<compile_context>
chip_gen: v7x
topology: tpu7x:2x2x1
jax: 0.10.0
libtpu: 0.0.40
codegen_flags: <defaults>
</compile_context>

<pallas_src>
import numpy as np
import jax
import jax.numpy as jnp
from jax.experimental import pallas as pl
from jax.experimental.pallas import tpu as pltpu


def identity_block_kernel(
    x_ref,                       # (1, T, H, W, Cp)  input block (f32)
    ws1_ref, bs1_ref,            # conv1 spatial: (9*Cp, Cp) bf16, (1, Cp) f32
    wt1_ref, bt1_ref,            # conv1 temporal (BN1 folded): (3*Cp, Cp) bf16, (1, Cp) f32
    ws2_ref, bs2_ref,            # conv2 spatial
    wt2_ref, bt2_ref,            # conv2 temporal (BN2 folded)
    o_ref,                       # (1, T, H, W, Cp)
    pbuf,                        # VMEM scratch (T, H+2, W+2, Cp) bf16 (spatial halo)
    tacc,                        # VMEM scratch (T*H*W, Cp) f32 (temporal accumulator)
):
    _, T, H, W, Cp = x_ref.shape
    HW = H * W
    THW = T * H * W
    # Group 3x3 taps so each MXU matmul has K >= 256 when Cp allows (fills the
    # 256-deep v6e/v7x MXU); at Cp >= 256 a single tap already does.
    TAPS_PER_DOT = 2 if Cp < 256 else 1

    # Zero ONLY the spatial halo (the interior is fully overwritten before any
    # read below).  This is done every grid step -- it is tiny compared to the
    # old full-buffer fill and stays correct if the parallel grid axis is
    # sharded across TensorCores (each core has its own, uninitialized scratch
    # and may never execute program_id == 0).
    pbuf[:, 0:1, :, :] = jnp.zeros((T, 1, W + 2, Cp), pbuf.dtype)
    pbuf[:, H + 1:H + 2, :, :] = jnp.zeros((T, 1, W + 2, Cp), pbuf.dtype)
    pbuf[:, 1:H + 1, 0:1, :] = jnp.zeros((T, H, 1, Cp), pbuf.dtype)
    pbuf[:, 1:H + 1, W + 1:W + 2, :] = jnp.zeros((T, H, 1, Cp), pbuf.dtype)

    def spatial_conv(w_ref, b_ref):
        # 3x3 "same" spatial conv as tap-chunked MXU matmuls, f32 accumulation.
        taps = [(dy, dx) for dy in range(3) for dx in range(3)]
        acc = None
        for t0 in range(0, 9, TAPS_PER_DOT):
            chunk = taps[t0:t0 + TAPS_PER_DOT]
            cols = [pbuf[0:T, dy:dy + H, dx:dx + W, :].reshape(THW, Cp)
                    for (dy, dx) in chunk]
            op = cols[0] if len(cols) == 1 else jnp.concatenate(cols, axis=-1)
            d = jnp.dot(op, w_ref[t0 * Cp:(t0 + len(chunk)) * Cp, :],
                        preferred_element_type=jnp.float32)
            acc = d if acc is None else acc + d
        return acc + b_ref[...]                                     # (THW, Cp) f32

    def temporal_conv(hflat, w_ref, b_ref):
        # "same" conv along T as three shifted row-range accumulating matmuls:
        # no zero-frame padding and no (THW, 3*Cp) operand materialization.
        hb = hflat.astype(jnp.bfloat16)                             # (THW, Cp)
        # Center tap + bias fully initializes the accumulator.
        tacc[...] = jnp.dot(hb, w_ref[Cp:2 * Cp, :],
                            preferred_element_type=jnp.float32) + b_ref[...]
        if T > 1:
            # tap dt=-1: input frames [0, T-1) -> output frames [1, T)
            tacc[HW:THW, :] += jnp.dot(hb[0:THW - HW, :], w_ref[0:Cp, :],
                                       preferred_element_type=jnp.float32)
            # tap dt=+1: input frames [1, T) -> output frames [0, T-1)
            tacc[0:THW - HW, :] += jnp.dot(hb[HW:THW, :], w_ref[2 * Cp:3 * Cp, :],
                                           preferred_element_type=jnp.float32)
        return tacc[...]

    # Conv2Plus1D #1 (+ folded BN1) -> ReLU
    pbuf[0:T, 1:H + 1, 1:W + 1, :] = x_ref[0].astype(pbuf.dtype)
    h = spatial_conv(ws1_ref, bs1_ref)
    h = jnp.maximum(temporal_conv(h, wt1_ref, bt1_ref), 0.0)

    # Conv2Plus1D #2 (+ folded BN2); Dropout is the identity in eval mode.
    pbuf[0:T, 1:H + 1, 1:W + 1, :] = h.reshape(T, H, W, Cp).astype(pbuf.dtype)
    h = spatial_conv(ws2_ref, bs2_ref)
    h = temporal_conv(h, wt2_ref, bt2_ref)

    # Residual add + ReLU (re-read x_ref here to keep its live range short).
    res = h.reshape(T, H, W, Cp) + x_ref[0].astype(jnp.float32)
    o_ref[0] = jnp.maximum(res, 0.0).astype(o_ref.dtype)


def _vmem_limit_bytes():
    # Generation-dependent scoped-VMEM limit: ~48 MiB on 64-MiB parts (v7x),
    # ~100 MiB on 128-MiB parts (v5e/v6e).
    try:
        cap = pltpu.get_tpu_info().vmem_capacity_bytes
    except Exception:
        cap = 64 * 1024 * 1024
    return int(max(32 * 1024 * 1024,
                   min(cap - 16 * 1024 * 1024, 100 * 1024 * 1024)))


def identity_block(x, p, *, eps=1e-5):
    """x: (N, T, H, W, C) NDHWC float32.  p: parameter dict (see make_params)."""
    N, T, H, W, C = x.shape
    Cp = -(-C // 128) * 128          # lane-dense channel padding

    def fold_bn_into_temporal(wt, bt, g, beta, mu, var):
        # BN(conv_t(x)) == conv_t[w * scale](x) + ((b - mu) * scale + beta)
        scale = (g / jnp.sqrt(var + eps)).reshape(-1)               # (C,)
        wt_f = wt * scale[None, None, :]                            # (3, C, C)
        bt_f = (bt.reshape(-1) - mu.reshape(-1)) * scale + beta.reshape(-1)
        return wt_f, bt_f.reshape(1, C)

    def pack_spatial(w):             # (3,3,C,C) -> (9*Cp, Cp) bf16, im2col row order
        wp = jnp.zeros((3, 3, Cp, Cp), jnp.float32).at[:, :, :C, :C].set(w)
        return wp.reshape(9 * Cp, Cp).astype(jnp.bfloat16)

    def pack_temporal(w):            # (3,C,C) -> (3*Cp, Cp) bf16
        wp = jnp.zeros((3, Cp, Cp), jnp.float32).at[:, :C, :C].set(w)
        return wp.reshape(3 * Cp, Cp).astype(jnp.bfloat16)

    def pack_bias(b):                # (1,C) -> (1,Cp) f32 (zero in padded lanes)
        return jnp.zeros((1, Cp), jnp.float32).at[:, :C].set(b.reshape(1, C))

    wt1_f, bt1_f = fold_bn_into_temporal(p["wt1"], p["bt1"],
                                         p["g1"], p["beta1"], p["mu1"], p["var1"])
    wt2_f, bt2_f = fold_bn_into_temporal(p["wt2"], p["bt2"],
                                         p["g2"], p["beta2"], p["mu2"], p["var2"])

    args = (
        pack_spatial(p["ws1"]), pack_bias(p["bs1"]),
        pack_temporal(wt1_f), pack_bias(bt1_f),
        pack_spatial(p["ws2"]), pack_bias(p["bs2"]),
        pack_temporal(wt2_f), pack_bias(bt2_f),
    )

    xp = x if Cp == C else jnp.pad(x, ((0, 0),) * 4 + ((0, Cp - C),))

    vol_spec = pl.BlockSpec((1, T, H, W, Cp), lambda n: (n, 0, 0, 0, 0))
    # Constant index_map -> weight blocks are fetched once; at production Cp
    # also single-buffer them (see TODO at top).
    ws_spec = pl.BlockSpec((9 * Cp, Cp), lambda n: (0, 0))
    wt_spec = pl.BlockSpec((3 * Cp, Cp), lambda n: (0, 0))
    b_spec = pl.BlockSpec((1, Cp), lambda n: (0, 0))

    out = pl.pallas_call(
        identity_block_kernel,
        out_shape=jax.ShapeDtypeStruct((N, T, H, W, Cp), x.dtype),
        grid_spec=pltpu.PrefetchScalarGridSpec(
            num_scalar_prefetch=0,
            grid=(N,),
            in_specs=[vol_spec,
                      ws_spec, b_spec, wt_spec, b_spec,
                      ws_spec, b_spec, wt_spec, b_spec],
            out_specs=vol_spec,
            scratch_shapes=[
                pltpu.VMEM((T, H + 2, W + 2, Cp), jnp.bfloat16),   # spatial-halo buffer
                pltpu.VMEM((T * H * W, Cp), jnp.float32),          # temporal accumulator
            ],
        ),
        compiler_params=pltpu.CompilerParams(
            dimension_semantics=("parallel",),
            vmem_limit_bytes=_vmem_limit_bytes(),
        ),
    )(xp, *args)

    return out if Cp == C else out[..., :C]


def reference_forward(x, p):
    """Pure-JAX reference (inference semantics, full f32), for validation."""
    eps = 1e-5

    def sconv(h, w, b):
        out = jax.lax.conv_general_dilated(
            h, w[None],                       # (1,3,3,C,C)
            window_strides=(1, 1, 1),
            padding=((0, 0), (1, 1), (1, 1)),
            dimension_numbers=("NDHWC", "DHWIO", "NDHWC"),
            precision=jax.lax.Precision.HIGHEST)
        return out + b

    def tconv(h, w, b):
        out = jax.lax.conv_general_dilated(
            h, w[:, None, None],              # (3,1,1,C,C)
            window_strides=(1, 1, 1),
            padding=((1, 1), (0, 0), (0, 0)),
            dimension_numbers=("NDHWC", "DHWIO", "NDHWC"),
            precision=jax.lax.Precision.HIGHEST)
        return out + b

    def bn(h, g, bt, mu, var):
        return (h - mu) * (g / jnp.sqrt(var + eps)) + bt

    h = sconv(x, p["ws1"], p["bs1"])
    h = tconv(h, p["wt1"], p["bt1"])
    h = bn(h, p["g1"], p["beta1"], p["mu1"], p["var1"])
    h = jnp.maximum(h, 0.0)
    h = sconv(h, p["ws2"], p["bs2"])
    h = tconv(h, p["wt2"], p["bt2"])
    h = bn(h, p["g2"], p["beta2"], p["mu2"], p["var2"])
    return jnp.maximum(h + x, 0.0)


def make_params(key, C):
    ks = jax.random.split(key, 16)

    def w_init(k, shape, fan_in):
        return jax.random.normal(k, shape, jnp.float32) / np.sqrt(fan_in)

    def bn_params(k):
        k1, k2, k3, k4 = jax.random.split(k, 4)
        return (1.0 + 0.1 * jax.random.normal(k1, (1, C), jnp.float32),   # gamma
                0.1 * jax.random.normal(k2, (1, C), jnp.float32),         # beta
                0.1 * jax.random.normal(k3, (1, C), jnp.float32),         # running mean
                jax.random.uniform(k4, (1, C), jnp.float32, 0.5, 1.5))    # running var

    g1, beta1, mu1, var1 = bn_params(ks[8])
    g2, beta2, mu2, var2 = bn_params(ks[9])
    return {
        # spatial conv weights in (kh, kw, C_in, C_out); PyTorch's Conv3d weight
        # (C_out, C_in, 1, kh, kw) maps via transpose(3, 4, 1, 0).
        "ws1": w_init(ks[0], (3, 3, C, C), 9 * C),
        "bs1": 0.1 * jax.random.normal(ks[1], (1, C), jnp.float32),
        # temporal conv weights in (kt, C_in, C_out).
        "wt1": w_init(ks[2], (3, C, C), 3 * C),
        "bt1": 0.1 * jax.random.normal(ks[3], (1, C), jnp.float32),
        "ws2": w_init(ks[4], (3, 3, C, C), 9 * C),
        "bs2": 0.1 * jax.random.normal(ks[5], (1, C), jnp.float32),
        "wt2": w_init(ks[6], (3, C, C), 3 * C),
        "bt2": 0.1 * jax.random.normal(ks[7], (1, C), jnp.float32),
        "g1": g1, "beta1": beta1, "mu1": mu1, "var1": var1,
        "g2": g2, "beta2": beta2, "mu2": mu2, "var2": var2,
    }


if __name__ == "__main__":
    # NOTE: tiny shapes for the correctness check only; perf conclusions need
    # realistic channel counts (C a multiple of 128).
    N, C, T, H, W = 2, 4, 4, 8, 8
    key = jax.random.PRNGKey(0)
    kx, kp = jax.random.split(key)
    x = jax.random.normal(kx, (N, T, H, W, C), jnp.float32)   # NDHWC
    params = make_params(kp, C)

    out = jax.block_until_ready(identity_block(x, params))
    ref = jax.block_until_ready(reference_forward(x, params))
    # Kernel uses bf16 MXU operands (f32 accumulation) while the reference is
    # full-f32 HIGHEST precision, so the tolerance is relaxed accordingly.
    np.testing.assert_allclose(np.asarray(out), np.asarray(ref),
                               atol=5e-2, rtol=5e-2)
    print("KERNEL_OK")
</pallas_src>

<mosaic_0001>
module attributes {stable_mosaic.version = 11 : i64} {
  func.func @identity_block_kernel(%arg0: i32, %arg1: memref<1x4x8x8x128xf32, #tpu.memory_space<vmem>>, %arg2: memref<1152x128xbf16, #tpu.memory_space<vmem>>, %arg3: memref<1x128xf32, #tpu.memory_space<vmem>>, %arg4: memref<384x128xbf16, #tpu.memory_space<vmem>>, %arg5: memref<1x128xf32, #tpu.memory_space<vmem>>, %arg6: memref<1152x128xbf16, #tpu.memory_space<vmem>>, %arg7: memref<1x128xf32, #tpu.memory_space<vmem>>, %arg8: memref<384x128xbf16, #tpu.memory_space<vmem>>, %arg9: memref<1x128xf32, #tpu.memory_space<vmem>>, %arg10: memref<1x4x8x8x128xf32, #tpu.memory_space<vmem>>, %arg11: memref<4x10x10x128xbf16, #tpu.memory_space<vmem>>, %arg12: memref<256x128xf32, #tpu.memory_space<vmem>>) attributes {dimension_semantics = [#tpu.dimension_semantics<parallel>], iteration_bounds = array<i64: 2>, scalar_prefetch = 0 : i64, scratch_operands = 2 : i64, tpu.core_type = #tpu.core_type<tc>, window_params = [{transform_indices = @transform_0, window_bounds = array<i64: 1, 4, 8, 8, 128>}, {pipeline_mode = #tpu.pipeline_mode<synchronous>, transform_indices = @transform_1, window_bounds = array<i64: 1152, 128>}, {pipeline_mode = #tpu.pipeline_mode<synchronous>, transform_indices = @transform_2, window_bounds = array<i64: 1, 128>}, {pipeline_mode = #tpu.pipeline_mode<synchronous>, transform_indices = @transform_3, window_bounds = array<i64: 384, 128>}, {pipeline_mode = #tpu.pipeline_mode<synchronous>, transform_indices = @transform_4, window_bounds = array<i64: 1, 128>}, {pipeline_mode = #tpu.pipeline_mode<synchronous>, transform_indices = @transform_5, window_bounds = array<i64: 1152, 128>}, {pipeline_mode = #tpu.pipeline_mode<synchronous>, transform_indices = @transform_6, window_bounds = array<i64: 1, 128>}, {pipeline_mode = #tpu.pipeline_mode<synchronous>, transform_indices = @transform_7, window_bounds = array<i64: 384, 128>}, {pipeline_mode = #tpu.pipeline_mode<synchronous>, transform_indices = @transform_8, window_bounds = array<i64: 1, 128>}, {transform_indices = @transform_9, window_bounds = array<i64: 1, 4, 8, 8, 128>}]} {
    %cst = arith.constant 0.000000e+00 : bf16
    %0 = vector.broadcast %cst : bf16 to vector<4x1x10x128xbf16>
    %c0 = arith.constant 0 : index
    %c0_0 = arith.constant 0 : index
    %c0_1 = arith.constant 0 : index
    %c0_2 = arith.constant 0 : index
    %1 = vector.load %arg11[%c0, %c0_0, %c0_1, %c0_2] : memref<4x10x10x128xbf16, #tpu.memory_space<vmem>>, vector<4x1x10x128xbf16>
    tpu.vector_store %arg11[%c0, %c0_0, %c0_1, %c0_2], %0 {strides = array<i32>} : memref<4x10x10x128xbf16, #tpu.memory_space<vmem>>, vector<4x1x10x128xbf16>,
    %cst_3 = arith.constant 0.000000e+00 : bf16
    %2 = vector.broadcast %cst_3 : bf16 to vector<4x1x10x128xbf16>
    %c0_4 = arith.constant 0 : index
    %c9 = arith.constant 9 : index
    %c0_5 = arith.constant 0 : index
    %c0_6 = arith.constant 0 : index
    %3 = vector.load %arg11[%c0_4, %c9, %c0_5, %c0_6] : memref<4x10x10x128xbf16, #tpu.memory_space<vmem>>, vector<4x1x10x128xbf16>
    tpu.vector_store %arg11[%c0_4, %c9, %c0_5, %c0_6], %2 {strides = array<i32>} : memref<4x10x10x128xbf16, #tpu.memory_space<vmem>>, vector<4x1x10x128xbf16>,
    %cst_7 = arith.constant 0.000000e+00 : bf16
    %4 = vector.broadcast %cst_7 : bf16 to vector<4x8x1x128xbf16>
    %c0_8 = arith.constant 0 : index
    %c1 = arith.constant 1 : index
    %c0_9 = arith.constant 0 : index
    %c0_10 = arith.constant 0 : index
    %5 = vector.load %arg11[%c0_8, %c1, %c0_9, %c0_10] : memref<4x10x10x128xbf16, #tpu.memory_space<vmem>>, vector<4x8x1x128xbf16>
    tpu.vector_store %arg11[%c0_8, %c1, %c0_9, %c0_10], %4 {strides = array<i32>} : memref<4x10x10x128xbf16, #tpu.memory_space<vmem>>, vector<4x8x1x128xbf16>,
    %cst_11 = arith.constant 0.000000e+00 : bf16
    %6 = vector.broadcast %cst_11 : bf16 to vector<4x8x1x128xbf16>
    %c0_12 = arith.constant 0 : index
    %c1_13 = arith.constant 1 : index
    %c9_14 = arith.constant 9 : index
    %c0_15 = arith.constant 0 : index
    %7 = vector.load %arg11[%c0_12, %c1_13, %c9_14, %c0_15] : memref<4x10x10x128xbf16, #tpu.memory_space<vmem>>, vector<4x8x1x128xbf16>
    tpu.vector_store %arg11[%c0_12, %c1_13, %c9_14, %c0_15], %6 {strides = array<i32>} : memref<4x10x10x128xbf16, #tpu.memory_space<vmem>>, vector<4x8x1x128xbf16>,
    %c0_16 = arith.constant 0 : index
    %c0_17 = arith.constant 0 : index
    %c0_18 = arith.constant 0 : index
    %c0_19 = arith.constant 0 : index
    %c0_20 = arith.constant 0 : index
    %8 = vector.load %arg1[%c0_16, %c0_17, %c0_18, %c0_19, %c0_20] : memref<1x4x8x8x128xf32, #tpu.memory_space<vmem>>, vector<1x4x8x8x128xf32>
    %9 = vector.shape_cast %8 : vector<1x4x8x8x128xf32> to vector<4x8x8x128xf32>
    %10 = arith.truncf %9 : vector<4x8x8x128xf32> to vector<4x8x8x128xbf16>
    %c0_21 = arith.constant 0 : index
    %c1_22 = arith.constant 1 : index
    %c1_23 = arith.constant 1 : index
    %c0_24 = arith.constant 0 : index
    %11 = vector.load %arg11[%c0_21, %c1_22, %c1_23, %c0_24] : memref<4x10x10x128xbf16, #tpu.memory_space<vmem>>, vector<4x8x8x128xbf16>
    tpu.vector_store %arg11[%c0_21, %c1_22, %c1_23, %c0_24], %10 {strides = array<i32>} : memref<4x10x10x128xbf16, #tpu.memory_space<vmem>>, vector<4x8x8x128xbf16>,
    %c0_25 = arith.constant 0 : index
    %c0_26 = arith.constant 0 : index
    %c0_27 = arith.constant 0 : index
    %c0_28 = arith.constant 0 : index
    %12 = vector.load %arg11[%c0_25, %c0_26, %c0_27, %c0_28] : memref<4x10x10x128xbf16, #tpu.memory_space<vmem>>, vector<4x8x8x128xbf16>
    %13 = vector.shape_cast %12 : vector<4x8x8x128xbf16> to vector<256x128xbf16>
    %c0_29 = arith.constant 0 : index
    %c0_30 = arith.constant 0 : index
    %c1_31 = arith.constant 1 : index
    %c0_32 = arith.constant 0 : index
    %14 = vector.load %arg11[%c0_29, %c0_30, %c1_31, %c0_32] : memref<4x10x10x128xbf16, #tpu.memory_space<vmem>>, vector<4x8x8x128xbf16>
    %15 = vector.shape_cast %14 : vector<4x8x8x128xbf16> to vector<256x128xbf16>
    %16 = tpu.concatenate %13, %15 in 1 : vector<256x128xbf16>, vector<256x128xbf16> -> vector<256x256xbf16>
    %c0_33 = arith.constant 0 : index
    %c0_34 = arith.constant 0 : index
    %17 = vector.load %arg2[%c0_33, %c0_34] : memref<1152x128xbf16, #tpu.memory_space<vmem>>, vector<256x128xbf16>
    %cst_35 = arith.constant dense<0.000000e+00> : vector<256x128xf32>
    %18 = tpu.matmul %16, %17, %cst_35 {dimension_numbers = #tpu.dot_dimension_numbers<[1], [0], [0], [1], [0, 0, 1, 1], [], []>} : vector<256x256xbf16>, vector<256x128xbf16>, vector<256x128xf32> -> vector<256x128xf32>
    %c0_36 = arith.constant 0 : index
    %c0_37 = arith.constant 0 : index
    %c2 = arith.constant 2 : index
    %c0_38 = arith.constant 0 : index
    %19 = vector.load %arg11[%c0_36, %c0_37, %c2, %c0_38] : memref<4x10x10x128xbf16, #tpu.memory_space<vmem>>, vector<4x8x8x128xbf16>
    %20 = vector.shape_cast %19 : vector<4x8x8x128xbf16> to vector<256x128xbf16>
    %c0_39 = arith.constant 0 : index
    %c1_40 = arith.constant 1 : index
    %c0_41 = arith.constant 0 : index
    %c0_42 = arith.constant 0 : index
    %21 = vector.load %arg11[%c0_39, %c1_40, %c0_41, %c0_42] : memref<4x10x10x128xbf16, #tpu.memory_space<vmem>>, vector<4x8x8x128xbf16>
    %22 = vector.shape_cast %21 : vector<4x8x8x128xbf16> to vector<256x128xbf16>
    %23 = tpu.concatenate %20, %22 in 1 : vector<256x128xbf16>, vector<256x128xbf16> -> vector<256x256xbf16>
    %c256 = arith.constant 256 : index
    %c0_43 = arith.constant 0 : index
    %24 = vector.load %arg2[%c256, %c0_43] : memref<1152x128xbf16, #tpu.memory_space<vmem>>, vector<256x128xbf16>
    %cst_44 = arith.constant dense<0.000000e+00> : vector<256x128xf32>
    %25 = tpu.matmul %23, %24, %cst_44 {dimension_numbers = #tpu.dot_dimension_numbers<[1], [0], [0], [1], [0, 0, 1, 1], [], []>} : vector<256x256xbf16>, vector<256x128xbf16>, vector<256x128xf32> -> vector<256x128xf32>
    %26 = arith.addf %18, %25 : vector<256x128xf32>
    %c0_45 = arith.constant 0 : index
    %c1_46 = arith.constant 1 : index
    %c1_47 = arith.constant 1 : index
    %c0_48 = arith.constant 0 : index
    %27 = vector.load %arg11[%c0_45, %c1_46, %c1_47, %c0_48] : memref<4x10x10x128xbf16, #tpu.memory_space<vmem>>, vector<4x8x8x128xbf16>
    %28 = vector.shape_cast %27 : vector<4x8x8x128xbf16> to vector<256x128xbf16>
    %c0_49 = arith.constant 0 : index
    %c1_50 = arith.constant 1 : index
    %c2_51 = arith.constant 2 : index
    %c0_52 = arith.constant 0 : index
    %29 = vector.load %arg11[%c0_49, %c1_50, %c2_51, %c0_52] : memref<4x10x10x128xbf16, #tpu.memory_space<vmem>>, vector<4x8x8x128xbf16>
    %30 = vector.shape_cast %29 : vector<4x8x8x128xbf16> to vector<256x128xbf16>
    %31 = tpu.concatenate %28, %30 in 1 : vector<256x128xbf16>, vector<256x128xbf16> -> vector<256x256xbf16>
    %c512 = arith.constant 512 : index
    %c0_53 = arith.constant 0 : index
    %32 = vector.load %arg2[%c512, %c0_53] : memref<1152x128xbf16, #tpu.memory_space<vmem>>, vector<256x128xbf16>
    %cst_54 = arith.constant dense<0.000000e+00> : vector<256x128xf32>
    %33 = tpu.matmul %31, %32, %cst_54 {dimension_numbers = #tpu.dot_dimension_numbers<[1], [0], [0], [1], [0, 0, 1, 1], [], []>} : vector<256x256xbf16>, vector<256x128xbf16>, vector<256x128xf32> -> vector<256x128xf32>
    %34 = arith.addf %26, %33 : vector<256x128xf32>
    %c0_55 = arith.constant 0 : index
    %c2_56 = arith.constant 2 : index
    %c0_57 = arith.constant 0 : index
    %c0_58 = arith.constant 0 : index
    %35 = vector.load %arg11[%c0_55, %c2_56, %c0_57, %c0_58] : memref<4x10x10x128xbf16, #tpu.memory_space<vmem>>, vector<4x8x8x128xbf16>
    %36 = vector.shape_cast %35 : vector<4x8x8x128xbf16> to vector<256x128xbf16>
    %c0_59 = arith.constant 0 : index
    %c2_60 = arith.constant 2 : index
    %c1_61 = arith.constant 1 : index
    %c0_62 = arith.constant 0 : index
    %37 = vector.load %arg11[%c0_59, %c2_60, %c1_61, %c0_62] : memref<4x10x10x128xbf16, #tpu.memory_space<vmem>>, vector<4x8x8x128xbf16>
    %38 = vector.shape_cast %37 : vector<4x8x8x128xbf16> to vector<256x128xbf16>
    %39 = tpu.concatenate %36, %38 in 1 : vector<256x128xbf16>, vector<256x128xbf16> -> vector<256x256xbf16>
    %c768 = arith.constant 768 : index
    %c0_63 = arith.constant 0 : index
    %40 = vector.load %arg2[%c768, %c0_63] : memref<1152x128xbf16, #tpu.memory_space<vmem>>, vector<256x128xbf16>
    %cst_64 = arith.constant dense<0.000000e+00> : vector<256x128xf32>
    %41 = tpu.matmul %39, %40, %cst_64 {dimension_numbers = #tpu.dot_dimension_numbers<[1], [0], [0], [1], [0, 0, 1, 1], [], []>} : vector<256x256xbf16>, vector<256x128xbf16>, vector<256x128xf32> -> vector<256x128xf32>
    %42 = arith.addf %34, %41 : vector<256x128xf32>
    %c0_65 = arith.constant 0 : index
    %c2_66 = arith.constant 2 : index
    %c2_67 = arith.constant 2 : index
    %c0_68 = arith.constant 0 : index
    %43 = vector.load %arg11[%c0_65, %c2_66, %c2_67, %c0_68] : memref<4x10x10x128xbf16, #tpu.memory_space<vmem>>, vector<4x8x8x128xbf16>
    %44 = vector.shape_cast %43 : vector<4x8x8x128xbf16> to vector<256x128xbf16>
    %c1024 = arith.constant 1024 : index
    %c0_69 = arith.constant 0 : index
    %45 = vector.load %arg2[%c1024, %c0_69] : memref<1152x128xbf16, #tpu.memory_space<vmem>>, vector<128x128xbf16>
    %cst_70 = arith.constant dense<0.000000e+00> : vector<256x128xf32>
    %46 = tpu.matmul %44, %45, %cst_70 {dimension_numbers = #tpu.dot_dimension_numbers<[1], [0], [0], [1], [0, 0, 1, 1], [], []>} : vector<256x128xbf16>, vector<128x128xbf16>, vector<256x128xf32> -> vector<256x128xf32>
    %47 = arith.addf %42, %46 : vector<256x128xf32>
    %c0_71 = arith.constant 0 : index
    %c0_72 = arith.constant 0 : index
    %48 = vector.load %arg3[%c0_71, %c0_72] : memref<1x128xf32, #tpu.memory_space<vmem>>, vector<1x128xf32>
    %49 = vector.broadcast %48 : vector<1x128xf32> to vector<256x128xf32>
    %50 = arith.addf %47, %49 : vector<256x128xf32>
    %51 = arith.truncf %50 : vector<256x128xf32> to vector<256x128xbf16>
    %c128 = arith.constant 128 : index
    %c0_73 = arith.constant 0 : index
    %52 = vector.load %arg4[%c128, %c0_73] : memref<384x128xbf16, #tpu.memory_space<vmem>>, vector<128x128xbf16>
    %cst_74 = arith.constant dense<0.000000e+00> : vector<256x128xf32>
    %53 = tpu.matmul %51, %52, %cst_74 {dimension_numbers = #tpu.dot_dimension_numbers<[1], [0], [0], [1], [0, 0, 1, 1], [], []>} : vector<256x128xbf16>, vector<128x128xbf16>, vector<256x128xf32> -> vector<256x128xf32>
    %c0_75 = arith.constant 0 : index
    %c0_76 = arith.constant 0 : index
    %54 = vector.load %arg5[%c0_75, %c0_76] : memref<1x128xf32, #tpu.memory_space<vmem>>, vector<1x128xf32>
    %55 = vector.broadcast %54 : vector<1x128xf32> to vector<256x128xf32>
    %56 = arith.addf %53, %55 : vector<256x128xf32>
    %c0_77 = arith.constant 0 : index
    %c0_78 = arith.constant 0 : index
    %57 = vector.load %arg12[%c0_77, %c0_78] : memref<256x128xf32, #tpu.memory_space<vmem>>, vector<256x128xf32>
    tpu.vector_store %arg12[%c0_77, %c0_78], %56 {strides = array<i32>} : memref<256x128xf32, #tpu.memory_space<vmem>>, vector<256x128xf32>,
    %c64 = arith.constant 64 : index
    %c0_79 = arith.constant 0 : index
    %58 = vector.load %arg12[%c64, %c0_79] : memref<256x128xf32, #tpu.memory_space<vmem>>, vector<192x128xf32>
    %59 = vector.extract_strided_slice %51 {offsets = [0, 0], sizes = [192, 128], strides = [1, 1]} : vector<256x128xbf16> to vector<192x128xbf16>
    %c0_80 = arith.constant 0 : index
    %c0_81 = arith.constant 0 : index
    %60 = vector.load %arg4[%c0_80, %c0_81] : memref<384x128xbf16, #tpu.memory_space<vmem>>, vector<128x128xbf16>
    %cst_82 = arith.constant dense<0.000000e+00> : vector<192x128xf32>
    %61 = tpu.matmul %59, %60, %cst_82 {dimension_numbers = #tpu.dot_dimension_numbers<[1], [0], [0], [1], [0, 0, 1, 1], [], []>} : vector<192x128xbf16>, vector<128x128xbf16>, vector<192x128xf32> -> vector<192x128xf32>
    %62 = arith.addf %58, %61 : vector<192x128xf32>
    %c64_83 = arith.constant 64 : index
    %c0_84 = arith.constant 0 : index
    %63 = vector.load %arg12[%c64_83, %c0_84] : memref<256x128xf32, #tpu.memory_space<vmem>>, vector<192x128xf32>
    tpu.vector_store %arg12[%c64_83, %c0_84], %62 {strides = array<i32>} : memref<256x128xf32, #tpu.memory_space<vmem>>, vector<192x128xf32>,
    %c0_85 = arith.constant 0 : index
    %c0_86 = arith.constant 0 : index
    %64 = vector.load %arg12[%c0_85, %c0_86] : memref<256x128xf32, #tpu.memory_space<vmem>>, vector<192x128xf32>
    %65 = vector.extract_strided_slice %51 {offsets = [64, 0], sizes = [192, 128], strides = [1, 1]} : vector<256x128xbf16> to vector<192x128xbf16>
    %c256_87 = arith.constant 256 : index
    %c0_88 = arith.constant 0 : index
    %66 = vector.load %arg4[%c256_87, %c0_88] : memref<384x128xbf16, #tpu.memory_space<vmem>>, vector<128x128xbf16>
    %cst_89 = arith.constant dense<0.000000e+00> : vector<192x128xf32>
    %67 = tpu.matmul %65, %66, %cst_89 {dimension_numbers = #tpu.dot_dimension_numbers<[1], [0], [0], [1], [0, 0, 1, 1], [], []>} : vector<192x128xbf16>, vector<128x128xbf16>, vector<192x128xf32> -> vector<192x128xf32>
    %68 = arith.addf %64, %67 : vector<192x128xf32>
    %c0_90 = arith.constant 0 : index
    %c0_91 = arith.constant 0 : index
    %69 = vector.load %arg12[%c0_90, %c0_91] : memref<256x128xf32, #tpu.memory_space<vmem>>, vector<192x128xf32>
    tpu.vector_store %arg12[%c0_90, %c0_91], %68 {strides = array<i32>} : memref<256x128xf32, #tpu.memory_space<vmem>>, vector<192x128xf32>,
    %c0_92 = arith.constant 0 : index
    %c0_93 = arith.constant 0 : index
    %70 = vector.load %arg12[%c0_92, %c0_93] : memref<256x128xf32, #tpu.memory_space<vmem>>, vector<256x128xf32>
    %cst_94 = arith.constant 0.000000e+00 : f32
    %71 = vector.broadcast %cst_94 : f32 to vector<256x128xf32>
    %72 = arith.maximumf %70, %71 : vector<256x128xf32>
    %73 = vector.shape_cast %72 : vector<256x128xf32> to vector<4x8x8x128xf32>
    %74 = arith.truncf %73 : vector<4x8x8x128xf32> to vector<4x8x8x128xbf16>
    %c0_95 = arith.constant 0 : index
    %c1_96 = arith.constant 1 : index
    %c1_97 = arith.constant 1 : index
    %c0_98 = arith.constant 0 : index
    %75 = vector.load %arg11[%c0_95, %c1_96, %c1_97, %c0_98] : memref<4x10x10x128xbf16, #tpu.memory_space<vmem>>, vector<4x8x8x128xbf16>
    tpu.vector_store %arg11[%c0_95, %c1_96, %c1_97, %c0_98], %74 {strides = array<i32>} : memref<4x10x10x128xbf16, #tpu.memory_space<vmem>>, vector<4x8x8x128xbf16>,
    %c0_99 = arith.constant 0 : index
    %c0_100 = arith.constant 0 : index
    %c0_101 = arith.constant 0 : index
    %c0_102 = arith.constant 0 : index
    %76 = vector.load %arg11[%c0_99, %c0_100, %c0_101, %c0_102] : memref<4x10x10x128xbf16, #tpu.memory_space<vmem>>, vector<4x8x8x128xbf16>
    %77 = vector.shape_cast %76 : vector<4x8x8x128xbf16> to vector<256x128xbf16>
    %c0_103 = arith.constant 0 : index
    %c0_104 = arith.constant 0 : index
    %c1_105 = arith.constant 1 : index
    %c0_106 = arith.constant 0 : index
    %78 = vector.load %arg11[%c0_103, %c0_104, %c1_105, %c0_106] : memref<4x10x10x128xbf16, #tpu.memory_space<vmem>>, vector<4x8x8x128xbf16>
    %79 = vector.shape_cast %78 : vector<4x8x8x128xbf16> to vector<256x128xbf16>
    %80 = tpu.concatenate %77, %79 in 1 : vector<256x128xbf16>, vector<256x128xbf16> -> vector<256x256xbf16>
    %c0_107 = arith.constant 0 : index
    %c0_108 = arith.constant 0 : index
    %81 = vector.load %arg6[%c0_107, %c0_108] : memref<1152x128xbf16, #tpu.memory_space<vmem>>, vector<256x128xbf16>
    %cst_109 = arith.constant dense<0.000000e+00> : vector<256x128xf32>
    %82 = tpu.matmul %80, %81, %cst_109 {dimension_numbers = #tpu.dot_dimension_numbers<[1], [0], [0], [1], [0, 0, 1, 1], [], []>} : vector<256x256xbf16>, vector<256x128xbf16>, vector<256x128xf32> -> vector<256x128xf32>
    %c0_110 = arith.constant 0 : index
    %c0_111 = arith.constant 0 : index
    %c2_112 = arith.constant 2 : index
    %c0_113 = arith.constant 0 : index
    %83 = vector.load %arg11[%c0_110, %c0_111, %c2_112, %c0_113] : memref<4x10x10x128xbf16, #tpu.memory_space<vmem>>, vector<4x8x8x128xbf16>
    %84 = vector.shape_cast %83 : vector<4x8x8x128xbf16> to vector<256x128xbf16>
    %c0_114 = arith.constant 0 : index
    %c1_115 = arith.constant 1 : index
    %c0_116 = arith.constant 0 : index
    %c0_117 = arith.constant 0 : index
    %85 = vector.load %arg11[%c0_114, %c1_115, %c0_116, %c0_117] : memref<4x10x10x128xbf16, #tpu.memory_space<vmem>>, vector<4x8x8x128xbf16>
    %86 = vector.shape_cast %85 : vector<4x8x8x128xbf16> to vector<256x128xbf16>
    %87 = tpu.concatenate %84, %86 in 1 : vector<256x128xbf16>, vector<256x128xbf16> -> vector<256x256xbf16>
    %c256_118 = arith.constant 256 : index
    %c0_119 = arith.constant 0 : index
    %88 = vector.load %arg6[%c256_118, %c0_119] : memref<1152x128xbf16, #tpu.memory_space<vmem>>, vector<256x128xbf16>
    %cst_120 = arith.constant dense<0.000000e+00> : vector<256x128xf32>
    %89 = tpu.matmul %87, %88, %cst_120 {dimension_numbers = #tpu.dot_dimension_numbers<[1], [0], [0], [1], [0, 0, 1, 1], [], []>} : vector<256x256xbf16>, vector<256x128xbf16>, vector<256x128xf32> -> vector<256x128xf32>
    %90 = arith.addf %82, %89 : vector<256x128xf32>
    %c0_121 = arith.constant 0 : index
    %c1_122 = arith.constant 1 : index
    %c1_123 = arith.constant 1 : index
    %c0_124 = arith.constant 0 : index
    %91 = vector.load %arg11[%c0_121, %c1_122, %c1_123, %c0_124] : memref<4x10x10x128xbf16, #tpu.memory_space<vmem>>, vector<4x8x8x128xbf16>
    %92 = vector.shape_cast %91 : vector<4x8x8x128xbf16> to vector<256x128xbf16>
    %c0_125 = arith.constant 0 : index
    %c1_126 = arith.constant 1 : index
    %c2_127 = arith.constant 2 : index
    %c0_128 = arith.constant 0 : index
    %93 = vector.load %arg11[%c0_125, %c1_126, %c2_127, %c0_128] : memref<4x10x10x128xbf16, #tpu.memory_space<vmem>>, vector<4x8x8x128xbf16>
    %94 = vector.shape_cast %93 : vector<4x8x8x128xbf16> to vector<256x128xbf16>
    %95 = tpu.concatenate %92, %94 in 1 : vector<256x128xbf16>, vector<256x128xbf16> -> vector<256x256xbf16>
    %c512_129 = arith.constant 512 : index
    %c0_130 = arith.constant 0 : index
    %96 = vector.load %arg6[%c512_129, %c0_130] : memref<1152x128xbf16, #tpu.memory_space<vmem>>, vector<256x128xbf16>
    %cst_131 = arith.constant dense<0.000000e+00> : vector<256x128xf32>
    %97 = tpu.matmul %95, %96, %cst_131 {dimension_numbers = #tpu.dot_dimension_numbers<[1], [0], [0], [1], [0, 0, 1, 1], [], []>} : vector<256x256xbf16>, vector<256x128xbf16>, vector<256x128xf32> -> vector<256x128xf32>
    %98 = arith.addf %90, %97 : vector<256x128xf32>
    %c0_132 = arith.constant 0 : index
    %c2_133 = arith.constant 2 : index
    %c0_134 = arith.constant 0 : index
    %c0_135 = arith.constant 0 : index
    %99 = vector.load %arg11[%c0_132, %c2_133, %c0_134, %c0_135] : memref<4x10x10x128xbf16, #tpu.memory_space<vmem>>, vector<4x8x8x128xbf16>
    %100 = vector.shape_cast %99 : vector<4x8x8x128xbf16> to vector<256x128xbf16>
    %c0_136 = arith.constant 0 : index
    %c2_137 = arith.constant 2 : index
    %c1_138 = arith.constant 1 : index
    %c0_139 = arith.constant 0 : index
    %101 = vector.load %arg11[%c0_136, %c2_137, %c1_138, %c0_139] : memref<4x10x10x128xbf16, #tpu.memory_space<vmem>>, vector<4x8x8x128xbf16>
    %102 = vector.shape_cast %101 : vector<4x8x8x128xbf16> to vector<256x128xbf16>
    %103 = tpu.concatenate %100, %102 in 1 : vector<256x128xbf16>, vector<256x128xbf16> -> vector<256x256xbf16>
    %c768_140 = arith.constant 768 : index
    %c0_141 = arith.constant 0 : index
    %104 = vector.load %arg6[%c768_140, %c0_141] : memref<1152x128xbf16, #tpu.memory_space<vmem>>, vector<256x128xbf16>
    %cst_142 = arith.constant dense<0.000000e+00> : vector<256x128xf32>
    %105 = tpu.matmul %103, %104, %cst_142 {dimension_numbers = #tpu.dot_dimension_numbers<[1], [0], [0], [1], [0, 0, 1, 1], [], []>} : vector<256x256xbf16>, vector<256x128xbf16>, vector<256x128xf32> -> vector<256x128xf32>
    %106 = arith.addf %98, %105 : vector<256x128xf32>
    %c0_143 = arith.constant 0 : index
    %c2_144 = arith.constant 2 : index
    %c2_145 = arith.constant 2 : index
    %c0_146 = arith.constant 0 : index
    %107 = vector.load %arg11[%c0_143, %c2_144, %c2_145, %c0_146] : memref<4x10x10x128xbf16, #tpu.memory_space<vmem>>, vector<4x8x8x128xbf16>
    %108 = vector.shape_cast %107 : vector<4x8x8x128xbf16> to vector<256x128xbf16>
    %c1024_147 = arith.constant 1024 : index
    %c0_148 = arith.constant 0 : index
    %109 = vector.load %arg6[%c1024_147, %c0_148] : memref<1152x128xbf16, #tpu.memory_space<vmem>>, vector<128x128xbf16>
    %cst_149 = arith.constant dense<0.000000e+00> : vector<256x128xf32>
    %110 = tpu.matmul %108, %109, %cst_149 {dimension_numbers = #tpu.dot_dimension_numbers<[1], [0], [0], [1], [0, 0, 1, 1], [], []>} : vector<256x128xbf16>, vector<128x128xbf16>, vector<256x128xf32> -> vector<256x128xf32>
    %111 = arith.addf %106, %110 : vector<256x128xf32>
    %c0_150 = arith.constant 0 : index
    %c0_151 = arith.constant 0 : index
    %112 = vector.load %arg7[%c0_150, %c0_151] : memref<1x128xf32, #tpu.memory_space<vmem>>, vector<1x128xf32>
    %113 = vector.broadcast %112 : vector<1x128xf32> to vector<256x128xf32>
    %114 = arith.addf %111, %113 : vector<256x128xf32>
    %115 = arith.truncf %114 : vector<256x128xf32> to vector<256x128xbf16>
    %c128_152 = arith.constant 128 : index
    %c0_153 = arith.constant 0 : index
    %116 = vector.load %arg8[%c128_152, %c0_153] : memref<384x128xbf16, #tpu.memory_space<vmem>>, vector<128x128xbf16>
    %cst_154 = arith.constant dense<0.000000e+00> : vector<256x128xf32>
    %117 = tpu.matmul %115, %116, %cst_154 {dimension_numbers = #tpu.dot_dimension_numbers<[1], [0], [0], [1], [0, 0, 1, 1], [], []>} : vector<256x128xbf16>, vector<128x128xbf16>, vector<256x128xf32> -> vector<256x128xf32>
    %c0_155 = arith.constant 0 : index
    %c0_156 = arith.constant 0 : index
    %118 = vector.load %arg9[%c0_155, %c0_156] : memref<1x128xf32, #tpu.memory_space<vmem>>, vector<1x128xf32>
    %119 = vector.broadcast %118 : vector<1x128xf32> to vector<256x128xf32>
    %120 = arith.addf %117, %119 : vector<256x128xf32>
    %c0_157 = arith.constant 0 : index
    %c0_158 = arith.constant 0 : index
    %121 = vector.load %arg12[%c0_157, %c0_158] : memref<256x128xf32, #tpu.memory_space<vmem>>, vector<256x128xf32>
    tpu.vector_store %arg12[%c0_157, %c0_158], %120 {strides = array<i32>} : memref<256x128xf32, #tpu.memory_space<vmem>>, vector<256x128xf32>,
    %c64_159 = arith.constant 64 : index
    %c0_160 = arith.constant 0 : index
    %122 = vector.load %arg12[%c64_159, %c0_160] : memref<256x128xf32, #tpu.memory_space<vmem>>, vector<192x128xf32>
    %123 = vector.extract_strided_slice %115 {offsets = [0, 0], sizes = [192, 128], strides = [1, 1]} : vector<256x128xbf16> to vector<192x128xbf16>
    %c0_161 = arith.constant 0 : index
    %c0_162 = arith.constant 0 : index
    %124 = vector.load %arg8[%c0_161, %c0_162] : memref<384x128xbf16, #tpu.memory_space<vmem>>, vector<128x128xbf16>
    %cst_163 = arith.constant dense<0.000000e+00> : vector<192x128xf32>
    %125 = tpu.matmul %123, %124, %cst_163 {dimension_numbers = #tpu.dot_dimension_numbers<[1], [0], [0], [1], [0, 0, 1, 1], [], []>} : vector<192x128xbf16>, vector<128x128xbf16>, vector<192x128xf32> -> vector<192x128xf32>
    %126 = arith.addf %122, %125 : vector<192x128xf32>
    %c64_164 = arith.constant 64 : index
    %c0_165 = arith.constant 0 : index
    %127 = vector.load %arg12[%c64_164, %c0_165] : memref<256x128xf32, #tpu.memory_space<vmem>>, vector<192x128xf32>
    tpu.vector_store %arg12[%c64_164, %c0_165], %126 {strides = array<i32>} : memref<256x128xf32, #tpu.memory_space<vmem>>, vector<192x128xf32>,
    %c0_166 = arith.constant 0 : index
    %c0_167 = arith.constant 0 : index
    %128 = vector.load %arg12[%c0_166, %c0_167] : memref<256x128xf32, #tpu.memory_space<vmem>>, vector<192x128xf32>
    %129 = vector.extract_strided_slice %115 {offsets = [64, 0], sizes = [192, 128], strides = [1, 1]} : vector<256x128xbf16> to vector<192x128xbf16>
    %c256_168 = arith.constant 256 : index
    %c0_169 = arith.constant 0 : index
    %130 = vector.load %arg8[%c256_168, %c0_169] : memref<384x128xbf16, #tpu.memory_space<vmem>>, vector<128x128xbf16>
    %cst_170 = arith.constant dense<0.000000e+00> : vector<192x128xf32>
    %131 = tpu.matmul %129, %130, %cst_170 {dimension_numbers = #tpu.dot_dimension_numbers<[1], [0], [0], [1], [0, 0, 1, 1], [], []>} : vector<192x128xbf16>, vector<128x128xbf16>, vector<192x128xf32> -> vector<192x128xf32>
    %132 = arith.addf %128, %131 : vector<192x128xf32>
    %c0_171 = arith.constant 0 : index
    %c0_172 = arith.constant 0 : index
    %133 = vector.load %arg12[%c0_171, %c0_172] : memref<256x128xf32, #tpu.memory_space<vmem>>, vector<192x128xf32>
    tpu.vector_store %arg12[%c0_171, %c0_172], %132 {strides = array<i32>} : memref<256x128xf32, #tpu.memory_space<vmem>>, vector<192x128xf32>,
    %c0_173 = arith.constant 0 : index
    %c0_174 = arith.constant 0 : index
    %134 = vector.load %arg12[%c0_173, %c0_174] : memref<256x128xf32, #tpu.memory_space<vmem>>, vector<256x128xf32>
    %135 = vector.shape_cast %134 : vector<256x128xf32> to vector<4x8x8x128xf32>
    %c0_175 = arith.constant 0 : index
    %c0_176 = arith.constant 0 : index
    %c0_177 = arith.constant 0 : index
    %c0_178 = arith.constant 0 : index
    %c0_179 = arith.constant 0 : index
    %136 = vector.load %arg1[%c0_175, %c0_176, %c0_177, %c0_178, %c0_179] : memref<1x4x8x8x128xf32, #tpu.memory_space<vmem>>, vector<1x4x8x8x128xf32>
    %137 = vector.shape_cast %136 : vector<1x4x8x8x128xf32> to vector<4x8x8x128xf32>
    %138 = arith.addf %135, %137 : vector<4x8x8x128xf32>
    %cst_180 = arith.constant 0.000000e+00 : f32
    %139 = vector.broadcast %cst_180 : f32 to vector<4x8x8x128xf32>
    %140 = arith.maximumf %138, %139 : vector<4x8x8x128xf32>
    %c0_181 = arith.constant 0 : index
    %c0_182 = arith.constant 0 : index
    %c0_183 = arith.constant 0 : index
    %c0_184 = arith.constant 0 : index
    %c0_185 = arith.constant 0 : index
    %141 = vector.load %arg10[%c0_181, %c0_182, %c0_183, %c0_184, %c0_185] : memref<1x4x8x8x128xf32, #tpu.memory_space<vmem>>, vector<1x4x8x8x128xf32>
    %142 = vector.shape_cast %141 : vector<1x4x8x8x128xf32> to vector<4x8x8x128xf32>
    %143 = vector.shape_cast %140 : vector<4x8x8x128xf32> to vector<1x4x8x8x128xf32>
    tpu.vector_store %arg10[%c0_181, %c0_182, %c0_183, %c0_184, %c0_185], %143 {strides = array<i32>} : memref<1x4x8x8x128xf32, #tpu.memory_space<vmem>>, vector<1x4x8x8x128xf32>,
    return
  }
  func.func @transform_0(%arg0: i32) -> (i32, i32, i32, i32, i32) {
    %c0_i32 = arith.constant 0 : i32
    %c0_i32_0 = arith.constant 0 : i32
    %c0_i32_1 = arith.constant 0 : i32
    %c0_i32_2 = arith.constant 0 : i32
    %c0_i32_3 = arith.constant 0 : i32
    return %arg0, %c0_i32, %c0_i32_0, %c0_i32_1, %c0_i32_2 : i32, i32, i32, i32, i32
  }
  func.func @transform_1(%arg0: i32) -> (i32, i32) {
    %c0_i32 = arith.constant 0 : i32
    %c0_i32_0 = arith.constant 0 : i32
    %c0_i32_1 = arith.constant 0 : i32
    return %c0_i32, %c0_i32_0 : i32, i32
  }
  func.func @transform_2(%arg0: i32) -> (i32, i32) {
    %c0_i32 = arith.constant 0 : i32
    %c0_i32_0 = arith.constant 0 : i32
    %c0_i32_1 = arith.constant 0 : i32
    return %c0_i32, %c0_i32_0 : i32, i32
  }
  func.func @transform_3(%arg0: i32) -> (i32, i32) {
    %c0_i32 = arith.constant 0 : i32
    %c0_i32_0 = arith.constant 0 : i32
    %c0_i32_1 = arith.constant 0 : i32
    return %c0_i32, %c0_i32_0 : i32, i32
  }
  func.func @transform_4(%arg0: i32) -> (i32, i32) {
    %c0_i32 = arith.constant 0 : i32
    %c0_i32_0 = arith.constant 0 : i32
    %c0_i32_1 = arith.constant 0 : i32
    return %c0_i32, %c0_i32_0 : i32, i32
  }
  func.func @transform_5(%arg0: i32) -> (i32, i32) {
    %c0_i32 = arith.constant 0 : i32
    %c0_i32_0 = arith.constant 0 : i32
    %c0_i32_1 = arith.constant 0 : i32
    return %c0_i32, %c0_i32_0 : i32, i32
  }
  func.func @transform_6(%arg0: i32) -> (i32, i32) {
    %c0_i32 = arith.constant 0 : i32
    %c0_i32_0 = arith.constant 0 : i32
    %c0_i32_1 = arith.constant 0 : i32
    return %c0_i32, %c0_i32_0 : i32, i32
  }
  func.func @transform_7(%arg0: i32) -> (i32, i32) {
    %c0_i32 = arith.constant 0 : i32
    %c0_i32_0 = arith.constant 0 : i32
    %c0_i32_1 = arith.constant 0 : i32
    return %c0_i32, %c0_i32_0 : i32, i32
  }
  func.func @transform_8(%arg0: i32) -> (i32, i32) {
    %c0_i32 = arith.constant 0 : i32
    %c0_i32_0 = arith.constant 0 : i32
    %c0_i32_1 = arith.constant 0 : i32
    return %c0_i32, %c0_i32_0 : i32, i32
  }
  func.func @transform_9(%arg0: i32) -> (i32, i32, i32, i32, i32) {
    %c0_i32 = arith.constant 0 : i32
    %c0_i32_0 = arith.constant 0 : i32
    %c0_i32_1 = arith.constant 0 : i32
    %c0_i32_2 = arith.constant 0 : i32
    %c0_i32_3 = arith.constant 0 : i32
    return %arg0, %c0_i32, %c0_i32_0, %c0_i32_1, %c0_i32_2 : i32, i32, i32, i32, i32
  }
}

</mosaic_0001>

<bundles_post_ra>
// kernel: tpu_custom_call.1
= control target key start
LH: loop header
LB: loop body
LE: loop exit
PB: predicated region body
PF: predicated region fallthrough
CT: control target
= control target key end

     0   :  { %s20546_s0 = inlined_call_operand.hbm [shape: f32[2,4,8,8,128], index: 0, kind: input, shape index: {}]   ;;  %s20547_s1 = inlined_call_operand.hbm [shape: bf16[1152,128], index: 1, kind: input, shape index: {}]   ;;  %s20548_s2 = inlined_call_operand.vmem [shape: f32[1,128], index: 2, kind: input, shape index: {}]   ;;  %s20549_s3 = inlined_call_operand.hbm [shape: bf16[384,128], index: 3, kind: input, shape index: {}]   ;;  %s20550_s4 = inlined_call_operand.vmem [shape: f32[1,128], index: 4, kind: input, shape index: {}]   ;;  %s20551_s5 = inlined_call_operand.hbm [shape: bf16[1152,128], index: 5, kind: input, shape index: {}]   ;;  %s20552_s6 = inlined_call_operand.vmem [shape: f32[1,128], index: 6, kind: input, shape index: {}]   ;;  %s20553_s7 = inlined_call_operand.hbm [shape: bf16[384,128], index: 7, kind: input, shape index: {}]   ;;  %s20554_s8 = inlined_call_operand.vmem [shape: f32[1,128], index: 8, kind: input, shape index: {}]   ;;  %s20555_s9 = inlined_call_operand.hbm [shape: f32[2,4,8,8,128], index: 9, kind: output, shape index: {}]  }
   0x1   :  { %20586 = sst [smem:[#allocation70_spill]] %s20555_s9 }
   0x2   :  { %14 = vsyncpa [#allocation5], 0 }
   0x3   :  { %16 = vsyncpa [#allocation5 + $0x1], 0 }
   0x4   :  { %17 = vsyncpa [#allocation8], 0 }
   0x5   :  { %18 = vsyncpa [#allocation11], 0 }
   0x6   :  { %19 = vsyncpa [#allocation6], 0 }
   0x7   :  { %21 = vsyncpa [#allocation6 + $0x1], 0  ;;  %s15909_s30 = smov 0   ;;  %s15911_s10 = smov 0  }
   0x8   :  { %s15913_s11 = smov 0   ;;  %s15915_s12 = smov 0  }
   0x9 LB: > { %20587 = sst [smem:[#allocation18_spill]] %s15832_s30  ;;  %s15930_s13 = sadd.s32 4294967295, %s15844_s12   ;;  %s15844_s12 = sphi %s15915_s12, %s20891_s12   ;;  %s15840_s11 = sphi %s15913_s11, %s20890_s11   ;;  %s15836_s10 = sphi %s15911_s10, %s20889_s10   ;;  %s15832_s30 = sphi %s15909_s30, %s20888_s30  }
   0xa   : > { %s12771_s14 = sadd.s32 4294967294, %s15844_s12   ;;  %p47_p0 = scmp.ne.s32.totalorder %s15836_s10, %s15832_s30 }
   0xb   : > { %p20556_p1 = scmp.eq.s32.totalorder %s15930_s13, 0  ;;  %p245_p3 = scmp.eq.s32.totalorder %s12771_s14, 1 }
   0xc   : > { %p12772_p5 = scmp.ge.s32.totalorder %s15844_s12, 1  ;;  %p252_p7 = scmp.lt.s32.totalorder %s15844_s12, 3 }
   0xd   : > { %p15939_p4 = por %p20556_p1, %p47_p0  ;;  %p15944_p6 = por %p245_p3, %p47_p0 }
   0xe   : > { %p15949_p8 = pnand %p12772_p5, %p252_p7  ;;  %s15846_s18 = smov [#allocation7]  }
   0xf   : > { %s20588_s15 = scalar_select %p15939_p4, 1, 0 }
  0x10   : > { %s20589_s16 = scalar_select %p15944_p6, 1, 0 }
  0x11   : > { %s20591_s17 = scalar_select %p15949_p8, 1, 0 }
  0x12   : > { %20590 = sst [smem:[#allocation19_spill]] %s20589_s16  ;;  %s264_s19 = sshll.u32 %s15846_s18, 4  ;;  %s15953_s19 = int_to_ptr.vmem [resolvable:$true] %s264_s19 }
  0x13   : > { %p15219_p9 = pneg %p15949_p8  ;;  %s15847_s21 = smov [#allocation10]  }
  0x14   : > { %s296_s22 = sshll.u32 %s15847_s21, 4  ;;  %s15848_s23 = smov [#allocation9]   ;;  %s15964_s22 = int_to_ptr.vmem [resolvable:$true] %s296_s22 }
  0x15   : > { %p15960_p11 = pnand %p15219_p9, %p20556_p1  ;;  %s15966_s24 = sshll.u32 %s15848_s23, 4  ;;  %s281_s24 = int_to_ptr.vmem [resolvable:$true] %s15966_s24 }
  0x16   : > { %s15628_s27 = scalar_lea.hbm %s20547_s1, 9216 }
  0x17   : > { %p15629_p12 = scmp.ne.s32.totalorder %s20547_s1, %s15628_s27  ;;  %p15976_p13 = pneg %p15960_p11 }
  0x18   : > { %p15635_p5 = scmp.lt.u32.totalorder %s15628_s27, %s20547_s1 }
  0x19   : > { %p15631_p0 = pnand %p15976_p13, %p15629_p12 }
  0x1b   : > { %p15632_p3 = pneg %p15631_p0 }
  0x1d   : > { %p15637_p7 = pnand %p15635_p5, %p15632_p3 }
  0x1f   : > { %15640 = shalt.err (!%p15637_p7)
}
  0x20   : > { %s15641_s23 = scalar_lea.vmem %s15953_s19, 9216  ;;  %p15649_p2 = scmp.lt.s32.totalorder %s15953_s19, %s15953_s19 }
  0x21   : > { %p15642_p9 = scmp.ne.s32.totalorder %s15953_s19, %s15641_s23  ;;  %p15650_p6 = scmp.lt.s32.totalorder %s15641_s23, %s15641_s23 }
  0x23   : > { %p15644_p10 = pnand %p15642_p9, %p15976_p13  ;;  %p15651_p12 = por %p15650_p6, %p15649_p2 }
  0x25   : > { %p15645_p1 = pneg %p15644_p10 }
  0x27   : > { %p15652_p0 = pnand %p15651_p12, %p15645_p1 }
  0x29   : > { %15655 = shalt.err (!%p15652_p0)
}
  0x2a   : > { %s15849_s25 = smov 64   ;;  %s15850_s26 = smov 4  }
  0x2b   : > { %15222 = dma.hbm_to_vmem [thread:$0]  (!%p15960_p11), %s20547_s1, 9216, %s15953_s19, [#allocation8], %s15849_s25, %s15849_s25, %s15850_s26  }
  0x2c   : > { %s15656_s21 = scalar_lea.hbm %s20551_s5, 9216 }
  0x2d   : > { %p15657_p1 = scmp.ne.s32.totalorder %s20551_s5, %s15656_s21  ;;  %p15663_p10 = scmp.lt.u32.totalorder %s15656_s21, %s20551_s5 }
  0x2f   : > { %p15659_p2 = pnand %p15657_p1, %p15976_p13 }
  0x31   : > { %p15660_p6 = pneg %p15659_p2 }
  0x33   : > { %p15665_p3 = pnand %p15663_p10, %p15660_p6 }
  0x35   : > { %15668 = shalt.err (!%p15665_p3)
}
  0x36   : > { %s15669_s19 = scalar_lea.vmem %s15964_s22, 9216  ;;  %p15677_p12 = scmp.lt.s32.totalorder %s15964_s22, %s15964_s22 }
  0x37   : > { %p15670_p5 = scmp.ne.s32.totalorder %s15964_s22, %s15669_s19  ;;  %p15678_p0 = scmp.lt.s32.totalorder %s15669_s19, %s15669_s19 }
  0x39   : > { %p15672_p7 = pnand %p15670_p5, %p15976_p13  ;;  %p15679_p1 = por %p15678_p0, %p15677_p12 }
  0x3b   : > { %p15673_p9 = pneg %p15672_p7 }
  0x3d   : > { %p15680_p2 = pnand %p15679_p1, %p15673_p9 }
  0x3f   : > { %15683 = shalt.err (!%p15680_p2)
}
  0x40   : > { %15228 = dma.hbm_to_vmem [thread:$0]  (!%p15960_p11), %s20551_s5, 9216, %s15964_s22, [#allocation11], %s15849_s25, %s15849_s25, %s15850_s26  }
  0x41   : > { %s15684_s28 = scalar_lea.hbm %s20549_s3, 3072 }
  0x42   : > { %p15685_p6 = scmp.ne.s32.totalorder %s20549_s3, %s15684_s28  ;;  %p15691_p5 = scmp.lt.u32.totalorder %s15684_s28, %s20549_s3 }
  0x44   : > { %p15687_p10 = pnand %p15685_p6, %p15976_p13 }
  0x46   : > { %p15688_p3 = pneg %p15687_p10 }
  0x48   : > { %p15693_p7 = pnand %p15691_p5, %p15688_p3 }
  0x4a   : > { %15696 = shalt.err (!%p15693_p7)
}
  0x4b   : > { %s15697_s19 = scalar_lea.vmem %s281_s24, 3072  ;;  %p15705_p1 = scmp.lt.s32.totalorder %s281_s24, %s281_s24 }
  0x4c   : > { %p15698_p9 = scmp.ne.s32.totalorder %s281_s24, %s15697_s19  ;;  %p15706_p2 = scmp.lt.s32.totalorder %s15697_s19, %s15697_s19 }
  0x4e   : > { %p15700_p12 = pnand %p15698_p9, %p15976_p13  ;;  %p15707_p4 = por %p15706_p2, %p15705_p1 }
  0x50   : > { %p15701_p0 = pneg %p15700_p12 }
  0x52   : > { %p15708_p8 = pnand %p15707_p4, %p15701_p0 }
  0x54   : > { %15711 = shalt.err (!%p15708_p8)
}
  0x55   : > { %15225 = dma.hbm_to_vmem [thread:$0]  (!%p15960_p11), %s20549_s3, 3072, %s281_s24, [#allocation8], %s15849_s25, %s15849_s25, %s15850_s26  }
  0x56   : > { %s15851_s30 = smov [#allocation12]   ;;  %s15712_s29 = scalar_lea.hbm %s20553_s7, 3072 }
  0x57   : > { %s312_s16 = sshll.u32 %s15851_s30, 4  ;;  %p15713_p4 = scmp.ne.s32.totalorder %s20553_s7, %s15712_s29  ;;  %s313_s16 = int_to_ptr.vmem [resolvable:$true] %s312_s16 }
  0x58   : > { %p15719_p10 = scmp.lt.u32.totalorder %s15712_s29, %s20553_s7 }
  0x59   : > { %p15715_p8 = pnand %p15713_p4, %p15976_p13 }
  0x5b   : > { %p15716_p6 = pneg %p15715_p8 }
  0x5d   : > { %p15721_p3 = pnand %p15719_p10, %p15716_p6 }
  0x5f   : > { %15724 = shalt.err (!%p15721_p3)
}
  0x60   : > { %s15725_s24 = scalar_lea.vmem %s313_s16, 3072  ;;  %p15733_p12 = scmp.lt.s32.totalorder %s313_s16, %s313_s16 }
  0x61   : > { %p15726_p5 = scmp.ne.s32.totalorder %s313_s16, %s15725_s24  ;;  %p15734_p0 = scmp.lt.s32.totalorder %s15725_s24, %s15725_s24 }
  0x63   : > { %p15728_p7 = pnand %p15726_p5, %p15976_p13  ;;  %p15735_p1 = por %p15734_p0, %p15733_p12 }
  0x65   : > { %p15729_p9 = pneg %p15728_p7 }
  0x67   : > { %p15736_p2 = pnand %p15735_p1, %p15729_p9 }
  0x69   : > { %15739 = shalt.err (!%p15736_p2)
}
  0x6a   : > { %15231 = dma.hbm_to_vmem [thread:$0]  (!%p15960_p11), %s20553_s7, 3072, %s313_s16, [#allocation11], %s15849_s25, %s15849_s25, %s15850_s26  }
  0x6b   : > { %s16070_s14 = sadd.s32 1, %s15844_s12   ;;  %s34_s20 = sadd.s32 1, %s15840_s11 }
  0x6c   : > { %s31_s30 = ssub.s32 %s15844_s12, %s16070_s14  ;;  %p41_p13 = scmp.ne.s32.totalorder %s15840_s11, %s15836_s10 }
  0x6d   : > { %p32_p4 = scmp.eq.s32.totalorder %s31_s30, 0  ;;  %p42_p8 = scmp.eq.s32.totalorder %s15844_s12, 0 }
  0x6e   : > { %p20594_p6 = scmp.eq.s32.totalorder %s15930_s13, 1  ;;  %p15244_p3 = scmp.lt.s32.totalorder %s15844_s12, 2 }
  0x6f   : > { %s16086_s28 = scalar_select %p32_p4, %s15840_s11, %s34_s20  }
  0x70   : > { %p16080_p10 = por %p20594_p6, %p41_p13  ;;  %p43_p5 = por %p42_p8, %p41_p13 }
  0x71   : > { %s329_s29 = sand.u32 1, %s15840_s11   ;;  %s13533_s25 = sshll.u32 %s15844_s12, 12 }
  0x72   : > { %s12778_s18 = sshll.u32 %s329_s29, 8  ;;  %s16093_s21 = scalar_lea.hbm %s20546_s0, %s13533_s25 }
  0x73   : > { %s333_s23 = scalar_lea.vmem [#allocation4], %s12778_s18  ;;  %p16097_p11 = pnand %p15244_p3, %p43_p5 }
  0x74   : > { %s340_s19 = sshll.u32 %s333_s23, 4  ;;  %s16101_s22 = scalar_lea.sflag [#allocation5], %s329_s29  ;;  %s16095_s19 = int_to_ptr.vmem [resolvable:$true] %s340_s19 }
  0x75   : > { %s15740_s9 = scalar_lea.hbm %s16093_s21, 4096  ;;  %p15742_p9 = pneg %p16097_p11 }
  0x76   : > { %p15741_p7 = scmp.ne.s32.totalorder %s16093_s21, %s15740_s9  ;;  %s15745_s18 = scalar_lea.hbm %s20546_s0, 8192 }
  0x77   : > { %p15746_p1 = scmp.lt.u32.totalorder %s16093_s21, %s20546_s0  ;;  %p15747_p2 = scmp.lt.u32.totalorder %s15745_s18, %s15740_s9 }
  0x78   : > { %p15743_p12 = pnand %p15742_p9, %p15741_p7  ;;  %p15749_p4 = scmp.lt.u32.totalorder %s15740_s9, %s16093_s21 }
  0x79   : > { %p15748_p13 = por %p15747_p2, %p15746_p1 }
  0x7a   : > { %p15744_p0 = pneg %p15743_p12 }
  0x7b   : > { %p15750_p8 = por %p15749_p4, %p15748_p13 }
  0x7d   : > { %p15751_p6 = pnand %p15750_p8, %p15744_p0 }
  0x7f   : > { %15754 = shalt.err (!%p15751_p6)
}
  0x80   : > { %s15755_s29 = scalar_lea.vmem %s16095_s19, 4096  ;;  %s15852_s16 = smov [#allocation4]  }
  0x81   : > { %p15756_p3 = scmp.ne.s32.totalorder %s16095_s19, %s15755_s29  ;;  %s15760_s23 = sshll.u32 %s15852_s16, 4  ;;  %s15761_s23 = int_to_ptr.vmem [resolvable:$false] %s15760_s23 }
  0x82   : > { %s15762_s20 = scalar_lea.vmem %s15761_s23, 8192  ;;  %p15763_p12 = scmp.lt.s32.totalorder %s16095_s19, %s15761_s23 }
  0x83   : > { %p15758_p5 = pnand %p15756_p3, %p15742_p9  ;;  %p15764_p1 = scmp.lt.s32.totalorder %s15762_s20, %s15755_s29 }
  0x85   : > { %p15759_p7 = pneg %p15758_p5  ;;  %p15765_p2 = por %p15764_p1, %p15763_p12 }
  0x87   : > { %p15766_p13 = pnand %p15765_p2, %p15759_p7 }
  0x89   : > { %15769 = shalt.err (!%p15766_p13)
}
  0x8a   : > { %s15853_s9 = smov 128   ;;  %s15854_s30 = smov 8  }
  0x8b   : > { %15235 = dma.hbm_to_vmem [thread:$0]  (!%p16097_p11), %s16093_s21, 4096, %s16095_s19, %s16101_s22, %s15853_s9, %s15853_s9, %s15854_s30  }
  0x8c   : > { %p20597_p9 = scmp.ne.s32.totalorder %s20591_s17, 0 }
  0x8e   : > { %352 = sbr.rel (%p20597_p9) target bundleno = 2149 (0x865), region = 56 }
  0x95   : > { %s16132_s18 = sand.u32 1, %s15836_s10   ;;  %p20598_p0 = scmp.ne.s32.totalorder %s20588_s15, 0 }
  0x96   : > { %s12782_s25 = sshll.u32 %s16132_s18, 8  ;;  %s355_s26 = scalar_lea.sflag [#allocation5], %s16132_s18 }
  0x97   : > { %s16138_s29 = scalar_lea.vmem [#allocation4], %s12782_s25 }
  0x98   : > { %15815 = dma.done.wait (%p20598_p0), %s355_s26, 4096  }
  0x99   : > { %15817 = vsyncadd (%p20598_p0), %s355_s26, 4294963200  ;;  %p20599_p11 = scmp.eq.s32.totalorder %s15930_s13, 0 }
  0x9b   : > { %15819 = dma.done.wait (%p20599_p11), [#allocation8], 12288   ;;  %p20600_p4 = pmov %p20599_p11 }
  0x9d   : > { %15821 = vsyncadd (%p20600_p4), [#allocation8], 4294955008  ;;  %p20601_p8 = pmov %p20600_p4 }
  0x9e   : > { %p20602_p6 = pmov %p20600_p4 }
  0x9f   : > { %15823 = dma.done.wait (%p20601_p8), [#allocation11], 12288  }
  0xa0   : > { %15825 = vsyncadd (%p20602_p6), [#allocation11], 4294955008  ;;  %v15855_v0 = vmov 0   ;;  %v15293_v1 = vld [vmem:[#allocation7 + $0xc0] sm:$0xff]   ;;  %v15295_v3 = vld [vmem:[#allocation7 + $0xc8] sm:$0xff]   ;;  %vm428_vm1 = vcmask 1040384  }
  0xa1   : > { %414 = vst [vmem:[#allocation2 + $0xa0] sm:$0xf] %v15855_v0  ;;  %415 = vst [vmem:[#allocation2 + $0xa4] sm:$0x1] %v15855_v0  ;;  %v15294_v2 = vld [vmem:[#allocation7 + $0x80] sm:$0xff]   ;;  %15023 = vmatprep.subr.bf16.mxu1 %v15293_v1  ;;  %13599 = vmatprep.subr.bf16.mxu0 %v15293_v1  ;;  %v15296_v4 = vld [vmem:[#allocation7 + $0x88] sm:$0xff]  }
  0xa2   : > { %410 = vst [vmem:[#allocation2] sm:$0xf] %v15855_v0  ;;  %411 = vst [vmem:[#allocation2 + $0x4] sm:$0x1] %v15855_v0  ;;  %15031 = vmatpush3.bf16.msra.mxu1 %v15294_v2  ;;  %13600 = vmatpush3.bf16.msra.mxu0 %v15294_v2  ;;  %v15297_v5 = vld [vmem:[#allocation7 + $0xd0] sm:$0xff]   ;;  %v15299_v7 = vld [vmem:[#allocation7 + $0xd8] sm:$0xff]  }
  0xa3   : > { %412 = vst [vmem:[#allocation2 + $0x50] sm:$0xf] %v15855_v0  ;;  %413 = vst [vmem:[#allocation2 + $0x54] sm:$0x1] %v15855_v0  ;;  %15024 = vmatprep.subr.bf16.mxu1 %v15295_v3  ;;  %13601 = vmatprep.subr.bf16.mxu0 %v15295_v3  ;;  %vm429_vm0 = vsmask.f32 256 }
  0xa4   : > { %416 = vst [vmem:[#allocation2 + $0xf0] sm:$0xf] %v15855_v0  ;;  %417 = vst [vmem:[#allocation2 + $0xf4] sm:$0x1] %v15855_v0  ;;  %v15298_v6 = vld [vmem:[#allocation7 + $0x90] sm:$0xff]   ;;  %v20603_v8 = vmov 0 }
  0xa5   : > { %419 = vst [vmem:[#allocation2 + $0x48] sm:$0xf] %v15855_v0  ;;  %420 = vst [vmem:[#allocation2 + $0x4c] sm:$0x1] %v15855_v0  ;;  %vm527_vm3 = vsmask.f32 7938 }
  0xa6   : > { %421 = vst [vmem:[#allocation2 + $0x98] sm:$0xf] %v15855_v0  ;;  %422 = vst [vmem:[#allocation2 + $0x9c] sm:$0x1] %v15855_v0  ;;  %15032 = vmatpush3.bf16.msra.mxu1 %v15296_v4  ;;  %13602 = vmatpush3.bf16.msra.mxu0 %v15296_v4  ;;  %v15300_v9 = vld [vmem:[#allocation7 + $0x98] sm:$0xff]   ;;  %v15301_v10 = vld [vmem:[#allocation7 + $0xe0] sm:$0xff]  }
  0xa7   : > { %423 = vst [vmem:[#allocation2 + $0xe8] sm:$0xf] %v15855_v0  ;;  %424 = vst [vmem:[#allocation2 + $0xec] sm:$0x1] %v15855_v0  ;;  %15025 = vmatprep.subr.bf16.mxu1 %v15297_v5  ;;  %13603 = vmatprep.subr.bf16.mxu0 %v15297_v5  ;;  %v15302_v12 = vld [vmem:[#allocation7 + $0xa0] sm:$0xff]   ;;  %v15303_v13 = vld [vmem:[#allocation7 + $0xe8] sm:$0xff]  }
  0xa8   : > { %425 = vst [vmem:[#allocation2 + $0x138] sm:$0xf] %v15855_v0  ;;  %426 = vst [vmem:[#allocation2 + $0x13c] sm:$0x1] %v15855_v0  ;;  %v479_v14 = vld [vmem:[#allocation2 + $0xa8] sm:$0x1] }
  0xa9   : > { %vm16152_vm2 = vmand %vm428_vm1, %vm429_vm0  ;;  %v482_v15 = vld [vmem:[#allocation2 + $0xb0] sm:$0x1]  ;;  %v641_v16 = vld [vmem:[%s16138_s29 + $0x80] sm:$0xff]  ;;  %vm1105_vm5 = vcmask 1043456   ;;  %vm2102_vm6 = vcmask 1042432   ;;  %vm2103_vm7 = vcmask 1046532  }
  0xaa   : > { %v20604_v8 = vsel %vm16152_vm2, 4294967295, %v20603_v8  ;;  %15033 = vmatpush3.bf16.msra.mxu1 %v15298_v6  ;;  %13604 = vmatpush3.bf16.msra.mxu0 %v15298_v6  ;;  %vm16157_vm4 = vmand %vm428_vm1, %vm527_vm3  ;;  %v15304_v17 = vld [vmem:[#allocation7 + $0xa8] sm:$0xff]   ;;  %v480_v18 = vsel %vm16152_vm2, 0, %v479_v14  ;;  %v483_v19 = vsel %vm16152_vm2, 0, %v482_v15  ;;  %v13550_v21 = vpack.c.bf16 %v641_v16, %v641_v16  ;;  %v16169_v25 = vld [vmem:[#allocation2 + $0xa4] sm:$0x1] }
  0xab   : > { %20605 = vst [vmem:[#allocation20_spill] sm:$0xff] %v20604_v8  ;;  %15026 = vmatprep.subr.bf16.mxu1 %v15299_v7  ;;  %13605 = vmatprep.subr.bf16.mxu0 %v15299_v7  ;;  %v642_v20 = vld [vmem:[%s16138_s29 + $0x88] sm:$0xff]  ;;  %481 = vst [vmem:[#allocation2 + $0xa8] sm:$0x1] %v480_v18  ;;  %v16171_v26 = vld [vmem:[#allocation2 + $0xa0] sm:$0xe] }
  0xac   : > { %v577_v22 = vld [vmem:[#allocation2 + $0xac] sm:$0x1]  ;;  %484 = vst [vmem:[#allocation2 + $0xb0] sm:$0x1] %v483_v19  ;;  %v13551_v23 = vpack.c.bf16 %v642_v20, %v642_v20  ;;  %v625_v27 = vld [vmem:[%s16138_s29] sm:$0xff]  ;;  %v15305_v28 = vld [vmem:[#allocation7 + $0xf0] sm:$0xff]  }
  0xad   : > { %v578_v24 = vsel %vm16157_vm4, 0, %v577_v22  ;;  %v914_v29 = vshrl.u32 %v13550_v21, 16  ;;  %v917_v30 = vshll.u32 %v13550_v21, 16  ;;  %v12868_v31 = vrot.slane %v16171_v26, 9  ;;  %v431_v34 = vld [vmem:[#allocation2 + $0x8] sm:$0x1]  ;;  %vm16186_vm8 = vmand %vm1105_vm5, %vm527_vm3 }
  0xae   : > { %15034 = vmatpush3.bf16.msra.mxu1 %v15300_v9  ;;  %13606 = vmatpush3.bf16.msra.mxu0 %v15300_v9  ;;  %579 = vst [vmem:[#allocation2 + $0xac] sm:$0x1] %v578_v24  ;;  %v922_v32 = vshrl.u32 %v13551_v23, 16  ;;  %v925_v33 = vshll.u32 %v13551_v23, 16  ;;  %v13534_v35 = vpack.c.bf16 %v625_v27, %v625_v27  ;;  %v15306_v36 = vld [vmem:[#allocation7 + $0xb0] sm:$0xff]   ;;  %v2171_v38 = vrot.slane %v16169_v25, 5  ;;  %vm16241_vm9 = vmor %vm2102_vm6, %vm2103_vm7 }
  0xaf   : > { %15027 = vmatprep.subr.bf16.mxu1 %v15301_v10  ;;  %13607 = vmatprep.subr.bf16.mxu0 %v15301_v10  ;;  %v916_v37 = vrot.slane %v914_v29, 7  ;;  %v432_v39 = vsel %vm16152_vm2, 0, %v431_v34  ;;  %v434_v40 = vld [vmem:[#allocation2 + $0x10] sm:$0x1]  ;;  %v626_v41 = vld [vmem:[%s16138_s29 + $0x8] sm:$0xff]  ;;  %v15307_v42 = vld [vmem:[#allocation7 + $0xf8] sm:$0xff]  }
  0xb0   : > { %v16179_v43 = vrot.slane %v922_v32, 7  ;;  %433 = vst [vmem:[#allocation2 + $0x8] sm:$0x1] %v432_v39  ;;  %v435_v44 = vsel %vm16152_vm2, 0, %v434_v40  ;;  %v13535_v45 = vpack.c.bf16 %v626_v41, %v626_v41  ;;  %v786_v46 = vshrl.u32 %v13534_v35, 16  ;;  %v643_v47 = vld [vmem:[%s16138_s29 + $0x90] sm:$0xff] }
  0xb1   : > { %v919_v48 = vor.u32 %v917_v30, %v916_v37  ;;  %v920_v49 = vrot.slane %v916_v37, 4  ;;  %v20608_v50 = vmov 0  ;;  %436 = vst [vmem:[#allocation2 + $0x10] sm:$0x1] %v435_v44  ;;  %v789_v51 = vshll.u32 %v13534_v35, 16  ;;  %v644_v59 = vld [vmem:[%s16138_s29 + $0x98] sm:$0xff] }
  0xb2   : > { %15035 = vmatpush3.bf16.msra.mxu1 %v15302_v12  ;;  %13608 = vmatpush3.bf16.msra.mxu0 %v15302_v12  ;;  %v20609_v50 = vsel %vm16186_vm8, 4294967295, %v20608_v50  ;;  %v529_v52 = vld [vmem:[#allocation2 + $0xc] sm:$0x1]  ;;  %v16190_v53 = vpack.c.bf16 %v643_v47, %v643_v47  ;;  %v927_v54 = vor.u32 %v925_v33, %v16179_v43  ;;  %v928_v55 = vrot.slane %v16179_v43, 4  ;;  %v16196_v58 = vld [vmem:[#allocation2 + $0x4] sm:$0x1] }
  0xb3   : > { %15028 = vmatprep.subr.bf16.mxu1 %v15303_v13  ;;  %13609 = vmatprep.subr.bf16.mxu0 %v15303_v13  ;;  %20610 = vst [vmem:[#allocation21_spill] sm:$0xff] %v20609_v50  ;;  %v16194_v56 = vrot.slane %v786_v46, 7  ;;  %v794_v57 = vshrl.u32 %v13535_v45, 16  ;;  %v1203_v60 = vld [vmem:[#allocation2 + $0xa8] sm:$0xf]  ;;  %v797_v62 = vshll.u32 %v13535_v45, 16  ;;  %v16201_v0 = vpack.c.bf16 %v644_v59, %v644_v59 }
  0xb4   : > { %v1209_v61 = vld [vmem:[#allocation2 + $0xb0] sm:$0xf]  ;;  %v530_v63 = vsel %vm16157_vm4, 0, %v529_v52  ;;  %v15308_v1 = vld [vmem:[#allocation7 + $0xb8] sm:$0xff]   ;;  %v1204_v2 = vsel %vm16186_vm8, %v919_v48, %v1203_v60  ;;  %v16209_v7 = vld [vmem:[#allocation2] sm:$0xe]  ;;  %v2172_v60 = vsel %vm16241_vm9, %v12868_v31, %v2171_v38 }
  0xb5   : > { %v1210_v3 = vsel %vm16186_vm8, %v927_v54, %v1209_v61  ;;  %v1206_v4 = vld [vmem:[#allocation2 + $0xac] sm:$0x1]  ;;  %v791_v5 = vor.u32 %v789_v51, %v16194_v56  ;;  %v792_v6 = vrot.slane %v16194_v56, 4  ;;  %531 = vst [vmem:[#allocation2 + $0xc] sm:$0x1] %v530_v63  ;;  %v15310_v10 = vld [vmem:[#allocation7 + $0x40] sm:$0xff]  }
  0xb6   : > { %15036 = vmatpush3.bf16.msra.mxu1 %v15304_v17  ;;  %13610 = vmatpush3.bf16.msra.mxu0 %v15304_v17  ;;  %1205 = vst [vmem:[#allocation2 + $0xa8] sm:$0xf] %v1204_v2  ;;  %1211 = vst [vmem:[#allocation2 + $0xb0] sm:$0xf] %v1210_v3  ;;  %v1207_v9 = vsel %vm16152_vm2, %v920_v49, %v1206_v4  ;;  %v16213_v12 = vrot.slane %v794_v57, 7  ;;  %v12852_v13 = vrot.slane %v16209_v7, 9 }
  0xb7   : > { %15029 = vmatprep.subr.bf16.mxu1 %v15305_v28  ;;  %13611 = vmatprep.subr.bf16.mxu0 %v15305_v28  ;;  %v2107_v14 = vrot.slane %v16196_v58, 5  ;;  %v485_v15 = vld [vmem:[#allocation2 + $0xb8] sm:$0x1]  ;;  %1208 = vst [vmem:[#allocation2 + $0xac] sm:$0x1] %v1207_v9  ;;  %v930_v18 = vshrl.u32 %v16190_v53, 16 }
  0xb8   : > { %v486_v16 = vsel %vm16152_vm2, 0, %v485_v15  ;;  %v488_v17 = vld [vmem:[#allocation2 + $0xc0] sm:$0x1]  ;;  %v938_v19 = vshrl.u32 %v16201_v0, 16  ;;  %v627_v20 = vld [vmem:[%s16138_s29 + $0x10] sm:$0xff]  ;;  %v799_v21 = vor.u32 %v797_v62, %v16213_v12  ;;  %v933_v24 = vshll.u32 %v16190_v53, 16 }
  0xb9   : > { %v1107_v22 = vld [vmem:[#allocation2 + $0x8] sm:$0xf]  ;;  %487 = vst [vmem:[#allocation2 + $0xb8] sm:$0x1] %v486_v16  ;;  %v489_v23 = vsel %vm16152_vm2, 0, %v488_v17  ;;  %v16228_v30 = vrot.slane %v930_v18, 7  ;;  %v13536_v45 = vpack.c.bf16 %v627_v20, %v627_v20 }
  0xba   : > { %15037 = vmatpush3.bf16.msra.mxu1 %v15306_v36  ;;  %13612 = vmatpush3.bf16.msra.mxu0 %v15306_v36  ;;  %v580_v27 = vld [vmem:[#allocation2 + $0xb4] sm:$0x1]  ;;  %v1108_v28 = vsel %vm16186_vm8, %v791_v5, %v1107_v22  ;;  %v1113_v29 = vld [vmem:[#allocation2 + $0x10] sm:$0xf]  ;;  %490 = vst [vmem:[#allocation2 + $0xc0] sm:$0x1] %v489_v23 }
  0xbb   : > { %15030 = vmatprep.subr.bf16.mxu1 %v15307_v42  ;;  %13613 = vmatprep.subr.bf16.mxu0 %v15307_v42  ;;  %v16230_v32 = vrot.slane %v938_v19, 7  ;;  %v941_v33 = vshll.u32 %v16201_v0, 16  ;;  %v628_v34 = vld [vmem:[%s16138_s29 + $0x18] sm:$0xff]  ;;  %v800_v35 = vrot.slane %v16213_v12, 4  ;;  %1109 = vst [vmem:[#allocation2 + $0x8] sm:$0xf] %v1108_v28  ;;  %v1114_v36 = vsel %vm16186_vm8, %v799_v21, %v1113_v29 }
  0xbc   : > { %v581_v37 = vsel %vm16157_vm4, 0, %v580_v27  ;;  %v583_v39 = vld [vmem:[#allocation2 + $0xbc] sm:$0x1]  ;;  %1115 = vst [vmem:[#allocation2 + $0x10] sm:$0xf] %v1114_v36  ;;  %v936_v41 = vrot.slane %v16228_v30, 4  ;;  %v935_v47 = vor.u32 %v933_v24, %v16228_v30  ;;  %v13537_v52 = vpack.c.bf16 %v628_v34, %v628_v34 }
  0xbd   : > { %v944_v42 = vrot.slane %v16230_v32, 4  ;;  %582 = vst [vmem:[#allocation2 + $0xb4] sm:$0x1] %v581_v37  ;;  %v437_v44 = vld [vmem:[#allocation2 + $0x18] sm:$0x1]  ;;  %v584_v48 = vsel %vm16157_vm4, 0, %v583_v39  ;;  %v943_v56 = vor.u32 %v941_v33, %v16230_v32 }
  0xbe   : > { %15038 = vmatpush3.bf16.msra.mxu1 %v15308_v1  ;;  %13614 = vmatpush3.bf16.msra.mxu0 %v15308_v1  ;;  %v1110_v46 = vld [vmem:[#allocation2 + $0xc] sm:$0x1]  ;;  %v438_v49 = vsel %vm16152_vm2, 0, %v437_v44  ;;  %v440_v51 = vld [vmem:[#allocation2 + $0x20] sm:$0x1]  ;;  %v802_v38 = vshrl.u32 %v13536_v45, 16 }
  0xbf   : > { %13711 = vmatprep.subr.bf16.mxu1 %v15310_v10  ;;  %v15309_v53 = vld [vmem:[#allocation2 + $0xa8] ss:$8 sps:$4 sm:$0xff]   ;;  %v1111_v54 = vsel %vm16152_vm2, %v792_v6, %v1110_v46  ;;  %585 = vst [vmem:[#allocation2 + $0xbc] sm:$0x1] %v584_v48  ;;  %439 = vst [vmem:[#allocation2 + $0x18] sm:$0x1] %v438_v49  ;;  %v2108_v48 = vsel %vm16241_vm9, %v12852_v13, %v2107_v14 }
  0xc0   : > { %v1348_v57 = vld [vmem:[#allocation2 + $0xac] sm:$0x1]  ;;  %v2023_v59 = vld [vmem:[#allocation2 + $0xa8] sm:$0xe]  ;;  %1112 = vst [vmem:[#allocation2 + $0xc] sm:$0x1] %v1111_v54  ;;  %2649 = vmatprep.mubr.bf16.mxu1 %v15309_v53 }
  0xc1   : > { %v16261_v61 = vld [vmem:[#allocation2 + $0xb0] sm:$0xe]  ;;  %v12869_v62 = vrot.slane %v2023_v59, 9  ;;  %v2175_v63 = vrot.slane %v1348_v57, 5  ;;  %v15312_v0 = vld [vmem:[#allocation7] sm:$0xff]   ;;  %v441_v25 = vsel %vm16152_vm2, 0, %v440_v51 }
  0xc2   : > { %v1215_v1 = vld [vmem:[#allocation2 + $0xb8] sm:$0xf]  ;;  %v12870_v2 = vrot.slane %v16261_v61, 9  ;;  %v1221_v3 = vld [vmem:[#allocation2 + $0xc0] sm:$0xf]  ;;  %v15314_v31 = vld [vmem:[#allocation7 + $0x48] sm:$0xff]  }
  0xc3   : > { %v1216_v26 = vsel %vm16186_vm8, %v935_v47, %v1215_v1  ;;  %442 = vst [vmem:[#allocation2 + $0x20] sm:$0x1] %v441_v25  ;;  %v805_v4 = vshll.u32 %v13536_v45, 16  ;;  %v810_v5 = vshrl.u32 %v13537_v52, 16  ;;  %v645_v6 = vld [vmem:[%s16138_s29 + $0xa0] sm:$0xff]  ;;  %v2176_v9 = vsel %vm16241_vm9, %v12869_v62, %v2175_v63  ;;  %v646_v17 = vld [vmem:[%s16138_s29 + $0xa8] sm:$0xff] }
  0xc4   : > { %v2007_v10 = vld [vmem:[#allocation2 + $0x8] sm:$0xe]  ;;  %1217 = vst [vmem:[#allocation2 + $0xb8] sm:$0xf] %v1216_v26  ;;  %v1222_v15 = vsel %vm16186_vm8, %v943_v56, %v1221_v3  ;;  %v813_v16 = vshll.u32 %v13537_v52, 16  ;;  %v16274_v18 = vpack.c.bf16 %v645_v6, %v645_v6  ;;  %v12892_v19 = vcombine.low %v2172_v60, %v2176_v9  ;;  %v15318_v3 = vld [vmem:[#allocation7 + $0x50] sm:$0xff]  }
  0xc5   : > { %v15311_v20 = vld [vmem:[#allocation2 + $0x8] ss:$8 sps:$4 sm:$0xff]   ;;  %v12853_v21 = vrot.slane %v2007_v10, 9  ;;  %1223 = vst [vmem:[#allocation2 + $0xc0] sm:$0xf] %v1222_v15  ;;  %v16276_v22 = vrot.slane %v802_v38, 7  ;;  %v16278_v23 = vpack.c.bf16 %v646_v17, %v646_v17 }
  0xc6   : > { %v1212_v24 = vld [vmem:[#allocation2 + $0xb4] sm:$0x1]  ;;  %v16280_v27 = vrot.slane %v810_v5, 7  ;;  %v15316_v28 = vld [vmem:[#allocation7 + $0x8] sm:$0xff]   ;;  %v946_v29 = vshrl.u32 %v16274_v18, 16  ;;  %2650 = vmatmul.mubr.bf16.vlgmr.msra.gmra.mrb[0].mxu1 %v12892_v19  ;;  %2585 = vmatprep.mubr.bf16.mxu0 %v15311_v20  ;;  %v949_v44 = vshll.u32 %v16274_v18, 16 }
  0xc7   : > { %v1213_v33 = vsel %vm16152_vm2, %v928_v55, %v1212_v24  ;;  %v1218_v34 = vld [vmem:[#allocation2 + $0xbc] sm:$0x1]  ;;  %v807_v36 = vor.u32 %v805_v4, %v16276_v22  ;;  %v808_v37 = vrot.slane %v16276_v22, 4  ;;  %v1119_v39 = vld [vmem:[#allocation2 + $0x18] sm:$0xf]  ;;  %13712 = vmatpush3.bf16.msra.mxu1 %v15312_v0  ;;  %v954_v52 = vshrl.u32 %v16278_v23, 16 }
  0xc8   : > { %v1332_v45 = vld [vmem:[#allocation2 + $0xc] sm:$0x1]  ;;  %1214 = vst [vmem:[#allocation2 + $0xb4] sm:$0x1] %v1213_v33  ;;  %v1219_v46 = vsel %vm16152_vm2, %v936_v41, %v1218_v34  ;;  %v815_v43 = vor.u32 %v813_v16, %v16280_v27  ;;  %v816_v55 = vrot.slane %v16280_v27, 4  ;;  %v16296_v47 = vrot.slane %v946_v29, 7  ;;  %13713 = vmatprep.subr.bf16.mxu1 %v15314_v31 }
  0xc9   : > { %v2111_v49 = vrot.slane %v1332_v45, 5  ;;  %1220 = vst [vmem:[#allocation2 + $0xbc] sm:$0x1] %v1219_v46  ;;  %v1120_v30 = vsel %vm16186_vm8, %v807_v36, %v1119_v39  ;;  %v532_v41 = vld [vmem:[#allocation2 + $0x14] sm:$0x1]  ;;  %v16319_v0 = vrot.slane %v954_v52, 7 }
  0xca   : > { %v535_v51 = vld [vmem:[#allocation2 + $0x1c] sm:$0x1]  ;;  %1121 = vst [vmem:[#allocation2 + $0x18] sm:$0xf] %v1120_v30  ;;  %v1125_v53 = vld [vmem:[#allocation2 + $0x20] sm:$0xf] }
  0xcb   : > { %v533_v58 = vsel %vm16157_vm4, 0, %v532_v41  ;;  %v536_v7 = vsel %vm16157_vm4, 0, %v535_v51  ;;  %v16311_v54 = vld [vmem:[#allocation2 + $0x10] sm:$0xe]  ;;  %v2112_v13 = vsel %vm16241_vm9, %v12853_v21, %v2111_v49  ;;  %v2025_v14 = vld [vmem:[#allocation2 + $0xb8] sm:$0xe]  ;;  %v1126_v56 = vsel %vm16186_vm8, %v815_v43, %v1125_v53  ;;  %13714 = vmatpush3.bf16.msra.mxu1 %v15316_v28 }
  0xcc   : > { %534 = vst [vmem:[#allocation2 + $0x14] sm:$0x1] %v533_v58  ;;  %537 = vst [vmem:[#allocation2 + $0x1c] sm:$0x1] %v536_v7  ;;  %v12854_v57 = vrot.slane %v16311_v54, 9  ;;  %v952_v59 = vrot.slane %v16296_v47, 4  ;;  %v12884_v60 = vcombine.low %v2108_v48, %v2112_v13  ;;  %13715 = vmatprep.subr.bf16.mxu1 %v15318_v3  ;;  %v951_v28 = vor.u32 %v949_v44, %v16296_v47 }
  0xcd   : > { %v15313_v62 = vld [vmem:[#allocation2 + $0xb8] ss:$8 sps:$4 sm:$0xff]   ;;  %v12871_v63 = vrot.slane %v2025_v14, 9  ;;  %1127 = vst [vmem:[#allocation2 + $0x20] sm:$0xf] %v1126_v56  ;;  %v957_v26 = vshll.u32 %v16278_v23, 16 }
  0xce   : > { %v491_v1 = vld [vmem:[#allocation2 + $0xc8] sm:$0x1]  ;;  %v494_v25 = vld [vmem:[#allocation2 + $0xd0] sm:$0x1]  ;;  %2586 = vmatmul.mubr.bf16.vlgmr.msra.gmra.mrb[0].mxu0 %v12884_v60  ;;  %2657 = vmatprep.mubr.bf16.mxu1 %v15313_v62  ;;  %v960_v4 = vrot.slane %v16319_v0, 4  ;;  %v629_v6 = vld [vmem:[%s16138_s29 + $0x20] sm:$0xff] }
  0xcf   : > { %v492_v31 = vsel %vm16152_vm2, 0, %v491_v1  ;;  %v495_v38 = vsel %vm16152_vm2, 0, %v494_v25  ;;  %v586_v5 = vld [vmem:[#allocation2 + $0xc4] sm:$0x1]  ;;  %v1349_v9 = vld [vmem:[#allocation2 + $0xb4] sm:$0x1]  ;;  %v13538_v17 = vpack.c.bf16 %v629_v6, %v629_v6 }
  0xd0   : > { %493 = vst [vmem:[#allocation2 + $0xc8] sm:$0x1] %v492_v31  ;;  %496 = vst [vmem:[#allocation2 + $0xd0] sm:$0x1] %v495_v38  ;;  %v587_v10 = vsel %vm16157_vm4, 0, %v586_v5  ;;  %v630_v16 = vld [vmem:[%s16138_s29 + $0x28] sm:$0xff] }
  0xd1   : > { %v589_v15 = vld [vmem:[#allocation2 + $0xcc] sm:$0x1]  ;;  %v1350_v18 = vld [vmem:[#allocation2 + $0xbc] sm:$0x1]  ;;  %v2179_v19 = vrot.slane %v1349_v9, 5  ;;  %v13539_v45 = vpack.c.bf16 %v630_v16, %v630_v16  ;;  %v818_v46 = vshrl.u32 %v13538_v17, 16 }
  0xd2   : > { %588 = vst [vmem:[#allocation2 + $0xc4] sm:$0x1] %v587_v10  ;;  %v590_v20 = vsel %vm16157_vm4, 0, %v589_v15  ;;  %v16333_v21 = vld [vmem:[#allocation2 + $0xc0] sm:$0xe]  ;;  %v2183_v23 = vrot.slane %v1350_v18, 5 }
  0xd3   : > { %v16335_v24 = vld [vmem:[#allocation2 + $0x18] sm:$0xe]  ;;  %591 = vst [vmem:[#allocation2 + $0xcc] sm:$0x1] %v590_v20  ;;  %v12872_v29 = vrot.slane %v16333_v21, 9  ;;  %v2180_v33 = vsel %vm16241_vm9, %v12870_v2, %v2179_v19  ;;  %v959_v2 = vor.u32 %v957_v26, %v16319_v0  ;;  %v821_v22 = vshll.u32 %v13538_v17, 16 }
  0xd4   : > { %v1116_v34 = vld [vmem:[#allocation2 + $0x14] sm:$0x1]  ;;  %v1122_v36 = vld [vmem:[#allocation2 + $0x1c] sm:$0x1]  ;;  %v12855_v39 = vrot.slane %v16335_v24, 9  ;;  %v2184_v43 = vsel %vm16241_vm9, %v12871_v63, %v2183_v23  ;;  %v826_v53 = vshrl.u32 %v13539_v45, 16 }
  0xd5   : > { %v15315_v48 = vld [vmem:[#allocation2 + $0x18] ss:$8 sps:$4 sm:$0xff]   ;;  %v1117_v44 = vsel %vm16152_vm2, %v800_v35, %v1116_v34  ;;  %v1123_v61 = vsel %vm16152_vm2, %v808_v37, %v1122_v36  ;;  %v12893_v49 = vcombine.low %v2180_v33, %v2184_v43  ;;  %v443_v30 = vld [vmem:[#allocation2 + $0x28] sm:$0x1]  ;;  %v446_v41 = vld [vmem:[#allocation2 + $0x30] sm:$0x1] }
  0xd6   : > { %1118 = vst [vmem:[#allocation2 + $0x14] sm:$0x1] %v1117_v44  ;;  %1124 = vst [vmem:[#allocation2 + $0x1c] sm:$0x1] %v1123_v61  ;;  %2593 = vmatprep.mubr.bf16.mxu0 %v15315_v48  ;;  %v444_v51 = vsel %vm16152_vm2, 0, %v443_v30  ;;  %v447_v12 = vsel %vm16152_vm2, 0, %v446_v41 }
  0xd7   : > { %v16359_v35 = vrot.slane %v818_v46, 7  ;;  %2658 = vmatmul.mubr.bf16.gmra.mrb[4].mxu1 %v12893_v49  ;;  %v1227_v52 = vld [vmem:[#allocation2 + $0xc8] sm:$0xf]  ;;  %v1233_v37 = vld [vmem:[#allocation2 + $0xd0] sm:$0xf]  ;;  %v829_v58 = vshll.u32 %v13539_v45, 16 }
  0xd8   : > { %445 = vst [vmem:[#allocation2 + $0x28] sm:$0x1] %v444_v51  ;;  %448 = vst [vmem:[#allocation2 + $0x30] sm:$0x1] %v447_v12  ;;  %v1228_v7 = vsel %vm16186_vm8, %v951_v28, %v1227_v52  ;;  %v1234_v13 = vsel %vm16186_vm8, %v959_v2, %v1233_v37  ;;  %v15320_v60 = vld [vmem:[#allocation7 + $0x10] sm:$0xff]   ;;  %v16370_v1 = vrot.slane %v826_v53, 7 }
  0xd9   : > { %v1224_v14 = vld [vmem:[#allocation2 + $0xc4] sm:$0x1]  ;;  %v824_v56 = vrot.slane %v16359_v35, 4  ;;  %1229 = vst [vmem:[#allocation2 + $0xc8] sm:$0xf] %v1228_v7  ;;  %v647_v26 = vld [vmem:[%s16138_s29 + $0xb0] sm:$0xff]  ;;  %v823_v31 = vor.u32 %v821_v22, %v16359_v35  ;;  %13716 = vmatpush3.bf16.msra.mxu1 %v15320_v60 }
  0xda   : > { %1235 = vst [vmem:[#allocation2 + $0xd0] sm:$0xf] %v1234_v13  ;;  %v1225_v62 = vsel %vm16152_vm2, %v944_v42, %v1224_v14  ;;  %v1230_v63 = vld [vmem:[#allocation2 + $0xcc] sm:$0x1]  ;;  %v538_v25 = vld [vmem:[#allocation2 + $0x24] sm:$0x1]  ;;  %v13556_v6 = vpack.c.bf16 %v647_v26, %v647_v26  ;;  %v831_v9 = vor.u32 %v829_v58, %v16370_v1 }
  0xdb   : > { %1226 = vst [vmem:[#allocation2 + $0xc4] sm:$0x1] %v1225_v62  ;;  %v1231_v3 = vsel %vm16152_vm2, %v952_v59, %v1230_v63  ;;  %v539_v32 = vsel %vm16157_vm4, 0, %v538_v25  ;;  %v541_v38 = vld [vmem:[#allocation2 + $0x2c] sm:$0x1]  ;;  %v648_v42 = vld [vmem:[%s16138_s29 + $0xb8] sm:$0xff] }
  0xdc   : > { %v16380_v5 = vld [vmem:[#allocation2 + $0x20] sm:$0xe]  ;;  %1232 = vst [vmem:[#allocation2 + $0xcc] sm:$0x1] %v1231_v3  ;;  %v832_v10 = vrot.slane %v16370_v1, 4  ;;  %v542_v47 = vsel %vm16157_vm4, 0, %v541_v38  ;;  %v13557_v34 = vpack.c.bf16 %v648_v42, %v648_v42 }
  0xdd   : > { %540 = vst [vmem:[#allocation2 + $0x24] sm:$0x1] %v539_v32  ;;  %v12856_v59 = vrot.slane %v16380_v5, 9  ;;  %v497_v15 = vld [vmem:[#allocation2 + $0xd8] sm:$0x1]  ;;  %v962_v20 = vshrl.u32 %v13556_v6, 16 }
  0xde   : > { %v15322_v16 = vld [vmem:[#allocation7 + $0x58] sm:$0xff]   ;;  %v1333_v17 = vld [vmem:[#allocation2 + $0x14] sm:$0x1]  ;;  %543 = vst [vmem:[#allocation2 + $0x2c] sm:$0x1] %v542_v47  ;;  %v498_v19 = vsel %vm16152_vm2, 0, %v497_v15 }
  0xdf   : > { %v1334_v18 = vld [vmem:[#allocation2 + $0x1c] sm:$0x1]  ;;  %v2115_v23 = vrot.slane %v1333_v17, 5  ;;  %499 = vst [vmem:[#allocation2 + $0xd8] sm:$0x1] %v498_v19  ;;  %v965_v36 = vshll.u32 %v13556_v6, 16  ;;  %13717 = vmatprep.subr.bf16.mxu1 %v15322_v16 }
  0xe0   : > { %v2119_v28 = vrot.slane %v1334_v18, 5  ;;  %v500_v33 = vld [vmem:[#allocation2 + $0xe0] sm:$0x1]  ;;  %v631_v45 = vld [vmem:[%s16138_s29 + $0x30] sm:$0xff]  ;;  %v1131_v46 = vld [vmem:[#allocation2 + $0x28] sm:$0xf] }
  0xe1   : > { %v1137_v43 = vld [vmem:[#allocation2 + $0x30] sm:$0xf]  ;;  %v501_v48 = vsel %vm16152_vm2, 0, %v500_v33  ;;  %v16393_v44 = vrot.slane %v962_v20, 7  ;;  %v2116_v61 = vsel %vm16241_vm9, %v12854_v57, %v2115_v23  ;;  %v1132_v49 = vsel %vm16186_vm8, %v823_v31, %v1131_v46  ;;  %v592_v41 = vld [vmem:[#allocation2 + $0xd4] sm:$0x1] }
  0xe2   : > { %v2120_v2 = vsel %vm16241_vm9, %v12855_v39, %v2119_v28  ;;  %v1138_v30 = vsel %vm16186_vm8, %v831_v9, %v1137_v43  ;;  %502 = vst [vmem:[#allocation2 + $0xe0] sm:$0x1] %v501_v48  ;;  %v595_v51 = vld [vmem:[#allocation2 + $0xdc] sm:$0x1]  ;;  %v15317_v22 = vld [vmem:[#allocation2 + $0xc8] ss:$8 sps:$4 sm:$0xff]   ;;  %v13540_v13 = vpack.c.bf16 %v631_v45, %v631_v45 }
  0xe3   : > { %v12885_v12 = vcombine.low %v2116_v61, %v2120_v2  ;;  %1133 = vst [vmem:[#allocation2 + $0x28] sm:$0xf] %v1132_v49  ;;  %1139 = vst [vmem:[#allocation2 + $0x30] sm:$0xf] %v1138_v30  ;;  %v1351_v54 = vld [vmem:[#allocation2 + $0xc4] sm:$0x1]  ;;  %v967_v24 = vor.u32 %v965_v36, %v16393_v44  ;;  %2665 = vmatprep.mubr.bf16.mxu1 %v15317_v22 }
  0xe4   : > { %v2027_v57 = vld [vmem:[#allocation2 + $0xc8] sm:$0xe]  ;;  %v968_v39 = vrot.slane %v16393_v44, 4  ;;  %v970_v52 = vshrl.u32 %v13557_v34, 16  ;;  %v1352_v37 = vld [vmem:[#allocation2 + $0xcc] sm:$0x1] }
  0xe5   : > { %2594 = vmatmul.mubr.bf16.gmra.mrb[4].mxu0 %v12885_v12  ;;  %v2187_v53 = vrot.slane %v1351_v54, 5  ;;  %v12873_v58 = vrot.slane %v2027_v57, 9  ;;  %v1128_v7 = vld [vmem:[#allocation2 + $0x24] sm:$0x1]  ;;  %v2191_v14 = vrot.slane %v1352_v37, 5  ;;  %v973_v25 = vshll.u32 %v13557_v34, 16 }
  0xe6   : > { %v1129_v60 = vsel %vm16152_vm2, %v816_v55, %v1128_v7  ;;  %v1134_v62 = vld [vmem:[#allocation2 + $0x2c] sm:$0x1]  ;;  %v16413_v63 = vrot.slane %v970_v52, 7  ;;  %v632_v26 = vld [vmem:[%s16138_s29 + $0x38] sm:$0xff]  ;;  %v593_v55 = vsel %vm16157_vm4, 0, %v592_v41  ;;  %v596_v32 = vsel %vm16157_vm4, 0, %v595_v51 }
  0xe7   : > { %v2188_v3 = vsel %vm16241_vm9, %v12872_v29, %v2187_v53  ;;  %1130 = vst [vmem:[#allocation2 + $0x24] sm:$0x1] %v1129_v60  ;;  %v1135_v31 = vsel %vm16152_vm2, %v824_v56, %v1134_v62  ;;  %v1239_v27 = vld [vmem:[#allocation2 + $0xd8] sm:$0xf]  ;;  %v16428_v38 = vld [vmem:[#allocation2 + $0xd0] sm:$0xe]  ;;  %v2192_v21 = vsel %vm16241_vm9, %v12873_v58, %v2191_v14  ;;  %v13541_v18 = vpack.c.bf16 %v632_v26, %v632_v26 }
  0xe8   : > { %1136 = vst [vmem:[#allocation2 + $0x2c] sm:$0x1] %v1135_v31  ;;  %v975_v29 = vor.u32 %v973_v25, %v16413_v63  ;;  %v976_v35 = vrot.slane %v16413_v63, 4  ;;  %v1240_v56 = vsel %vm16186_vm8, %v967_v24, %v1239_v27  ;;  %594 = vst [vmem:[#allocation2 + $0xd4] sm:$0x1] %v593_v55  ;;  %v15324_v6 = vld [vmem:[#allocation7 + $0x18] sm:$0xff]   ;;  %v12894_v9 = vcombine.low %v2188_v3, %v2192_v21 }
  0xe9   : > { %597 = vst [vmem:[#allocation2 + $0xdc] sm:$0x1] %v596_v32  ;;  %v449_v42 = vld [vmem:[#allocation2 + $0x38] sm:$0x1]  ;;  %1241 = vst [vmem:[#allocation2 + $0xd8] sm:$0xf] %v1240_v56  ;;  %13718 = vmatpush3.bf16.msra.mxu1 %v15324_v6 }
  0xea   : > { %v1245_v47 = vld [vmem:[#allocation2 + $0xe0] sm:$0xf]  ;;  %v12874_v15 = vrot.slane %v16428_v38, 9  ;;  %v450_v16 = vsel %vm16152_vm2, 0, %v449_v42  ;;  %v15319_v19 = vld [vmem:[#allocation2 + $0x28] ss:$8 sps:$4 sm:$0xff]   ;;  %2666 = vmatmul.mubr.bf16.gmra.mrb[8].mxu1 %v12894_v9 }
  0xeb   : > { %v452_v17 = vld [vmem:[#allocation2 + $0x40] sm:$0x1]  ;;  %v1246_v20 = vsel %vm16186_vm8, %v975_v29, %v1245_v47  ;;  %451 = vst [vmem:[#allocation2 + $0x38] sm:$0x1] %v450_v16  ;;  %v2011_v23 = vld [vmem:[#allocation2 + $0x28] sm:$0xe]  ;;  %2601 = vmatprep.mubr.bf16.mxu0 %v15319_v19 }
  0xec   : > { %1247 = vst [vmem:[#allocation2 + $0xe0] sm:$0xf] %v1246_v20  ;;  %v453_v28 = vsel %vm16152_vm2, 0, %v452_v17  ;;  %v834_v33 = vshrl.u32 %v13540_v13, 16  ;;  %v837_v34 = vshll.u32 %v13540_v13, 16  ;;  %v842_v36 = vshrl.u32 %v13541_v18, 16 }
  0xed   : > { %v12857_v45 = vrot.slane %v2011_v23, 9  ;;  %454 = vst [vmem:[#allocation2 + $0x40] sm:$0x1] %v453_v28  ;;  %v845_v46 = vshll.u32 %v13541_v18, 16  ;;  %v544_v61 = vld [vmem:[#allocation2 + $0x34] sm:$0x1] }
  0xee   : > { %v16443_v43 = vrot.slane %v834_v33, 7  ;;  %v16445_v48 = vrot.slane %v842_v36, 7  ;;  %v547_v2 = vld [vmem:[#allocation2 + $0x3c] sm:$0x1]  ;;  %v1335_v49 = vld [vmem:[#allocation2 + $0x24] sm:$0x1] }
  0xef   : > { %v545_v30 = vsel %vm16157_vm4, 0, %v544_v61  ;;  %v548_v41 = vsel %vm16157_vm4, 0, %v547_v2  ;;  %v16451_v51 = vld [vmem:[#allocation2 + $0x30] sm:$0xe]  ;;  %v1336_v12 = vld [vmem:[#allocation2 + $0x2c] sm:$0x1] }
  0xf0   : > { %v2123_v22 = vrot.slane %v1335_v49, 5  ;;  %v1236_v54 = vld [vmem:[#allocation2 + $0xd4] sm:$0x1]  ;;  %v839_v57 = vor.u32 %v837_v34, %v16443_v43  ;;  %v840_v24 = vrot.slane %v16443_v43, 4  ;;  %546 = vst [vmem:[#allocation2 + $0x34] sm:$0x1] %v545_v30  ;;  %v847_v58 = vor.u32 %v845_v46, %v16445_v48 }
  0xf1   : > { %549 = vst [vmem:[#allocation2 + $0x3c] sm:$0x1] %v548_v41  ;;  %v2127_v52 = vrot.slane %v1336_v12, 5  ;;  %v1237_v37 = vsel %vm16152_vm2, %v960_v4, %v1236_v54  ;;  %v1242_v53 = vld [vmem:[#allocation2 + $0xdc] sm:$0x1]  ;;  %v848_v7 = vrot.slane %v16445_v48, 4 }
  0xf2   : > { %v2124_v13 = vsel %vm16241_vm9, %v12856_v59, %v2123_v22  ;;  %1238 = vst [vmem:[#allocation2 + $0xd4] sm:$0x1] %v1237_v37  ;;  %v1243_v0 = vsel %vm16152_vm2, %v968_v39, %v1242_v53  ;;  %v16469_v14 = vld [vmem:[#allocation2 + $0xd8] sm:$0xe]  ;;  %v12858_v60 = vrot.slane %v16451_v51, 9  ;;  %v649_v62 = vld [vmem:[%s16138_s29 + $0xc0] sm:$0xff] }
  0xf3   : > { %v1143_v4 = vld [vmem:[#allocation2 + $0x38] sm:$0xf]  ;;  %v2128_v25 = vsel %vm16241_vm9, %v12857_v45, %v2127_v52  ;;  %1244 = vst [vmem:[#allocation2 + $0xdc] sm:$0x1] %v1243_v0  ;;  %v12875_v5 = vrot.slane %v16469_v14, 9  ;;  %v650_v44 = vld [vmem:[%s16138_s29 + $0xc8] sm:$0xff]  ;;  %v13558_v3 = vpack.c.bf16 %v649_v62, %v649_v62 }
  0xf4   : > { %v15321_v26 = vld [vmem:[#allocation2 + $0xd8] ss:$8 sps:$4 sm:$0xff]   ;;  %v1144_v59 = vsel %vm16186_vm8, %v839_v57, %v1143_v4  ;;  %v12886_v31 = vcombine.low %v2124_v13, %v2128_v25  ;;  %v13559_v32 = vpack.c.bf16 %v650_v44, %v650_v44  ;;  %v601_v6 = vld [vmem:[#allocation2 + $0xfc] sm:$0x1]  ;;  %v16487_v19 = vld [vmem:[#allocation2 + $0xf4] sm:$0x1] }
  0xf5   : > { %1145 = vst [vmem:[#allocation2 + $0x38] sm:$0xf] %v1144_v59  ;;  %v1149_v39 = vld [vmem:[#allocation2 + $0x40] sm:$0xf]  ;;  %v503_v27 = vld [vmem:[#allocation2 + $0xf8] sm:$0x1]  ;;  %2673 = vmatprep.mubr.bf16.mxu1 %v15321_v26 }
  0xf6   : > { %v506_v55 = vld [vmem:[#allocation2 + $0x100] sm:$0x1]  ;;  %v1150_v21 = vsel %vm16186_vm8, %v847_v58, %v1149_v39  ;;  %v504_v29 = vsel %vm16152_vm2, 0, %v503_v27  ;;  %v978_v42 = vshrl.u32 %v13558_v3, 16  ;;  %2602 = vmatmul.mubr.bf16.gmra.mrb[8].mxu0 %v12886_v31  ;;  %v981_v47 = vshll.u32 %v13558_v3, 16  ;;  %v634_v13 = vld [vmem:[%s16138_s29 + $0x48] sm:$0xff] }
  0xf7   : > { %v507_v56 = vsel %vm16152_vm2, 0, %v506_v55  ;;  %v15326_v9 = vld [vmem:[#allocation7 + $0x60] sm:$0xff]   ;;  %1151 = vst [vmem:[#allocation2 + $0x40] sm:$0xf] %v1150_v21  ;;  %505 = vst [vmem:[#allocation2 + $0xf8] sm:$0x1] %v504_v29  ;;  %v13543_v26 = vpack.c.bf16 %v634_v13, %v634_v13 }
  0xf8   : > { %508 = vst [vmem:[#allocation2 + $0x100] sm:$0x1] %v507_v56  ;;  %v986_v16 = vshrl.u32 %v13559_v32, 16  ;;  %v989_v17 = vshll.u32 %v13559_v32, 16  ;;  %v602_v18 = vsel %vm16157_vm4, 0, %v601_v6  ;;  %v980_v28 = vrot.slane %v978_v42, 7  ;;  %13719 = vmatprep.subr.bf16.mxu1 %v15326_v9 }
  0xf9   : > { %v1140_v20 = vld [vmem:[#allocation2 + $0x34] sm:$0x1]  ;;  %v1146_v23 = vld [vmem:[#allocation2 + $0x3c] sm:$0x1]  ;;  %603 = vst [vmem:[#allocation2 + $0xfc] sm:$0x1] %v602_v18 }
  0xfa   : > { %v2203_v33 = vrot.slane %v16487_v19, 5  ;;  %v1141_v34 = vsel %vm16152_vm2, %v832_v10, %v1140_v20  ;;  %v1147_v36 = vsel %vm16152_vm2, %v840_v24, %v1146_v23  ;;  %v16496_v45 = vrot.slane %v986_v16, 7  ;;  %v16498_v46 = vld [vmem:[#allocation2 + $0xf0] sm:$0xe]  ;;  %v633_v43 = vld [vmem:[%s16138_s29 + $0x40] sm:$0xff]  ;;  %s20405_s30 = scalar_lea.vmem [#allocation13], %s12782_s25 }
  0xfb   : > { %v1353_v61 = vld [vmem:[#allocation2 + $0xd4] sm:$0x1]  ;;  %1142 = vst [vmem:[#allocation2 + $0x34] sm:$0x1] %v1141_v34  ;;  %1148 = vst [vmem:[#allocation2 + $0x3c] sm:$0x1] %v1147_v36  ;;  %v13542_v30 = vpack.c.bf16 %v633_v43, %v633_v43  ;;  %v983_v12 = vor.u32 %v981_v47, %v980_v28 }
  0xfc   : > { %v984_v2 = vrot.slane %v980_v28, 4  ;;  %v12876_v49 = vrot.slane %v16498_v46, 9  ;;  %v1354_v1 = vld [vmem:[#allocation2 + $0xdc] sm:$0x1]  ;;  %v2195_v41 = vrot.slane %v1353_v61, 5  ;;  %v992_v10 = vrot.slane %v16496_v45, 4 }
  0xfd   : > { %v455_v22 = vld [vmem:[#allocation2 + $0x58] sm:$0x1]  ;;  %v2199_v54 = vrot.slane %v1354_v1, 5  ;;  %v2013_v57 = vld [vmem:[#allocation2 + $0x38] sm:$0xe]  ;;  %v991_v24 = vor.u32 %v989_v17, %v16496_v45  ;;  %v850_v0 = vshrl.u32 %v13542_v30, 16 }
  0xfe   : > { %v456_v52 = vsel %vm16152_vm2, 0, %v455_v22  ;;  %v2196_v37 = vsel %vm16241_vm9, %v12874_v15, %v2195_v41  ;;  %v12859_v53 = vrot.slane %v2013_v57, 9  ;;  %v458_v58 = vld [vmem:[#allocation2 + $0x60] sm:$0x1]  ;;  %v853_v14 = vshll.u32 %v13542_v30, 16  ;;  %v15331_v30 = vld [vmem:[#allocation7 + $0x148] sm:$0xff]  }
  0xff   : > { %457 = vst [vmem:[#allocation2 + $0x58] sm:$0x1] %v456_v52  ;;  %v2200_v4 = vsel %vm16241_vm9, %v12875_v5, %v2199_v54  ;;  %v15323_v62 = vld [vmem:[#allocation2 + $0x38] ss:$8 sps:$4 sm:$0xff]   ;;  %v459_v15 = vsel %vm16152_vm2, 0, %v458_v58  ;;  %v16517_v31 = vrot.slane %v850_v0, 7  ;;  %v2204_v52 = vsel %vm16241_vm9, %v12876_v49, %v2203_v33 }
 0x100   : > { %v1251_v25 = vld [vmem:[#allocation2 + $0xf8] sm:$0xf]  ;;  %v12895_v59 = vcombine.low %v2196_v37, %v2200_v4  ;;  %v1257_v38 = vld [vmem:[#allocation2 + $0x100] sm:$0xf]  ;;  %v1254_v3 = vld [vmem:[#allocation2 + $0xfc] sm:$0x1]  ;;  %2609 = vmatprep.mubr.bf16.mxu0 %v15323_v62 }
 0x101   : > { %v1252_v44 = vsel %vm16186_vm8, %v983_v12, %v1251_v25  ;;  %v1258_v39 = vsel %vm16186_vm8, %v991_v24, %v1257_v38  ;;  %v1255_v5 = vsel %vm16152_vm2, %v984_v2, %v1254_v3  ;;  %460 = vst [vmem:[#allocation2 + $0x60] sm:$0x1] %v459_v15  ;;  %v858_v27 = vshrl.u32 %v13543_v26, 16  ;;  %v15328_v42 = vld [vmem:[#allocation7 + $0x20] sm:$0xff]   ;;  %v553_v16 = vld [vmem:[#allocation2 + $0x5c] sm:$0x1] }
 0x102   : > { %1253 = vst [vmem:[#allocation2 + $0xf8] sm:$0xf] %v1252_v44  ;;  %v861_v55 = vshll.u32 %v13543_v26, 16  ;;  %2674 = vmatmul.mubr.bf16.gmra.mrb[12].mxu1 %v12895_v59  ;;  %v1337_v32 = vld [vmem:[#allocation2 + $0x34] sm:$0x1]  ;;  %v855_v29 = vor.u32 %v853_v14, %v16517_v31  ;;  %v856_v56 = vrot.slane %v16517_v31, 4 }
 0x103   : > { %v1338_v21 = vld [vmem:[#allocation2 + $0x3c] sm:$0x1]  ;;  %1259 = vst [vmem:[#allocation2 + $0x100] sm:$0xf] %v1258_v39  ;;  %1256 = vst [vmem:[#allocation2 + $0xfc] sm:$0x1] %v1255_v5  ;;  %13720 = vmatpush3.bf16.msra.mxu1 %v15328_v42 }
 0x104   : > { %v2131_v6 = vrot.slane %v1337_v32, 5  ;;  %v2135_v9 = vrot.slane %v1338_v21, 5  ;;  %v16525_v47 = vrot.slane %v858_v27, 7  ;;  %v15329_v17 = vld [vmem:[#allocation7 + $0x140] sm:$0xff]   ;;  %v554_v18 = vsel %vm16157_vm4, 0, %v553_v16  ;;  %v651_v4 = vld [vmem:[%s16138_s29 + $0xd0] sm:$0xff] }
 0x105   : > { %v16529_v20 = vld [vmem:[#allocation2 + $0x54] sm:$0x1]  ;;  %v16531_v23 = vld [vmem:[#allocation2 + $0x50] sm:$0xe]  ;;  %v15330_v28 = vld [vmem:[#allocation7 + $0x100] sm:$0xff]   ;;  %13823 = vmatprep.subr.bf16.mxu0 %v15329_v17  ;;  %v13560_v33 = vpack.c.bf16 %v651_v4, %v651_v4  ;;  %s13598_s25 = sshll.u32 %s15930_s13, 12 }
 0x106   : > { %v2132_v34 = vsel %vm16241_vm9, %v12858_v60, %v2131_v6  ;;  %v2136_v36 = vsel %vm16241_vm9, %v12859_v53, %v2135_v9  ;;  %v863_v43 = vor.u32 %v861_v55, %v16525_v47  ;;  %v864_v61 = vrot.slane %v16525_v47, 4  ;;  %v1155_v2 = vld [vmem:[#allocation2 + $0x58] sm:$0xf]  ;;  %555 = vst [vmem:[#allocation2 + $0x5c] sm:$0x1] %v554_v18  ;;  %13824 = vmatpush3.bf16.msra.mxu0 %v15330_v28  ;;  %v15333_v25 = vld [vmem:[#allocation7 + $0x108] sm:$0xff]  }
 0x107   : > { %v12887_v1 = vcombine.low %v2132_v34, %v2136_v36  ;;  %v1156_v41 = vsel %vm16186_vm8, %v855_v29, %v1155_v2  ;;  %v12860_v51 = vrot.slane %v16531_v23, 9  ;;  %v2139_v12 = vrot.slane %v16529_v20, 5  ;;  %13825 = vmatprep.subr.bf16.mxu0 %v15331_v30  ;;  %v509_v58 = vld [vmem:[#allocation2 + $0x108] sm:$0x1]  ;;  %v512_v13 = vld [vmem:[#allocation2 + $0x110] sm:$0x1] }
 0x108   : > { %1157 = vst [vmem:[#allocation2 + $0x58] sm:$0xf] %v1156_v41  ;;  %v1161_v22 = vld [vmem:[#allocation2 + $0x60] sm:$0xf]  ;;  %v510_v0 = vsel %vm16152_vm2, 0, %v509_v58  ;;  %v513_v14 = vsel %vm16152_vm2, 0, %v512_v13 }
 0x109   : > { %2610 = vmatmul.mubr.bf16.gmra.mrb[12].mxu0 %v12887_v1  ;;  %v2031_v60 = vld [vmem:[#allocation2 + $0xf8] sm:$0xe]  ;;  %v1162_v24 = vsel %vm16186_vm8, %v863_v43, %v1161_v22  ;;  %511 = vst [vmem:[#allocation2 + $0x108] sm:$0x1] %v510_v0  ;;  %514 = vst [vmem:[#allocation2 + $0x110] sm:$0x1] %v513_v14 }
 0x10a   : > { %v15325_v54 = vld [vmem:[#allocation2 + $0xf8] ss:$8 sps:$4 sm:$0xff]   ;;  %v1356_v57 = vld [vmem:[#allocation2 + $0xfc] sm:$0x1]  ;;  %v12877_v37 = vrot.slane %v2031_v60, 9  ;;  %v994_v5 = vshrl.u32 %v13560_v33, 16  ;;  %13826 = vmatpush3.bf16.msra.mxu0 %v15333_v25 }
 0x10b   : > { %v2207_v53 = vrot.slane %v1356_v57, 5  ;;  %1163 = vst [vmem:[#allocation2 + $0x60] sm:$0xf] %v1162_v24  ;;  %2681 = vmatprep.mubr.bf16.mxu1 %v15325_v54  ;;  %v652_v62 = vld [vmem:[%s16138_s29 + $0xd8] sm:$0xff]  ;;  %v16561_v26 = vld [vmem:[#allocation2 + $0x4] sm:$0x1] }
 0x10c   : > { %v13561_v49 = vpack.c.bf16 %v652_v62, %v652_v62  ;;  %v1376_v59 = vshll.u32 %v16561_v26, 16  ;;  %v604_v3 = vld [vmem:[#allocation2 + $0x104] sm:$0x1]  ;;  %v607_v15 = vld [vmem:[#allocation2 + $0x10c] sm:$0x1]  ;;  %v997_v27 = vshll.u32 %v13560_v33, 16  ;;  %v2140_v62 = vsel %vm16241_vm9, %v12860_v51, %v2139_v12 }
 0x10d   : > { %v2208_v19 = vsel %vm16241_vm9, %v12877_v37, %v2207_v53  ;;  %v1158_v46 = vld [vmem:[#allocation2 + $0x5c] sm:$0x1]  ;;  %v16566_v31 = vld [vmem:[#allocation2 + $0x100] sm:$0xe]  ;;  %v605_v29 = vsel %vm16157_vm4, 0, %v604_v3  ;;  %v996_v42 = vrot.slane %v994_v5, 7 }
 0x10e   : > { %v12896_v44 = vcombine.low %v2204_v52, %v2208_v19  ;;  %v1159_v38 = vsel %vm16152_vm2, %v856_v56, %v1158_v46  ;;  %v1002_v32 = vshrl.u32 %v13561_v49, 16  ;;  %v1005_v21 = vshll.u32 %v13561_v49, 16  ;;  %606 = vst [vmem:[#allocation2 + $0x104] sm:$0x1] %v605_v29  ;;  %v15334_v9 = vld [vmem:[#allocation7 + $0x68] sm:$0xff]   ;;  %v635_v18 = vld [vmem:[%s16138_s29 + $0x50] sm:$0xff] }
 0x10f   : > { %1160 = vst [vmem:[#allocation2 + $0x5c] sm:$0x1] %v1159_v38  ;;  %v2015_v39 = vld [vmem:[#allocation2 + $0x58] sm:$0xe]  ;;  %v608_v56 = vsel %vm16157_vm4, 0, %v607_v15  ;;  %v12878_v6 = vrot.slane %v16566_v31, 9  ;;  %v999_v28 = vor.u32 %v997_v27, %v996_v42  ;;  %13721 = vmatprep.subr.bf16.mxu1 %v15334_v9  ;;  %v13544_v30 = vpack.c.bf16 %v635_v18, %v635_v18 }
 0x110   : > { %2682 = vmatmul.mubr.bf16.gmra.mrb[16].mxu1 %v12896_v44  ;;  %v12861_v55 = vrot.slane %v2015_v39, 9  ;;  %v16573_v17 = vrot.slane %v1002_v32, 7  ;;  %609 = vst [vmem:[#allocation2 + $0x10c] sm:$0x1] %v608_v56  ;;  %v1000_v34 = vrot.slane %v996_v42, 4  ;;  %v636_v2 = vld [vmem:[%s16138_s29 + $0x58] sm:$0xff] }
 0x111   : > { %v461_v36 = vld [vmem:[#allocation2 + $0x68] sm:$0x1]  ;;  %v464_v43 = vld [vmem:[#allocation2 + $0x70] sm:$0x1]  ;;  %v13545_v57 = vpack.c.bf16 %v636_v2, %v636_v2  ;;  %v866_v37 = vshrl.u32 %v13544_v30, 16  ;;  %v869_v53 = vshll.u32 %v13544_v30, 16 }
 0x112   : > { %v15327_v16 = vld [vmem:[#allocation2 + $0x58] ss:$8 sps:$4 sm:$0xff]   ;;  %v1007_v1 = vor.u32 %v1005_v21, %v16573_v17  ;;  %v1008_v41 = vrot.slane %v16573_v17, 4  ;;  %v1263_v60 = vld [vmem:[#allocation2 + $0x108] sm:$0xf]  ;;  %v462_v54 = vsel %vm16152_vm2, 0, %v461_v36 }
 0x113   : > { %2617 = vmatprep.mubr.bf16.mxu0 %v15327_v16  ;;  %v1269_v22 = vld [vmem:[#allocation2 + $0x110] sm:$0xf]  ;;  %v1264_v24 = vsel %vm16186_vm8, %v999_v28, %v1263_v60  ;;  %463 = vst [vmem:[#allocation2 + $0x68] sm:$0x1] %v462_v54  ;;  %v465_v52 = vsel %vm16152_vm2, 0, %v464_v43  ;;  %v15336_v58 = vld [vmem:[#allocation7 + $0x28] sm:$0xff]  }
 0x114   : > { %1265 = vst [vmem:[#allocation2 + $0x108] sm:$0xf] %v1264_v24  ;;  %v1270_v0 = vsel %vm16186_vm8, %v1007_v1, %v1269_v22  ;;  %466 = vst [vmem:[#allocation2 + $0x70] sm:$0x1] %v465_v52  ;;  %v874_v14 = vshrl.u32 %v13545_v57, 16  ;;  %v877_v4 = vshll.u32 %v13545_v57, 16  ;;  %13722 = vmatpush3.bf16.msra.mxu1 %v15336_v58 }
 0x115   : > { %1271 = vst [vmem:[#allocation2 + $0x110] sm:$0xf] %v1270_v0  ;;  %v868_v46 = vrot.slane %v866_v37, 7  ;;  %v556_v33 = vld [vmem:[#allocation2 + $0x64] sm:$0x1]  ;;  %v15337_v3 = vld [vmem:[#allocation7 + $0x150] sm:$0xff]  }
 0x116   : > { %v1340_v13 = vld [vmem:[#allocation2 + $0x5c] sm:$0x1]  ;;  %v559_v49 = vld [vmem:[#allocation2 + $0x6c] sm:$0x1]  ;;  %v1260_v25 = vld [vmem:[#allocation2 + $0x104] sm:$0x1]  ;;  %13827 = vmatprep.subr.bf16.mxu0 %v15337_v3 }
 0x117   : > { %v2143_v19 = vrot.slane %v1340_v13, 5  ;;  %v16593_v44 = vrot.slane %v874_v14, 7  ;;  %v557_v38 = vsel %vm16157_vm4, 0, %v556_v33  ;;  %v560_v20 = vsel %vm16157_vm4, 0, %v559_v49  ;;  %v1266_v12 = vld [vmem:[#allocation2 + $0x10c] sm:$0x1] }
 0x118   : > { %v1261_v51 = vsel %vm16152_vm2, %v992_v10, %v1260_v25  ;;  %v871_v15 = vor.u32 %v869_v53, %v868_v46  ;;  %v872_v39 = vrot.slane %v868_v46, 4  ;;  %558 = vst [vmem:[#allocation2 + $0x64] sm:$0x1] %v557_v38  ;;  %561 = vst [vmem:[#allocation2 + $0x6c] sm:$0x1] %v560_v20  ;;  %v15338_v27 = vld [vmem:[#allocation7 + $0x110] sm:$0xff]   ;;  %v1267_v21 = vsel %vm16152_vm2, %v1000_v34, %v1266_v12 }
 0x119   : > { %v2144_v23 = vsel %vm16241_vm9, %v12861_v55, %v2143_v19  ;;  %v16605_v5 = vld [vmem:[#allocation2 + $0x60] sm:$0xe]  ;;  %1262 = vst [vmem:[#allocation2 + $0x104] sm:$0x1] %v1261_v51  ;;  %v879_v55 = vor.u32 %v877_v4, %v16593_v44  ;;  %v880_v45 = vrot.slane %v16593_v44, 4  ;;  %v15339_v10 = vld [vmem:[#allocation7 + $0x158] sm:$0xff]   ;;  %13828 = vmatpush3.bf16.msra.mxu0 %v15338_v27 }
 0x11a   : > { %v12888_v32 = vcombine.low %v2140_v62, %v2144_v23  ;;  %1268 = vst [vmem:[#allocation2 + $0x10c] sm:$0x1] %v1267_v21  ;;  %v12862_v29 = vrot.slane %v16605_v5, 9  ;;  %v653_v42 = vld [vmem:[%s16138_s29 + $0xe0] sm:$0xff]  ;;  %v1167_v56 = vld [vmem:[#allocation2 + $0x68] sm:$0xf]  ;;  %13829 = vmatprep.subr.bf16.mxu0 %v15339_v10 }
 0x11b   : > { %v13562_v9 = vpack.c.bf16 %v653_v42, %v653_v42  ;;  %v2033_v16 = vld [vmem:[#allocation2 + $0x108] sm:$0xe]  ;;  %v1168_v18 = vsel %vm16186_vm8, %v871_v15, %v1167_v56  ;;  %v1173_v28 = vld [vmem:[#allocation2 + $0x70] sm:$0xf]  ;;  %v515_v30 = vld [vmem:[#allocation2 + $0x118] sm:$0x1] }
 0x11c   : > { %2618 = vmatmul.mubr.bf16.gmra.mrb[16].mxu0 %v12888_v32  ;;  %v15332_v34 = vld [vmem:[#allocation2 + $0x108] ss:$8 sps:$4 sm:$0xff]   ;;  %v12879_v36 = vrot.slane %v2033_v16, 9  ;;  %1169 = vst [vmem:[#allocation2 + $0x68] sm:$0xf] %v1168_v18  ;;  %v1174_v43 = vsel %vm16186_vm8, %v879_v55, %v1173_v28  ;;  %v516_v52 = vsel %vm16152_vm2, 0, %v515_v30 }
 0x11d   : > { %v654_v2 = vld [vmem:[%s16138_s29 + $0xe8] sm:$0xff]  ;;  %1175 = vst [vmem:[#allocation2 + $0x70] sm:$0xf] %v1174_v43  ;;  %v518_v1 = vld [vmem:[#allocation2 + $0x120] sm:$0x1]  ;;  %v1010_v22 = vshrl.u32 %v13562_v9, 16  ;;  %2689 = vmatprep.mubr.bf16.mxu1 %v15332_v34 }
 0x11e   : > { %v13563_v60 = vpack.c.bf16 %v654_v2, %v654_v2  ;;  %v1013_v54 = vshll.u32 %v13562_v9, 16  ;;  %v519_v37 = vsel %vm16152_vm2, 0, %v518_v1  ;;  %517 = vst [vmem:[#allocation2 + $0x118] sm:$0x1] %v516_v52  ;;  %v15341_v49 = vld [vmem:[#allocation7 + $0x118] sm:$0xff]   ;;  %v15342_v51 = vld [vmem:[#allocation7 + $0x70] sm:$0xff]  }
 0x11f   : > { %v1164_v57 = vld [vmem:[#allocation2 + $0x64] sm:$0x1]  ;;  %v1170_v24 = vld [vmem:[#allocation2 + $0x6c] sm:$0x1]  ;;  %520 = vst [vmem:[#allocation2 + $0x120] sm:$0x1] %v519_v37  ;;  %13830 = vmatpush3.bf16.msra.mxu0 %v15341_v49  ;;  %13723 = vmatprep.subr.bf16.mxu1 %v15342_v51 }
 0x120   : > { %v1357_v53 = vld [vmem:[#allocation2 + $0x104] sm:$0x1]  ;;  %v1165_v58 = vsel %vm16152_vm2, %v864_v61, %v1164_v57  ;;  %v1171_v13 = vsel %vm16152_vm2, %v872_v39, %v1170_v24  ;;  %v16628_v0 = vrot.slane %v1010_v22, 7  ;;  %v1018_v14 = vshrl.u32 %v13563_v60, 16  ;;  %v610_v61 = vld [vmem:[#allocation2 + $0x114] sm:$0x1] }
 0x121   : > { %v1358_v4 = vld [vmem:[#allocation2 + $0x10c] sm:$0x1]  ;;  %v2211_v62 = vrot.slane %v1357_v53, 5  ;;  %1166 = vst [vmem:[#allocation2 + $0x64] sm:$0x1] %v1165_v58  ;;  %v1021_v19 = vshll.u32 %v13563_v60, 16 }
 0x122   : > { %1172 = vst [vmem:[#allocation2 + $0x6c] sm:$0x1] %v1171_v13  ;;  %v2215_v46 = vrot.slane %v1358_v4, 5  ;;  %v1016_v33 = vrot.slane %v16628_v0, 4  ;;  %v16631_v47 = vrot.slane %v1018_v14, 7  ;;  %v1015_v38 = vor.u32 %v1013_v54, %v16628_v0  ;;  %v637_v16 = vld [vmem:[%s16138_s29 + $0x60] sm:$0xff] }
 0x123   : > { %v2212_v25 = vsel %vm16241_vm9, %v12878_v6, %v2211_v62  ;;  %v611_v20 = vsel %vm16157_vm4, 0, %v610_v61  ;;  %v613_v3 = vld [vmem:[#allocation2 + $0x11c] sm:$0x1]  ;;  %v16640_v23 = vld [vmem:[#allocation2 + $0x110] sm:$0xe]  ;;  %v13546_v2 = vpack.c.bf16 %v637_v16, %v637_v16  ;;  %v638_v22 = vld [vmem:[%s16138_s29 + $0x68] sm:$0xff] }
 0x124   : > { %v2216_v12 = vsel %vm16241_vm9, %v12879_v36, %v2215_v46  ;;  %v2017_v15 = vld [vmem:[#allocation2 + $0x68] sm:$0xe]  ;;  %v1023_v39 = vor.u32 %v1021_v19, %v16631_v47  ;;  %v1024_v31 = vrot.slane %v16631_v47, 4  ;;  %612 = vst [vmem:[#allocation2 + $0x114] sm:$0x1] %v611_v20  ;;  %v614_v6 = vsel %vm16157_vm4, 0, %v613_v3 }
 0x125   : > { %v12897_v27 = vcombine.low %v2212_v25, %v2216_v12  ;;  %v15335_v32 = vld [vmem:[#allocation2 + $0x68] ss:$8 sps:$4 sm:$0xff]   ;;  %v12863_v21 = vrot.slane %v2017_v15, 9  ;;  %615 = vst [vmem:[#allocation2 + $0x11c] sm:$0x1] %v614_v6  ;;  %v12880_v55 = vrot.slane %v16640_v23, 9  ;;  %v13547_v54 = vpack.c.bf16 %v638_v22, %v638_v22 }
 0x126   : > { %v467_v10 = vld [vmem:[#allocation2 + $0x78] sm:$0x1]  ;;  %2625 = vmatprep.mubr.bf16.mxu0 %v15335_v32  ;;  %v1281_v56 = vld [vmem:[#allocation2 + $0x120] sm:$0xf]  ;;  %v882_v57 = vshrl.u32 %v13546_v2, 16  ;;  %v885_v24 = vshll.u32 %v13546_v2, 16 }
 0x127   : > { %2690 = vmatmul.mubr.bf16.gmra.mrb[20].mxu1 %v12897_v27  ;;  %v1275_v42 = vld [vmem:[#allocation2 + $0x118] sm:$0xf]  ;;  %v468_v9 = vsel %vm16152_vm2, 0, %v467_v10  ;;  %v1282_v36 = vsel %vm16186_vm8, %v1023_v39, %v1281_v56  ;;  %v470_v43 = vld [vmem:[#allocation2 + $0x80] sm:$0x1]  ;;  %v15344_v52 = vld [vmem:[#allocation7 + $0x30] sm:$0xff]  }
 0x128   : > { %v1341_v18 = vld [vmem:[#allocation2 + $0x64] sm:$0x1]  ;;  %v1276_v34 = vsel %vm16186_vm8, %v1015_v38, %v1275_v42  ;;  %469 = vst [vmem:[#allocation2 + $0x78] sm:$0x1] %v468_v9  ;;  %1283 = vst [vmem:[#allocation2 + $0x120] sm:$0xf] %v1282_v36  ;;  %13724 = vmatpush3.bf16.msra.mxu1 %v15344_v52 }
 0x129   : > { %v1342_v28 = vld [vmem:[#allocation2 + $0x6c] sm:$0x1]  ;;  %v2147_v30 = vrot.slane %v1341_v18, 5  ;;  %1277 = vst [vmem:[#allocation2 + $0x118] sm:$0xf] %v1276_v34  ;;  %v471_v60 = vsel %vm16152_vm2, 0, %v470_v43 }
 0x12a   : > { %v2151_v1 = vrot.slane %v1342_v28, 5  ;;  %472 = vst [vmem:[#allocation2 + $0x80] sm:$0x1] %v471_v60  ;;  %v15345_v37 = vld [vmem:[#allocation7 + $0x160] sm:$0xff]   ;;  %v562_v14 = vld [vmem:[#allocation2 + $0x74] sm:$0x1] }
 0x12b   : > { %v2148_v53 = vsel %vm16241_vm9, %v12862_v29, %v2147_v30  ;;  %v1272_v13 = vld [vmem:[#allocation2 + $0x114] sm:$0x1]  ;;  %v565_v4 = vld [vmem:[#allocation2 + $0x7c] sm:$0x1]  ;;  %v884_v49 = vrot.slane %v882_v57, 7  ;;  %v890_v61 = vshrl.u32 %v13547_v54, 16  ;;  %13831 = vmatprep.subr.bf16.mxu0 %v15345_v37 }
 0x12c   : > { %v2152_v58 = vsel %vm16241_vm9, %v12863_v21, %v2151_v1  ;;  %v1273_v19 = vsel %vm16152_vm2, %v1008_v41, %v1272_v13  ;;  %v1278_v46 = vld [vmem:[#allocation2 + $0x11c] sm:$0x1]  ;;  %v16669_v5 = vld [vmem:[#allocation2 + $0x70] sm:$0xe]  ;;  %v893_v25 = vshll.u32 %v13547_v54, 16  ;;  %v563_v17 = vsel %vm16157_vm4, 0, %v562_v14 }
 0x12d   : > { %v12889_v62 = vcombine.low %v2148_v53, %v2152_v58  ;;  %1274 = vst [vmem:[#allocation2 + $0x114] sm:$0x1] %v1273_v19  ;;  %v1279_v29 = vsel %vm16152_vm2, %v1016_v33, %v1278_v46  ;;  %v566_v41 = vsel %vm16157_vm4, 0, %v565_v4  ;;  %v15346_v38 = vld [vmem:[#allocation7 + $0x120] sm:$0xff]   ;;  %v887_v20 = vor.u32 %v885_v24, %v884_v49  ;;  %564 = vst [vmem:[#allocation2 + $0x74] sm:$0x1] %v563_v17 }
 0x12e   : > { %1280 = vst [vmem:[#allocation2 + $0x11c] sm:$0x1] %v1279_v29  ;;  %v888_v3 = vrot.slane %v884_v49, 4  ;;  %v16679_v51 = vrot.slane %v890_v61, 7  ;;  %567 = vst [vmem:[#allocation2 + $0x7c] sm:$0x1] %v566_v41  ;;  %13832 = vmatpush3.bf16.msra.mxu0 %v15346_v38 }
 0x12f   : > { %2626 = vmatmul.mubr.bf16.gmra.mrb[20].mxu0 %v12889_v62  ;;  %v12864_v0 = vrot.slane %v16669_v5, 9  ;;  %v15347_v33 = vld [vmem:[#allocation7 + $0x168] sm:$0xff]   ;;  %v1179_v12 = vld [vmem:[#allocation2 + $0x78] sm:$0xf]  ;;  %v655_v10 = vld [vmem:[%s16138_s29 + $0xf0] sm:$0xff]  ;;  %s12660_s26 = sshll.u32 %s20405_s30, 4  ;;  %s20499_s26 = int_to_ptr.vmem [resolvable:$true] %s12660_s26 }
 0x130   : > { %v15340_v15 = vld [vmem:[#allocation2 + $0x118] ss:$8 sps:$4 sm:$0xff]   ;;  %v895_v39 = vor.u32 %v893_v25, %v16679_v51  ;;  %v1180_v6 = vsel %vm16186_vm8, %v887_v20, %v1179_v12  ;;  %13833 = vmatprep.subr.bf16.mxu0 %v15347_v33  ;;  %v896_v32 = vrot.slane %v16679_v51, 4  ;;  %v13564_v16 = vpack.c.bf16 %v655_v10, %v655_v10  ;;  %v521_v18 = vld [vmem:[#allocation2 + $0x128] sm:$0x1]  ;;  %s20883_s21 = sld [smem:[#allocation70_spill]] }
 0x131   : > { %v2035_v27 = vld [vmem:[#allocation2 + $0x118] sm:$0xe]  ;;  %1181 = vst [vmem:[#allocation2 + $0x78] sm:$0xf] %v1180_v6  ;;  %v1185_v21 = vld [vmem:[#allocation2 + $0x80] sm:$0xf]  ;;  %2697 = vmatprep.mubr.bf16.mxu1 %v15340_v15 }
 0x132   : > { %v12881_v42 = vrot.slane %v2035_v27, 9  ;;  %v1186_v56 = vsel %vm16186_vm8, %v895_v39, %v1185_v21  ;;  %v656_v9 = vld [vmem:[%s16138_s29 + $0xf8] sm:$0xff]  ;;  %v524_v28 = vld [vmem:[#allocation2 + $0x130] sm:$0x1]  ;;  %v522_v43 = vsel %vm16152_vm2, 0, %v521_v18  ;;  %v1026_v30 = vshrl.u32 %v13564_v16, 16 }
 0x133   : > { %1187 = vst [vmem:[#allocation2 + $0x80] sm:$0xf] %v1186_v56  ;;  %v13565_v34 = vpack.c.bf16 %v656_v9, %v656_v9  ;;  %v525_v2 = vsel %vm16152_vm2, 0, %v524_v28  ;;  %v1029_v1 = vshll.u32 %v13564_v16, 16  ;;  %523 = vst [vmem:[#allocation2 + $0x128] sm:$0x1] %v522_v43 }
 0x134   : > { %v1359_v36 = vld [vmem:[#allocation2 + $0x114] sm:$0x1]  ;;  %526 = vst [vmem:[#allocation2 + $0x130] sm:$0x1] %v525_v2  ;;  %v16698_v53 = vrot.slane %v1026_v30, 7  ;;  %v15349_v13 = vld [vmem:[#allocation7 + $0x128] sm:$0xff]  }
 0x135   : > { %v1360_v60 = vld [vmem:[#allocation2 + $0x11c] sm:$0x1]  ;;  %v2219_v22 = vrot.slane %v1359_v36, 5  ;;  %v1176_v54 = vld [vmem:[#allocation2 + $0x74] sm:$0x1]  ;;  %v1034_v57 = vshrl.u32 %v13565_v34, 16  ;;  %13834 = vmatpush3.bf16.msra.mxu0 %v15349_v13 }
 0x136   : > { %v2223_v24 = vrot.slane %v1360_v60, 5  ;;  %v1177_v52 = vsel %vm16152_vm2, %v880_v45, %v1176_v54  ;;  %v1182_v37 = vld [vmem:[#allocation2 + $0x7c] sm:$0x1]  ;;  %v1037_v58 = vshll.u32 %v13565_v34, 16  ;;  %v616_v44 = vld [vmem:[#allocation2 + $0x124] sm:$0x1]  ;;  %v1031_v49 = vor.u32 %v1029_v1, %v16698_v53  ;;  %s20497_s19 = scalar_lea.hbm %s20883_s21, %s13598_s25 }
 0x137   : > { %v2220_v14 = vsel %vm16241_vm9, %v12880_v55, %v2219_v22  ;;  %1178 = vst [vmem:[#allocation2 + $0x74] sm:$0x1] %v1177_v52  ;;  %v1183_v4 = vsel %vm16152_vm2, %v888_v3, %v1182_v37  ;;  %v16706_v62 = vrot.slane %v1034_v57, 7  ;;  %v15350_v19 = vld [vmem:[#allocation7 + $0x78] sm:$0xff]   ;;  %v1032_v23 = vrot.slane %v16698_v53, 4  ;;  %v639_v27 = vld [vmem:[%s16138_s29 + $0x70] sm:$0xff] }
 0x138   : > { %v2224_v45 = vsel %vm16241_vm9, %v12881_v42, %v2223_v24  ;;  %1184 = vst [vmem:[#allocation2 + $0x7c] sm:$0x1] %v1183_v4  ;;  %v2019_v46 = vld [vmem:[#allocation2 + $0x78] sm:$0xe]  ;;  %v617_v55 = vsel %vm16157_vm4, 0, %v616_v44  ;;  %13725 = vmatprep.subr.bf16.mxu1 %v15350_v19  ;;  %v13548_v9 = vpack.c.bf16 %v639_v27, %v639_v27  ;;  %v16731_v16 = vrot.slane %v1376_v59, 5 }
 0x139   : > { %v12898_v61 = vcombine.low %v2220_v14, %v2224_v45  ;;  %v12865_v29 = vrot.slane %v2019_v46, 9  ;;  %v1039_v25 = vor.u32 %v1037_v58, %v16706_v62  ;;  %618 = vst [vmem:[#allocation2 + $0x124] sm:$0x1] %v617_v55  ;;  %v619_v41 = vld [vmem:[#allocation2 + $0x12c] sm:$0x1]  ;;  %v640_v56 = vld [vmem:[%s16138_s29 + $0x78] sm:$0xff] }
 0x13a   : > { %v16716_v38 = vld [vmem:[#allocation2 + $0x120] sm:$0xe]  ;;  %v620_v3 = vsel %vm16157_vm4, 0, %v619_v41  ;;  %v473_v12 = vld [vmem:[#allocation2 + $0x88] sm:$0x1]  ;;  %v13549_v34 = vpack.c.bf16 %v640_v56, %v640_v56  ;;  %v15352_v36 = vld [vmem:[#allocation7 + $0x38] sm:$0xff]  }
 0x13b   : > { %v15343_v20 = vld [vmem:[#allocation2 + $0x78] ss:$8 sps:$4 sm:$0xff]   ;;  %v12882_v33 = vrot.slane %v16716_v38, 9  ;;  %2698 = vmatmul.mubr.bf16.gmra.mrb[24].mxu1 %v12898_v61  ;;  %621 = vst [vmem:[#allocation2 + $0x12c] sm:$0x1] %v620_v3  ;;  %v474_v6 = vsel %vm16152_vm2, 0, %v473_v12 }
 0x13c   : > { %2633 = vmatprep.mubr.bf16.mxu0 %v15343_v20  ;;  %v1287_v15 = vld [vmem:[#allocation2 + $0x128] sm:$0xf]  ;;  %v1293_v39 = vld [vmem:[#allocation2 + $0x130] sm:$0xf]  ;;  %475 = vst [vmem:[#allocation2 + $0x88] sm:$0x1] %v474_v6  ;;  %13726 = vmatpush3.bf16.msra.mxu1 %v15352_v36 }
 0x13d   : > { %v1288_v21 = vsel %vm16186_vm8, %v1031_v49, %v1287_v15  ;;  %v1294_v10 = vsel %vm16186_vm8, %v1039_v25, %v1293_v39  ;;  %v476_v42 = vld [vmem:[#allocation2 + $0x90] sm:$0x1]  ;;  %v898_v30 = vshrl.u32 %v13548_v9, 16  ;;  %v901_v1 = vshll.u32 %v13548_v9, 16  ;;  %v568_v58 = vld [vmem:[#allocation2 + $0x84] sm:$0x1] }
 0x13e   : > { %v1343_v18 = vld [vmem:[#allocation2 + $0x74] sm:$0x1]  ;;  %1289 = vst [vmem:[#allocation2 + $0x128] sm:$0xf] %v1288_v21  ;;  %1295 = vst [vmem:[#allocation2 + $0x130] sm:$0xf] %v1294_v10 }
 0x13f   : > { %v477_v28 = vsel %vm16152_vm2, 0, %v476_v42  ;;  %v1344_v43 = vld [vmem:[#allocation2 + $0x7c] sm:$0x1]  ;;  %v2155_v2 = vrot.slane %v1343_v18, 5  ;;  %v15353_v60 = vld [vmem:[#allocation7 + $0x170] sm:$0xff]   ;;  %v906_v57 = vshrl.u32 %v13549_v34, 16 }
 0x140   : > { %478 = vst [vmem:[#allocation2 + $0x90] sm:$0x1] %v477_v28  ;;  %v2159_v22 = vrot.slane %v1344_v43, 5  ;;  %v1284_v54 = vld [vmem:[#allocation2 + $0x124] sm:$0x1]  ;;  %v909_v26 = vshll.u32 %v13549_v34, 16  ;;  %13835 = vmatprep.subr.bf16.mxu0 %v15353_v60 }
 0x141   : > { %v15354_v59 = vld [vmem:[#allocation7 + $0x130] sm:$0xff]   ;;  %v2156_v24 = vsel %vm16241_vm9, %v12864_v0, %v2155_v2  ;;  %v1285_v52 = vsel %vm16152_vm2, %v1024_v31, %v1284_v54  ;;  %v900_v37 = vrot.slane %v898_v30, 7  ;;  %v571_v13 = vld [vmem:[#allocation2 + $0x8c] sm:$0x1]  ;;  %v15355_v14 = vld [vmem:[#allocation7 + $0x178] sm:$0xff]   ;;  %v16745_v19 = vrot.slane %v906_v57, 7 }
 0x142   : > { %v2160_v4 = vsel %vm16241_vm9, %v12865_v29, %v2159_v22  ;;  %1286 = vst [vmem:[#allocation2 + $0x124] sm:$0x1] %v1285_v52  ;;  %v1290_v44 = vld [vmem:[#allocation2 + $0x12c] sm:$0x1]  ;;  %v569_v5 = vsel %vm16157_vm4, 0, %v568_v58  ;;  %v572_v47 = vsel %vm16157_vm4, 0, %v571_v13  ;;  %13836 = vmatpush3.bf16.msra.mxu0 %v15354_v59 }
 0x143   : > { %v15356_v31 = vld [vmem:[#allocation7 + $0x138] sm:$0xff]   ;;  %v12890_v0 = vcombine.low %v2156_v24, %v2160_v4  ;;  %v1291_v45 = vsel %vm16152_vm2, %v1032_v23, %v1290_v44  ;;  %v903_v46 = vor.u32 %v901_v1, %v900_v37  ;;  %v904_v49 = vrot.slane %v900_v37, 4  ;;  %570 = vst [vmem:[#allocation2 + $0x84] sm:$0x1] %v569_v5  ;;  %573 = vst [vmem:[#allocation2 + $0x8c] sm:$0x1] %v572_v47 }
 0x144   : > { %v16755_v55 = vld [vmem:[#allocation2 + $0x80] sm:$0xe]  ;;  %13837 = vmatprep.subr.bf16.mxu0 %v15355_v14  ;;  %1292 = vst [vmem:[#allocation2 + $0x12c] sm:$0x1] %v1291_v45  ;;  %v911_v29 = vor.u32 %v909_v26, %v16745_v19  ;;  %v912_v25 = vrot.slane %v16745_v19, 4  ;;  %s12647_s13 = scalar_lea.sflag [#allocation6], %s16132_s18 }
 0x145   : > { %v15358_v61 = vld [vmem:[#allocation7 + $0x1c0] sm:$0xff]   ;;  %v1191_v41 = vld [vmem:[#allocation2 + $0x88] sm:$0xf]  ;;  %v12866_v20 = vrot.slane %v16755_v55, 9  ;;  %2634 = vmatmul.mubr.bf16.gmra.mrb[24].mxu0 %v12890_v0  ;;  %v15582_v6 = vld [vmem:[#allocation2 + $0xc] sm:$0x1] }
 0x146   : > { %v15348_v53 = vld [vmem:[#allocation2 + $0x128] ss:$8 sps:$4 sm:$0xff]   ;;  %v1192_v23 = vsel %vm16186_vm8, %v903_v46, %v1191_v41  ;;  %13935 = vmatprep.subr.bf16.mxu1 %v15358_v61  ;;  %13838 = vmatpush3.bf16.msra.mxu0 %v15356_v31  ;;  %v1390_v27 = vshll.u32 %v15582_v6, 16  ;;  %v16764_v21 = vld [vmem:[#allocation2] sm:$0xf]  ;;  %s15856_s24 = smov [#allocation13]  }
 0x147   : > { %v2037_v3 = vld [vmem:[#allocation2 + $0x128] sm:$0xe]  ;;  %1193 = vst [vmem:[#allocation2 + $0x88] sm:$0xf] %v1192_v23  ;;  %v1197_v12 = vld [vmem:[#allocation2 + $0x90] sm:$0xf]  ;;  %2705 = vmatprep.mubr.bf16.mxu1 %v15348_v53 }
 0x148   : > { %v12883_v15 = vrot.slane %v2037_v3, 9  ;;  %v1198_v39 = vsel %vm16186_vm8, %v911_v29, %v1197_v12  ;;  %v16766_v10 = vld [vmem:[#allocation2 + $0x8] sm:$0xf]  ;;  %vm1363_vm10 = vsmask.f32 3328  ;;  %v1367_v28 = vshrl.u32 %v16764_v21, 16 }
 0x149   : > { %1199 = vst [vmem:[#allocation2 + $0x90] sm:$0xf] %v1198_v39  ;;  %v1361_v42 = vld [vmem:[#allocation2 + $0x124] sm:$0x1]  ;;  %vm1364_vm11 = vsmask.f32 7440  ;;  %v12820_v3 = vcombine.low %v16764_v21, %v16766_v10 }
 0x14a   : > { %v2227_v56 = vrot.slane %v1361_v42, 5  ;;  %v1188_v9 = vld [vmem:[#allocation2 + $0x84] sm:$0x1]  ;;  %v1194_v18 = vld [vmem:[#allocation2 + $0x8c] sm:$0x1]  ;;  %v1370_v2 = vshll.u32 %v16764_v21, 16  ;;  %vm16786_vm12 = vmor %vm1363_vm10, %vm1364_vm11 }
 0x14b   : > { %v1362_v34 = vld [vmem:[#allocation2 + $0x12c] sm:$0x1]  ;;  %v1189_v36 = vsel %vm16152_vm2, %v896_v32, %v1188_v9  ;;  %v1195_v43 = vsel %vm16152_vm2, %v904_v49, %v1194_v18  ;;  %v1381_v30 = vshrl.u32 %v16766_v10, 16  ;;  %v1369_v22 = vrot.slane %v1367_v28, 4  ;;  %v2974_v4 = vld [vmem:[#allocation2 + $0x14] sm:$0x1] }
 0x14c   : > { %v2228_v1 = vsel %vm16241_vm9, %v12882_v33, %v2227_v56  ;;  %v2231_v60 = vrot.slane %v1362_v34, 5  ;;  %1190 = vst [vmem:[#allocation2 + $0x84] sm:$0x1] %v1189_v36  ;;  %1196 = vst [vmem:[#allocation2 + $0x8c] sm:$0x1] %v1195_v43  ;;  %v1384_v51 = vshll.u32 %v16766_v10, 16 }
 0x14d   : > { %v1372_v32 = vrot.slane %v1370_v2, 5  ;;  %v1383_v57 = vrot.slane %v1381_v30, 4  ;;  %v1392_v24 = vrot.slane %v1390_v27, 5  ;;  %v2972_v14 = vld [vmem:[#allocation2 + $0xc] sm:$0x1]  ;;  %v3059_v31 = vshll.u32 %v2974_v4, 16 }
 0x14e   : > { %v2021_v54 = vld [vmem:[#allocation2 + $0x88] sm:$0xe]  ;;  %v2232_v26 = vsel %vm16241_vm9, %v12883_v15, %v2231_v60  ;;  %v1386_v33 = vrot.slane %v1384_v51, 5  ;;  %v3045_v47 = vshll.u32 %v2972_v14, 16  ;;  %v3484_v0 = vld [vmem:[#allocation2 + $0x10] sm:$0xe] }
 0x14f   : > { %v12867_v59 = vrot.slane %v2021_v54, 9  ;;  %v12899_v52 = vcombine.low %v2228_v1, %v2232_v26  ;;  %v1373_v58 = vor.u32 %v1372_v32, %v1369_v22  ;;  %v3483_v44 = vld [vmem:[#allocation2 + $0x8] sm:$0xe]  ;;  %v3581_v49 = vrot.slane %v2972_v14, 5  ;;  %v2973_v21 = vld [vmem:[#allocation2 + $0x10] sm:$0xf] }
 0x150   : > { %v15351_v37 = vld [vmem:[#allocation2 + $0x88] ss:$8 sps:$4 sm:$0xff]   ;;  %v1387_v13 = vor.u32 %v1386_v33, %v1383_v57  ;;  %v12948_v45 = vrot.slane %v3483_v44, 9  ;;  %v12949_v61 = vrot.slane %v3484_v0, 9  ;;  %v3585_v29 = vrot.slane %v2974_v4, 5  ;;  %v15359_v2 = vld [vmem:[#allocation7 + $0x180] sm:$0xff]  }
 0x151   : > { %2706 = vmatmul.mubr.bf16.gmra.mrb[28].mxu1 %v12899_v52  ;;  %2641 = vmatprep.mubr.bf16.mxu0 %v15351_v37  ;;  %v1374_v5 = vrot.slane %v1373_v58, 4  ;;  %v16799_v12 = vrot.slane %v3045_v47, 5  ;;  %v16801_v15 = vrot.slane %v3059_v31, 5  ;;  %v2971_v56 = vld [vmem:[#allocation2 + $0x8] sm:$0xf]  ;;  %v3050_v30 = vshrl.u32 %v2973_v21, 16 }
 0x152   : > { %v1388_v46 = vrot.slane %v1387_v13, 4  ;;  %v3582_v42 = vsel %vm16241_vm9, %v12948_v45, %v3581_v49  ;;  %v3036_v10 = vshrl.u32 %v2971_v56, 16  ;;  %v3039_v18 = vshll.u32 %v2971_v56, 16  ;;  %v16811_v28 = vld [vmem:[#allocation2 + $0x10] sm:$0xf]  ;;  %v15362_v32 = vld [vmem:[#allocation7 + $0x1c8] sm:$0xff]  }
 0x153   : > { %v16790_v41 = vld [vmem:[#allocation2 + $0x84] sm:$0x1]  ;;  %v16792_v53 = vld [vmem:[#allocation2 + $0x8c] sm:$0x1]  ;;  %v1379_v23 = vsel %vm16786_vm12, %v1374_v5, %v16731_v16  ;;  %v3586_v16 = vsel %vm16241_vm9, %v12949_v61, %v3585_v29  ;;  %v16819_v1 = vld [vmem:[#allocation2 + $0x18] sm:$0xf] }
 0x154   : > { %v2163_v39 = vrot.slane %v16790_v41, 5  ;;  %v2167_v6 = vrot.slane %v16792_v53, 5  ;;  %v1393_v27 = vsel %vm16786_vm12, %v1388_v46, %v1392_v24  ;;  %v12996_v43 = vcombine.low %v3582_v42, %v3586_v16  ;;  %v16823_v24 = vld [vmem:[#allocation2 + $0x1c] sm:$0x1]  ;;  %v16827_v13 = vld [vmem:[#allocation2 + $0x24] sm:$0x1] }
 0x155   : > { %v12836_v9 = vcombine.low %v1379_v23, %v1393_v27  ;;  %v3038_v22 = vrot.slane %v3036_v10, 4  ;;  %v3041_v51 = vrot.slane %v3039_v18, 5  ;;  %v3053_v54 = vshll.u32 %v2973_v21, 16  ;;  %v3485_v14 = vld [vmem:[#allocation2 + $0x18] sm:$0xe]  ;;  %v15363_v4 = vld [vmem:[#allocation7 + $0x188] sm:$0xff]  }
 0x156   : > { %v2164_v34 = vsel %vm16241_vm9, %v12866_v20, %v2163_v39  ;;  %v2168_v36 = vsel %vm16241_vm9, %v12867_v59, %v2167_v6  ;;  %v3052_v57 = vrot.slane %v3050_v30, 4  ;;  %v1395_v55 = vshrl.u32 %v16811_v28, 16  ;;  %v15583_v20 = vld [vmem:[#allocation2 + $0x14] sm:$0x1]  ;;  %v15584_v31 = vld [vmem:[#allocation2 + $0x1c] sm:$0x1] }
 0x157   : > { %v12891_v60 = vcombine.low %v2164_v34, %v2168_v36  ;;  %2842 = vmatprep.mubr.bf16.mxu1 %v12836_v9  ;;  %v1398_v26 = vshll.u32 %v16811_v28, 16  ;;  %v1404_v33 = vshll.u32 %v15583_v20, 16  ;;  %v3042_v59 = vor.u32 %v3041_v51, %v3038_v22  ;;  %v3486_v45 = vld [vmem:[#allocation2 + $0x20] sm:$0xe]  ;;  %v2975_v23 = vld [vmem:[#allocation2 + $0x18] sm:$0xf] }
 0x158   : > { %v3055_v52 = vrot.slane %v3053_v54, 5  ;;  %v1409_v37 = vshrl.u32 %v16819_v1, 16  ;;  %v1412_v58 = vshll.u32 %v16819_v1, 16  ;;  %v1397_v44 = vrot.slane %v1395_v55, 4  ;;  %s15774_s22 = sshll.u32 %s15856_s24, 4  ;;  %s15775_s22 = int_to_ptr.vmem [resolvable:$false] %s15774_s22 }
 0x159   : > { %2642 = vmatmul.mubr.bf16.gmra.mrb[28].mxu0 %v12891_v60  ;;  %2843 = vmatmul.mubr.bf16.vlgmr.msra.gmra.mrb[32].mxu1 %v12820_v3  ;;  %v1400_v5 = vrot.slane %v1398_v26, 5  ;;  %v1406_v47 = vrot.slane %v1404_v33, 5  ;;  %v1418_v0 = vshll.u32 %v15584_v31, 16  ;;  %v3043_v46 = vrot.slane %v3042_v59, 4  ;;  %v15366_v3 = vld [vmem:[#allocation7 + $0x1d0] sm:$0xff]   ;;  %v15370_v60 = vld [vmem:[#allocation7 + $0x1d8] sm:$0xff]   ;;  %p15777_p12 = scmp.lt.s32.totalorder %s20499_s26, %s15775_s22 }
 0x15a   : > { %3995 = vmatprep.mubr.bf16.mxu0 %v12996_v43  ;;  %13936 = vmatpush3.bf16.msra.mxu1 %v15359_v2  ;;  %v3056_v49 = vor.u32 %v3055_v52, %v3052_v57  ;;  %v1411_v61 = vrot.slane %v1409_v37, 4  ;;  %v1414_v29 = vrot.slane %v1412_v58, 5  ;;  %v12821_v27 = vcombine.low %v16811_v28, %v16819_v1  ;;  %v15367_v43 = vld [vmem:[#allocation7 + $0x190] sm:$0xff]   ;;  %v16845_v57 = vld [vmem:[#allocation2 + $0x20] sm:$0xf]  ;;  %s15776_s16 = scalar_lea.vmem %s15775_s22, 8192 }
 0x15b   : > { %13937 = vmatprep.subr.bf16.mxu1 %v15362_v32  ;;  %v1401_v39 = vor.u32 %v1400_v5, %v1397_v44  ;;  %v1420_v6 = vrot.slane %v1418_v0, 5  ;;  %v12950_v42 = vrot.slane %v3485_v14, 9  ;;  %v3048_v56 = vsel %vm16786_vm12, %v3043_v46, %v16799_v12  ;;  %v2977_v12 = vld [vmem:[#allocation2 + $0x20] sm:$0xf]  ;;  %v16851_v58 = vld [vmem:[#allocation2 + $0x28] sm:$0xf] }
 0x15c   : > { %v3057_v9 = vrot.slane %v3056_v49, 4  ;;  %v1415_v16 = vor.u32 %v1414_v29, %v1411_v61  ;;  %v3589_v21 = vrot.slane %v16823_v24, 5  ;;  %v12951_v18 = vrot.slane %v3486_v45, 9  ;;  %v15371_v14 = vld [vmem:[#allocation7 + $0x198] sm:$0xff]   ;;  %v15374_v31 = vld [vmem:[#allocation7 + $0x1e0] sm:$0xff]  }
 0x15d   : > { %v1402_v10 = vrot.slane %v1401_v39, 4  ;;  %v3593_v34 = vrot.slane %v16827_v13, 5  ;;  %v3064_v36 = vshrl.u32 %v2975_v23, 16  ;;  %v3067_v1 = vshll.u32 %v2975_v23, 16  ;;  %v15585_v46 = vld [vmem:[#allocation2 + $0x24] sm:$0x1] }
 0x15e   : > { %13938 = vmatpush3.bf16.msra.mxu1 %v15363_v4  ;;  %v3062_v28 = vsel %vm16786_vm12, %v3057_v9, %v16801_v15  ;;  %v1416_v2 = vrot.slane %v1415_v16, 4  ;;  %v3590_v30 = vsel %vm16241_vm9, %v12950_v42, %v3589_v21  ;;  %v3073_v20 = vshll.u32 %v16823_v24, 16  ;;  %v16857_v61 = vld [vmem:[#allocation2 + $0x34] sm:$0x1]  ;;  %v3487_v29 = vld [vmem:[#allocation2 + $0x28] sm:$0xe] }
 0x15f   : > { %13939 = vmatprep.subr.bf16.mxu1 %v15366_v3  ;;  %v12980_v22 = vcombine.low %v3048_v56, %v3062_v28  ;;  %v1407_v51 = vsel %vm16786_vm12, %v1402_v10, %v1406_v47  ;;  %v3594_v54 = vsel %vm16241_vm9, %v12951_v18, %v3593_v34  ;;  %v3066_v32 = vrot.slane %v3064_v36, 4  ;;  %v3488_v42 = vld [vmem:[#allocation2 + $0x30] sm:$0xe]  ;;  %v15586_v21 = vld [vmem:[#allocation2 + $0x2c] sm:$0x1]  ;;  %v15375_v18 = vld [vmem:[#allocation7 + $0x1a0] sm:$0xff]  }
 0x160   : > { %v1421_v15 = vsel %vm16786_vm12, %v1416_v2, %v1420_v6  ;;  %v12997_v55 = vcombine.low %v3590_v30, %v3594_v54  ;;  %v3069_v26 = vrot.slane %v3067_v1, 5  ;;  %v3078_v59 = vshrl.u32 %v2977_v12, 16  ;;  %v15376_v34 = vld [vmem:[#allocation7 + $0x200] sm:$0xff]   ;;  %v2979_v2 = vld [vmem:[#allocation2 + $0x28] sm:$0xf] }
 0x161   : > { %3996 = vmatmul.mubr.bf16.vlgmr.msra.gmra.mrb[32].mxu0 %v12980_v22  ;;  %v12837_v33 = vcombine.low %v1407_v51, %v1421_v15  ;;  %v3081_v52 = vshll.u32 %v2977_v12, 16  ;;  %v3087_v37 = vshll.u32 %v16827_v13, 16  ;;  %v3075_v44 = vrot.slane %v3073_v20, 5  ;;  %v16855_v13 = vld [vmem:[#allocation2 + $0x2c] sm:$0x1]  ;;  %14671 = vmatprep.subr.bf16.mxu0 %v15376_v34 }
 0x162   : > { %13940 = vmatpush3.bf16.msra.mxu1 %v15367_v43  ;;  %4003 = vmatprep.mubr.bf16.mxu0 %v12997_v55  ;;  %v3070_v4 = vor.u32 %v3069_v26, %v3066_v32  ;;  %v1423_v5 = vshrl.u32 %v16845_v57, 16  ;;  %v1426_v47 = vshll.u32 %v16845_v57, 16  ;;  %v3080_v24 = vrot.slane %v3078_v59, 4  ;;  %v15379_v30 = vld [vmem:[#allocation7 + $0x1e8] sm:$0xff]  }
 0x163   : > { %13941 = vmatprep.subr.bf16.mxu1 %v15370_v60  ;;  %2850 = vmatprep.mubr.bf16.mxu1 %v12837_v33  ;;  %v3083_v0 = vrot.slane %v3081_v52, 5  ;;  %v3089_v45 = vrot.slane %v3087_v37, 5  ;;  %v1432_v49 = vshll.u32 %v15585_v46, 16  ;;  %v1437_v6 = vshrl.u32 %v16851_v58, 16 }
 0x164   : > { %2851 = vmatmul.mubr.bf16.gmra.mrb[36].mxu1 %v12821_v27  ;;  %v3071_v23 = vrot.slane %v3070_v4, 4  ;;  %v1425_v3 = vrot.slane %v1423_v5, 4  ;;  %v1428_v39 = vrot.slane %v1426_v47, 5  ;;  %v1440_v16 = vshll.u32 %v16851_v58, 16  ;;  %14672 = vmatpush3.bf16.msra.mxu0 %v15376_v34 }
 0x165   : > { %v3084_v56 = vor.u32 %v3083_v0, %v3080_v24  ;;  %v1434_v9 = vrot.slane %v1432_v49, 5  ;;  %v1446_v10 = vshll.u32 %v15586_v21, 16  ;;  %v1439_v27 = vrot.slane %v1437_v6, 4 }
 0x166   : > { %13942 = vmatpush3.bf16.msra.mxu1 %v15371_v14  ;;  %v3076_v36 = vsel %vm16786_vm12, %v3071_v23, %v3075_v44  ;;  %v1429_v43 = vor.u32 %v1428_v39, %v1425_v3  ;;  %v12822_v28 = vcombine.low %v16845_v57, %v16851_v58  ;;  %v1442_v1 = vrot.slane %v1440_v16, 5  ;;  %v2981_v57 = vld [vmem:[#allocation2 + $0x30] sm:$0xf]  ;;  %v16881_v23 = vld [vmem:[#allocation2 + $0x38] sm:$0xf] }
 0x167   : > { %13943 = vmatprep.subr.bf16.mxu1 %v15374_v31  ;;  %v3085_v12 = vrot.slane %v3084_v56, 4  ;;  %v1448_v60 = vrot.slane %v1446_v10, 5  ;;  %v12952_v22 = vrot.slane %v3487_v29, 9  ;;  %v3597_v54 = vrot.slane %v16855_v13, 5  ;;  %v16875_v14 = vld [vmem:[#allocation2 + $0x30] sm:$0xf] }
 0x168   : > { %v1430_v51 = vrot.slane %v1429_v43, 4  ;;  %v12953_v32 = vrot.slane %v3488_v42, 9  ;;  %v3601_v15 = vrot.slane %v16857_v61, 5  ;;  %v1443_v26 = vor.u32 %v1442_v1, %v1439_v27  ;;  %v15380_v31 = vld [vmem:[#allocation7 + $0x1a8] sm:$0xff]  }
 0x169   : > { %v3090_v55 = vsel %vm16786_vm12, %v3085_v12, %v3089_v45  ;;  %v3092_v20 = vshrl.u32 %v2979_v2, 16  ;;  %v3095_v33 = vshll.u32 %v2979_v2, 16  ;;  %v3598_v37 = vsel %vm16241_vm9, %v12952_v22, %v3597_v54  ;;  %v15384_v12 = vld [vmem:[#allocation7 + $0x1f0] sm:$0xff]   ;;  %v15588_v22 = vld [vmem:[#allocation2 + $0x3c] sm:$0x1] }
 0x16a   : > { %13944 = vmatpush3.bf16.msra.mxu1 %v15375_v18  ;;  %v12981_v59 = vcombine.low %v3076_v36, %v3090_v55  ;;  %v1435_v52 = vsel %vm16786_vm12, %v1430_v51, %v1434_v9  ;;  %v3602_v58 = vsel %vm16241_vm9, %v12953_v32, %v3601_v15  ;;  %v1444_v4 = vrot.slane %v1443_v26, 4  ;;  %v15381_v9 = vld [vmem:[#allocation7 + $0x208] sm:$0xff]   ;;  %v550_v18 = vld [vmem:[#allocation2 + $0x44] sm:$0x1]  ;;  %v15587_v36 = vld [vmem:[#allocation2 + $0x34] sm:$0x1] }
 0x16b   : > { %13945 = vmatprep.subr.bf16.mxu1 %v15379_v30  ;;  %v12998_v44 = vcombine.low %v3598_v37, %v3602_v58  ;;  %v3094_v5 = vrot.slane %v3092_v20, 4  ;;  %v3097_v47 = vrot.slane %v3095_v33, 5  ;;  %v3101_v24 = vshll.u32 %v16855_v13, 16  ;;  %v3489_v30 = vld [vmem:[#allocation2 + $0x38] sm:$0xe]  ;;  %14673 = vmatprep.subr.bf16.mxu0 %v15381_v9  ;;  %v15385_v55 = vld [vmem:[#allocation7 + $0x1b0] sm:$0xff]  }
 0x16c   : > { %4004 = vmatmul.mubr.bf16.gmra.mrb[36].mxu0 %v12981_v59  ;;  %v3106_v0 = vshrl.u32 %v2981_v57, 16  ;;  %v3109_v45 = vshll.u32 %v2981_v57, 16  ;;  %v3115_v46 = vshll.u32 %v16857_v61, 16  ;;  %v1449_v49 = vsel %vm16786_vm12, %v1444_v4, %v1448_v60  ;;  %v2984_v32 = vld [vmem:[#allocation2 + $0x3c] sm:$0x1] }
 0x16d   : > { %4011 = vmatprep.mubr.bf16.mxu0 %v12998_v44  ;;  %v3098_v29 = vor.u32 %v3097_v47, %v3094_v5  ;;  %v1451_v3 = vshrl.u32 %v16875_v14, 16  ;;  %v1454_v39 = vshll.u32 %v16875_v14, 16  ;;  %v12838_v6 = vcombine.low %v1435_v52, %v1449_v49  ;;  %v16891_v15 = vld [vmem:[#allocation2 + $0x40] sm:$0xe]  ;;  %14674 = vmatpush3.bf16.msra.mxu0 %v15381_v9  ;;  %v2983_v59 = vld [vmem:[#allocation2 + $0x38] sm:$0xf] }
 0x16e   : > { %13946 = vmatpush3.bf16.msra.mxu1 %v15380_v31  ;;  %v3103_v42 = vrot.slane %v3101_v24, 5  ;;  %v3108_v56 = vrot.slane %v3106_v0, 4  ;;  %v3111_v13 = vrot.slane %v3109_v45, 5  ;;  %v3117_v21 = vrot.slane %v3115_v46, 5  ;;  %v2985_v4 = vld [vmem:[#allocation2 + $0x40] sm:$0xf] }
 0x16f   : > { %v3099_v16 = vrot.slane %v3098_v29, 4  ;;  %v1453_v61 = vrot.slane %v1451_v3, 4  ;;  %v1456_v10 = vrot.slane %v1454_v39, 5  ;;  %2858 = vmatprep.mubr.bf16.mxu1 %v12838_v6  ;;  %v1460_v43 = vshll.u32 %v15587_v36, 16  ;;  %13947 = vmatprep.subr.bf16.mxu1 %v15384_v12  ;;  %v16898_v24 = vld [vmem:[#allocation2 + $0x50] sm:$0xf] }
 0x170   : > { %v3112_v34 = vor.u32 %v3111_v13, %v3108_v56  ;;  %v1465_v27 = vshrl.u32 %v16881_v23, 16  ;;  %v1468_v2 = vshll.u32 %v16881_v23, 16  ;;  %2859 = vmatmul.mubr.bf16.gmra.mrb[40].mxu1 %v12822_v28  ;;  %v1474_v51 = vshll.u32 %v15588_v22, 16  ;;  %v3491_v12 = vld [vmem:[#allocation2 + $0x58] sm:$0xe] }
 0x171   : > { %v3104_v1 = vsel %vm16786_vm12, %v3099_v16, %v3103_v42  ;;  %v1457_v60 = vor.u32 %v1456_v10, %v1453_v61  ;;  %v12823_v54 = vcombine.low %v16875_v14, %v16881_v23  ;;  %v1462_v57 = vrot.slane %v1460_v43, 5  ;;  %v15386_v42 = vld [vmem:[#allocation7 + $0x210] sm:$0xff]   ;;  %v16906_v16 = vld [vmem:[#allocation2 + $0x58] sm:$0xf] }
 0x172   : > { %v3113_v26 = vrot.slane %v3112_v34, 4  ;;  %v1467_v20 = vrot.slane %v1465_v27, 4  ;;  %v1470_v33 = vrot.slane %v1468_v2, 5  ;;  %v1476_v52 = vrot.slane %v1474_v51, 5  ;;  %13948 = vmatpush3.bf16.msra.mxu1 %v15385_v55  ;;  %14675 = vmatprep.subr.bf16.mxu0 %v15386_v42  ;;  %v16916_v55 = vld [vmem:[#allocation2 + $0x64] sm:$0x1] }
 0x173   : > { %v1458_v28 = vrot.slane %v1457_v60, 4  ;;  %v551_v37 = vsel %vm16157_vm4, 0, %v550_v18  ;;  %v12954_v58 = vrot.slane %v3489_v30, 9  ;;  %v3605_v47 = vrot.slane %v2984_v32, 5  ;;  %v2988_v30 = vld [vmem:[#allocation2 + $0x5c] sm:$0x1]  ;;  %14676 = vmatpush3.bf16.msra.mxu0 %v15386_v42 }
 0x174   : > { %v3118_v44 = vsel %vm16786_vm12, %v3113_v26, %v3117_v21  ;;  %v1471_v5 = vor.u32 %v1470_v33, %v1467_v20  ;;  %552 = vst [vmem:[#allocation2 + $0x44] sm:$0x1] %v551_v37  ;;  %v12955_v31 = vrot.slane %v16891_v15, 9  ;;  %v3120_v46 = vshrl.u32 %v2983_v59, 16  ;;  %v15589_v60 = vld [vmem:[#allocation2 + $0x54] sm:$0x1] }
 0x175   : > { %v12982_v0 = vcombine.low %v3104_v1, %v3118_v44  ;;  %v1463_v45 = vsel %vm16786_vm12, %v1458_v28, %v1462_v57  ;;  %v3123_v49 = vshll.u32 %v2983_v59, 16  ;;  %v16904_v3 = vsel %vm16241_vm9, %v12954_v58, %v3605_v47  ;;  %v3492_v26 = vld [vmem:[#allocation2 + $0x60] sm:$0xe]  ;;  %v15590_v59 = vld [vmem:[#allocation2 + $0x5c] sm:$0x1] }
 0x176   : > { %v1472_v29 = vrot.slane %v1471_v5, 4  ;;  %v3129_v39 = vshll.u32 %v2984_v32, 16  ;;  %v3134_v6 = vshrl.u32 %v2985_v4, 16  ;;  %v3122_v56 = vrot.slane %v3120_v46, 4  ;;  %v2987_v37 = vld [vmem:[#allocation2 + $0x58] sm:$0xf] }
 0x177   : > { %4012 = vmatmul.mubr.bf16.gmra.mrb[40].mxu0 %v12982_v0  ;;  %v3125_v13 = vrot.slane %v3123_v49, 5  ;;  %v3137_v9 = vshll.u32 %v2985_v4, 16  ;;  %v1479_v21 = vshrl.u32 %v16898_v24, 16  ;;  %v1482_v34 = vshll.u32 %v16898_v24, 16  ;;  %v2989_v47 = vld [vmem:[#allocation2 + $0x60] sm:$0xf] }
 0x178   : > { %v1477_v61 = vsel %vm16786_vm12, %v1472_v29, %v1476_v52  ;;  %v16911_v10 = vrot.slane %v3129_v39, 5  ;;  %v3136_v18 = vrot.slane %v3134_v6, 4  ;;  %v1488_v22 = vshll.u32 %v15589_v60, 16  ;;  %v15389_v23 = vld [vmem:[#allocation7 + $0x1f8] sm:$0xff]  }
 0x179   : > { %v12839_v36 = vcombine.low %v1463_v45, %v1477_v61  ;;  %v3126_v43 = vor.u32 %v3125_v13, %v3122_v56  ;;  %v3139_v27 = vrot.slane %v3137_v9, 5  ;;  %v1481_v2 = vrot.slane %v1479_v21, 4  ;;  %13949 = vmatprep.subr.bf16.mxu1 %v15389_v23  ;;  %v15390_v56 = vld [vmem:[#allocation7 + $0x218] sm:$0xff]  }
 0x17a   : > { %v1484_v1 = vrot.slane %v1482_v34, 5  ;;  %v1493_v51 = vshrl.u32 %v16906_v16, 16  ;;  %v1496_v32 = vshll.u32 %v16906_v16, 16  ;;  %v1502_v28 = vshll.u32 %v15590_v59, 16  ;;  %14677 = vmatprep.subr.bf16.mxu0 %v15390_v56 }
 0x17b   : > { %2866 = vmatprep.mubr.bf16.mxu1 %v12839_v36  ;;  %v1152_v57 = vld [vmem:[#allocation2 + $0x44] sm:$0x1]  ;;  %v16918_v20 = vrot.slane %v3126_v43, 4  ;;  %v3140_v33 = vor.u32 %v3139_v27, %v3136_v18  ;;  %v12824_v52 = vcombine.low %v16898_v24, %v16906_v16  ;;  %v1490_v44 = vrot.slane %v1488_v22, 5  ;;  %v16942_v18 = vld [vmem:[#allocation2 + $0x60] sm:$0xf]  ;;  %14678 = vmatpush3.bf16.msra.mxu0 %v15390_v56 }
 0x17c   : > { %2867 = vmatmul.mubr.bf16.gmra.mrb[44].mxu1 %v12823_v54  ;;  %v1153_v58 = vsel %vm16152_vm2, %v848_v7, %v1152_v57  ;;  %v1485_v4 = vor.u32 %v1484_v1, %v1481_v2  ;;  %v1495_v5 = vrot.slane %v1493_v51, 4  ;;  %v1498_v46 = vrot.slane %v1496_v32, 5  ;;  %v15391_v2 = vld [vmem:[#allocation7 + $0x1b8] sm:$0xff]   ;;  %v15592_v16 = vld [vmem:[#allocation2 + $0x6c] sm:$0x1] }
 0x17d   : > { %1154 = vst [vmem:[#allocation2 + $0x44] sm:$0x1] %v1153_v58  ;;  %v3132_v0 = vsel %vm16786_vm12, %v16918_v20, %v16911_v10  ;;  %v16933_v45 = vrot.slane %v3140_v33, 4  ;;  %v1504_v14 = vrot.slane %v1502_v28, 5  ;;  %v12956_v48 = vrot.slane %v3491_v12, 9  ;;  %13950 = vmatpush3.bf16.msra.mxu1 %v15391_v2 }
 0x17e   : > { %v1486_v54 = vrot.slane %v1485_v4, 4  ;;  %v3613_v49 = vrot.slane %v2988_v30, 5  ;;  %v12957_v29 = vrot.slane %v3492_v26, 9  ;;  %v1499_v7 = vor.u32 %v1498_v46, %v1495_v5  ;;  %v16953_v26 = vld [vmem:[#allocation2 + $0x68] sm:$0xf] }
 0x17f   : > { %v3617_v39 = vrot.slane %v16916_v55, 5  ;;  %v3148_v6 = vshrl.u32 %v2987_v37, 16  ;;  %v3151_v42 = vshll.u32 %v2987_v37, 16  ;;  %v3157_v21 = vshll.u32 %v2988_v30, 16  ;;  %v15591_v58 = vld [vmem:[#allocation2 + $0x64] sm:$0x1] }
 0x180   : > { %v1491_v13 = vsel %vm16786_vm12, %v1486_v54, %v1490_v44  ;;  %v16940_v9 = vsel %vm16241_vm9, %v12956_v48, %v3613_v49  ;;  %v3162_v61 = vshrl.u32 %v2989_v47, 16  ;;  %v1500_v34 = vrot.slane %v1499_v7, 4  ;;  %v15392_v44 = vld [vmem:[#allocation7 + $0x220] sm:$0xff]   ;;  %v16983_v20 = vld [vmem:[#allocation2 + $0x70] sm:$0xf] }
 0x181   : > { %v16946_v36 = vsel %vm16241_vm9, %v12957_v29, %v3617_v39  ;;  %v3150_v43 = vrot.slane %v3148_v6, 4  ;;  %v3153_v27 = vrot.slane %v3151_v42, 5  ;;  %v3159_v1 = vrot.slane %v3157_v21, 5  ;;  %14679 = vmatprep.subr.bf16.mxu0 %v15392_v44  ;;  %v2992_v6 = vld [vmem:[#allocation2 + $0x6c] sm:$0x1] }
 0x182   : > { %v13000_v12 = vcombine.low %v16940_v9, %v16946_v36  ;;  %v3164_v60 = vrot.slane %v3162_v61, 4  ;;  %v3165_v22 = vshll.u32 %v2989_v47, 16  ;;  %v1505_v30 = vsel %vm16786_vm12, %v1500_v34, %v1504_v14  ;;  %v3493_v42 = vld [vmem:[#allocation2 + $0x68] sm:$0xe]  ;;  %14680 = vmatpush3.bf16.msra.mxu0 %v15392_v44  ;;  %v2994_v34 = vld [vmem:[#allocation2 + $0x74] sm:$0x1] }
 0x183   : > { %v3154_v51 = vor.u32 %v3153_v27, %v3150_v43  ;;  %v3171_v32 = vshll.u32 %v16916_v55, 16  ;;  %v1507_v57 = vshrl.u32 %v16942_v18, 16  ;;  %v12840_v59 = vcombine.low %v1491_v13, %v1505_v30  ;;  %v3494_v43 = vld [vmem:[#allocation2 + $0x70] sm:$0xe] }
 0x184   : > { %v2986_v33 = vld [vmem:[#allocation2 + $0x44] sm:$0x1]  ;;  %v3167_v28 = vrot.slane %v3165_v22, 5  ;;  %v1510_v37 = vshll.u32 %v16942_v18, 16  ;;  %v1516_v4 = vshll.u32 %v15591_v58, 16  ;;  %v1521_v39 = vshrl.u32 %v16953_v26, 16 }
 0x185   : > { %v3609_v5 = vrot.slane %v2986_v33, 5  ;;  %v3143_v47 = vshll.u32 %v2986_v33, 16  ;;  %v3155_v46 = vrot.slane %v3154_v51, 4  ;;  %v3173_v14 = vrot.slane %v3171_v32, 5  ;;  %2874 = vmatprep.mubr.bf16.mxu1 %v12840_v59  ;;  %v15394_v32 = vld [vmem:[#allocation7 + $0x228] sm:$0xff]  }
 0x186   : > { %v3168_v23 = vor.u32 %v3167_v28, %v3164_v60  ;;  %v1509_v55 = vrot.slane %v1507_v57, 4  ;;  %v1512_v54 = vrot.slane %v1510_v37, 5  ;;  %v1518_v48 = vrot.slane %v1516_v4, 5  ;;  %2875 = vmatmul.mubr.bf16.gmra.mrb[48].mxu1 %v12824_v52  ;;  %v2993_v60 = vld [vmem:[#allocation2 + $0x70] sm:$0xf]  ;;  %14681 = vmatprep.subr.bf16.mxu0 %v15394_v32 }
 0x187   : > { %v3610_v49 = vsel %vm16241_vm9, %v12955_v31, %v3609_v5  ;;  %v3145_v29 = vrot.slane %v3143_v47, 5  ;;  %v3160_v7 = vsel %vm16786_vm12, %v3155_v46, %v3159_v1  ;;  %v1524_v21 = vshll.u32 %v16953_v26, 16  ;;  %v2991_v1 = vld [vmem:[#allocation2 + $0x68] sm:$0xf]  ;;  %v16990_v58 = vld [vmem:[#allocation2 + $0x78] sm:$0xf]  ;;  %14682 = vmatpush3.bf16.msra.mxu0 %v15394_v32 }
 0x188   : > { %v12999_v56 = vcombine.low %v16904_v3, %v3610_v49  ;;  %v3169_v13 = vrot.slane %v3168_v23, 4  ;;  %v1513_v15 = vor.u32 %v1512_v54, %v1509_v55  ;;  %v1523_v24 = vrot.slane %v1521_v39, 4  ;;  %v2995_v32 = vld [vmem:[#allocation2 + $0x78] sm:$0xf] }
 0x189   : > { %v3146_v31 = vsel %vm16786_vm12, %v16933_v45, %v3145_v29  ;;  %v1530_v52 = vshll.u32 %v15592_v16, 16  ;;  %v12825_v61 = vcombine.low %v16942_v18, %v16953_v26  ;;  %v1526_v45 = vrot.slane %v1524_v21, 5 }
 0x18a   : > { %4019 = vmatprep.mubr.bf16.mxu0 %v12999_v56  ;;  %v12983_v3 = vcombine.low %v3132_v0, %v3146_v31  ;;  %v3174_v27 = vsel %vm16786_vm12, %v3169_v13, %v3173_v14  ;;  %v1514_v2 = vrot.slane %v1513_v15, 4  ;;  %v12958_v51 = vrot.slane %v3493_v42, 9  ;;  %v15593_v42 = vld [vmem:[#allocation2 + $0x74] sm:$0x1]  ;;  %v2996_v15 = vld [vmem:[#allocation2 + $0x7c] sm:$0x1] }
 0x18b   : > { %v12984_v22 = vcombine.low %v3160_v7, %v3174_v27  ;;  %v1532_v30 = vrot.slane %v1530_v52, 5  ;;  %v3621_v18 = vrot.slane %v2992_v6, 5  ;;  %v1527_v57 = vor.u32 %v1526_v45, %v1523_v24  ;;  %v3495_v52 = vld [vmem:[#allocation2 + $0x78] sm:$0xe]  ;;  %v15594_v27 = vld [vmem:[#allocation2 + $0x7c] sm:$0x1] }
 0x18c   : > { %4020 = vmatmul.mubr.bf16.gmra.mrb[44].mxu0 %v12983_v3  ;;  %v1519_v26 = vsel %vm16786_vm12, %v1514_v2, %v1518_v48  ;;  %v12959_v33 = vrot.slane %v3494_v43, 9  ;;  %v3625_v10 = vrot.slane %v2994_v34, 5  ;;  %v3176_v59 = vshrl.u32 %v2991_v1, 16  ;;  %v3496_v45 = vld [vmem:[#allocation2 + $0x80] sm:$0xe] }
 0x18d   : > { %4027 = vmatprep.mubr.bf16.mxu0 %v13000_v12  ;;  %v3622_v0 = vsel %vm16241_vm9, %v12958_v51, %v3621_v18  ;;  %v3179_v28 = vshll.u32 %v2991_v1, 16  ;;  %v3185_v37 = vshll.u32 %v2992_v6, 16  ;;  %v1528_v4 = vrot.slane %v1527_v57, 4  ;;  %v2998_v18 = vld [vmem:[#allocation2 + $0x84] sm:$0x1] }
 0x18e   : > { %v3626_v44 = vsel %vm16241_vm9, %v12959_v33, %v3625_v10  ;;  %v3190_v5 = vshrl.u32 %v2993_v60, 16  ;;  %v3193_v47 = vshll.u32 %v2993_v60, 16  ;;  %v3178_v14 = vrot.slane %v3176_v59, 4  ;;  %v2997_v33 = vld [vmem:[#allocation2 + $0x80] sm:$0xf] }
 0x18f   : > { %v13001_v46 = vcombine.low %v3622_v0, %v3626_v44  ;;  %v3181_v9 = vrot.slane %v3179_v28, 5  ;;  %v3187_v36 = vrot.slane %v3185_v37, 5  ;;  %v1533_v12 = vsel %vm16786_vm12, %v1528_v4, %v1532_v30 }
 0x190   : > { %v3192_v23 = vrot.slane %v3190_v5, 4  ;;  %v3195_v55 = vrot.slane %v3193_v47, 5  ;;  %v3199_v54 = vshll.u32 %v2994_v34, 16  ;;  %v12841_v48 = vcombine.low %v1519_v26, %v1533_v12 }
 0x191   : > { %v3182_v49 = vor.u32 %v3181_v9, %v3178_v14  ;;  %v1535_v29 = vshrl.u32 %v16983_v20, 16  ;;  %v1538_v7 = vshll.u32 %v16983_v20, 16  ;;  %v1544_v56 = vshll.u32 %v15593_v42, 16  ;;  %v17010_v9 = vld [vmem:[#allocation2 + $0x80] sm:$0xf] }
 0x192   : > { %v3196_v39 = vor.u32 %v3195_v55, %v3192_v23  ;;  %v3201_v6 = vrot.slane %v3199_v54, 5  ;;  %v1549_v13 = vshrl.u32 %v16990_v58, 16  ;;  %2882 = vmatprep.mubr.bf16.mxu1 %v12841_v48  ;;  %v1552_v16 = vshll.u32 %v16990_v58, 16  ;;  %v17014_v48 = vld [vmem:[#allocation2 + $0x88] sm:$0xf] }
 0x193   : > { %v3183_v21 = vrot.slane %v3182_v49, 4  ;;  %v1537_v31 = vrot.slane %v1535_v29, 4  ;;  %v1540_v24 = vrot.slane %v1538_v7, 5  ;;  %2883 = vmatmul.mubr.bf16.gmra.mrb[52].mxu1 %v12825_v61  ;;  %v1546_v43 = vrot.slane %v1544_v56, 5 }
 0x194   : > { %4028 = vmatmul.mubr.bf16.gmra.mrb[48].mxu0 %v12984_v22  ;;  %v3197_v34 = vrot.slane %v3196_v39, 4  ;;  %v1551_v3 = vrot.slane %v1549_v13, 4  ;;  %v1558_v2 = vshll.u32 %v15594_v27, 16  ;;  %v1554_v30 = vrot.slane %v1552_v16, 5 }
 0x195   : > { %4035 = vmatprep.mubr.bf16.mxu0 %v13001_v46  ;;  %v3188_v1 = vsel %vm16786_vm12, %v3183_v21, %v3187_v36  ;;  %v1541_v60 = vor.u32 %v1540_v24, %v1537_v31  ;;  %v12826_v51 = vcombine.low %v16983_v20, %v16990_v58  ;;  %v12960_v26 = vrot.slane %v3495_v52, 9  ;;  %v15395_v20 = vld [vmem:[#allocation7 + $0x230] sm:$0xff]   ;;  %v15397_v36 = vld [vmem:[#allocation7 + $0x238] sm:$0xff]   ;;  %v3000_v52 = vld [vmem:[#allocation2 + $0x8c] sm:$0x1] }
 0x196   : > { %v3202_v61 = vsel %vm16786_vm12, %v3197_v34, %v3201_v6  ;;  %v1560_v22 = vrot.slane %v1558_v2, 5  ;;  %v3629_v57 = vrot.slane %v2996_v15, 5  ;;  %v1555_v59 = vor.u32 %v1554_v30, %v1551_v3  ;;  %14683 = vmatprep.subr.bf16.mxu0 %v15395_v20  ;;  %v3497_v34 = vld [vmem:[#allocation2 + $0x88] sm:$0xe] }
 0x197   : > { %v12985_v10 = vcombine.low %v3188_v1, %v3202_v61  ;;  %v1542_v0 = vrot.slane %v1541_v60, 4  ;;  %v12961_v28 = vrot.slane %v3496_v45, 9  ;;  %v3633_v4 = vrot.slane %v2998_v18, 5  ;;  %14684 = vmatpush3.bf16.msra.mxu0 %v15395_v20  ;;  %v17023_v45 = vld [vmem:[#allocation2 + $0x90] sm:$0xe] }
 0x198   : > { %v3630_v37 = vsel %vm16241_vm9, %v12960_v26, %v3629_v57  ;;  %v3204_v44 = vshrl.u32 %v2995_v32, 16  ;;  %v3207_v5 = vshll.u32 %v2995_v32, 16  ;;  %v1556_v47 = vrot.slane %v1555_v59, 4  ;;  %14685 = vmatprep.subr.bf16.mxu0 %v15397_v36  ;;  %v2999_v1 = vld [vmem:[#allocation2 + $0x88] sm:$0xf] }
 0x199   : > { %v1547_v58 = vsel %vm16786_vm12, %v1542_v0, %v1546_v43  ;;  %v3213_v46 = vshll.u32 %v2996_v15, 16  ;;  %v3218_v14 = vshrl.u32 %v2997_v33, 16  ;;  %v3634_v12 = vsel %vm16241_vm9, %v12961_v28, %v3633_v4  ;;  %v574_v15 = vld [vmem:[#allocation2 + $0x94] sm:$0x1]  ;;  %v3001_v4 = vld [vmem:[#allocation2 + $0x90] sm:$0xf] }
 0x19a   : > { %v3206_v23 = vrot.slane %v3204_v44, 4  ;;  %v3209_v55 = vrot.slane %v3207_v5, 5  ;;  %v3221_v54 = vshll.u32 %v2997_v33, 16  ;;  %v1561_v49 = vsel %vm16786_vm12, %v1556_v47, %v1560_v22 }
 0x19b   : > { %v13002_v29 = vcombine.low %v3630_v37, %v3634_v12  ;;  %v3215_v7 = vrot.slane %v3213_v46, 5  ;;  %v3220_v39 = vrot.slane %v3218_v14, 4  ;;  %v12842_v6 = vcombine.low %v1547_v58, %v1561_v49  ;;  %14686 = vmatpush3.bf16.msra.mxu0 %v15397_v36  ;;  %v17035_v58 = vld [vmem:[#allocation2 + $0xa0] sm:$0xf] }
 0x19c   : > { %4036 = vmatmul.mubr.bf16.gmra.mrb[52].mxu0 %v12985_v10  ;;  %v3210_v42 = vor.u32 %v3209_v55, %v3206_v23  ;;  %v3223_v56 = vrot.slane %v3221_v54, 5  ;;  %v3227_v13 = vshll.u32 %v2998_v18, 16  ;;  %v1563_v21 = vshrl.u32 %v17010_v9, 16  ;;  %v17043_v54 = vld [vmem:[#allocation2 + $0xa8] sm:$0xf] }
 0x19d   : > { %4043 = vmatprep.mubr.bf16.mxu0 %v13002_v29  ;;  %v1566_v31 = vshll.u32 %v17010_v9, 16  ;;  %v1572_v24 = vshll.u32 %v16790_v41, 16  ;;  %v1577_v16 = vshrl.u32 %v17014_v48, 16  ;;  %2890 = vmatprep.mubr.bf16.mxu1 %v12842_v6  ;;  %v1580_v2 = vshll.u32 %v17014_v48, 16 }
 0x19e   : > { %v3211_v43 = vrot.slane %v3210_v42, 4  ;;  %v3224_v3 = vor.u32 %v3223_v56, %v3220_v39  ;;  %v3229_v27 = vrot.slane %v3227_v13, 5  ;;  %2891 = vmatmul.mubr.bf16.gmra.mrb[56].mxu1 %v12826_v51  ;;  %v1565_v60 = vrot.slane %v1563_v21, 4  ;;  %v3004_v21 = vld [vmem:[#allocation2 + $0xac] sm:$0x1] }
 0x19f   : > { %v1568_v30 = vrot.slane %v1566_v31, 5  ;;  %v1574_v18 = vrot.slane %v1572_v24, 5  ;;  %v1579_v32 = vrot.slane %v1577_v16, 4  ;;  %v1582_v22 = vrot.slane %v1580_v2, 5  ;;  %v3499_v31 = vld [vmem:[#allocation2 + $0xa8] sm:$0xe] }
 0x1a0   : > { %v3216_v41 = vsel %vm16786_vm12, %v3211_v43, %v3215_v7  ;;  %v3225_v61 = vrot.slane %v3224_v3, 4  ;;  %v1586_v26 = vshll.u32 %v16792_v53, 16  ;;  %v12827_v33 = vcombine.low %v17010_v9, %v17014_v48  ;;  %v17045_v48 = vpop.f32.mrb[0].mxu1  ;;  %v3500_v2 = vld [vmem:[#allocation2 + $0xb0] sm:$0xe] }
 0x1a1   : > { %v1569_v57 = vor.u32 %v1568_v30, %v1565_v60  ;;  %v575_v10 = vsel %vm16157_vm4, 0, %v574_v15  ;;  %v12962_v51 = vrot.slane %v3497_v34, 9  ;;  %v1583_v59 = vor.u32 %v1582_v22, %v1579_v32  ;;  %v17052_v6 = vpop.f32.mrb[1].mxu1  ;;  %v15595_v34 = vld [vmem:[#allocation2 + $0xa4] sm:$0x1] }
 0x1a2   : > { %v3230_v0 = vsel %vm16786_vm12, %v3225_v61, %v3229_v27  ;;  %v1588_v28 = vrot.slane %v1586_v26, 5  ;;  %576 = vst [vmem:[#allocation2 + $0x94] sm:$0x1] %v575_v10  ;;  %v3637_v37 = vrot.slane %v3000_v52, 5  ;;  %v12963_v53 = vrot.slane %v17023_v45, 9  ;;  %v17055_v24 = vpop.f32.mrb[2].mxu1 }
 0x1a3   : > { %v12986_v44 = vcombine.low %v3216_v41, %v3230_v0  ;;  %v1570_v5 = vrot.slane %v1569_v57, 4  ;;  %v3232_v20 = vshrl.u32 %v2999_v1, 16  ;;  %v1584_v47 = vrot.slane %v1583_v59, 4  ;;  %v3006_v27 = vld [vmem:[#allocation2 + $0xb4] sm:$0x1] }
 0x1a4   : > { %v17039_v46 = vsel %vm16241_vm9, %v12962_v51, %v3637_v37  ;;  %v3235_v14 = vshll.u32 %v2999_v1, 16  ;;  %v3241_v9 = vshll.u32 %v3000_v52, 16  ;;  %v3246_v23 = vshrl.u32 %v3001_v4, 16  ;;  %v17058_v1 = vpop.f32.mrb[3].mxu1  ;;  %v15596_v41 = vld [vmem:[#allocation2 + $0xac] sm:$0x1] }
 0x1a5   : > { %4044 = vmatmul.mubr.bf16.gmra.mrb[56].mxu0 %v12986_v44  ;;  %v1575_v36 = vsel %vm16786_vm12, %v1570_v5, %v1574_v18  ;;  %v3234_v12 = vrot.slane %v3232_v20, 4  ;;  %v3249_v55 = vshll.u32 %v3001_v4, 16  ;;  %v1589_v49 = vsel %vm16786_vm12, %v1584_v47, %v1588_v28  ;;  %v3003_v22 = vld [vmem:[#allocation2 + $0xa8] sm:$0xf]  ;;  %v3005_v44 = vld [vmem:[#allocation2 + $0xb0] sm:$0xf] }
 0x1a6   : > { %v3237_v29 = vrot.slane %v3235_v14, 5  ;;  %v17049_v7 = vrot.slane %v3241_v9, 5  ;;  %v1591_v39 = vshrl.u32 %v17035_v58, 16  ;;  %v12843_v42 = vcombine.low %v1575_v36, %v1589_v49 }
 0x1a7   : > { %v3248_v56 = vrot.slane %v3246_v23, 4  ;;  %v3251_v13 = vrot.slane %v3249_v55, 5  ;;  %v1594_v15 = vshll.u32 %v17035_v58, 16  ;;  %v1600_v43 = vshll.u32 %v15595_v34, 16  ;;  %v17079_v55 = vld [vmem:[#allocation2 + $0xb0] sm:$0xf] }
 0x1a8   : > { %v3238_v16 = vor.u32 %v3237_v29, %v3234_v12  ;;  %v1593_v52 = vrot.slane %v1591_v39, 4  ;;  %v1605_v3 = vshrl.u32 %v17043_v54, 16  ;;  %2898 = vmatprep.mubr.bf16.mxu1 %v12843_v42  ;;  %v1608_v32 = vshll.u32 %v17043_v54, 16  ;;  %v17093_v34 = vld [vmem:[#allocation2 + $0xb8] sm:$0xf] }
 0x1a9   : > { %v1200_v60 = vld [vmem:[#allocation2 + $0x94] sm:$0x1]  ;;  %v3252_v30 = vor.u32 %v3251_v13, %v3248_v56  ;;  %v1596_v18 = vrot.slane %v1594_v15, 5  ;;  %v1614_v61 = vshll.u32 %v15596_v41, 16  ;;  %2899 = vmatmul.mubr.bf16.gmra.mrb[60].mxu1 %v12827_v33  ;;  %v1602_v10 = vrot.slane %v1600_v43, 5 }
 0x1aa   : > { %v1201_v26 = vsel %vm16152_vm2, %v912_v25, %v1200_v60  ;;  %v17065_v57 = vrot.slane %v3238_v16, 4  ;;  %v1607_v51 = vrot.slane %v1605_v3, 4  ;;  %v1610_v28 = vrot.slane %v1608_v32, 5  ;;  %v17089_v15 = vpop.f32.mrb[4].mxu1 }
 0x1ab   : > { %1202 = vst [vmem:[#allocation2 + $0x94] sm:$0x1] %v1201_v26  ;;  %v17067_v0 = vrot.slane %v3252_v30, 4  ;;  %v1597_v59 = vor.u32 %v1596_v18, %v1593_v52  ;;  %v1616_v37 = vrot.slane %v1614_v61, 5  ;;  %v12828_v19 = vcombine.low %v17035_v58, %v17043_v54  ;;  %v17095_v43 = vpop.f32.mrb[5].mxu1 }
 0x1ac   : > { %v3244_v33 = vsel %vm16786_vm12, %v17065_v57, %v17049_v7  ;;  %v12964_v4 = vrot.slane %v3499_v31, 9  ;;  %v3645_v25 = vrot.slane %v3004_v21, 5  ;;  %v1611_v20 = vor.u32 %v1610_v28, %v1607_v51 }
 0x1ad   : > { %v1598_v5 = vrot.slane %v1597_v59, 4  ;;  %v12965_v47 = vrot.slane %v3500_v2, 9  ;;  %v3649_v14 = vrot.slane %v3006_v27, 5  ;;  %v3260_v36 = vshrl.u32 %v3003_v22, 16 }
 0x1ae   : > { %v17077_v9 = vsel %vm16241_vm9, %v12964_v4, %v3645_v25  ;;  %v3263_v12 = vshll.u32 %v3003_v22, 16  ;;  %v3269_v23 = vshll.u32 %v3004_v21, 16  ;;  %v1612_v58 = vrot.slane %v1611_v20, 4 }
 0x1af   : > { %v1603_v49 = vsel %vm16786_vm12, %v1598_v5, %v1602_v10  ;;  %v17085_v54 = vsel %vm16241_vm9, %v12965_v47, %v3649_v14  ;;  %v3274_v29 = vshrl.u32 %v3005_v44, 16  ;;  %v3262_v42 = vrot.slane %v3260_v36, 4  ;;  %v3008_v14 = vld [vmem:[#allocation2 + $0xbc] sm:$0x1]  ;;  %v17107_v36 = vpop.f32.mrb[6].mxu1 }
 0x1b0   : > { %v13004_v39 = vcombine.low %v17077_v9, %v17085_v54  ;;  %v3265_v56 = vrot.slane %v3263_v12, 5  ;;  %v3271_v13 = vrot.slane %v3269_v23, 5  ;;  %v1617_v21 = vsel %vm16786_vm12, %v1612_v58, %v1616_v37  ;;  %v3501_v9 = vld [vmem:[#allocation2 + $0xb8] sm:$0xe]  ;;  %v3502_v23 = vld [vmem:[#allocation2 + $0xc0] sm:$0xe] }
 0x1b1   : > { %v3276_v31 = vrot.slane %v3274_v29, 4  ;;  %v3277_v16 = vshll.u32 %v3005_v44, 16  ;;  %v3283_v52 = vshll.u32 %v3006_v27, 16  ;;  %v12844_v2 = vcombine.low %v1603_v49, %v1617_v21  ;;  %v15597_v27 = vld [vmem:[#allocation2 + $0xb4] sm:$0x1]  ;;  %v17113_v49 = vpop.f32.mrb[7].mxu1 }
 0x1b2   : > { %v3002_v3 = vld [vmem:[#allocation2 + $0x94] sm:$0x1]  ;;  %v3266_v60 = vor.u32 %v3265_v56, %v3262_v42  ;;  %v1619_v30 = vshrl.u32 %v17079_v55, 16  ;;  %v1622_v18 = vshll.u32 %v17079_v55, 16  ;;  %v1628_v59 = vshll.u32 %v15597_v27, 16 }
 0x1b3   : > { %v3641_v32 = vrot.slane %v3002_v3, 5  ;;  %v3255_v41 = vshll.u32 %v3002_v3, 16  ;;  %v3279_v61 = vrot.slane %v3277_v16, 5  ;;  %v3285_v22 = vrot.slane %v3283_v52, 5  ;;  %2906 = vmatprep.mubr.bf16.mxu1 %v12844_v2  ;;  %v15598_v54 = vld [vmem:[#allocation2 + $0xbc] sm:$0x1] }
 0x1b4   : > { %v3267_v26 = vrot.slane %v3266_v60, 4  ;;  %v1621_v10 = vrot.slane %v1619_v30, 4  ;;  %v1624_v51 = vrot.slane %v1622_v18, 5  ;;  %2907 = vmatmul.mubr.bf16.gmra.mrb[64].mxu1 %v12828_v19  ;;  %v1633_v25 = vshrl.u32 %v17093_v34, 16  ;;  %v3010_v42 = vld [vmem:[#allocation2 + $0xc4] sm:$0x1] }
 0x1b5   : > { %v3642_v28 = vsel %vm16241_vm9, %v12963_v53, %v3641_v32  ;;  %v3257_v37 = vrot.slane %v3255_v41, 5  ;;  %v3280_v4 = vor.u32 %v3279_v61, %v3276_v31  ;;  %v1630_v47 = vrot.slane %v1628_v59, 5  ;;  %v3007_v56 = vld [vmem:[#allocation2 + $0xb8] sm:$0xf]  ;;  %v3009_v52 = vld [vmem:[#allocation2 + $0xc0] sm:$0xf] }
 0x1b6   : > { %v13003_v44 = vcombine.low %v17039_v46, %v3642_v28  ;;  %v3272_v5 = vsel %vm16786_vm12, %v3267_v26, %v3271_v13  ;;  %v1625_v20 = vor.u32 %v1624_v51, %v1621_v10  ;;  %v1635_v19 = vrot.slane %v1633_v25, 4  ;;  %v17126_v2 = vld [vmem:[#allocation2 + $0xc0] sm:$0xf] }
 0x1b7   : > { %v3258_v45 = vsel %vm16786_vm12, %v17067_v0, %v3257_v37  ;;  %v3281_v53 = vrot.slane %v3280_v4, 4  ;;  %v1636_v12 = vshll.u32 %v17093_v34, 16  ;;  %v1642_v29 = vshll.u32 %v15598_v54, 16  ;;  %v17132_v37 = vld [vmem:[#allocation2 + $0xc8] sm:$0xf] }
 0x1b8   : > { %4051 = vmatprep.mubr.bf16.mxu0 %v13003_v44  ;;  %v12987_v46 = vcombine.low %v3244_v33, %v3258_v45  ;;  %v1626_v58 = vrot.slane %v1625_v20, 4  ;;  %v12829_v0 = vcombine.low %v17079_v55, %v17093_v34  ;;  %v12966_v31 = vrot.slane %v3501_v9, 9  ;;  %v15599_v9 = vld [vmem:[#allocation2 + $0xc4] sm:$0x1]  ;;  %v17140_v54 = vld [vmem:[#allocation2 + $0xd4] sm:$0x1] }
 0x1b9   : > { %v3286_v13 = vsel %vm16786_vm12, %v3281_v53, %v3285_v22  ;;  %v1638_v21 = vrot.slane %v1636_v12, 5  ;;  %v3653_v16 = vrot.slane %v3008_v14, 5  ;;  %v1644_v57 = vrot.slane %v1642_v29, 5  ;;  %v3012_v53 = vld [vmem:[#allocation2 + $0xcc] sm:$0x1] }
 0x1ba   : > { %4052 = vmatmul.mubr.bf16.gmra.mrb[60].mxu0 %v12987_v46  ;;  %v12988_v3 = vcombine.low %v3272_v5, %v3286_v13  ;;  %v1631_v7 = vsel %vm16786_vm12, %v1626_v58, %v1630_v47  ;;  %v12967_v33 = vrot.slane %v3502_v23, 9  ;;  %v3657_v60 = vrot.slane %v3010_v42, 5 }
 0x1bb   : > { %4059 = vmatprep.mubr.bf16.mxu0 %v13004_v39  ;;  %v1639_v55 = vor.u32 %v1638_v21, %v1635_v19  ;;  %v3654_v34 = vsel %vm16241_vm9, %v12966_v31, %v3653_v16  ;;  %v3288_v30 = vshrl.u32 %v3007_v56, 16  ;;  %v3291_v18 = vshll.u32 %v3007_v56, 16  ;;  %v3503_v19 = vld [vmem:[#allocation2 + $0xc8] sm:$0xe]  ;;  %v15600_v21 = vld [vmem:[#allocation2 + $0xcc] sm:$0x1] }
 0x1bc   : > { %v3297_v32 = vshll.u32 %v3008_v14, 16  ;;  %v3302_v41 = vshrl.u32 %v3009_v52, 16  ;;  %v3305_v61 = vshll.u32 %v3009_v52, 16  ;;  %v3658_v26 = vsel %vm16241_vm9, %v12967_v33, %v3657_v60  ;;  %v3504_v16 = vld [vmem:[#allocation2 + $0xd0] sm:$0xe] }
 0x1bd   : > { %v1640_v22 = vrot.slane %v1639_v55, 4  ;;  %v3290_v10 = vrot.slane %v3288_v30, 4  ;;  %v3311_v51 = vshll.u32 %v3010_v42, 16  ;;  %v13005_v27 = vcombine.low %v3654_v34, %v3658_v26  ;;  %v17142_v29 = vpop.f32.mrb[8].mxu1  ;;  %v3011_v55 = vld [vmem:[#allocation2 + $0xc8] sm:$0xf] }
 0x1be   : > { %v3293_v59 = vrot.slane %v3291_v18, 5  ;;  %v3299_v28 = vrot.slane %v3297_v32, 5  ;;  %v3304_v39 = vrot.slane %v3302_v41, 4  ;;  %v3307_v25 = vrot.slane %v3305_v61, 5  ;;  %v17146_v34 = vpop.f32.mrb[9].mxu1 }
 0x1bf   : > { %v1645_v4 = vsel %vm16786_vm12, %v1640_v22, %v1644_v57  ;;  %v3313_v44 = vrot.slane %v3311_v51, 5  ;;  %v1647_v5 = vshrl.u32 %v17126_v2, 16  ;;  %v1650_v14 = vshll.u32 %v17126_v2, 16  ;;  %v3013_v22 = vld [vmem:[#allocation2 + $0xd0] sm:$0xf] }
 0x1c0   : > { %v12845_v20 = vcombine.low %v1631_v7, %v1645_v4  ;;  %v3294_v47 = vor.u32 %v3293_v59, %v3290_v10  ;;  %v1656_v45 = vshll.u32 %v15599_v9, 16  ;;  %v3308_v12 = vor.u32 %v3307_v25, %v3304_v39 }
 0x1c1   : > { %v1649_v23 = vrot.slane %v1647_v5, 4  ;;  %v1661_v46 = vshrl.u32 %v17132_v37, 16  ;;  %v1664_v58 = vshll.u32 %v17132_v37, 16  ;;  %v1652_v56 = vrot.slane %v1650_v14, 5 }
 0x1c2   : > { %4060 = vmatmul.mubr.bf16.gmra.mrb[64].mxu0 %v12988_v3  ;;  %2914 = vmatprep.mubr.bf16.mxu1 %v12845_v20  ;;  %v3295_v42 = vrot.slane %v3294_v47, 4  ;;  %v1658_v13 = vrot.slane %v1656_v45, 5  ;;  %v1670_v31 = vshll.u32 %v15600_v21, 16  ;;  %v3309_v52 = vrot.slane %v3308_v12, 4  ;;  %v17163_v47 = vld [vmem:[#allocation2 + $0xd0] sm:$0xf] }
 0x1c3   : > { %2915 = vmatmul.mubr.bf16.gmra.mrb[68].mxu1 %v12829_v0  ;;  %4067 = vmatprep.mubr.bf16.mxu0 %v13005_v27  ;;  %v1663_v7 = vrot.slane %v1661_v46, 4  ;;  %v1666_v57 = vrot.slane %v1664_v58, 5  ;;  %v12830_v33 = vcombine.low %v17126_v2, %v17132_v37  ;;  %v1653_v60 = vor.u32 %v1652_v56, %v1649_v23  ;;  %v17153_v27 = vpop.f32.mrb[10].mxu1  ;;  %v17167_v12 = vld [vmem:[#allocation2 + $0xd8] sm:$0xf]  ;;  %v17170_v56 = vpop.f32.mrb[0].mxu0 }
 0x1c4   : > { %v3300_v3 = vsel %vm16786_vm12, %v3295_v42, %v3299_v28  ;;  %v1672_v30 = vrot.slane %v1670_v31, 5  ;;  %v12968_v18 = vrot.slane %v3503_v19, 9  ;;  %v3314_v32 = vsel %vm16786_vm12, %v3309_v52, %v3313_v44  ;;  %v17157_v4 = vpop.f32.mrb[11].mxu1  ;;  %v598_v42 = vld [vmem:[#allocation2 + $0xe4] sm:$0x1] }
 0x1c5   : > { %v1667_v0 = vor.u32 %v1666_v57, %v1663_v7  ;;  %v3661_v41 = vrot.slane %v3012_v53, 5  ;;  %v12969_v61 = vrot.slane %v3504_v16, 9  ;;  %v12989_v26 = vcombine.low %v3300_v3, %v3314_v32  ;;  %v15601_v16 = vld [vmem:[#allocation2 + $0xd4] sm:$0x1]  ;;  %v3505_v7 = vld [vmem:[#allocation2 + $0xd8] sm:$0xe] }
 0x1c6   : > { %v1654_v10 = vrot.slane %v1653_v60, 4  ;;  %v3665_v2 = vrot.slane %v17140_v54, 5  ;;  %v3316_v51 = vshrl.u32 %v3011_v55, 16  ;;  %v3319_v39 = vshll.u32 %v3011_v55, 16  ;;  %v17174_v57 = vpop.f32.mrb[1].mxu0 }
 0x1c7   : > { %v1668_v59 = vrot.slane %v1667_v0, 4  ;;  %v3662_v28 = vsel %vm16241_vm9, %v12968_v18, %v3661_v41  ;;  %v3325_v37 = vshll.u32 %v3012_v53, 16  ;;  %v3330_v20 = vshrl.u32 %v3013_v22, 16  ;;  %v17178_v18 = vld [vmem:[#allocation2 + $0xe0] sm:$0xe] }
 0x1c8   : > { %v1659_v25 = vsel %vm16786_vm12, %v1654_v10, %v1658_v13  ;;  %v3666_v44 = vsel %vm16241_vm9, %v12969_v61, %v3665_v2  ;;  %v3318_v5 = vrot.slane %v3316_v51, 4  ;;  %v3321_v45 = vrot.slane %v3319_v39, 5  ;;  %v15602_v2 = vld [vmem:[#allocation2 + $0xdc] sm:$0x1] }
 0x1c9   : > { %v1673_v14 = vsel %vm16786_vm12, %v1668_v59, %v1672_v30  ;;  %v13006_v9 = vcombine.low %v3662_v28, %v3666_v44  ;;  %v3327_v19 = vrot.slane %v3325_v37, 5  ;;  %v3332_v23 = vrot.slane %v3330_v20, 4  ;;  %v3016_v30 = vld [vmem:[#allocation2 + $0xdc] sm:$0x1]  ;;  %v3015_v59 = vld [vmem:[#allocation2 + $0xd8] sm:$0xf] }
 0x1ca   : > { %4068 = vmatmul.mubr.bf16.gmra.mrb[68].mxu0 %v12989_v26  ;;  %v12846_v53 = vcombine.low %v1659_v25, %v1673_v14  ;;  %v3333_v46 = vshll.u32 %v3013_v22, 16  ;;  %v3339_v58 = vshll.u32 %v17140_v54, 16  ;;  %v3322_v13 = vor.u32 %v3321_v45, %v3318_v5  ;;  %v17180_v28 = vpop.f32.mrb[2].mxu0  ;;  %v3017_v44 = vld [vmem:[#allocation2 + $0xe0] sm:$0xf] }
 0x1cb   : > { %4075 = vmatprep.mubr.bf16.mxu0 %v13006_v9  ;;  %v1675_v21 = vshrl.u32 %v17163_v47, 16  ;;  %v1678_v31 = vshll.u32 %v17163_v47, 16  ;;  %v1684_v52 = vshll.u32 %v15601_v16, 16  ;;  %v1689_v60 = vshrl.u32 %v17167_v12, 16  ;;  %v17188_v5 = vpop.f32.mrb[3].mxu0 }
 0x1cc   : > { %2922 = vmatprep.mubr.bf16.mxu1 %v12846_v53  ;;  %v3335_v55 = vrot.slane %v3333_v46, 5  ;;  %v3341_v3 = vrot.slane %v3339_v58, 5  ;;  %v1692_v54 = vshll.u32 %v17167_v12, 16  ;;  %v3323_v32 = vrot.slane %v3322_v13, 4  ;;  %v17190_v53 = vld [vmem:[#allocation2 + $0xf0] sm:$0xf] }
 0x1cd   : > { %2923 = vmatmul.mubr.bf16.gmra.mrb[72].mxu1 %v12830_v33  ;;  %v1677_v0 = vrot.slane %v1675_v21, 4  ;;  %v1680_v41 = vrot.slane %v1678_v31, 5  ;;  %v1686_v61 = vrot.slane %v1684_v52, 5  ;;  %v1691_v26 = vrot.slane %v1689_v60, 4  ;;  %v17205_v60 = vld [vmem:[#allocation2 + $0xf8] sm:$0xf] }
 0x1ce   : > { %v3336_v22 = vor.u32 %v3335_v55, %v3332_v23  ;;  %v1694_v10 = vrot.slane %v1692_v54, 5  ;;  %v1698_v51 = vshll.u32 %v15602_v2, 16  ;;  %v3328_v39 = vsel %vm16786_vm12, %v3323_v32, %v3327_v19  ;;  %v17192_v23 = vpop.f32.mrb[4].mxu0  ;;  %v3020_v2 = vld [vmem:[#allocation2 + $0xfc] sm:$0x1] }
 0x1cf   : > { %v1681_v37 = vor.u32 %v1680_v41, %v1677_v0  ;;  %v12831_v25 = vcombine.low %v17163_v47, %v17167_v12  ;;  %v599_v33 = vsel %vm16157_vm4, 0, %v598_v42  ;;  %v12970_v45 = vrot.slane %v3505_v7, 9  ;;  %v17197_v31 = vpop.f32.mrb[5].mxu0 }
 0x1d0   : > { %v3337_v20 = vrot.slane %v3336_v22, 4  ;;  %v1695_v14 = vor.u32 %v1694_v10, %v1691_v26  ;;  %v1700_v9 = vrot.slane %v1698_v51, 5  ;;  %600 = vst [vmem:[#allocation2 + $0xe4] sm:$0x1] %v599_v33  ;;  %v3669_v46 = vrot.slane %v3016_v30, 5  ;;  %v17207_v54 = vpop.f32.mrb[6].mxu0 }
 0x1d1   : > { %v1682_v19 = vrot.slane %v1681_v37, 4  ;;  %v3344_v47 = vshrl.u32 %v3015_v59, 16  ;;  %v3347_v13 = vshll.u32 %v3015_v59, 16  ;;  %v3353_v21 = vshll.u32 %v3016_v30, 16  ;;  %v15603_v37 = vld [vmem:[#allocation2 + $0xf4] sm:$0x1] }
 0x1d2   : > { %v3342_v12 = vsel %vm16786_vm12, %v3337_v20, %v3341_v3  ;;  %v1696_v42 = vrot.slane %v1695_v14, 4  ;;  %v17203_v7 = vsel %vm16241_vm9, %v12970_v45, %v3669_v46  ;;  %v3358_v0 = vshrl.u32 %v3017_v44, 16  ;;  %v3507_v14 = vld [vmem:[#allocation2 + $0xf8] sm:$0xe] }
 0x1d3   : > { %v12990_v16 = vcombine.low %v3328_v39, %v3342_v12  ;;  %v1687_v52 = vsel %vm16786_vm12, %v1682_v19, %v1686_v61  ;;  %v3346_v55 = vrot.slane %v3344_v47, 4  ;;  %v3349_v32 = vrot.slane %v3347_v13, 5 }
 0x1d4   : > { %v1701_v3 = vsel %vm16786_vm12, %v1696_v42, %v1700_v9  ;;  %v17211_v30 = vrot.slane %v3353_v21, 5  ;;  %v3361_v22 = vshll.u32 %v3017_v44, 16  ;;  %v1703_v26 = vshrl.u32 %v17190_v53, 16 }
 0x1d5   : > { %v17213_v41 = vpop.f32.mrb[12].mxu1  ;;  %4076 = vmatmul.mubr.bf16.gmra.mrb[72].mxu0 %v12990_v16  ;;  %v12847_v61 = vcombine.low %v1687_v52, %v1701_v3  ;;  %v1706_v10 = vshll.u32 %v17190_v53, 16  ;;  %v3350_v59 = vor.u32 %v3349_v32, %v3346_v55  ;;  %v3360_v39 = vrot.slane %v3358_v0, 4  ;;  %v3022_v16 = vld [vmem:[#allocation2 + $0x104] sm:$0x1] }
 0x1d6   : > { %v17217_v51 = vpop.f32.mrb[13].mxu1  ;;  %v1712_v33 = vshll.u32 %v15603_v37, 16  ;;  %v1717_v20 = vshrl.u32 %v17205_v60, 16  ;;  %v3363_v19 = vrot.slane %v3361_v22, 5  ;;  %v1705_v44 = vrot.slane %v1703_v26, 4 }
 0x1d7   : > { %v17220_v9 = vpop.f32.mrb[14].mxu1  ;;  %2930 = vmatprep.mubr.bf16.mxu1 %v12847_v61  ;;  %v1248_v45 = vld [vmem:[#allocation2 + $0xe4] sm:$0x1]  ;;  %v1708_v46 = vrot.slane %v1706_v10, 5  ;;  %v1720_v47 = vshll.u32 %v17205_v60, 16  ;;  %v17227_v42 = vrot.slane %v3350_v59, 4 }
 0x1d8   : > { %2931 = vmatmul.mubr.bf16.gmra.mrb[76].mxu1 %v12831_v25  ;;  %v1249_v12 = vsel %vm16152_vm2, %v976_v35, %v1248_v45  ;;  %v1714_v13 = vrot.slane %v1712_v33, 5  ;;  %v1719_v21 = vrot.slane %v1717_v20, 4  ;;  %v17229_v52 = vpop.f32.mrb[15].mxu1  ;;  %v3364_v55 = vor.u32 %v3363_v19, %v3360_v39  ;;  %v15604_v0 = vld [vmem:[#allocation2 + $0xfc] sm:$0x1]  ;;  %v17239_v45 = vpop.f32.mrb[7].mxu0 }
 0x1d9   : > { %1250 = vst [vmem:[#allocation2 + $0xe4] sm:$0x1] %v1249_v12  ;;  %v1709_v3 = vor.u32 %v1708_v46, %v1705_v44  ;;  %v1722_v32 = vrot.slane %v1720_v47, 5  ;;  %v1726_v61 = vshll.u32 %v15604_v0, 16  ;;  %v3508_v22 = vld [vmem:[#allocation2 + $0x100] sm:$0xe]  ;;  %v12832_v35 = vcombine.low %v17190_v53, %v17205_v60 }
 0x1da   : > { %v3019_v25 = vld [vmem:[#allocation2 + $0xf8] sm:$0xf]  ;;  %v12972_v26 = vrot.slane %v3507_v14, 9  ;;  %v3677_v10 = vrot.slane %v3020_v2, 5  ;;  %v17237_v59 = vrot.slane %v3364_v55, 4  ;;  %20615 = vst [vmem:[#allocation22_spill] sm:$0xff] %v17239_v45 }
 0x1db   : > { %v1710_v37 = vrot.slane %v1709_v3, 4  ;;  %v1723_v39 = vor.u32 %v1722_v32, %v1719_v21  ;;  %v1728_v33 = vrot.slane %v1726_v61, 5  ;;  %v3021_v20 = vld [vmem:[#allocation2 + $0x100] sm:$0xf]  ;;  %v12973_v44 = vrot.slane %v3508_v22, 9  ;;  %v17245_v12 = vpop.f32.mrb[8].mxu0 }
 0x1dc   : > { %v17243_v19 = vsel %vm16241_vm9, %v12972_v26, %v3677_v10  ;;  %v3681_v46 = vrot.slane %v3022_v16, 5  ;;  %v3372_v47 = vshrl.u32 %v3019_v25, 16  ;;  %20616 = vst [vmem:[#allocation23_spill] sm:$0xff] %v17245_v12  ;;  %v3375_v14 = vshll.u32 %v3019_v25, 16  ;;  %v17249_v21 = vpop.f32.mrb[9].mxu0 }
 0x1dd   : > { %v1715_v53 = vsel %vm16786_vm12, %v1710_v37, %v1714_v13  ;;  %v1724_v60 = vrot.slane %v1723_v39, 4  ;;  %v3381_v55 = vshll.u32 %v3020_v2, 16  ;;  %20617 = vst [vmem:[#allocation24_spill] sm:$0xff] %v17249_v21  ;;  %v3386_v0 = vshrl.u32 %v3021_v20, 16  ;;  %v17255_v22 = vld [vmem:[#allocation2 + $0x100] sm:$0xf] }
 0x1de   : > { %v17253_v3 = vsel %vm16241_vm9, %v12973_v44, %v3681_v46  ;;  %v3374_v32 = vrot.slane %v3372_v47, 4  ;;  %v3389_v61 = vshll.u32 %v3021_v20, 16  ;;  %v17257_v26 = vpop.f32.mrb[10].mxu0  ;;  %v3377_v2 = vrot.slane %v3375_v14, 5 }
 0x1df   : > { %20618 = vst [vmem:[#allocation25_spill] sm:$0xff] %v17257_v26  ;;  %v1729_v10 = vsel %vm16786_vm12, %v1724_v60, %v1728_v33  ;;  %v13008_v13 = vcombine.low %v17243_v19, %v17253_v3  ;;  %v3383_v25 = vrot.slane %v3381_v55, 5  ;;  %v3388_v17 = vrot.slane %v3386_v0, 4  ;;  %v17263_v47 = vpop.f32.mrb[11].mxu0  ;;  %v17268_v19 = vld [vmem:[#allocation2 + $0x108] sm:$0xf] }
 0x1e0   : > { %v3018_v37 = vld [vmem:[#allocation2 + $0xe4] sm:$0x1]  ;;  %v12848_v39 = vcombine.low %v1715_v53, %v1729_v10  ;;  %v3391_v44 = vrot.slane %v3389_v61, 5  ;;  %v3395_v46 = vshll.u32 %v3022_v16, 16  ;;  %20619 = vst [vmem:[#allocation26_spill] sm:$0xff] %v17263_v47  ;;  %v3378_v58 = vor.u32 %v3377_v2, %v3374_v32 }
 0x1e1   : > { %v3673_v20 = vrot.slane %v3018_v37, 5  ;;  %v3367_v63 = vshll.u32 %v3018_v37, 16  ;;  %v1731_v50 = vshrl.u32 %v17255_v22, 16  ;;  %v1734_v14 = vshll.u32 %v17255_v22, 16  ;;  %v15605_v53 = vld [vmem:[#allocation2 + $0x104] sm:$0x1] }
 0x1e2   : > { %2938 = vmatprep.mubr.bf16.mxu1 %v12848_v39  ;;  %v3392_v33 = vor.u32 %v3391_v44, %v3388_v17  ;;  %v3397_v60 = vrot.slane %v3395_v46, 5  ;;  %v1740_v55 = vshll.u32 %v15605_v53, 16  ;;  %v20620_v16 = vrot.slane %v17178_v18, 9  ;;  %v3024_v46 = vld [vmem:[#allocation2 + $0x10c] sm:$0x1] }
 0x1e3   : > { %v17266_v26 = vpop.f32.mrb[16].mxu1  ;;  %v3369_v0 = vrot.slane %v3367_v63, 5  ;;  %2939 = vmatmul.mubr.bf16.gmra.mrb[80].mxu1 %v12832_v35  ;;  %v3379_v61 = vrot.slane %v3378_v58, 4  ;;  %v1733_v10 = vrot.slane %v1731_v50, 4  ;;  %v1736_v39 = vrot.slane %v1734_v14, 5 }
 0x1e4   : > { %v17271_v3 = vpop.f32.mrb[17].mxu1  ;;  %v3674_v32 = vsel %vm16241_vm9, %v20620_v16, %v3673_v20  ;;  %v3393_v37 = vrot.slane %v3392_v33, 4  ;;  %v1742_v44 = vrot.slane %v1740_v55, 5  ;;  %v1745_v58 = vshrl.u32 %v17268_v19, 16  ;;  %v3026_v35 = vld [vmem:[#allocation2 + $0x114] sm:$0x1] }
 0x1e5   : > { %v17277_v2 = vpop.f32.mrb[18].mxu1  ;;  %v13007_v17 = vcombine.low %v17203_v7, %v3674_v32  ;;  %v3370_v18 = vsel %vm16786_vm12, %v17237_v59, %v3369_v0  ;;  %v3384_v63 = vsel %vm16786_vm12, %v3379_v61, %v3383_v25  ;;  %v1748_v50 = vshll.u32 %v17268_v19, 16  ;;  %v3509_v20 = vld [vmem:[#allocation2 + $0x108] sm:$0xe]  ;;  %v15606_v55 = vld [vmem:[#allocation2 + $0x10c] sm:$0x1] }
 0x1e6   : > { %v17280_v53 = vpop.f32.mrb[19].mxu1  ;;  %v20621_v7 = vsel %vm16786_vm12, %v17227_v42, %v17211_v30  ;;  %v3398_v14 = vsel %vm16786_vm12, %v3393_v37, %v3397_v60  ;;  %v1737_v59 = vor.u32 %v1736_v39, %v1733_v10  ;;  %v1754_v16 = vshll.u32 %v15606_v55, 16  ;;  %v3510_v25 = vld [vmem:[#allocation2 + $0x110] sm:$0xe]  ;;  %v3023_v32 = vld [vmem:[#allocation2 + $0x108] sm:$0xf] }
 0x1e7   : > { %4083 = vmatprep.mubr.bf16.mxu0 %v13007_v17  ;;  %v12991_v33 = vcombine.low %v20621_v7, %v3370_v18  ;;  %v17296_v0 = vpop.f32.mrb[12].mxu0  ;;  %v12992_v61 = vcombine.low %v3384_v63, %v3398_v14  ;;  %v1747_v47 = vrot.slane %v1745_v58, 4  ;;  %v1750_v21 = vrot.slane %v1748_v50, 5  ;;  %v3025_v7 = vld [vmem:[#allocation2 + $0x110] sm:$0xf] }
 0x1e8   : > { %20622 = vst [vmem:[#allocation27_spill] sm:$0xff] %v17296_v0  ;;  %v12833_v17 = vcombine.low %v17255_v22, %v17268_v19  ;;  %v1738_v12 = vrot.slane %v1737_v59, 4  ;;  %v1756_v30 = vrot.slane %v1754_v16, 5  ;;  %v12974_v42 = vrot.slane %v3509_v20, 9  ;;  %v17300_v55 = vpop.f32.mrb[13].mxu0 }
 0x1e9   : > { %4084 = vmatmul.mubr.bf16.gmra.mrb[76].mxu0 %v12991_v33  ;;  %v3685_v18 = vrot.slane %v3024_v46, 5  ;;  %v1751_v60 = vor.u32 %v1750_v21, %v1747_v47  ;;  %v12975_v10 = vrot.slane %v3510_v25, 9  ;;  %v3689_v37 = vrot.slane %v3026_v35, 5  ;;  %20623 = vst [vmem:[#allocation28_spill] sm:$0xff] %v17300_v55  ;;  %v17306_v50 = vld [vmem:[#allocation2 + $0x110] sm:$0xf] }
 0x1ea   : > { %4091 = vmatprep.mubr.bf16.mxu0 %v13008_v13  ;;  %v3400_v39 = vshrl.u32 %v3023_v32, 16  ;;  %v1743_v63 = vsel %vm16786_vm12, %v1738_v12, %v1742_v44  ;;  %v3403_v22 = vshll.u32 %v3023_v32, 16  ;;  %v3409_v19 = vshll.u32 %v3024_v46, 16  ;;  %v17310_v33 = vpop.f32.mrb[14].mxu0  ;;  %v17312_v12 = vld [vmem:[#allocation2 + $0x118] sm:$0xf] }
 0x1eb   : > { %v3686_v58 = vsel %vm16241_vm9, %v12974_v42, %v3685_v18  ;;  %v1752_v20 = vrot.slane %v1751_v60, 4  ;;  %v3690_v13 = vsel %vm16241_vm9, %v12975_v10, %v3689_v37  ;;  %v3414_v47 = vshrl.u32 %v3025_v7, 16  ;;  %20624 = vst [vmem:[#allocation29_spill] sm:$0xff] %v17310_v33  ;;  %v17314_v44 = vpop.f32.mrb[15].mxu0  ;;  %v3511_v55 = vld [vmem:[#allocation2 + $0x118] sm:$0xe] }
 0x1ec   : > { %v3402_v21 = vrot.slane %v3400_v39, 4  ;;  %v13009_v14 = vcombine.low %v3686_v58, %v3690_v13  ;;  %v3405_v59 = vrot.slane %v3403_v22, 5  ;;  %v3411_v16 = vrot.slane %v3409_v19, 5  ;;  %20625 = vst [vmem:[#allocation30_spill] sm:$0xff] %v17314_v44  ;;  %v3028_v22 = vld [vmem:[#allocation2 + $0x11c] sm:$0x1] }
 0x1ed   : > { %v3417_v25 = vshll.u32 %v3025_v7, 16  ;;  %v1757_v46 = vsel %vm16786_vm12, %v1752_v20, %v1756_v30  ;;  %v3416_v32 = vrot.slane %v3414_v47, 4  ;;  %v3423_v42 = vshll.u32 %v3026_v35, 16  ;;  %v15607_v13 = vld [vmem:[#allocation2 + $0x114] sm:$0x1] }
 0x1ee   : > { %v1759_v18 = vshrl.u32 %v17306_v50, 16  ;;  %v12849_v10 = vcombine.low %v1743_v63, %v1757_v46  ;;  %v3406_v37 = vor.u32 %v3405_v59, %v3402_v21  ;;  %v1762_v58 = vshll.u32 %v17306_v50, 16  ;;  %v3512_v63 = vld [vmem:[#allocation2 + $0x120] sm:$0xe]  ;;  %v15608_v46 = vld [vmem:[#allocation2 + $0x11c] sm:$0x1] }
 0x1ef   : > { %v17319_v60 = vpop.f32.mrb[16].mxu0  ;;  %v3419_v39 = vrot.slane %v3417_v25, 5  ;;  %v3425_v7 = vrot.slane %v3423_v42, 5  ;;  %v1768_v33 = vshll.u32 %v15607_v13, 16  ;;  %v1773_v44 = vshrl.u32 %v17312_v12, 16 }
 0x1f0   : > { %20626 = vst [vmem:[#allocation31_spill] sm:$0xff] %v17319_v60  ;;  %v1761_v19 = vrot.slane %v1759_v18, 4  ;;  %2946 = vmatprep.mubr.bf16.mxu1 %v12849_v10  ;;  %v3407_v35 = vrot.slane %v3406_v37, 4  ;;  %v1764_v20 = vrot.slane %v1762_v58, 5  ;;  %v1776_v47 = vshll.u32 %v17312_v12, 16  ;;  %v17324_v21 = vpop.f32.mrb[17].mxu0 }
 0x1f1   : > { %4092 = vmatmul.mubr.bf16.gmra.mrb[80].mxu0 %v12992_v61  ;;  %v3420_v30 = vor.u32 %v3419_v39, %v3416_v32  ;;  %20627 = vst [vmem:[#allocation32_spill] sm:$0xff] %v17324_v21  ;;  %2947 = vmatmul.mubr.bf16.gmra.mrb[84].mxu1 %v12833_v17  ;;  %v1770_v59 = vrot.slane %v1768_v33, 5  ;;  %v1775_v25 = vrot.slane %v1773_v44, 4  ;;  %v1782_v42 = vshll.u32 %v15608_v46, 16  ;;  %v3030_v13 = vld [vmem:[#allocation2 + $0x124] sm:$0x1] }
 0x1f2   : > { %4099 = vmatprep.mubr.bf16.mxu0 %v13009_v14  ;;  %v12834_v18 = vcombine.low %v17306_v50, %v17312_v12  ;;  %v17328_v61 = vpop.f32.mrb[18].mxu0  ;;  %v3412_v32 = vsel %vm16786_vm12, %v3407_v35, %v3411_v16  ;;  %v1765_v37 = vor.u32 %v1764_v20, %v1761_v19  ;;  %v1778_v39 = vrot.slane %v1776_v47, 5  ;;  %v3027_v58 = vld [vmem:[#allocation2 + $0x118] sm:$0xf]  ;;  %v3029_v12 = vld [vmem:[#allocation2 + $0x120] sm:$0xf] }
 0x1f3   : > { %20628 = vst [vmem:[#allocation33_spill] sm:$0xff] %v17328_v61  ;;  %v3421_v10 = vrot.slane %v3420_v30, 4  ;;  %v1784_v21 = vrot.slane %v1782_v42, 5  ;;  %v12976_v17 = vrot.slane %v3511_v55, 9  ;;  %v3693_v14 = vrot.slane %v3028_v22, 5 }
 0x1f4   : > { %v12977_v33 = vrot.slane %v3512_v63, 9  ;;  %v1766_v46 = vrot.slane %v1765_v37, 4  ;;  %v1779_v60 = vor.u32 %v1778_v39, %v1775_v25  ;;  %v3697_v50 = vrot.slane %v3030_v13, 5  ;;  %v17340_v47 = vld [vmem:[#allocation2 + $0x120] sm:$0xf] }
 0x1f5   : > { %v3426_v44 = vsel %vm16786_vm12, %v3421_v10, %v3425_v7  ;;  %v3694_v61 = vsel %vm16241_vm9, %v12976_v17, %v3693_v14  ;;  %v3428_v16 = vshrl.u32 %v3027_v58, 16  ;;  %v3431_v35 = vshll.u32 %v3027_v58, 16  ;;  %v622_v14 = vld [vmem:[#allocation2 + $0x134] sm:$0x1] }
 0x1f6   : > { %v12993_v0 = vcombine.low %v3412_v32, %v3426_v44  ;;  %v1771_v19 = vsel %vm16786_vm12, %v1766_v46, %v1770_v59  ;;  %v1780_v30 = vrot.slane %v1779_v60, 4  ;;  %v3698_v55 = vsel %vm16241_vm9, %v12977_v33, %v3697_v50  ;;  %v17342_v32 = vpop.f32.mrb[19].mxu0  ;;  %v17346_v60 = vld [vmem:[#allocation2 + $0x128] sm:$0xf]  ;;  %v15609_v50 = vld [vmem:[#allocation2 + $0x124] sm:$0x1] }
 0x1f7   : > { %v3437_v20 = vshll.u32 %v3028_v22, 16  ;;  %v13010_v7 = vcombine.low %v3694_v61, %v3698_v55  ;;  %v3430_v63 = vrot.slane %v3428_v16, 4  ;;  %v3433_v25 = vrot.slane %v3431_v35, 5  ;;  %20629 = vst [vmem:[#allocation34_spill] sm:$0xff] %v17342_v32  ;;  %v3032_v16 = vld [vmem:[#allocation2 + $0x12c] sm:$0x1] }
 0x1f8   : > { %v3442_v42 = vshrl.u32 %v3029_v12, 16  ;;  %v1785_v10 = vsel %vm16786_vm12, %v1780_v30, %v1784_v21  ;;  %v3445_v39 = vshll.u32 %v3029_v12, 16  ;;  %v3451_v59 = vshll.u32 %v3030_v13, 16  ;;  %v3513_v12 = vld [vmem:[#allocation2 + $0x128] sm:$0xe] }
 0x1f9   : > { %4100 = vmatmul.mubr.bf16.gmra.mrb[84].mxu0 %v12993_v0  ;;  %v3439_v37 = vrot.slane %v3437_v20, 5  ;;  %v12850_v58 = vcombine.low %v1771_v19, %v1785_v10  ;;  %v3434_v22 = vor.u32 %v3433_v25, %v3430_v63  ;;  %v1787_v61 = vshrl.u32 %v17340_v47, 16  ;;  %v3031_v32 = vld [vmem:[#allocation2 + $0x128] sm:$0xf] }
 0x1fa   : > { %4107 = vmatprep.mubr.bf16.mxu0 %v13010_v7  ;;  %v3444_v17 = vrot.slane %v3442_v42, 4  ;;  %v17349_v33 = vpop.f32.mrb[20].mxu1  ;;  %v3447_v44 = vrot.slane %v3445_v39, 5  ;;  %v3453_v46 = vrot.slane %v3451_v59, 5  ;;  %v1790_v0 = vshll.u32 %v17340_v47, 16 }
 0x1fb   : > { %20630 = vst [vmem:[#allocation35_spill] sm:$0xff] %v17349_v33  ;;  %v1796_v21 = vshll.u32 %v15609_v50, 16  ;;  %v17352_v13 = vpop.f32.mrb[21].mxu1  ;;  %2954 = vmatprep.mubr.bf16.mxu1 %v12850_v58  ;;  %v3435_v35 = vrot.slane %v3434_v22, 4  ;;  %v1789_v19 = vrot.slane %v1787_v61, 4  ;;  %v1801_v30 = vshrl.u32 %v17346_v60, 16 }
 0x1fc   : > { %20631 = vst [vmem:[#allocation36_spill] sm:$0xff] %v17352_v13  ;;  %v1804_v55 = vshll.u32 %v17346_v60, 16  ;;  %v17356_v20 = vpop.f32.mrb[22].mxu1  ;;  %2955 = vmatmul.mubr.bf16.gmra.mrb[88].mxu1 %v12834_v18  ;;  %v3448_v7 = vor.u32 %v3447_v44, %v3444_v17  ;;  %v1792_v63 = vrot.slane %v1790_v0, 5  ;;  %v15610_v42 = vld [vmem:[#allocation2 + $0x12c] sm:$0x1]  ;;  %v12835_v50 = vcombine.low %v17340_v47, %v17346_v60 }
 0x1fd   : > { %20632 = vst [vmem:[#allocation37_spill] sm:$0xff] %v17356_v20  ;;  %v1798_v25 = vrot.slane %v1796_v21, 5  ;;  %v1810_v10 = vshll.u32 %v15610_v42, 16  ;;  %v17358_v39 = vld [vmem:[#allocation2 + $0x130] sm:$0xe]  ;;  %v17360_v59 = vpop.f32.mrb[23].mxu1  ;;  %v3440_v58 = vsel %vm16786_vm12, %v3435_v35, %v3439_v37 }
 0x1fe   : > { %20633 = vst [vmem:[#allocation38_spill] sm:$0xff] %v17360_v59  ;;  %v1803_v22 = vrot.slane %v1801_v30, 4  ;;  %v1806_v61 = vrot.slane %v1804_v55, 5  ;;  %v3449_v20 = vrot.slane %v3448_v7, 4  ;;  %v1793_v18 = vor.u32 %v1792_v63, %v1789_v19  ;;  %v3033_v13 = vld [vmem:[#allocation2 + $0x130] sm:$0xf] }
 0x1ff   : > { %v1812_v17 = vrot.slane %v1810_v10, 5  ;;  %v623_v44 = vsel %vm16157_vm4, 0, %v622_v14  ;;  %v12978_v21 = vrot.slane %v3513_v12, 9  ;;  %v3701_v42 = vrot.slane %v3032_v16, 5  ;;  %v17371_v60 = vld [vmem:[#allocation2 + $0x10] sm:$0xf] }
 0x200   : > { %v1807_v0 = vor.u32 %v1806_v61, %v1803_v22  ;;  %624 = vst [vmem:[#allocation2 + $0x134] sm:$0x1] %v623_v44  ;;  %v3454_v37 = vsel %vm16786_vm12, %v3449_v20, %v3453_v46  ;;  %v1794_v35 = vrot.slane %v1793_v18, 4  ;;  %v3456_v30 = vshrl.u32 %v3031_v32, 16  ;;  %v17379_v7 = vld [vmem:[#allocation2 + $0x18] sm:$0xf] }
 0x201   : > { %v3459_v47 = vshll.u32 %v3031_v32, 16  ;;  %v12994_v55 = vcombine.low %v3440_v58, %v3454_v37  ;;  %v17377_v14 = vsel %vm16241_vm9, %v12978_v21, %v3701_v42  ;;  %v3465_v12 = vshll.u32 %v3032_v16, 16  ;;  %v4189_v22 = vld [vmem:[#allocation2 + $0x14] sm:$0x1]  ;;  %v4190_v44 = vld [vmem:[#allocation2 + $0x1c] sm:$0x1] }
 0x202   : > { %v17373_v19 = vpop.f32.mrb[20].mxu0  ;;  %v1808_v11 = vrot.slane %v1807_v0, 4  ;;  %v1799_v46 = vsel %vm16786_vm12, %v1794_v35, %v1798_v25  ;;  %v3458_v20 = vrot.slane %v3456_v30, 4  ;;  %v3470_v10 = vshrl.u32 %v3033_v13, 16  ;;  %v17411_v33 = vld [vmem:[#allocation2 + $0x20] sm:$0xf] }
 0x203   : > { %20634 = vst [vmem:[#allocation39_spill] sm:$0xff] %v17373_v19  ;;  %v17381_v63 = vpop.f32.mrb[21].mxu0  ;;  %v3461_v32 = vrot.slane %v3459_v47, 5  ;;  %4108 = vmatmul.mubr.bf16.gmra.mrb[88].mxu0 %v12994_v55  ;;  %v17389_v18 = vrot.slane %v3465_v12, 5  ;;  %v3473_v16 = vshll.u32 %v3033_v13, 16  ;;  %v4222_v0 = vshrl.u32 %v17371_v60, 16 }
 0x204   : > { %20635 = vst [vmem:[#allocation40_spill] sm:$0xff] %v17381_v63  ;;  %v17385_v61 = vpop.f32.mrb[22].mxu0  ;;  %v1813_v58 = vsel %vm16786_vm12, %v1808_v11, %v1812_v17  ;;  %v3472_v37 = vrot.slane %v3470_v10, 4  ;;  %v4225_v35 = vshll.u32 %v17371_v60, 16  ;;  %v4231_v59 = vshll.u32 %v4189_v22, 16 }
 0x205   : > { %20636 = vst [vmem:[#allocation41_spill] sm:$0xff] %v17385_v61  ;;  %v17392_v21 = vpop.f32.mrb[23].mxu0  ;;  %v12851_v42 = vcombine.low %v1799_v46, %v1813_v58  ;;  %v3462_v25 = vor.u32 %v3461_v32, %v3458_v20  ;;  %v3475_v30 = vrot.slane %v3473_v16, 5  ;;  %v4224_v47 = vrot.slane %v4222_v0, 4  ;;  %v5150_v61 = vld [vmem:[#allocation2 + $0x10] sm:$0xe] }
 0x206   : > { %20637 = vst [vmem:[#allocation42_spill] sm:$0xff] %v17392_v21  ;;  %v4236_v55 = vshrl.u32 %v17379_v7, 16  ;;  %v4227_v13 = vrot.slane %v4225_v35, 5  ;;  %v4239_v12 = vshll.u32 %v17379_v7, 16  ;;  %v4245_v63 = vshll.u32 %v4190_v44, 16 }
 0x207   : > { %2962 = vmatprep.mubr.bf16.mxu1 %v12851_v42  ;;  %v1296_v17 = vld [vmem:[#allocation2 + $0x134] sm:$0x1]  ;;  %v17396_v11 = vrot.slane %v3462_v25, 4  ;;  %v20638_v46 = vrot.slane %v16706_v62, 4  ;;  %v3476_v32 = vor.u32 %v3475_v30, %v3472_v37  ;;  %v4233_v10 = vrot.slane %v4231_v59, 5 }
 0x208   : > { %2963 = vmatmul.mubr.bf16.gmra.mrb[92].mxu1 %v12835_v50  ;;  %v4238_v58 = vrot.slane %v4236_v55, 4  ;;  %v5151_v16 = vld [vmem:[#allocation2 + $0x18] sm:$0xe]  ;;  %v4191_v0 = vld [vmem:[#allocation2 + $0x24] sm:$0x1]  ;;  %v4228_v25 = vor.u32 %v4227_v13, %v4224_v47  ;;  %v4241_v35 = vrot.slane %v4239_v12, 5  ;;  %v13028_v37 = vcombine.low %v17371_v60, %v17379_v7 }
 0x209   : > { %v1297_v20 = vsel %vm16152_vm2, %v20638_v46, %v1296_v17  ;;  %v4247_v21 = vrot.slane %v4245_v63, 5  ;;  %v5152_v50 = vld [vmem:[#allocation2 + $0x20] sm:$0xe]  ;;  %v5153_v19 = vld [vmem:[#allocation2 + $0x28] sm:$0xe]  ;;  %v17407_v62 = vrot.slane %v3476_v32, 4 }
 0x20a   : > { %1298 = vst [vmem:[#allocation2 + $0x134] sm:$0x1] %v1297_v20  ;;  %v13076_v59 = vrot.slane %v5150_v61, 9  ;;  %v5248_v30 = vrot.slane %v4189_v22, 5  ;;  %v4192_v55 = vld [vmem:[#allocation2 + $0x2c] sm:$0x1]  ;;  %v4242_v46 = vor.u32 %v4241_v35, %v4238_v58 }
 0x20b   : > { %v4229_v17 = vrot.slane %v4228_v25, 4  ;;  %v13077_v20 = vrot.slane %v5151_v16, 9  ;;  %v5252_v8 = vrot.slane %v4190_v44, 5  ;;  %v13078_v63 = vrot.slane %v5152_v50, 9  ;;  %v17417_v32 = vld [vmem:[#allocation2 + $0x28] sm:$0xf] }
 0x20c   : > { %v17415_v47 = vsel %vm16241_vm9, %v13076_v59, %v5248_v30  ;;  %v5256_v13 = vrot.slane %v4191_v0, 5  ;;  %v13079_v12 = vrot.slane %v5153_v19, 9  ;;  %v4243_v7 = vrot.slane %v4242_v46, 4  ;;  %v17442_v59 = vld [vmem:[#allocation2 + $0x30] sm:$0xf] }
 0x20d   : > { %v4234_v60 = vsel %vm16786_vm12, %v4229_v17, %v4233_v10  ;;  %v17423_v22 = vsel %vm16241_vm9, %v13077_v20, %v5252_v8  ;;  %v5260_v61 = vrot.slane %v4192_v55, 5  ;;  %v4250_v19 = vshrl.u32 %v17411_v33, 16 }
 0x20e   : > { %v13108_v44 = vcombine.low %v17415_v47, %v17423_v22  ;;  %v17429_v58 = vsel %vm16241_vm9, %v13078_v63, %v5256_v13  ;;  %v4253_v16 = vshll.u32 %v17411_v33, 16  ;;  %v17433_v25 = vpop.f32.mrb[24].mxu1  ;;  %v4248_v10 = vsel %vm16786_vm12, %v4243_v7, %v4247_v21 }
 0x20f   : > { %20639 = vst [vmem:[#allocation43_spill] sm:$0xff] %v17433_v25  ;;  %v17439_v8 = vsel %vm16241_vm9, %v13079_v12, %v5260_v61  ;;  %v4259_v35 = vshll.u32 %v4191_v0, 16  ;;  %v4264_v50 = vshrl.u32 %v17417_v32, 16  ;;  %v17444_v30 = vpop.f32.mrb[25].mxu1  ;;  %v13044_v46 = vcombine.low %v4234_v60, %v4248_v10  ;;  %v4193_v10 = vld [vmem:[#allocation2 + $0x34] sm:$0x1] }
 0x210   : > { %20640 = vst [vmem:[#allocation44_spill] sm:$0xff] %v17444_v30  ;;  %v4252_v47 = vrot.slane %v4250_v19, 4  ;;  %v4255_v63 = vrot.slane %v4253_v16, 5  ;;  %v17448_v13 = vpop.f32.mrb[26].mxu1  ;;  %v4267_v42 = vshll.u32 %v17417_v32, 16  ;;  %v4273_v30 = vshll.u32 %v4192_v55, 16 }
 0x211   : > { %v3034_v17 = vld [vmem:[#allocation2 + $0x134] sm:$0x1]  ;;  %20641 = vst [vmem:[#allocation45_spill] sm:$0xff] %v17448_v13  ;;  %v4261_v12 = vrot.slane %v4259_v35, 5  ;;  %v4266_v22 = vrot.slane %v4264_v50, 4  ;;  %v17450_v0 = vpop.f32.mrb[27].mxu1  ;;  %4989 = vmatprep.mubr.bf16.mxu1 %v13044_v46 }
 0x212   : > { %v3705_v21 = vrot.slane %v3034_v17, 5  ;;  %v3479_v7 = vshll.u32 %v3034_v17, 16  ;;  %20642 = vst [vmem:[#allocation46_spill] sm:$0xff] %v17450_v0  ;;  %v4256_v61 = vor.u32 %v4255_v63, %v4252_v47  ;;  %v20643_v19 = vrot.slane %v17358_v39, 9  ;;  %4990 = vmatmul.mubr.bf16.vlgmr.msra.gmra.mrb[96].mxu1 %v13028_v37  ;;  %v17459_v35 = vld [vmem:[#allocation2 + $0x38] sm:$0xf] }
 0x213   : > { %v4278_v50 = vshrl.u32 %v17442_v59, 16  ;;  %v4281_v17 = vshll.u32 %v17442_v59, 16  ;;  %v4269_v47 = vrot.slane %v4267_v42, 5  ;;  %v4275_v63 = vrot.slane %v4273_v30, 5  ;;  %v4194_v60 = vld [vmem:[#allocation2 + $0x3c] sm:$0x1] }
 0x214   : > { %v3706_v16 = vsel %vm16241_vm9, %v20643_v19, %v3705_v21  ;;  %v3481_v20 = vrot.slane %v3479_v7, 5  ;;  %v4257_v55 = vrot.slane %v4256_v61, 4  ;;  %v4287_v7 = vshll.u32 %v4193_v10, 16  ;;  %v5154_v37 = vld [vmem:[#allocation2 + $0x30] sm:$0xe] }
 0x215   : > { %v13011_v46 = vcombine.low %v17377_v14, %v3706_v16  ;;  %v4280_v0 = vrot.slane %v4278_v50, 4  ;;  %v4283_v21 = vrot.slane %v4281_v17, 5  ;;  %v20644_v19 = vsel %vm16786_vm12, %v17396_v11, %v17389_v18  ;;  %v5155_v61 = vld [vmem:[#allocation2 + $0x38] sm:$0xe]  ;;  %v4195_v17 = vld [vmem:[#allocation2 + $0x44] sm:$0x1] }
 0x216   : > { %v3482_v39 = vsel %vm16786_vm12, %v17407_v62, %v3481_v20  ;;  %v4262_v14 = vsel %vm16786_vm12, %v4257_v55, %v4261_v12  ;;  %v4270_v42 = vor.u32 %v4269_v47, %v4266_v22  ;;  %v4292_v30 = vshrl.u32 %v17459_v35, 16 }
 0x217   : > { %4115 = vmatprep.mubr.bf16.mxu0 %v13011_v46  ;;  %v12995_v13 = vcombine.low %v20644_v19, %v3482_v39  ;;  %v4284_v16 = vor.u32 %v4283_v21, %v4280_v0  ;;  %v4289_v62 = vrot.slane %v4287_v7, 5  ;;  %v4295_v20 = vshll.u32 %v17459_v35, 16  ;;  %v5156_v46 = vld [vmem:[#allocation2 + $0x40] sm:$0xe]  ;;  %v5157_v39 = vld [vmem:[#allocation2 + $0x48] sm:$0xe] }
 0x218   : > { %v4301_v50 = vshll.u32 %v4194_v60, 16  ;;  %v4271_v25 = vrot.slane %v4270_v42, 4  ;;  %v4294_v45 = vrot.slane %v4292_v30, 4  ;;  %v13080_v11 = vrot.slane %v5154_v37, 9  ;;  %v17478_v12 = vpop.f32.mrb[24].mxu0 }
 0x219   : > { %4116 = vmatmul.mubr.bf16.gmra.mrb[92].mxu0 %v12995_v13  ;;  %v4285_v22 = vrot.slane %v4284_v16, 4  ;;  %v4297_v55 = vrot.slane %v4295_v20, 5  ;;  %v5264_v47 = vrot.slane %v4193_v10, 5  ;;  %v17480_v21 = vpop.f32.mrb[25].mxu0  ;;  %v13081_v13 = vrot.slane %v5155_v61, 9 }
 0x21a   : > { %14687 = vmatprep.mubr.bf16.mxu0 %v13108_v44  ;;  %v4303_v0 = vrot.slane %v4301_v50, 5  ;;  %v4276_v7 = vsel %vm16786_vm12, %v4271_v25, %v4275_v63  ;;  %v5268_v19 = vrot.slane %v4194_v60, 5  ;;  %v17486_v42 = vadd.f32 %v17052_v6, %v17045_v48  ;;  %v4196_v37 = vld [vmem:[#allocation2 + $0x4c] sm:$0x1]  ;;  %v17488_v30 = vpop.f32.mrb[26].mxu0 }
 0x21b   : > { %v13045_v18 = vcombine.low %v4262_v14, %v4276_v7  ;;  %v4290_v44 = vsel %vm16786_vm12, %v4285_v22, %v4289_v62  ;;  %v4298_v16 = vor.u32 %v4297_v55, %v4294_v45  ;;  %v5265_v10 = vsel %vm16241_vm9, %v13080_v11, %v5264_v47  ;;  %v17494_v20 = vld [vmem:[#allocation2 + $0x40] sm:$0xf]  ;;  %v17496_v25 = vpop.f32.mrb[27].mxu0  ;;  %v17500_v61 = vld [vmem:[#allocation2 + $0x48] sm:$0xf] }
 0x21c   : > { %20645 = vst [vmem:[#allocation47_spill] sm:$0xff] %v17486_v42  ;;  %v5269_v60 = vsel %vm16241_vm9, %v13081_v13, %v5268_v19  ;;  %v13082_v48 = vrot.slane %v5156_v46, 9  ;;  %v5272_v6 = vrot.slane %v4195_v17, 5  ;;  %v13083_v63 = vrot.slane %v5157_v39, 9  ;;  %v17523_v7 = vld [vmem:[#allocation2 + $0x64] sm:$0x1] }
 0x21d   : > { %4997 = vmatprep.mubr.bf16.mxu1 %v13045_v18  ;;  %v4299_v14 = vrot.slane %v4298_v16, 4  ;;  %v13110_v50 = vcombine.low %v5265_v10, %v5269_v60  ;;  %v5276_v62 = vrot.slane %v4196_v37, 5  ;;  %v17504_v45 = vadd.f32 %v17058_v1, %v17055_v24  ;;  %v17513_v18 = vld [vmem:[#allocation2 + $0x60] sm:$0xf] }
 0x21e   : > { %v20647_v11 = vcombine.low %v17411_v33, %v17417_v32  ;;  %v5273_v22 = vsel %vm16241_vm9, %v13082_v48, %v5272_v6  ;;  %v4306_v46 = vshrl.u32 %v17494_v20, 16  ;;  %v4309_v39 = vshll.u32 %v17494_v20, 16  ;;  %v17521_v32 = vld [vmem:[#allocation2 + $0x68] sm:$0xf] }
 0x21f   : > { %20646 = vst [vmem:[#allocation48_spill] sm:$0xff] %v17504_v45  ;;  %v4315_v55 = vshll.u32 %v4195_v17, 16  ;;  %v4304_v47 = vsel %vm16786_vm12, %v4299_v14, %v4303_v0  ;;  %v5277_v24 = vsel %vm16241_vm9, %v13083_v63, %v5276_v62  ;;  %v4320_v1 = vshrl.u32 %v17500_v61, 16  ;;  %v17528_v0 = vld [vmem:[#allocation2 + $0x6c] sm:$0x1] }
 0x220   : > { %4998 = vmatmul.mubr.bf16.gmra.mrb[100].mxu1 %v20647_v11  ;;  %v4323_v33 = vshll.u32 %v17500_v61, 16  ;;  %v20648_v13 = vcombine.low %v17429_v58, %v17439_v8  ;;  %v13046_v17 = vcombine.low %v4290_v44, %v4304_v47  ;;  %v13111_v19 = vcombine.low %v5273_v22, %v5277_v24  ;;  %v15413_v24 = vld [vmem:[#allocation9 + $0x40] sm:$0xff]  }
 0x221   : > { %v4308_v16 = vrot.slane %v4306_v46, 4  ;;  %v4311_v10 = vrot.slane %v4309_v39, 5  ;;  %v4317_v60 = vrot.slane %v4315_v55, 5  ;;  %v4322_v48 = vrot.slane %v4320_v1, 4  ;;  %14719 = vmatprep.subr.bf16.mxu1 %v15413_v24 }
 0x222   : > { %14688 = vmatmul.mubr.bf16.vlgmr.msra.gmra.mrb[96].mxu0 %v20648_v13  ;;  %v4325_v6 = vrot.slane %v4323_v33, 5  ;;  %v4329_v63 = vshll.u32 %v4196_v37, 16  ;;  %5005 = vmatprep.mubr.bf16.mxu1 %v13046_v17  ;;  %v17534_v58 = vadd.f32 %v17095_v43, %v17089_v15  ;;  %v17538_v8 = vadd.f32 %v17113_v49, %v17107_v36  ;;  %v5158_v37 = vld [vmem:[#allocation2 + $0x60] sm:$0xe]  ;;  %v5159_v15 = vld [vmem:[#allocation2 + $0x68] sm:$0xe] }
 0x223   : > { %14691 = vmatprep.mubr.bf16.mxu0 %v13110_v50  ;;  %v4312_v14 = vor.u32 %v4311_v10, %v4308_v16  ;;  %v4334_v50 = vshrl.u32 %v17513_v18, 16  ;;  %v4337_v22 = vshll.u32 %v17513_v18, 16  ;;  %v4343_v39 = vshll.u32 %v17523_v7, 16  ;;  %v17548_v13 = vld [vmem:[#allocation2 + $0x74] sm:$0x1]  ;;  %14720 = vmatpush3.bf16.msra.mxu1 %v15413_v24 }
 0x224   : > { %20649 = vst [vmem:[#allocation49_spill] sm:$0xff] %v17534_v58  ;;  %20650 = vst [vmem:[#allocation50_spill] sm:$0xff] %v17538_v8  ;;  %v4326_v44 = vor.u32 %v4325_v6, %v4322_v48  ;;  %v4331_v11 = vrot.slane %v4329_v63, 5  ;;  %v4348_v55 = vshrl.u32 %v17521_v32, 16  ;;  %v4351_v47 = vshll.u32 %v17521_v32, 16  ;;  %v17545_v43 = vpop.f32.mrb[28].mxu1 }
 0x225   : > { %v4313_v46 = vrot.slane %v4312_v14, 4  ;;  %v4336_v49 = vrot.slane %v4334_v50, 4  ;;  %v4339_v1 = vrot.slane %v4337_v22, 5  ;;  %v4357_v33 = vshll.u32 %v17528_v0, 16  ;;  %v5160_v17 = vld [vmem:[#allocation2 + $0x70] sm:$0xe] }
 0x226   : > { %v4327_v36 = vrot.slane %v4326_v44, 4  ;;  %v17550_v16 = vpop.f32.mrb[29].mxu1  ;;  %v20651_v10 = vcombine.low %v17442_v59, %v17459_v35  ;;  %v4345_v6 = vrot.slane %v4343_v39, 5  ;;  %v4350_v63 = vrot.slane %v4348_v55, 4  ;;  %v17557_v44 = vld [vmem:[#allocation2 + $0x7c] sm:$0x1] }
 0x227   : > { %v4318_v48 = vsel %vm16786_vm12, %v4313_v46, %v4317_v60  ;;  %v4353_v14 = vrot.slane %v4351_v47, 5  ;;  %v5161_v50 = vld [vmem:[#allocation2 + $0x78] sm:$0xe]  ;;  %v17559_v22 = vpop.f32.mrb[30].mxu1  ;;  %v4340_v8 = vor.u32 %v4339_v1, %v4336_v49  ;;  %v4359_v58 = vrot.slane %v4357_v33, 5 }
 0x228   : > { %5006 = vmatmul.mubr.bf16.gmra.mrb[104].mxu1 %v20651_v10  ;;  %v4332_v62 = vsel %vm16786_vm12, %v4327_v36, %v4331_v11  ;;  %v17565_v35 = vpop.f32.mrb[31].mxu1  ;;  %v13084_v39 = vrot.slane %v5158_v37, 9  ;;  %v5280_v55 = vrot.slane %v17523_v7, 5  ;;  %v17568_v47 = vld [vmem:[#allocation2 + $0x70] sm:$0xf]  ;;  %v13085_v45 = vrot.slane %v5159_v15, 9 }
 0x229   : > { %v13047_v60 = vcombine.low %v4318_v48, %v4332_v62  ;;  %v4354_v46 = vor.u32 %v4353_v14, %v4350_v63  ;;  %v4341_v10 = vrot.slane %v4340_v8, 4  ;;  %v5284_v11 = vrot.slane %v17528_v0, 5  ;;  %v17575_v49 = vld [vmem:[#allocation2 + $0x78] sm:$0xf]  ;;  %v4203_v59 = vld [vmem:[#allocation2 + $0x94] sm:$0x1] }
 0x22a   : > { %14692 = vmatmul.mubr.bf16.gmra.mrb[100].mxu0 %v13111_v19  ;;  %v17573_v36 = vadd.f32 %v17146_v34, %v17142_v29  ;;  %v5281_v19 = vsel %vm16241_vm9, %v13084_v39, %v5280_v55  ;;  %v13086_v62 = vrot.slane %v5160_v17, 9  ;;  %v5288_v7 = vrot.slane %v17548_v13, 5  ;;  %v17593_v17 = vld [vmem:[#allocation2 + $0x80] sm:$0xf] }
 0x22b   : > { %5013 = vmatprep.mubr.bf16.mxu1 %v13047_v60  ;;  %v4355_v24 = vrot.slane %v4354_v46, 4  ;;  %v4346_v8 = vsel %vm16786_vm12, %v4341_v10, %v4345_v6  ;;  %v5285_v0 = vsel %vm16241_vm9, %v13085_v45, %v5284_v11  ;;  %v13087_v37 = vrot.slane %v5161_v50, 9  ;;  %v17603_v50 = vld [vmem:[#allocation2 + $0x88] sm:$0xf]  ;;  %v17605_v60 = vld [vmem:[#allocation2 + $0x84] sm:$0x1] }
 0x22c   : > { %20652 = vst [vmem:[#allocation51_spill] sm:$0xff] %v17573_v36  ;;  %v5292_v29 = vrot.slane %v17557_v44, 5  ;;  %v13112_v15 = vcombine.low %v5281_v19, %v5285_v0  ;;  %v5289_v1 = vsel %vm16241_vm9, %v13086_v62, %v5288_v7  ;;  %v17591_v33 = vadd.f32 %v17157_v4, %v17153_v27  ;;  %v17595_v48 = vpop.f32.mrb[28].mxu0  ;;  %v17597_v6 = vpop.f32.mrb[32].mxu1 }
 0x22d   : > { %v4360_v34 = vsel %vm16786_vm12, %v4355_v24, %v4359_v58  ;;  %v4362_v58 = vshrl.u32 %v17568_v47, 16  ;;  %v4365_v14 = vshll.u32 %v17568_v47, 16  ;;  %v17607_v27 = vpop.f32.mrb[29].mxu0  ;;  %v17609_v4 = vpop.f32.mrb[33].mxu1  ;;  %v20654_v46 = vcombine.low %v17494_v20, %v17500_v61  ;;  %v17617_v24 = vld [vmem:[#allocation2 + $0x8c] sm:$0x1] }
 0x22e   : > { %20653 = vst [vmem:[#allocation52_spill] sm:$0xff] %v17591_v33  ;;  %v13048_v45 = vcombine.low %v4346_v8, %v4360_v34  ;;  %v5293_v63 = vsel %vm16241_vm9, %v13087_v37, %v5292_v29  ;;  %14695 = vmatprep.mubr.bf16.mxu0 %v13112_v15  ;;  %v4371_v55 = vshll.u32 %v17548_v13, 16  ;;  %v4376_v10 = vshrl.u32 %v17575_v49, 16  ;;  %v17619_v19 = vpop.f32.mrb[30].mxu0  ;;  %v17621_v62 = vpop.f32.mrb[34].mxu1 }
 0x22f   : > { %v13113_v39 = vcombine.low %v5289_v1, %v5293_v63  ;;  %v4379_v11 = vshll.u32 %v17575_v49, 16  ;;  %v4364_v7 = vrot.slane %v4362_v58, 4  ;;  %v4367_v8 = vrot.slane %v4365_v14, 5  ;;  %v17626_v0 = vpop.f32.mrb[31].mxu0  ;;  %v17628_v13 = vpop.f32.mrb[35].mxu1 }
 0x230   : > { %5014 = vmatmul.mubr.bf16.gmra.mrb[108].mxu1 %v20654_v46  ;;  %v4385_v20 = vshll.u32 %v17557_v44, 16  ;;  %v4373_v37 = vrot.slane %v4371_v55, 5  ;;  %v4378_v29 = vrot.slane %v4376_v10, 4  ;;  %v17632_v15 = vadd.f32 %v17217_v51, %v17213_v41  ;;  %v5162_v58 = vld [vmem:[#allocation2 + $0x80] sm:$0xe] }
 0x231   : > { %5021 = vmatprep.mubr.bf16.mxu1 %v13048_v45  ;;  %v4381_v34 = vrot.slane %v4379_v11, 5  ;;  %v4368_v1 = vor.u32 %v4367_v8, %v4364_v7  ;;  %v17636_v44 = vadd.f32 %v17229_v52, %v17220_v9  ;;  %v4390_v63 = vshrl.u32 %v17593_v17, 16  ;;  %v5163_v10 = vld [vmem:[#allocation2 + $0x88] sm:$0xe]  ;;  %v5164_v8 = vld [vmem:[#allocation2 + $0x90] sm:$0xe] }
 0x232   : > { %14696 = vmatmul.mubr.bf16.gmra.mrb[104].mxu0 %v13113_v39  ;;  %20655 = vst [vmem:[#allocation53_spill] sm:$0xff] %v17632_v15  ;;  %v4387_v45 = vrot.slane %v4385_v20, 5  ;;  %v4393_v46 = vshll.u32 %v17593_v17, 16  ;;  %v4399_v39 = vshll.u32 %v17605_v60, 16  ;;  %v4404_v55 = vshrl.u32 %v17603_v50, 16 }
 0x233   : > { %20656 = vst [vmem:[#allocation54_spill] sm:$0xff] %v17636_v44  ;;  %v4382_v14 = vor.u32 %v4381_v34, %v4378_v29  ;;  %v4369_v11 = vrot.slane %v4368_v1, 4  ;;  %v4392_v41 = vrot.slane %v4390_v63, 4  ;;  %v4407_v51 = vshll.u32 %v17603_v50, 16  ;;  %v5165_v29 = vld [vmem:[#allocation2 + $0x98] sm:$0xe] }
 0x234   : > { %v4413_v7 = vshll.u32 %v17617_v24, 16  ;;  %v4395_v52 = vrot.slane %v4393_v46, 5  ;;  %v4401_v20 = vrot.slane %v4399_v39, 5  ;;  %v4406_v61 = vrot.slane %v4404_v55, 4  ;;  %v4204_v63 = vld [vmem:[#allocation2 + $0x9c] sm:$0x1] }
 0x235   : > { %v4383_v9 = vrot.slane %v4382_v14, 4  ;;  %v4374_v34 = vsel %vm16786_vm12, %v4369_v11, %v4373_v37  ;;  %v4409_v44 = vrot.slane %v4407_v51, 5  ;;  %v17648_v33 = vpop.f32.mrb[32].mxu0  ;;  %v20658_v36 = vcombine.low %v17513_v18, %v17521_v32  ;;  %v17656_v37 = vld [vmem:[#allocation2 + $0x90] sm:$0xf] }
 0x236   : > { %v4415_v15 = vrot.slane %v4413_v7, 5  ;;  %20657 = vst [vmem:[#allocation55_spill] sm:$0xff] %v17648_v33  ;;  %v4396_v46 = vor.u32 %v4395_v52, %v4392_v41  ;;  %v13088_v39 = vrot.slane %v5162_v58, 9  ;;  %v5296_v55 = vrot.slane %v17605_v60, 5  ;;  %v17658_v11 = vpop.f32.mrb[33].mxu0 }
 0x237   : > { %v4388_v14 = vsel %vm16786_vm12, %v4383_v9, %v4387_v45  ;;  %v4410_v7 = vor.u32 %v4409_v44, %v4406_v61  ;;  %v13089_v1 = vrot.slane %v5163_v10, 9  ;;  %v5300_v42 = vrot.slane %v17617_v24, 5  ;;  %v17661_v33 = vpop.f32.mrb[34].mxu0  ;;  %v17669_v45 = vld [vmem:[#allocation2 + $0x98] sm:$0xf]  ;;  %v17673_v41 = vpop.f32.mrb[36].mxu1 }
 0x238   : > { %5022 = vmatmul.mubr.bf16.gmra.mrb[112].mxu1 %v20658_v36  ;;  %v13049_v51 = vcombine.low %v4374_v34, %v4388_v14  ;;  %v4397_v18 = vrot.slane %v4396_v46, 4  ;;  %v5297_v32 = vsel %vm16241_vm9, %v13088_v39, %v5296_v55  ;;  %v17667_v36 = vadd.f32 %v17271_v3, %v17266_v26  ;;  %v17671_v58 = vpop.f32.mrb[35].mxu0  ;;  %v17677_v9 = vpop.f32.mrb[37].mxu1 }
 0x239   : > { %v13090_v60 = vrot.slane %v5164_v8, 9  ;;  %v4411_v61 = vrot.slane %v4410_v7, 4  ;;  %v5301_v24 = vsel %vm16241_vm9, %v13089_v1, %v5300_v42  ;;  %v5304_v44 = vrot.slane %v4203_v59, 5  ;;  %v17685_v34 = vpop.f32.mrb[38].mxu1 }
 0x23a   : > { %20659 = vst [vmem:[#allocation56_spill] sm:$0xff] %v17667_v36  ;;  %5029 = vmatprep.mubr.bf16.mxu1 %v13049_v51  ;;  %v13091_v10 = vrot.slane %v5165_v29, 9  ;;  %v4402_v26 = vsel %vm16786_vm12, %v4397_v18, %v4401_v20  ;;  %v13114_v3 = vcombine.low %v5297_v32, %v5301_v24  ;;  %v5308_v8 = vrot.slane %v4204_v63, 5  ;;  %v17696_v1 = vpop.f32.mrb[39].mxu1  ;;  %v17707_v18 = vld [vmem:[#allocation2 + $0xb4] sm:$0x1] }
 0x23b   : > { %v17683_v52 = vadd.f32 %v17174_v57, %v17170_v56  ;;  %v4416_v14 = vsel %vm16786_vm12, %v4411_v61, %v4415_v15  ;;  %v5305_v42 = vsel %vm16241_vm9, %v13090_v60, %v5304_v44  ;;  %v17693_v29 = vadd.f32 %v17280_v53, %v17277_v2  ;;  %v17701_v15 = vld [vmem:[#allocation2 + $0xb0] sm:$0xf]  ;;  %v17705_v53 = vld [vmem:[#allocation2 + $0xb8] sm:$0xf]  ;;  %v17716_v44 = vld [vmem:[#allocation2 + $0xbc] sm:$0x1] }
 0x23c   : > { %v4418_v20 = vshrl.u32 %v17656_v37, 16  ;;  %v13050_v46 = vcombine.low %v4402_v26, %v4416_v14  ;;  %14699 = vmatprep.mubr.bf16.mxu0 %v13114_v3  ;;  %v5309_v56 = vsel %vm16241_vm9, %v13091_v10, %v5308_v8  ;;  %v4421_v57 = vshll.u32 %v17656_v37, 16 }
 0x23d   : > { %20660 = vst [vmem:[#allocation57_spill] sm:$0xff] %v17693_v29  ;;  %v4427_v39 = vshll.u32 %v4203_v59, 16  ;;  %v13115_v55 = vcombine.low %v5305_v42, %v5309_v56  ;;  %v4432_v7 = vshrl.u32 %v17669_v45, 16  ;;  %v4435_v2 = vshll.u32 %v17669_v45, 16  ;;  %v20668_v56 = vld [vmem:[#allocation23_spill] sm:$0xff] }
 0x23e   : > { %v4420_v51 = vrot.slane %v4418_v20, 4  ;;  %v20661_v32 = vcombine.low %v17568_v47, %v17575_v49  ;;  %v4423_v60 = vrot.slane %v4421_v57, 5  ;;  %v4441_v24 = vshll.u32 %v4204_v63, 16  ;;  %v20663_v63 = vld [vmem:[#allocation22_spill] sm:$0xff]  ;;  %v20669_v57 = vld [vmem:[#allocation24_spill] sm:$0xff] }
 0x23f   : > { %v4429_v61 = vrot.slane %v4427_v39, 5  ;;  %v17714_v59 = vadd.f32 %v17188_v5, %v17180_v28  ;;  %14700 = vmatmul.mubr.bf16.gmra.mrb[108].mxu0 %v13115_v55  ;;  %v4434_v10 = vrot.slane %v4432_v7, 4  ;;  %v4437_v26 = vrot.slane %v4435_v2, 5  ;;  %v20665_v28 = vld [vmem:[#allocation35_spill] sm:$0xff]  ;;  %v20666_v5 = vld [vmem:[#allocation36_spill] sm:$0xff]  ;;  %v17732_v20 = vpop.f32.mrb[36].mxu0 }
 0x240   : > { %5030 = vmatmul.mubr.bf16.gmra.mrb[116].mxu1 %v20661_v32  ;;  %v17722_v47 = vadd.f32 %v17197_v31, %v17192_v23  ;;  %v4424_v49 = vor.u32 %v4423_v60, %v4420_v51  ;;  %v4443_v8 = vrot.slane %v4441_v24, 5  ;;  %v17726_v14 = vadd.f32 %v20663_v63, %v17207_v54  ;;  %v20671_v55 = vld [vmem:[#allocation37_spill] sm:$0xff]  ;;  %v20672_v23 = vld [vmem:[#allocation38_spill] sm:$0xff]  ;;  %v17743_v7 = vpop.f32.mrb[37].mxu0  ;;  %v5168_v29 = vld [vmem:[#allocation2 + $0xc0] sm:$0xe] }
 0x241   : > { %5037 = vmatprep.mubr.bf16.mxu1 %v13050_v46  ;;  %v17730_v42 = vadd.f32 %v20666_v5, %v20665_v28  ;;  %v4438_v46 = vor.u32 %v4437_v26, %v4434_v10  ;;  %v17736_v39 = vadd.f32 %v20669_v57, %v20668_v56  ;;  %v17740_v31 = vadd.f32 %v20672_v23, %v20671_v55  ;;  %v5166_v24 = vld [vmem:[#allocation2 + $0xb0] sm:$0xe]  ;;  %v5167_v10 = vld [vmem:[#allocation2 + $0xb8] sm:$0xe]  ;;  %v17748_v26 = vpop.f32.mrb[38].mxu0  ;;  %v15414_v63 = vld [vmem:[#allocation9 + $0x48] sm:$0xff]  }
 0x242   : > { %20662 = vst [vmem:[#allocation58_spill] sm:$0xff] %v17722_v47  ;;  %20664 = vst [vmem:[#allocation22_spill] sm:$0xff] %v17726_v14  ;;  %v4446_v51 = vshrl.u32 %v17701_v15, 16  ;;  %v4425_v54 = vrot.slane %v4424_v49, 4  ;;  %v4449_v2 = vshll.u32 %v17701_v15, 16  ;;  %v4455_v32 = vshll.u32 %v17707_v18, 16  ;;  %14721 = vmatprep.subr.bf16.mxu1 %v15414_v63 }
 0x243   : > { %20667 = vst [vmem:[#allocation35_spill] sm:$0xff] %v17730_v42  ;;  %20670 = vst [vmem:[#allocation36_spill] sm:$0xff] %v17736_v39  ;;  %v4460_v60 = vshrl.u32 %v17705_v53, 16  ;;  %v4439_v28 = vrot.slane %v4438_v46, 4  ;;  %v4463_v56 = vshll.u32 %v17705_v53, 16  ;;  %v4469_v57 = vshll.u32 %v17716_v44, 16  ;;  %14722 = vmatpush3.bf16.msra.mxu1 %v15414_v63 }
 0x244   : > { %20673 = vst [vmem:[#allocation23_spill] sm:$0xff] %v17740_v31  ;;  %20674 = vst [vmem:[#allocation24_spill] sm:$0xff] %v17748_v26  ;;  %v4448_v5 = vrot.slane %v4446_v51, 4  ;;  %v17752_v55 = vpop.f32.mrb[39].mxu0  ;;  %v4430_v49 = vsel %vm16786_vm12, %v4425_v54, %v4429_v61  ;;  %v4451_v23 = vrot.slane %v4449_v2, 5  ;;  %v4457_v3 = vrot.slane %v4455_v32, 5 }
 0x245   : > { %20675 = vst [vmem:[#allocation37_spill] sm:$0xff] %v17752_v55  ;;  %v4462_v31 = vrot.slane %v4460_v60, 4  ;;  %v17756_v42 = vld [vmem:[#allocation2 + $0xc4] sm:$0x1]  ;;  %v4444_v46 = vsel %vm16786_vm12, %v4439_v28, %v4443_v8  ;;  %v4465_v51 = vrot.slane %v4463_v56, 5  ;;  %v4471_v36 = vrot.slane %v4469_v57, 5 }
 0x246   : > { %v20676_v39 = vld [vmem:[#allocation25_spill] sm:$0xff]  ;;  %v20677_v26 = vld [vmem:[#allocation26_spill] sm:$0xff]  ;;  %v17766_v61 = vpop.f32.mrb[40].mxu1  ;;  %v20680_v54 = vcombine.low %v17593_v17, %v17603_v50  ;;  %v13051_v2 = vcombine.low %v4430_v49, %v4444_v46  ;;  %v4452_v32 = vor.u32 %v4451_v23, %v4448_v5  ;;  %v20681_v60 = vld [vmem:[#allocation27_spill] sm:$0xff]  ;;  %v13092_v57 = vrot.slane %v5166_v24, 9 }
 0x247   : > { %v17762_v14 = vadd.f32 %v20677_v26, %v20676_v39  ;;  %v17764_v55 = vld [vmem:[#allocation2 + $0xcc] sm:$0x1]  ;;  %v5169_v47 = vld [vmem:[#allocation2 + $0xc8] sm:$0xe]  ;;  %20679 = vst [vmem:[#allocation25_spill] sm:$0xff] %v17766_v61  ;;  %v20682_v28 = vld [vmem:[#allocation28_spill] sm:$0xff]  ;;  %v4466_v26 = vor.u32 %v4465_v51, %v4462_v31 }
 0x248   : > { %5038 = vmatmul.mubr.bf16.gmra.mrb[120].mxu1 %v20680_v54  ;;  %v17775_v56 = vadd.f32 %v20682_v28, %v20681_v60  ;;  %v17777_v39 = vpop.f32.mrb[41].mxu1  ;;  %v13093_v63 = vrot.slane %v5167_v10, 9  ;;  %v17780_v61 = vld [vmem:[#allocation2 + $0xc0] sm:$0xf]  ;;  %v4453_v50 = vrot.slane %v4452_v32, 4  ;;  %v5316_v5 = vrot.slane %v17716_v44, 5 }
 0x249   : > { %20678 = vst [vmem:[#allocation38_spill] sm:$0xff] %v17762_v14  ;;  %v5312_v14 = vrot.slane %v17707_v18, 5  ;;  %v17782_v17 = vpop.f32.mrb[42].mxu1  ;;  %5045 = vmatprep.mubr.bf16.mxu1 %v13051_v2  ;;  %v20683_v49 = vld [vmem:[#allocation29_spill] sm:$0xff]  ;;  %v20684_v23 = vld [vmem:[#allocation30_spill] sm:$0xff]  ;;  %v20685_v54 = vld [vmem:[#allocation43_spill] sm:$0xff] }
 0x24a   : > { %v17787_v46 = vadd.f32 %v20684_v23, %v20683_v49  ;;  %v20686_v60 = vld [vmem:[#allocation44_spill] sm:$0xff]  ;;  %v17793_v31 = vld [vmem:[#allocation2 + $0xc8] sm:$0xf]  ;;  %v17795_v18 = vpop.f32.mrb[43].mxu1  ;;  %v4467_v24 = vrot.slane %v4466_v26, 4  ;;  %v13094_v51 = vrot.slane %v5168_v29, 9  ;;  %v4458_v44 = vsel %vm16786_vm12, %v4453_v50, %v4457_v3 }
 0x24b   : > { %v17791_v28 = vadd.f32 %v20686_v60, %v20685_v54  ;;  %v5313_v10 = vsel %vm16241_vm9, %v13092_v57, %v5312_v14  ;;  %v5320_v2 = vrot.slane %v17756_v42, 5  ;;  %v5317_v32 = vsel %vm16241_vm9, %v13093_v63, %v5316_v5  ;;  %v20688_v14 = vld [vmem:[#allocation31_spill] sm:$0xff]  ;;  %v20689_v29 = vld [vmem:[#allocation32_spill] sm:$0xff]  ;;  %v17813_v8 = vpop.f32.mrb[40].mxu0  ;;  %v20693_v50 = vld [vmem:[#allocation46_spill] sm:$0xff] }
 0x24c   : > { %v13095_v49 = vrot.slane %v5169_v47, 9  ;;  %v5324_v23 = vrot.slane %v17764_v55, 5  ;;  %v4472_v54 = vsel %vm16786_vm12, %v4467_v24, %v4471_v36  ;;  %v13116_v60 = vcombine.low %v5313_v10, %v5317_v32  ;;  %20691 = vst [vmem:[#allocation28_spill] sm:$0xff] %v17813_v8  ;;  %v20692_v47 = vld [vmem:[#allocation45_spill] sm:$0xff]  ;;  %v17822_v24 = vpop.f32.mrb[41].mxu0  ;;  %v20706_v8 = vld [vmem:[#allocation42_spill] sm:$0xff] }
 0x24d   : > { %20687 = vst [vmem:[#allocation26_spill] sm:$0xff] %v17791_v28  ;;  %v5321_v26 = vsel %vm16241_vm9, %v13094_v51, %v5320_v2  ;;  %v17811_v57 = vadd.f32 %v20689_v29, %v20688_v14  ;;  %v13052_v3 = vcombine.low %v4458_v44, %v4472_v54  ;;  %v17819_v5 = vadd.f32 %v20693_v50, %v20692_v47  ;;  %v17827_v44 = vld [vmem:[#allocation2 + $0xd0] sm:$0xf]  ;;  %v17829_v54 = vld [vmem:[#allocation2 + $0xd4] sm:$0x1]  ;;  %v20698_v29 = vld [vmem:[#allocation33_spill] sm:$0xff] }
 0x24e   : > { %v5325_v63 = vsel %vm16241_vm9, %v13095_v49, %v5324_v23  ;;  %v4474_v36 = vshrl.u32 %v17780_v61, 16  ;;  %20695 = vst [vmem:[#allocation30_spill] sm:$0xff] %v17822_v24  ;;  %14703 = vmatprep.mubr.bf16.mxu0 %v13116_v60  ;;  %v4477_v51 = vshll.u32 %v17780_v61, 16  ;;  %v4483_v2 = vshll.u32 %v17756_v42, 16  ;;  %v17831_v49 = vpop.f32.mrb[42].mxu0  ;;  %v20703_v24 = vld [vmem:[#allocation40_spill] sm:$0xff] }
 0x24f   : > { %20690 = vst [vmem:[#allocation27_spill] sm:$0xff] %v17811_v57  ;;  %20694 = vst [vmem:[#allocation29_spill] sm:$0xff] %v17819_v5  ;;  %v13117_v10 = vcombine.low %v5321_v26, %v5325_v63  ;;  %v4488_v32 = vshrl.u32 %v17793_v31, 16  ;;  %v20697_v23 = vcombine.low %v17656_v37, %v17669_v45  ;;  %v4491_v60 = vshll.u32 %v17793_v31, 16  ;;  %v20699_v63 = vld [vmem:[#allocation34_spill] sm:$0xff]  ;;  %v17846_v5 = vpop.f32.mrb[43].mxu0 }
 0x250   : > { %20696 = vst [vmem:[#allocation43_spill] sm:$0xff] %v17831_v49  ;;  %v4476_v14 = vrot.slane %v4474_v36, 4  ;;  %v4497_v26 = vshll.u32 %v17764_v55, 16  ;;  %v17840_v42 = vadd.f32 %v20699_v63, %v20698_v29  ;;  %v17842_v47 = vld [vmem:[#allocation2 + $0xd8] sm:$0xf]  ;;  %20701 = vst [vmem:[#allocation31_spill] sm:$0xff] %v17846_v5 }
 0x251   : > { %5046 = vmatmul.mubr.bf16.gmra.mrb[124].mxu1 %v20697_v23  ;;  %v17844_v50 = vld [vmem:[#allocation2 + $0xdc] sm:$0x1]  ;;  %14704 = vmatmul.mubr.bf16.gmra.mrb[112].mxu0 %v13117_v10  ;;  %v4479_v28 = vrot.slane %v4477_v51, 5  ;;  %v4485_v37 = vrot.slane %v4483_v2, 5  ;;  %v4490_v45 = vrot.slane %v4488_v32, 4  ;;  %v4493_v23 = vrot.slane %v4491_v60, 5 }
 0x252   : > { %20700 = vst [vmem:[#allocation44_spill] sm:$0xff] %v17840_v42  ;;  %5053 = vmatprep.mubr.bf16.mxu1 %v13052_v3  ;;  %v4499_v55 = vrot.slane %v4497_v26, 5  ;;  %v20702_v49 = vld [vmem:[#allocation39_spill] sm:$0xff]  ;;  %v20705_v63 = vld [vmem:[#allocation41_spill] sm:$0xff]  ;;  %v17858_v57 = vpop.f32.mrb[44].mxu1  ;;  %v17862_v10 = vadd.f32 %v17550_v16, %v17545_v43  ;;  %v17866_v51 = vadd.f32 %v17480_v21, %v17478_v12  ;;  %v17870_v2 = vadd.f32 %v17565_v35, %v17559_v22  ;;  %v15415_v16 = vld [vmem:[#allocation9 + $0x50] sm:$0xff]  }
 0x253   : > { %v17852_v29 = vadd.f32 %v20703_v24, %v20702_v49  ;;  %v17856_v42 = vadd.f32 %v20706_v8, %v20705_v63  ;;  %v4480_v3 = vor.u32 %v4479_v28, %v4476_v14  ;;  %v17872_v24 = vpop.f32.mrb[45].mxu1  ;;  %v4494_v32 = vor.u32 %v4493_v23, %v4490_v45  ;;  %v5170_v14 = vld [vmem:[#allocation2 + $0xd0] sm:$0xe]  ;;  %v5171_v35 = vld [vmem:[#allocation2 + $0xd8] sm:$0xe]  ;;  %14723 = vmatprep.subr.bf16.mxu1 %v15415_v16 }
 0x254   : > { %20708 = vst [vmem:[#allocation46_spill] sm:$0xff] %v17862_v10  ;;  %20709 = vst [vmem:[#allocation33_spill] sm:$0xff] %v17866_v51  ;;  %v4502_v8 = vshrl.u32 %v17827_v44, 16  ;;  %v4505_v49 = vshll.u32 %v17827_v44, 16  ;;  %v4511_v28 = vshll.u32 %v17829_v54, 16  ;;  %v17877_v43 = vpop.f32.mrb[46].mxu1  ;;  %14724 = vmatpush3.bf16.msra.mxu1 %v15415_v16  ;;  %v17899_v16 = vadd.f32 %v17607_v27, %v17595_v48 }
 0x255   : > { %20704 = vst [vmem:[#allocation32_spill] sm:$0xff] %v17852_v29  ;;  %20707 = vst [vmem:[#allocation45_spill] sm:$0xff] %v17856_v42  ;;  %v4481_v60 = vrot.slane %v4480_v3, 4  ;;  %v4516_v12 = vshrl.u32 %v17842_v47, 16  ;;  %v4519_v21 = vshll.u32 %v17842_v47, 16  ;;  %v4525_v22 = vshll.u32 %v17844_v50, 16 }
 0x256   : > { %20710 = vst [vmem:[#allocation34_spill] sm:$0xff] %v17870_v2  ;;  %v17882_v26 = vpop.f32.mrb[47].mxu1  ;;  %v4495_v45 = vrot.slane %v4494_v32, 4  ;;  %v4504_v23 = vrot.slane %v4502_v8, 4  ;;  %v4507_v63 = vrot.slane %v4505_v49, 5  ;;  %v4513_v36 = vrot.slane %v4511_v28, 5 }
 0x257   : > { %v5172_v2 = vld [vmem:[#allocation2 + $0xe0] sm:$0xe]  ;;  %v4486_v10 = vsel %vm16786_vm12, %v4481_v60, %v4485_v37  ;;  %v4518_v5 = vrot.slane %v4516_v12, 4  ;;  %v4521_v3 = vrot.slane %v4519_v21, 5  ;;  %v4527_v51 = vrot.slane %v4525_v22, 5 }
 0x258   : > { %v4211_v42 = vld [vmem:[#allocation2 + $0xe4] sm:$0x1]  ;;  %v20711_v29 = vcombine.low %v17701_v15, %v17705_v53  ;;  %v4500_v32 = vsel %vm16786_vm12, %v4495_v45, %v4499_v55  ;;  %v4508_v8 = vor.u32 %v4507_v63, %v4504_v23  ;;  %v17893_v49 = vadd.f32 %v17496_v25, %v17488_v30  ;;  %v5173_v28 = vld [vmem:[#allocation2 + $0xe8] sm:$0xe]  ;;  %v4212_v53 = vld [vmem:[#allocation2 + $0xec] sm:$0x1] }
 0x259   : > { %v13038_v37 = vcombine.low %v17827_v44, %v17842_v47  ;;  %v13053_v60 = vcombine.low %v4486_v10, %v4500_v32  ;;  %v4522_v12 = vor.u32 %v4521_v3, %v4518_v5  ;;  %v13096_v15 = vrot.slane %v5170_v14, 9  ;;  %v17903_v30 = vld [vmem:[#allocation2 + $0xe0] sm:$0xf]  ;;  %v17911_v5 = vld [vmem:[#allocation2 + $0xe8] sm:$0xf]  ;;  %v20712_v32 = vld [vmem:[#allocation55_spill] sm:$0xff] }
 0x25a   : > { %5054 = vmatmul.mubr.bf16.gmra.mrb[128].mxu1 %v20711_v29  ;;  %v4509_v29 = vrot.slane %v4508_v8, 4  ;;  %v5328_v55 = vrot.slane %v17829_v54, 5  ;;  %v13097_v21 = vrot.slane %v5171_v35, 9  ;;  %v5332_v22 = vrot.slane %v17844_v50, 5 }
 0x25b   : > { %5061 = vmatprep.mubr.bf16.mxu1 %v13053_v60  ;;  %v4523_v25 = vrot.slane %v4522_v12, 4  ;;  %v17907_v10 = vadd.f32 %v17626_v0, %v17619_v19  ;;  %v13729_v48 = vadd.f32 %v17609_v4, %v17597_v6  ;;  %v13098_v27 = vrot.slane %v5172_v2, 9  ;;  %v17924_v4 = vpop.f32.mrb[48].mxu1  ;;  %v17938_v60 = vld [vmem:[#allocation2 + $0x100] sm:$0xf] }
 0x25c   : > { %v4514_v54 = vsel %vm16786_vm12, %v4509_v29, %v4513_v36  ;;  %v5329_v50 = vsel %vm16241_vm9, %v13096_v15, %v5328_v55  ;;  %v5333_v14 = vsel %vm16241_vm9, %v13097_v21, %v5332_v22  ;;  %v5336_v35 = vrot.slane %v4211_v42, 5  ;;  %v17930_v3 = vpop.f32.mrb[49].mxu1 }
 0x25d   : > { %v4528_v19 = vsel %vm16786_vm12, %v4523_v25, %v4527_v51  ;;  %v13118_v0 = vcombine.low %v5329_v50, %v5333_v14  ;;  %v17922_v45 = vadd.f32 %v13729_v48, %v17683_v52  ;;  %v13099_v6 = vrot.slane %v5173_v28, 9  ;;  %v17940_v12 = vpop.f32.mrb[50].mxu1  ;;  %v17954_v48 = vld [vmem:[#allocation2 + $0x108] sm:$0xf]  ;;  %v17962_v50 = vld [vmem:[#allocation2 + $0x10c] sm:$0x1] }
 0x25e   : > { %v13054_v2 = vcombine.low %v4514_v54, %v4528_v19  ;;  %v5337_v36 = vsel %vm16241_vm9, %v13098_v27, %v5336_v35  ;;  %v5340_v23 = vrot.slane %v4212_v53, 5  ;;  %v13732_v63 = vadd.f32 %v17628_v13, %v17621_v62  ;;  %v17952_v55 = vpop.f32.mrb[51].mxu1 }
 0x25f   : > { %14707 = vmatprep.mubr.bf16.mxu0 %v13118_v0  ;;  %v17934_v51 = vadd.f32 %v17658_v11, %v20712_v32  ;;  %v4530_v52 = vshrl.u32 %v17903_v30, 16  ;;  %v4533_v8 = vshll.u32 %v17903_v30, 16  ;;  %v4539_v28 = vshll.u32 %v4211_v42, 16  ;;  %v17964_v14 = vpop.f32.mrb[44].mxu0  ;;  %v20714_v32 = vld [vmem:[#allocation58_spill] sm:$0xff] }
 0x260   : > { %v20713_v15 = vcombine.low %v17780_v61, %v17793_v31  ;;  %v5341_v62 = vsel %vm16241_vm9, %v13099_v6, %v5340_v23  ;;  %v17948_v13 = vadd.f32 %v13732_v63, %v17714_v59  ;;  %v4544_v11 = vshrl.u32 %v17911_v5, 16  ;;  %v17956_v61 = vld [vmem:[#allocation2 + $0x104] sm:$0x1] }
 0x261   : > { %v4547_v29 = vshll.u32 %v17911_v5, 16  ;;  %v13119_v42 = vcombine.low %v5337_v36, %v5341_v62  ;;  %v4532_v21 = vrot.slane %v4530_v52, 4  ;;  %v4535_v22 = vrot.slane %v4533_v8, 5  ;;  %v5175_v8 = vld [vmem:[#allocation2 + $0x108] sm:$0xe] }
 0x262   : > { %5062 = vmatmul.mubr.bf16.gmra.mrb[132].mxu1 %v20713_v15  ;;  %v4541_v25 = vrot.slane %v4539_v28, 5  ;;  %v4546_v31 = vrot.slane %v4544_v11, 4  ;;  %v4553_v54 = vshll.u32 %v4212_v53, 16  ;;  %v17960_v59 = vadd.f32 %v17671_v58, %v17661_v33  ;;  %v17972_v53 = vpop.f32.mrb[45].mxu0 }
 0x263   : > { %5069 = vmatprep.mubr.bf16.mxu1 %v13054_v2  ;;  %v4549_v27 = vrot.slane %v4547_v29, 5  ;;  %14708 = vmatmul.mubr.bf16.gmra.mrb[116].mxu0 %v13119_v42  ;;  %v4536_v35 = vor.u32 %v4535_v22, %v4532_v21  ;;  %v13735_v0 = vadd.f32 %v17677_v9, %v17673_v41  ;;  %v13738_v6 = vadd.f32 %v17696_v1, %v17685_v34  ;;  %v17979_v23 = vpop.f32.mrb[46].mxu0  ;;  %v20715_v41 = vld [vmem:[#allocation22_spill] sm:$0xff]  ;;  %v5174_v1 = vld [vmem:[#allocation2 + $0x100] sm:$0xe] }
 0x264   : > { %v4555_v33 = vrot.slane %v4553_v54, 5  ;;  %v17976_v58 = vadd.f32 %v17743_v7, %v17732_v20  ;;  %v4558_v36 = vshrl.u32 %v17938_v60, 16  ;;  %v4561_v34 = vshll.u32 %v17938_v60, 16  ;;  %v17988_v28 = vpop.f32.mrb[47].mxu0  ;;  %v4215_v22 = vld [vmem:[#allocation2 + $0x114] sm:$0x1] }
 0x265   : > { %v4550_v2 = vor.u32 %v4549_v27, %v4546_v31  ;;  %v4537_v63 = vrot.slane %v4536_v35, 4  ;;  %v17982_v52 = vadd.f32 %v13735_v0, %v20714_v32  ;;  %v17985_v9 = vadd.f32 %v13738_v6, %v20715_v41  ;;  %v5176_v31 = vld [vmem:[#allocation2 + $0x110] sm:$0xe]  ;;  %v5177_v27 = vld [vmem:[#allocation2 + $0x118] sm:$0xe]  ;;  %v20716_v6 = vld [vmem:[#allocation24_spill] sm:$0xff] }
 0x266   : > { %v4560_v20 = vrot.slane %v4558_v36, 4  ;;  %v4567_v7 = vshll.u32 %v17956_v61, 16  ;;  %v4572_v62 = vshrl.u32 %v17954_v48, 16  ;;  %v4563_v29 = vrot.slane %v4561_v34, 5  ;;  %v18005_v34 = vld [vmem:[#allocation2 + $0x11c] sm:$0x1] }
 0x267   : > { %v4551_v15 = vrot.slane %v4550_v2, 4  ;;  %v4542_v11 = vsel %vm16786_vm12, %v4537_v63, %v4541_v25  ;;  %v4575_v42 = vshll.u32 %v17954_v48, 16  ;;  %v4581_v21 = vshll.u32 %v17962_v50, 16  ;;  %v20717_v2 = vld [vmem:[#allocation37_spill] sm:$0xff] }
 0x268   : > { %v4569_v35 = vrot.slane %v4567_v7, 5  ;;  %v4574_v0 = vrot.slane %v4572_v62, 4  ;;  %v18003_v25 = vadd.f32 %v20717_v2, %v20716_v6  ;;  %v4564_v63 = vor.u32 %v4563_v29, %v4560_v20  ;;  %v18014_v7 = vpop.f32.mrb[52].mxu1  ;;  %v20719_v29 = vld [vmem:[#allocation25_spill] sm:$0xff] }
 0x269   : > { %v4556_v54 = vsel %vm16786_vm12, %v4551_v15, %v4555_v33  ;;  %v4577_v32 = vrot.slane %v4575_v42, 5  ;;  %v4583_v41 = vrot.slane %v4581_v21, 5  ;;  %v13100_v44 = vrot.slane %v5174_v1, 9  ;;  %v18010_v33 = vld [vmem:[#allocation2 + $0x110] sm:$0xf]  ;;  %v18012_v15 = vpop.f32.mrb[48].mxu0 }
 0x26a   : > { %5070 = vmatmul.mubr.bf16.gmra.mrb[136].mxu1 %v13038_v37  ;;  %v13055_v36 = vcombine.low %v4542_v11, %v4556_v54  ;;  %v5344_v47 = vrot.slane %v17956_v61, 5  ;;  %v13101_v37 = vrot.slane %v5175_v8, 9  ;;  %20718 = vst [vmem:[#allocation39_spill] sm:$0xff] %v18012_v15  ;;  %v4565_v62 = vrot.slane %v4564_v63, 4  ;;  %v18019_v21 = vld [vmem:[#allocation2 + $0x118] sm:$0xf] }
 0x26b   : > { %v4578_v20 = vor.u32 %v4577_v32, %v4574_v0  ;;  %v5348_v11 = vrot.slane %v17962_v50, 5  ;;  %v13741_v42 = vadd.f32 %v17777_v39, %v20719_v29  ;;  %v18021_v1 = vpop.f32.mrb[49].mxu0  ;;  %v18023_v61 = vpop.f32.mrb[53].mxu1  ;;  %v13102_v54 = vrot.slane %v5176_v31, 9  ;;  %v20722_v32 = vld [vmem:[#allocation36_spill] sm:$0xff] }
 0x26c   : > { %5077 = vmatprep.mubr.bf16.mxu1 %v13055_v36  ;;  %20720 = vst [vmem:[#allocation40_spill] sm:$0xff] %v18021_v1  ;;  %v5345_v8 = vsel %vm16241_vm9, %v13100_v44, %v5344_v47  ;;  %v5352_v6 = vrot.slane %v4215_v22, 5  ;;  %v13103_v2 = vrot.slane %v5177_v27, 9  ;;  %v18027_v36 = vpop.f32.mrb[50].mxu0  ;;  %v18029_v0 = vpop.f32.mrb[54].mxu1  ;;  %v4570_v50 = vsel %vm16786_vm12, %v4565_v62, %v4569_v35  ;;  %v15417_v15 = vld [vmem:[#allocation9 + $0x60] sm:$0xff]  }
 0x26d   : > { %20721 = vst [vmem:[#allocation41_spill] sm:$0xff] %v18027_v36  ;;  %v4579_v39 = vrot.slane %v4578_v20, 4  ;;  %v5349_v63 = vsel %vm16241_vm9, %v13101_v37, %v5348_v11  ;;  %v18036_v29 = vadd.f32 %v13741_v42, %v20722_v32  ;;  %v18038_v19 = vpop.f32.mrb[51].mxu0  ;;  %v18040_v44 = vpop.f32.mrb[55].mxu1  ;;  %v5356_v47 = vrot.slane %v18005_v34, 5 }
 0x26e   : > { %20723 = vst [vmem:[#allocation42_spill] sm:$0xff] %v18038_v19  ;;  %v13120_v31 = vcombine.low %v5345_v8, %v5349_v63  ;;  %v5353_v27 = vsel %vm16241_vm9, %v13102_v54, %v5352_v6  ;;  %v13744_v35 = vadd.f32 %v17795_v18, %v17782_v17  ;;  %v18047_v62 = vld [vmem:[#allocation2 + $0x120] sm:$0xf]  ;;  %v4586_v20 = vshrl.u32 %v18010_v33, 16  ;;  %v18053_v32 = vld [vmem:[#allocation2 + $0x124] sm:$0x1] }
 0x26f   : > { %v4584_v37 = vsel %vm16786_vm12, %v4579_v39, %v4583_v41  ;;  %v4589_v11 = vshll.u32 %v18010_v33, 16  ;;  %v4595_v42 = vshll.u32 %v4215_v22, 16  ;;  %v20724_v8 = vcombine.low %v17903_v30, %v17911_v5  ;;  %v20725_v18 = vld [vmem:[#allocation38_spill] sm:$0xff]  ;;  %v18066_v36 = vld [vmem:[#allocation2 + $0x128] sm:$0xf] }
 0x270   : > { %v13056_v54 = vcombine.low %v4570_v50, %v4584_v37  ;;  %14711 = vmatprep.mubr.bf16.mxu0 %v13120_v31  ;;  %v5357_v17 = vsel %vm16241_vm9, %v13103_v2, %v5356_v47  ;;  %v18061_v6 = vadd.f32 %v13744_v35, %v20725_v18  ;;  %v4600_v41 = vshrl.u32 %v18019_v21, 16  ;;  %v18072_v31 = vld [vmem:[#allocation2 + $0x12c] sm:$0x1]  ;;  %v18074_v47 = vpop.f32.mrb[52].mxu0  ;;  %v18119_v1 = vld [vmem:[#allocation2 + $0x130] sm:$0xf] }
 0x271   : > { %v13121_v39 = vcombine.low %v5353_v27, %v5357_v17  ;;  %v4588_v63 = vrot.slane %v4586_v20, 4  ;;  %v4591_v19 = vrot.slane %v4589_v11, 5  ;;  %v18064_v22 = vrot.slane %v4595_v42, 5  ;;  %20727 = vst [vmem:[#allocation58_spill] sm:$0xff] %v18074_v47  ;;  %v5178_v11 = vld [vmem:[#allocation2 + $0x120] sm:$0xe] }
 0x272   : > { %5078 = vmatmul.mubr.bf16.gmra.mrb[140].mxu1 %v20724_v8  ;;  %20726 = vst [vmem:[#allocation55_spill] sm:$0xff] %v18061_v6  ;;  %v4602_v30 = vrot.slane %v4600_v41, 4  ;;  %v4603_v5 = vshll.u32 %v18019_v21, 16  ;;  %v4609_v50 = vshll.u32 %v18005_v34, 16  ;;  %v13747_v35 = vadd.f32 %v17872_v24, %v17858_v57  ;;  %v18081_v42 = vpop.f32.mrb[53].mxu0  ;;  %v15416_v34 = vld [vmem:[#allocation9 + $0x58] sm:$0xff]  }
 0x273   : > { %5085 = vmatprep.mubr.bf16.mxu1 %v13056_v54  ;;  %14712 = vmatmul.mubr.bf16.gmra.mrb[120].mxu0 %v13121_v39  ;;  %v4592_v27 = vor.u32 %v4591_v19, %v4588_v63  ;;  %v13750_v37 = vadd.f32 %v17882_v26, %v17877_v43  ;;  %v4614_v20 = vshrl.u32 %v18047_v62, 16  ;;  %20728 = vst [vmem:[#allocation22_spill] sm:$0xff] %v18081_v42  ;;  %v4617_v17 = vshll.u32 %v18047_v62, 16  ;;  %v5179_v41 = vld [vmem:[#allocation2 + $0x128] sm:$0xe]  ;;  %v18085_v19 = vpop.f32.mrb[54].mxu0 }
 0x274   : > { %v4605_v8 = vrot.slane %v4603_v5, 5  ;;  %v4611_v54 = vrot.slane %v4609_v50, 5  ;;  %v4623_v18 = vshll.u32 %v18053_v32, 16  ;;  %20729 = vst [vmem:[#allocation24_spill] sm:$0xff] %v18085_v19  ;;  %v18088_v57 = vadd.f32 %v13747_v35, %v17775_v56  ;;  %v18093_v26 = vpop.f32.mrb[55].mxu0  ;;  %v18095_v63 = vpop.f32.mrb[56].mxu1  ;;  %14725 = vmatprep.subr.bf16.mxu1 %v15416_v34 }
 0x275   : > { %v4593_v39 = vrot.slane %v4592_v27, 4  ;;  %v18091_v24 = vadd.f32 %v13750_v37, %v17787_v46  ;;  %v4616_v43 = vrot.slane %v4614_v20, 4  ;;  %20732 = vst [vmem:[#allocation36_spill] sm:$0xff] %v18093_v26  ;;  %v4619_v50 = vrot.slane %v4617_v17, 5  ;;  %v18100_v19 = vpop.f32.mrb[57].mxu1  ;;  %14726 = vmatpush3.bf16.msra.mxu1 %v15416_v34 }
 0x276   : > { %20730 = vst [vmem:[#allocation37_spill] sm:$0xff] %v18088_v57  ;;  %v4606_v5 = vor.u32 %v4605_v8, %v4602_v30  ;;  %v18097_v2 = vrot.slane %v4623_v18, 5  ;;  %v4628_v42 = vshrl.u32 %v18066_v36, 16  ;;  %v4631_v46 = vshll.u32 %v18066_v36, 16  ;;  %v4219_v30 = vld [vmem:[#allocation2 + $0x134] sm:$0x1]  ;;  %14727 = vmatprep.subr.bf16.mxu1 %v15417_v15 }
 0x277   : > { %20731 = vst [vmem:[#allocation25_spill] sm:$0xff] %v18091_v24  ;;  %v4598_v56 = vsel %vm16786_vm12, %v4593_v39, %v18064_v22  ;;  %v4637_v27 = vshll.u32 %v18072_v31, 16  ;;  %v5180_v37 = vld [vmem:[#allocation2 + $0x130] sm:$0xe]  ;;  %v18109_v20 = vpop.f32.mrb[58].mxu1  ;;  %v20733_v8 = vcombine.low %v17938_v60, %v17954_v48  ;;  %v4620_v17 = vor.u32 %v4619_v50, %v4616_v43 }
 0x278   : > { %v4607_v34 = vrot.slane %v4606_v5, 4  ;;  %v4630_v18 = vrot.slane %v4628_v42, 4  ;;  %v13104_v26 = vrot.slane %v5178_v11, 9  ;;  %v18114_v22 = vld [vmem:[#allocation2 + $0x13c] sm:$0x1]  ;;  %v18116_v47 = vpop.f32.mrb[59].mxu1  ;;  %v13753_v11 = vadd.f32 %v17930_v3, %v17924_v4 }
 0x279   : > { %v5181_v39 = vld [vmem:[#allocation2 + $0x138] sm:$0xe]  ;;  %v4633_v24 = vrot.slane %v4631_v46, 5  ;;  %v4639_v57 = vrot.slane %v4637_v27, 5  ;;  %v5360_v35 = vrot.slane %v18053_v32, 5  ;;  %v13105_v6 = vrot.slane %v5179_v41, 9  ;;  %14728 = vmatpush3.bf16.msra.mxu1 %v15417_v15 }
 0x27a   : > { %5086 = vmatmul.mubr.bf16.gmra.mrb[144].mxu1 %v20733_v8  ;;  %v4612_v60 = vsel %vm16786_vm12, %v4607_v34, %v4611_v54  ;;  %v4621_v48 = vrot.slane %v4620_v17, 4  ;;  %v5364_v42 = vrot.slane %v18072_v31, 5  ;;  %v18126_v43 = vld [vmem:[#allocation2 + $0x138] sm:$0xf]  ;;  %v13106_v41 = vrot.slane %v5180_v37, 9  ;;  %v13875_v46 = vpop.f32.mrb[56].mxu0 }
 0x27b   : > { %v13057_v5 = vcombine.low %v4598_v56, %v4612_v60  ;;  %v4634_v50 = vor.u32 %v4633_v24, %v4630_v18  ;;  %v5361_v32 = vsel %vm16241_vm9, %v13104_v26, %v5360_v35  ;;  %v15418_v27 = vld [vmem:[#allocation9 + $0x68] sm:$0xff]   ;;  %v20734_v8 = vld [vmem:[#allocation27_spill] sm:$0xff]  ;;  %v5368_v3 = vrot.slane %v4219_v30, 5  ;;  %v13876_v56 = vpop.f32.mrb[57].mxu0 }
 0x27c   : > { %v4626_v54 = vsel %vm16786_vm12, %v4621_v48, %v18097_v2  ;;  %v5365_v31 = vsel %vm16241_vm9, %v13105_v6, %v5364_v42  ;;  %v18136_v4 = vadd.f32 %v13753_v11, %v20734_v8  ;;  %v13107_v35 = vrot.slane %v5181_v39, 9  ;;  %v13878_v34 = vpop.f32.mrb[58].mxu0  ;;  %14729 = vmatprep.subr.bf16.mxu1 %v15418_v27  ;;  %v15419_v11 = vld [vmem:[#allocation9 + $0x70] sm:$0xff]  }
 0x27d   : > { %5093 = vmatprep.mubr.bf16.mxu1 %v13057_v5  ;;  %v4635_v24 = vrot.slane %v4634_v50, 4  ;;  %v13122_v26 = vcombine.low %v5361_v32, %v5365_v31  ;;  %v5372_v37 = vrot.slane %v18114_v22, 5  ;;  %v5369_v2 = vsel %vm16241_vm9, %v13106_v41, %v5368_v3  ;;  %v13879_v60 = vpop.f32.mrb[59].mxu0  ;;  %v20736_v50 = vld [vmem:[#allocation44_spill] sm:$0xff]  ;;  %v13769_v31 = vpop.f32.mrb[60].mxu1  ;;  %14730 = vmatpush3.bf16.msra.mxu1 %v15418_v27 }
 0x27e   : > { %v13756_v6 = vadd.f32 %v17952_v55, %v17940_v12  ;;  %v4642_v17 = vshrl.u32 %v18119_v1, 16  ;;  %v4645_v18 = vshll.u32 %v18119_v1, 16  ;;  %v4651_v48 = vshll.u32 %v4219_v30, 16  ;;  %v13770_v30 = vpop.f32.mrb[61].mxu1  ;;  %14731 = vmatprep.subr.bf16.mxu1 %v15419_v11 }
 0x27f   : > { %v4640_v15 = vsel %vm16786_vm12, %v4635_v24, %v4639_v57  ;;  %14715 = vmatprep.mubr.bf16.mxu0 %v13122_v26  ;;  %v5373_v39 = vsel %vm16241_vm9, %v13107_v35, %v5372_v37  ;;  %v4656_v42 = vshrl.u32 %v18126_v43, 16  ;;  %v20735_v5 = vcombine.low %v18010_v33, %v18019_v21  ;;  %v15420_v26 = vld [vmem:[#allocation9 + $0x78] sm:$0xff]   ;;  %v13772_v37 = vpop.f32.mrb[62].mxu1 }
 0x280   : > { %v13058_v12 = vcombine.low %v4626_v54, %v4640_v15  ;;  %v13123_v55 = vcombine.low %v5369_v2, %v5373_v39  ;;  %v18154_v32 = vadd.f32 %v13756_v6, %v20736_v50  ;;  %v4644_v41 = vrot.slane %v4642_v17, 4  ;;  %v20737_v15 = vld [vmem:[#allocation32_spill] sm:$0xff] }
 0x281   : > { %v4647_v57 = vrot.slane %v4645_v18, 5  ;;  %v4653_v8 = vrot.slane %v4651_v48, 5  ;;  %v4658_v3 = vrot.slane %v4656_v42, 4  ;;  %v4659_v24 = vshll.u32 %v18126_v43, 16  ;;  %v13773_v18 = vpop.f32.mrb[63].mxu1  ;;  %14732 = vmatpush3.bf16.msra.mxu1 %v15419_v11  ;;  %v20742_v11 = vld [vmem:[#allocation30_spill] sm:$0xff] }
 0x282   : > { %5094 = vmatmul.mubr.bf16.gmra.mrb[148].mxu1 %v20735_v5  ;;  %14716 = vmatmul.mubr.bf16.gmra.mrb[124].mxu0 %v13123_v55  ;;  %v4665_v33 = vshll.u32 %v18114_v22, 16  ;;  %v13043_v21 = vcombine.low %v18119_v1, %v18126_v43  ;;  %v13759_v54 = vadd.f32 %v18023_v61, %v18014_v7  ;;  %v13762_v35 = vadd.f32 %v18040_v44, %v18029_v0  ;;  %v20738_v43 = vld [vmem:[#allocation45_spill] sm:$0xff] }
 0x283   : > { %5101 = vmatprep.mubr.bf16.mxu1 %v13058_v12  ;;  %v4648_v2 = vor.u32 %v4647_v57, %v4644_v41  ;;  %v4661_v6 = vrot.slane %v4659_v24, 5  ;;  %v13765_v27 = vadd.f32 %v18100_v19, %v18095_v63  ;;  %v13768_v17 = vadd.f32 %v18116_v47, %v18109_v20  ;;  %v20739_v0 = vld [vmem:[#allocation33_spill] sm:$0xff]  ;;  %14733 = vmatprep.subr.bf16.mxu1 %v15420_v26 }
 0x284   : > { %v4667_v22 = vrot.slane %v4665_v33, 5  ;;  %v2885_v1 = vadd.f32 %v13759_v54, %v20737_v15  ;;  %v2888_v39 = vadd.f32 %v13762_v35, %v20738_v43  ;;  %v13877_v7 = vadd.f32 %v13876_v56, %v13875_v46  ;;  %v20747_v41 = vld [vmem:[#allocation41_spill] sm:$0xff] }
 0x285   : > { %v4649_v61 = vrot.slane %v4648_v2, 4  ;;  %v4662_v48 = vor.u32 %v4661_v6, %v4658_v3  ;;  %v2893_v44 = vadd.f32 %v13765_v27, %v20739_v0  ;;  %v2896_v42 = vadd.f32 %v13768_v17, %v17893_v49  ;;  %14734 = vmatpush3.bf16.msra.mxu1 %v15420_v26  ;;  %v20749_v3 = vld [vmem:[#allocation55_spill] sm:$0xff]  ;;  %v20755_v2 = vld [vmem:[#allocation36_spill] sm:$0xff] }
 0x286   : > { %v13880_v5 = vadd.f32 %v13879_v60, %v13878_v34  ;;  %v13771_v19 = vadd.f32 %v13770_v30, %v13769_v31  ;;  %v13774_v63 = vadd.f32 %v13773_v18, %v13772_v37  ;;  %v18174_v47 = vadd.f32 %v17934_v51, %v17922_v45  ;;  %v20741_v60 = vld [vmem:[#allocation28_spill] sm:$0xff]  ;;  %v20748_v31 = vld [vmem:[#allocation42_spill] sm:$0xff]  ;;  %v20750_v30 = vld [vmem:[#allocation37_spill] sm:$0xff] }
 0x287   : > { %v4654_v20 = vsel %vm16786_vm12, %v4649_v61, %v4653_v8  ;;  %v4663_v12 = vrot.slane %v4662_v48, 4  ;;  %v18180_v46 = vadd.f32 %v17960_v59, %v17948_v13  ;;  %v18184_v49 = vadd.f32 %v17976_v58, %v17982_v52  ;;  %v20743_v58 = vld [vmem:[#allocation43_spill] sm:$0xff]  ;;  %v13775_v8 = vpop.f32.mrb[64].mxu1  ;;  %v20754_v37 = vld [vmem:[#allocation24_spill] sm:$0xff] }
 0x288   : > { %v20740_v56 = vcombine.low %v18047_v62, %v18066_v36  ;;  %v2901_v45 = vadd.f32 %v13771_v19, %v17899_v16  ;;  %v2904_v51 = vadd.f32 %v13774_v63, %v17907_v10  ;;  %v18193_v34 = vadd.f32 %v18003_v25, %v17985_v9  ;;  %v20744_v52 = vld [vmem:[#allocation31_spill] sm:$0xff]  ;;  %v20746_v62 = vld [vmem:[#allocation40_spill] sm:$0xff]  ;;  %v13776_v33 = vpop.f32.mrb[65].mxu1 }
 0x289   : > { %v13853_v13 = vadd.f32 %v20742_v11, %v20741_v60  ;;  %v4668_v59 = vsel %vm16786_vm12, %v4663_v12, %v4667_v22  ;;  %v13856_v55 = vadd.f32 %v20744_v52, %v20743_v58  ;;  %v13859_v36 = vadd.f32 %v17972_v53, %v17964_v14  ;;  %v20745_v25 = vld [vmem:[#allocation39_spill] sm:$0xff]  ;;  %v20751_v14 = vld [vmem:[#allocation25_spill] sm:$0xff]  ;;  %v13778_v18 = vpop.f32.mrb[66].mxu1  ;;  %v20757_v63 = vld [vmem:[#allocation48_spill] sm:$0xff] }
 0x28a   : > { %5102 = vmatmul.mubr.bf16.gmra.mrb[152].mxu1 %v20740_v56  ;;  %v13862_v16 = vadd.f32 %v17988_v28, %v17979_v23  ;;  %v13059_v10 = vcombine.low %v4654_v20, %v4668_v59  ;;  %v13865_v50 = vadd.f32 %v20746_v62, %v20745_v25  ;;  %v13868_v57 = vadd.f32 %v20748_v31, %v20747_v41  ;;  %v20752_v23 = vld [vmem:[#allocation58_spill] sm:$0xff]  ;;  %v13779_v43 = vpop.f32.mrb[67].mxu1  ;;  %v20756_v48 = vld [vmem:[#allocation47_spill] sm:$0xff] }
 0x28b   : > { %v18206_v9 = vadd.f32 %v13853_v13, %v18036_v29  ;;  %v18213_v24 = vadd.f32 %v13856_v55, %v20749_v3  ;;  %v18216_v26 = vadd.f32 %v13859_v36, %v20750_v30  ;;  %v20753_v28 = vld [vmem:[#allocation22_spill] sm:$0xff]  ;;  %v13874_v6 = vadd.f32 %v20755_v2, %v20754_v37 }
 0x28c   : > { %v18219_v53 = vadd.f32 %v13862_v16, %v20751_v14  ;;  %v13871_v29 = vadd.f32 %v20753_v28, %v20752_v23  ;;  %5109 = vmatprep.mubr.bf16.mxu1 %v13059_v10  ;;  %v18224_v54 = vadd.f32 %v13865_v50, %v18136_v4  ;;  %v18227_v35 = vadd.f32 %v13868_v57, %v18154_v32  ;;  %v20758_v10 = vld [vmem:[#allocation49_spill] sm:$0xff] }
 0x28d   : > { %v18231_v27 = vadd.f32 %v13877_v7, %v2893_v44  ;;  %v13777_v17 = vadd.f32 %v13776_v33, %v13775_v8  ;;  %v18235_v15 = vadd.f32 %v13880_v5, %v2896_v42  ;;  %v18237_v61 = vadd.f32 %v13874_v6, %v2888_v39  ;;  %v13881_v32 = vpop.f32.mrb[60].mxu0  ;;  %v20760_v6 = vld [vmem:[#allocation51_spill] sm:$0xff] }
 0x28e   : > { %v18233_v22 = vadd.f32 %v13871_v29, %v2885_v1  ;;  %v13780_v0 = vadd.f32 %v13779_v43, %v13778_v18  ;;  %v13882_v19 = vpop.f32.mrb[61].mxu0  ;;  %v20761_v43 = vld [vmem:[#allocation52_spill] sm:$0xff] }
 0x28f   : > { %v2909_v4 = vadd.f32 %v13777_v17, %v20756_v48  ;;  %v13883_v12 = vadd.f32 %v13882_v19, %v13881_v32  ;;  %v13884_v7 = vpop.f32.mrb[62].mxu0 }
 0x290   : > { %v2912_v20 = vadd.f32 %v13780_v0, %v20757_v63  ;;  %v13885_v44 = vpop.f32.mrb[63].mxu0 }
 0x291   : > { %v13886_v56 = vadd.f32 %v13885_v44, %v13884_v7  ;;  %v18241_v60 = vadd.f32 %v13883_v12, %v2901_v45 }
 0x292   : > { %5110 = vmatmul.mubr.bf16.gmra.mrb[156].mxu1 %v13043_v21 }
 0x293   : > { %v18243_v1 = vadd.f32 %v13886_v56, %v2904_v51  ;;  %v20759_v51 = vld [vmem:[#allocation50_spill] sm:$0xff] }
 0x295   : > { %v13887_v42 = vpop.f32.mrb[64].mxu0 }
 0x296   : > { %v13888_v5 = vpop.f32.mrb[65].mxu0  ;;  %v13781_v39 = vpop.f32.mrb[68].mxu1 }
 0x297   : > { %v13889_v11 = vadd.f32 %v13888_v5, %v13887_v42  ;;  %v13890_v13 = vpop.f32.mrb[66].mxu0  ;;  %v13782_v59 = vpop.f32.mrb[69].mxu1 }
 0x298   : > { %v13891_v58 = vpop.f32.mrb[67].mxu0  ;;  %v13783_v21 = vadd.f32 %v13782_v59, %v13781_v39  ;;  %v13784_v52 = vpop.f32.mrb[70].mxu1 }
 0x299   : > { %v18245_v55 = vadd.f32 %v13889_v11, %v2909_v4  ;;  %v13892_v36 = vadd.f32 %v13891_v58, %v13890_v13  ;;  %v13785_v16 = vpop.f32.mrb[71].mxu1  ;;  %v20762_v11 = vld [vmem:[#allocation53_spill] sm:$0xff]  ;;  %v20763_v58 = vld [vmem:[#allocation54_spill] sm:$0xff] }
 0x29a   : > { %v2917_v25 = vadd.f32 %v13783_v21, %v20758_v10  ;;  %v13786_v62 = vadd.f32 %v13785_v16, %v13784_v52 }
 0x29b   : > { %v18248_v45 = vadd.f32 %v13892_v36, %v2912_v20 }
 0x29c   : > { %v2920_v50 = vadd.f32 %v13786_v62, %v20759_v51  ;;  %v20764_v51 = vld [vmem:[#allocation56_spill] sm:$0xff] }
 0x29d   : > { %v13893_v41 = vpop.f32.mrb[68].mxu0 }
 0x29e   : > { %v13894_v31 = vpop.f32.mrb[69].mxu0 }
 0x29f   : > { %v13895_v57 = vadd.f32 %v13894_v31, %v13893_v41  ;;  %v13896_v8 = vpop.f32.mrb[70].mxu0 }
 0x2a0   : > { %v13897_v3 = vpop.f32.mrb[71].mxu0  ;;  %v13787_v30 = vpop.f32.mrb[72].mxu1 }
 0x2a1   : > { %v18251_v14 = vadd.f32 %v13895_v57, %v2917_v25  ;;  %v13898_v23 = vadd.f32 %v13897_v3, %v13896_v8  ;;  %v13788_v28 = vpop.f32.mrb[73].mxu1  ;;  %v18263_v25 = vld [vmem:[#allocation9] sm:$0xff]   ;;  %v20765_v8 = vld [vmem:[#allocation57_spill] sm:$0xff] }
 0x2a2   : > { %v13789_v29 = vadd.f32 %v13788_v28, %v13787_v30  ;;  %v13790_v33 = vpop.f32.mrb[74].mxu1  ;;  %14767 = vmatprep.subr.bf16.mxu1 %v18263_v25 }
 0x2a3   : > { %v18253_v37 = vadd.f32 %v13898_v23, %v2920_v50  ;;  %v13791_v2 = vpop.f32.mrb[75].mxu1 }
 0x2a4   : > { %v2925_v17 = vadd.f32 %v13789_v29, %v20760_v6  ;;  %v13792_v18 = vadd.f32 %v13791_v2, %v13790_v33 }
 0x2a6   : > { %v2928_v48 = vadd.f32 %v13792_v18, %v20761_v43 }
 0x2a8   : > { %v13899_v4 = vpop.f32.mrb[72].mxu0 }
 0x2a9   : > { %v13900_v0 = vpop.f32.mrb[73].mxu0 }
 0x2aa   : > { %v13901_v32 = vadd.f32 %v13900_v0, %v13899_v4  ;;  %v13902_v19 = vpop.f32.mrb[74].mxu0 }
 0x2ab   : > { %v13903_v63 = vpop.f32.mrb[75].mxu0  ;;  %v13793_v20 = vpop.f32.mrb[76].mxu1 }
 0x2ac   : > { %v18257_v12 = vadd.f32 %v13901_v32, %v2925_v17  ;;  %v13904_v7 = vadd.f32 %v13903_v63, %v13902_v19  ;;  %v13794_v44 = vpop.f32.mrb[77].mxu1 }
 0x2ad   : > { %v13795_v56 = vadd.f32 %v13794_v44, %v13793_v20  ;;  %v13796_v42 = vpop.f32.mrb[78].mxu1  ;;  %v20766_v44 = vld [vmem:[#allocation35_spill] sm:$0xff] }
 0x2ae   : > { %v18259_v5 = vadd.f32 %v13904_v7, %v2928_v48  ;;  %v13797_v39 = vpop.f32.mrb[79].mxu1 }
 0x2af   : > { %v2933_v13 = vadd.f32 %v13795_v56, %v20762_v11  ;;  %v13798_v59 = vadd.f32 %v13797_v39, %v13796_v42  ;;  %v20767_v11 = vld [vmem:[#allocation23_spill] sm:$0xff] }
 0x2b1   : > { %v2936_v21 = vadd.f32 %v13798_v59, %v20763_v58 }
 0x2b6   : > { %v13799_v52 = vpop.f32.mrb[80].mxu1 }
 0x2b7   : > { %v13800_v36 = vpop.f32.mrb[81].mxu1 }
 0x2b8   : > { %v13801_v16 = vadd.f32 %v13800_v36, %v13799_v52  ;;  %v13802_v10 = vpop.f32.mrb[82].mxu1 }
 0x2b9   : > { %v13803_v62 = vpop.f32.mrb[83].mxu1 }
 0x2ba   : > { %v2941_v50 = vadd.f32 %v13801_v16, %v20764_v51  ;;  %v13804_v41 = vadd.f32 %v13803_v62, %v13802_v10 }
 0x2bc   : > { %v13905_v31 = vpop.f32.mrb[76].mxu0  ;;  %v2944_v3 = vadd.f32 %v13804_v41, %v20765_v8  ;;  %v20768_v8 = vld [vmem:[#allocation26_spill] sm:$0xff] }
 0x2bd   : > { %v13906_v57 = vpop.f32.mrb[77].mxu0 }
 0x2be   : > { %v13907_v30 = vadd.f32 %v13906_v57, %v13905_v31  ;;  %v13908_v23 = vpop.f32.mrb[78].mxu0 }
 0x2bf   : > { %v13909_v28 = vpop.f32.mrb[79].mxu0 }
 0x2c0   : > { %v18268_v29 = vadd.f32 %v13907_v30, %v2933_v13  ;;  %v13910_v33 = vadd.f32 %v13909_v28, %v13908_v23  ;;  %v20769_v23 = vld [vmem:[#allocation29_spill] sm:$0xff] }
 0x2c2   : > { %v18270_v2 = vadd.f32 %v13910_v33, %v2936_v21 }
 0x2c4   : > { %v13911_v6 = vpop.f32.mrb[80].mxu0  ;;  %v13805_v18 = vpop.f32.mrb[84].mxu1 }
 0x2c5   : > { %v13912_v17 = vpop.f32.mrb[81].mxu0  ;;  %v13806_v4 = vpop.f32.mrb[85].mxu1 }
 0x2c6   : > { %v13913_v43 = vadd.f32 %v13912_v17, %v13911_v6  ;;  %v13914_v48 = vpop.f32.mrb[82].mxu0  ;;  %v13807_v32 = vadd.f32 %v13806_v4, %v13805_v18  ;;  %v13808_v19 = vpop.f32.mrb[86].mxu1 }
 0x2c7   : > { %v13915_v0 = vpop.f32.mrb[83].mxu0  ;;  %v13809_v7 = vpop.f32.mrb[87].mxu1 }
 0x2c8   : > { %v18272_v63 = vadd.f32 %v13913_v43, %v2941_v50  ;;  %v13916_v20 = vadd.f32 %v13915_v0, %v13914_v48  ;;  %v2949_v56 = vadd.f32 %v13807_v32, %v20766_v44  ;;  %v13810_v42 = vadd.f32 %v13809_v7, %v13808_v19 }
 0x2ca   : > { %v18275_v39 = vadd.f32 %v13916_v20, %v2944_v3  ;;  %v2952_v13 = vadd.f32 %v13810_v42, %v20767_v11 }
 0x2cc   : > { %v13917_v59 = vpop.f32.mrb[84].mxu0 }
 0x2cd   : > { %v13918_v58 = vpop.f32.mrb[85].mxu0 }
 0x2ce   : > { %v13919_v21 = vadd.f32 %v13918_v58, %v13917_v59  ;;  %v13920_v52 = vpop.f32.mrb[86].mxu0 }
 0x2cf   : > { %v13921_v36 = vpop.f32.mrb[87].mxu0  ;;  %v13811_v62 = vpop.f32.mrb[88].mxu1 }
 0x2d0   : > { %v18278_v16 = vadd.f32 %v13919_v21, %v2949_v56  ;;  %v13922_v10 = vadd.f32 %v13921_v36, %v13920_v52  ;;  %v13812_v51 = vpop.f32.mrb[89].mxu1  ;;  %v20770_v56 = vld [vmem:[#allocation46_spill] sm:$0xff] }
 0x2d1   : > { %v13813_v41 = vadd.f32 %v13812_v51, %v13811_v62  ;;  %v13814_v31 = vpop.f32.mrb[90].mxu1 }
 0x2d2   : > { %v18280_v50 = vadd.f32 %v13922_v10, %v2952_v13  ;;  %v13815_v57 = vpop.f32.mrb[91].mxu1  ;;  %v20771_v13 = vld [vmem:[#allocation34_spill] sm:$0xff] }
 0x2d3   : > { %v2957_v3 = vadd.f32 %v13813_v41, %v20768_v8  ;;  %v13816_v30 = vadd.f32 %v13815_v57, %v13814_v31 }
 0x2d5   : > { %v2960_v28 = vadd.f32 %v13816_v30, %v20769_v23 }
 0x2d6   : > { %v13923_v33 = vpop.f32.mrb[88].mxu0 }
 0x2d7   : > { %v13924_v6 = vpop.f32.mrb[89].mxu0 }
 0x2d8   : > { %v13925_v17 = vadd.f32 %v13924_v6, %v13923_v33  ;;  %v13926_v18 = vpop.f32.mrb[90].mxu0 }
 0x2d9   : > { %v13927_v43 = vpop.f32.mrb[91].mxu0 }
 0x2da   : > { %v18284_v48 = vadd.f32 %v13925_v17, %v2957_v3  ;;  %v13928_v4 = vadd.f32 %v13927_v43, %v13926_v18 }
 0x2db   : > { %v13817_v0 = vpop.f32.mrb[92].mxu1 }
 0x2dc   : > { %v13818_v32 = vpop.f32.mrb[93].mxu1  ;;  %v18286_v19 = vadd.f32 %v13928_v4, %v2960_v28 }
 0x2dd   : > { %v13819_v20 = vadd.f32 %v13818_v32, %v13817_v0  ;;  %v13820_v7 = vpop.f32.mrb[94].mxu1 }
 0x2de   : > { %v13821_v44 = vpop.f32.mrb[95].mxu1 }
 0x2df   : > { %v2965_v42 = vadd.f32 %v13819_v20, %v20770_v56  ;;  %v13822_v11 = vadd.f32 %v13821_v44, %v13820_v7  ;;  %v18300_v44 = vld [vmem:[%s20548_s2] ss:$0 sm:$0xff] }
 0x2e1   : > { %v2968_v59 = vadd.f32 %v13822_v11, %v20771_v13 }
 0x2e5   : > { %v13951_v58 = vpop.f32.mrb[96].mxu1 }
 0x2e6   : > { %v13952_v21 = vpop.f32.mrb[97].mxu1 }
 0x2e7   : > { %v13953_v52 = vadd.f32 %v13952_v21, %v13951_v58  ;;  %v13954_v36 = vpop.f32.mrb[98].mxu1 }
 0x2e8   : > { %v13955_v10 = vpop.f32.mrb[99].mxu1 }
 0x2e9   : > { %v13956_v62 = vadd.f32 %v13955_v10, %v13954_v36  ;;  %v5118_v51 = vadd.f32 %v13953_v52, %v18174_v47 }
 0x2eb   : > { %v5119_v57 = vadd.f32 %v13956_v62, %v18180_v46 }
 0x2ec   : > { %v13929_v41 = vpop.f32.mrb[92].mxu0 }
 0x2ed   : > { %v13930_v31 = vpop.f32.mrb[93].mxu0 }
 0x2ee   : > { %v13931_v8 = vadd.f32 %v13930_v31, %v13929_v41  ;;  %v13932_v3 = vpop.f32.mrb[94].mxu0 }
 0x2ef   : > { %v13933_v30 = vpop.f32.mrb[95].mxu0 }
 0x2f0   : > { %v18292_v23 = vadd.f32 %v13931_v8, %v2965_v42  ;;  %v13934_v28 = vadd.f32 %v13933_v30, %v13932_v3 }
 0x2f2   : > { %v18294_v33 = vadd.f32 %v13934_v28, %v2968_v59 }
 0x2f3   : > { %v13957_v6 = vpop.f32.mrb[100].mxu1 }
 0x2f4   : > { %v13958_v17 = vpop.f32.mrb[101].mxu1 }
 0x2f5   : > { %v14689_v18 = vpop.f32.mrb[96].mxu0  ;;  %v13959_v43 = vadd.f32 %v13958_v17, %v13957_v6  ;;  %v13960_v4 = vpop.f32.mrb[102].mxu1  ;;  %v15422_v6 = vld [vmem:[#allocation9 + $0x8] sm:$0xff]  }
 0x2f6   : > { %v5536_v0 = vpop.f32.mrb[97].mxu0  ;;  %v13961_v32 = vpop.f32.mrb[103].mxu1 }
 0x2f7   : > { %v5663_v47 = vadd.f32 %v5536_v0, %v5118_v51  ;;  %v14690_v20 = vpop.f32.mrb[98].mxu0  ;;  %v5120_v7 = vadd.f32 %v13959_v43, %v18184_v49  ;;  %v13962_v46 = vadd.f32 %v13961_v32, %v13960_v4  ;;  %v15423_v32 = vld [vmem:[#allocation9 + $0x10] sm:$0xff]  }
 0x2f8   : > { %v5539_v56 = vpop.f32.mrb[99].mxu0 }
 0x2f9   : > { %v5664_v42 = vadd.f32 %v5539_v56, %v5119_v57  ;;  %v5665_v11 = vadd.f32 %v14689_v18, %v5120_v7  ;;  %v5121_v13 = vadd.f32 %v13962_v46, %v18193_v34  ;;  %v5702_v59 = vadd.f32 %v18300_v44, %v5663_v47 }
 0x2fb   : > { %v5703_v58 = vadd.f32 %v18300_v44, %v5664_v42  ;;  %v5666_v21 = vadd.f32 %v14690_v20, %v5121_v13  ;;  %v13963_v52 = vpop.f32.mrb[104].mxu1  ;;  %v5704_v49 = vadd.f32 %v18300_v44, %v5665_v11 }
 0x2fc   : > { %v13964_v36 = vpop.f32.mrb[105].mxu1 }
 0x2fd   : > { %v5705_v10 = vadd.f32 %v18300_v44, %v5666_v21  ;;  %v18307_v62 = vpack.c.bf16 %v5703_v58, %v5702_v59  ;;  %v13965_v51 = vadd.f32 %v13964_v36, %v13963_v52  ;;  %v13966_v41 = vpop.f32.mrb[106].mxu1  ;;  %v14693_v31 = vpop.f32.mrb[100].mxu0  ;;  %v15424_v58 = vld [vmem:[#allocation9 + $0x18] sm:$0xff]  }
 0x2fe   : > { %v13967_v57 = vpop.f32.mrb[107].mxu1  ;;  %v5552_v8 = vpop.f32.mrb[101].mxu0 }
 0x2ff   : > { %v18309_v3 = vpack.c.bf16 %v5705_v10, %v5704_v49  ;;  %14735 = vmatprep.mubr.bf16.mxu1 %v18307_v62  ;;  %v13968_v34 = vadd.f32 %v13967_v57, %v13966_v41  ;;  %v5122_v30 = vadd.f32 %v13965_v51, %v18206_v9  ;;  %v14694_v28 = vpop.f32.mrb[102].mxu0  ;;  %v15425_v51 = vld [vmem:[#allocation9 + $0x20] sm:$0xff]  }
 0x300   : > { %v5555_v17 = vpop.f32.mrb[103].mxu0 }
 0x301   : > { %v5667_v18 = vadd.f32 %v5552_v8, %v5122_v30  ;;  %14736 = vmatmul.mubr.bf16.vlgmr.msra.gmra.mrb[160].mxu1 %v18309_v3  ;;  %v5123_v43 = vadd.f32 %v13968_v34, %v18213_v24 }
 0x302   : > { %14768 = vmatpush3.bf16.msra.mxu1 %v18263_v25 }
 0x303   : > { %v5668_v4 = vadd.f32 %v5555_v17, %v5123_v43  ;;  %v13969_v0 = vpop.f32.mrb[108].mxu1  ;;  %14769 = vmatprep.subr.bf16.mxu1 %v15422_v6  ;;  %v5706_v20 = vadd.f32 %v18300_v44, %v5667_v18  ;;  %v15426_v17 = vld [vmem:[#allocation9 + $0x28] sm:$0xff]  }
 0x304   : > { %v13970_v47 = vpop.f32.mrb[109].mxu1 }
 0x305   : > { %v5707_v7 = vadd.f32 %v18300_v44, %v5668_v4  ;;  %v13971_v9 = vadd.f32 %v13970_v47, %v13969_v0  ;;  %v13972_v46 = vpop.f32.mrb[110].mxu1  ;;  %v14697_v56 = vpop.f32.mrb[104].mxu0  ;;  %v15427_v0 = vld [vmem:[#allocation9 + $0x30] sm:$0xff]  }
 0x306   : > { %v13973_v42 = vpop.f32.mrb[111].mxu1  ;;  %v5568_v11 = vpop.f32.mrb[105].mxu0  ;;  %14770 = vmatpush3.bf16.msra.mxu1 %v15422_v6 }
 0x307   : > { %v5124_v13 = vadd.f32 %v13971_v9, %v18216_v26  ;;  %v13974_v24 = vadd.f32 %v13973_v42, %v13972_v46  ;;  %v18319_v59 = vpack.c.bf16 %v5707_v7, %v5706_v20  ;;  %v14698_v25 = vpop.f32.mrb[106].mxu0  ;;  %14771 = vmatprep.subr.bf16.mxu1 %v15423_v32 }
 0x308   : > { %v5571_v21 = vpop.f32.mrb[107].mxu0 }
 0x309   : > { %v5669_v52 = vadd.f32 %v14693_v31, %v5124_v13  ;;  %v5125_v36 = vadd.f32 %v13974_v24, %v18219_v53  ;;  %14739 = vmatprep.mubr.bf16.mxu1 %v18319_v59 }
 0x30a   : > { %14772 = vmatpush3.bf16.msra.mxu1 %v15423_v32 }
 0x30b   : > { %v5670_v49 = vadd.f32 %v14694_v28, %v5125_v36  ;;  %v13975_v10 = vpop.f32.mrb[112].mxu1  ;;  %14773 = vmatprep.subr.bf16.mxu1 %v15424_v58  ;;  %v5708_v8 = vadd.f32 %v18300_v44, %v5669_v52 }
 0x30c   : > { %v13976_v41 = vpop.f32.mrb[113].mxu1 }
 0x30d   : > { %v13977_v57 = vadd.f32 %v13976_v41, %v13975_v10  ;;  %v13978_v26 = vpop.f32.mrb[114].mxu1  ;;  %v5709_v34 = vadd.f32 %v18300_v44, %v5670_v49 }
 0x30e   : > { %v13979_v30 = vpop.f32.mrb[115].mxu1  ;;  %14774 = vmatpush3.bf16.msra.mxu1 %v15424_v58 }
 0x30f   : > { %v13980_v6 = vadd.f32 %v13979_v30, %v13978_v26  ;;  %v5126_v31 = vadd.f32 %v13977_v57, %v18224_v54  ;;  %v18326_v53 = vpack.c.bf16 %v5709_v34, %v5708_v8  ;;  %14775 = vmatprep.subr.bf16.mxu1 %v15425_v51 }
 0x311   : > { %v5671_v28 = vadd.f32 %v5568_v11, %v5126_v31  ;;  %14740 = vmatmul.mubr.bf16.gmra.mrb[164].mxu1 %v18326_v53  ;;  %v5127_v18 = vadd.f32 %v13980_v6, %v18227_v35 }
 0x312   : > { %14776 = vmatpush3.bf16.msra.mxu1 %v15425_v51  ;;  %v14701_v47 = vpop.f32.mrb[108].mxu0  ;;  %v18337_v51 = vld [vmem:[#allocation9 + $0x80] sm:$0xff]  }
 0x313   : > { %v5672_v43 = vadd.f32 %v5571_v21, %v5127_v18  ;;  %v13981_v4 = vpop.f32.mrb[116].mxu1  ;;  %14777 = vmatprep.subr.bf16.mxu1 %v15426_v17  ;;  %v5710_v20 = vadd.f32 %v18300_v44, %v5671_v28  ;;  %v5584_v46 = vpop.f32.mrb[109].mxu0  ;;  %v15428_v21 = vld [vmem:[#allocation9 + $0x38] sm:$0xff]  }
 0x314   : > { %v13982_v32 = vpop.f32.mrb[117].mxu1  ;;  %v14702_v11 = vpop.f32.mrb[110].mxu0 }
 0x315   : > { %v5711_v54 = vadd.f32 %v18300_v44, %v5672_v43  ;;  %v13983_v7 = vadd.f32 %v13982_v32, %v13981_v4  ;;  %v13984_v9 = vpop.f32.mrb[118].mxu1  ;;  %v5587_v58 = vpop.f32.mrb[111].mxu0 }
 0x316   : > { %v13985_v42 = vpop.f32.mrb[119].mxu1  ;;  %14778 = vmatpush3.bf16.msra.mxu1 %v15426_v17 }
 0x317   : > { %v5128_v13 = vadd.f32 %v13983_v7, %v18233_v22  ;;  %v13986_v35 = vadd.f32 %v13985_v42, %v13984_v9  ;;  %v18333_v24 = vpack.c.bf16 %v5711_v54, %v5710_v20  ;;  %14779 = vmatprep.subr.bf16.mxu1 %v15427_v0 }
 0x319   : > { %v5673_v52 = vadd.f32 %v14697_v56, %v5128_v13  ;;  %v5129_v36 = vadd.f32 %v13986_v35, %v18237_v61  ;;  %14743 = vmatprep.mubr.bf16.mxu1 %v18333_v24 }
 0x31a   : > { %14780 = vmatpush3.bf16.msra.mxu1 %v15427_v0 }
 0x31b   : > { %v5674_v49 = vadd.f32 %v14698_v25, %v5129_v36  ;;  %v13987_v10 = vpop.f32.mrb[120].mxu1  ;;  %14781 = vmatprep.subr.bf16.mxu1 %v15428_v21  ;;  %v5712_v26 = vadd.f32 %v18300_v44, %v5673_v52 }
 0x31c   : > { %v13988_v41 = vpop.f32.mrb[121].mxu1 }
 0x31d   : > { %v13989_v57 = vadd.f32 %v13988_v41, %v13987_v10  ;;  %v13990_v22 = vpop.f32.mrb[122].mxu1  ;;  %v5713_v8 = vadd.f32 %v18300_v44, %v5674_v49 }
 0x31e   : > { %v13991_v34 = vpop.f32.mrb[123].mxu1  ;;  %14782 = vmatpush3.bf16.msra.mxu1 %v15428_v21 }
 0x31f   : > { %v13992_v56 = vadd.f32 %v13991_v34, %v13990_v22  ;;  %v5130_v61 = vadd.f32 %v13989_v57, %v18231_v27  ;;  %v18342_v30 = vpack.c.bf16 %v5713_v8, %v5712_v26  ;;  %14807 = vmatprep.subr.bf16.mxu1 %v18337_v51 }
 0x321   : > { %v5675_v25 = vadd.f32 %v5584_v46, %v5130_v61  ;;  %14744 = vmatmul.mubr.bf16.gmra.mrb[168].mxu1 %v18342_v30  ;;  %v5131_v6 = vadd.f32 %v13992_v56, %v18235_v15 }
 0x323   : > { %v5676_v31 = vadd.f32 %v5587_v58, %v5131_v6  ;;  %v5714_v43 = vadd.f32 %v18300_v44, %v5675_v25 }
 0x324   : > { %v13993_v17 = vpop.f32.mrb[124].mxu1  ;;  %v14705_v18 = vpop.f32.mrb[112].mxu0 }
 0x325   : > { %v13994_v28 = vpop.f32.mrb[125].mxu1  ;;  %v5715_v4 = vadd.f32 %v18300_v44, %v5676_v31  ;;  %v5600_v27 = vpop.f32.mrb[113].mxu0 }
 0x326   : > { %v13995_v0 = vadd.f32 %v13994_v28, %v13993_v17  ;;  %v13996_v32 = vpop.f32.mrb[126].mxu1  ;;  %v14706_v54 = vpop.f32.mrb[114].mxu0 }
 0x327   : > { %v13997_v20 = vpop.f32.mrb[127].mxu1  ;;  %v18350_v46 = vpack.c.bf16 %v5715_v4, %v5714_v43  ;;  %v5603_v42 = vpop.f32.mrb[115].mxu0 }
 0x328   : > { %v5132_v7 = vadd.f32 %v13995_v0, %v18241_v60  ;;  %v13998_v9 = vadd.f32 %v13997_v20, %v13996_v32 }
 0x329   : > { %14747 = vmatprep.mubr.bf16.mxu1 %v18350_v46 }
 0x32a   : > { %v5677_v15 = vadd.f32 %v14701_v47, %v5132_v7  ;;  %v5133_v13 = vadd.f32 %v13998_v9, %v18243_v1 }
 0x32c   : > { %v5678_v35 = vadd.f32 %v14702_v11, %v5133_v13  ;;  %v5716_v49 = vadd.f32 %v18300_v44, %v5677_v15 }
 0x32d   : > { %v13999_v58 = vpop.f32.mrb[128].mxu1 }
 0x32e   : > { %v14000_v21 = vpop.f32.mrb[129].mxu1  ;;  %v5717_v10 = vadd.f32 %v18300_v44, %v5678_v35 }
 0x32f   : > { %v14001_v52 = vadd.f32 %v14000_v21, %v13999_v58  ;;  %v14002_v36 = vpop.f32.mrb[130].mxu1 }
 0x330   : > { %v14003_v41 = vpop.f32.mrb[131].mxu1  ;;  %v18357_v22 = vpack.c.bf16 %v5717_v10, %v5716_v49 }
 0x331   : > { %v14004_v60 = vadd.f32 %v14003_v41, %v14002_v36  ;;  %v5134_v57 = vadd.f32 %v14001_v52, %v18245_v55 }
 0x332   : > { %14748 = vmatmul.mubr.bf16.gmra.mrb[172].mxu1 %v18357_v22 }
 0x333   : > { %v5679_v47 = vadd.f32 %v5600_v27, %v5134_v57  ;;  %v5135_v1 = vadd.f32 %v14004_v60, %v18248_v45 }
 0x335   : > { %v5680_v11 = vadd.f32 %v5603_v42, %v5135_v1  ;;  %v14005_v26 = vpop.f32.mrb[132].mxu1  ;;  %v5718_v34 = vadd.f32 %v18300_v44, %v5679_v47 }
 0x336   : > { %v14006_v8 = vpop.f32.mrb[133].mxu1  ;;  %v14709_v31 = vpop.f32.mrb[116].mxu0 }
 0x337   : > { %v5719_v56 = vadd.f32 %v18300_v44, %v5680_v11  ;;  %v14007_v61 = vadd.f32 %v14006_v8, %v14005_v26  ;;  %v14008_v25 = vpop.f32.mrb[134].mxu1  ;;  %v5616_v43 = vpop.f32.mrb[117].mxu0 }
 0x338   : > { %v14009_v6 = vpop.f32.mrb[135].mxu1  ;;  %v14710_v4 = vpop.f32.mrb[118].mxu0 }
 0x339   : > { %v5136_v55 = vadd.f32 %v14007_v61, %v18251_v14  ;;  %v14010_v17 = vadd.f32 %v14009_v6, %v14008_v25  ;;  %v18364_v28 = vpack.c.bf16 %v5719_v56, %v5718_v34  ;;  %v5619_v32 = vpop.f32.mrb[119].mxu0 }
 0x33b   : > { %v5681_v0 = vadd.f32 %v14705_v18, %v5136_v55  ;;  %v5137_v45 = vadd.f32 %v14010_v17, %v18253_v37  ;;  %14751 = vmatprep.mubr.bf16.mxu1 %v18364_v28 }
 0x33d   : > { %v5682_v27 = vadd.f32 %v14706_v54, %v5137_v45  ;;  %v14011_v20 = vpop.f32.mrb[136].mxu1  ;;  %v5720_v15 = vadd.f32 %v18300_v44, %v5681_v0 }
 0x33e   : > { %v14012_v7 = vpop.f32.mrb[137].mxu1 }
 0x33f   : > { %v14013_v9 = vadd.f32 %v14012_v7, %v14011_v20  ;;  %v14014_v42 = vpop.f32.mrb[138].mxu1  ;;  %v5721_v14 = vadd.f32 %v18300_v44, %v5682_v27  ;;  %v15438_v20 = vld [vmem:[#allocation10 + $0x80] sm:$0xff]   ;;  %v15439_v7 = vld [vmem:[#allocation10 + $0xc8] sm:$0xff]  }
 0x340   : > { %v14015_v13 = vpop.f32.mrb[139].mxu1 }
 0x341   : > { %v14016_v35 = vadd.f32 %v14015_v13, %v14014_v42  ;;  %v5138_v58 = vadd.f32 %v14013_v9, %v18257_v12  ;;  %v18371_v21 = vpack.c.bf16 %v5721_v14, %v5720_v15  ;;  %v15440_v14 = vld [vmem:[#allocation10 + $0x88] sm:$0xff]  }
 0x343   : > { %v5683_v18 = vadd.f32 %v5616_v43, %v5138_v58  ;;  %14752 = vmatmul.mubr.bf16.gmra.mrb[176].mxu1 %v18371_v21  ;;  %v5139_v37 = vadd.f32 %v14016_v35, %v18259_v5 }
 0x345   : > { %v5684_v54 = vadd.f32 %v5619_v32, %v5139_v37  ;;  %v14017_v52 = vpop.f32.mrb[140].mxu1  ;;  %v5722_v49 = vadd.f32 %v18300_v44, %v5683_v18  ;;  %v15441_v37 = vld [vmem:[#allocation10 + $0xd0] sm:$0xff]  }
 0x346   : > { %v14018_v36 = vpop.f32.mrb[141].mxu1  ;;  %v14713_v47 = vpop.f32.mrb[120].mxu0 }
 0x347   : > { %v5723_v10 = vadd.f32 %v18300_v44, %v5684_v54  ;;  %v14019_v41 = vadd.f32 %v14018_v36, %v14017_v52  ;;  %v14020_v60 = vpop.f32.mrb[142].mxu1  ;;  %v5632_v26 = vpop.f32.mrb[121].mxu0 }
 0x348   : > { %v14021_v57 = vpop.f32.mrb[143].mxu1  ;;  %v14714_v8 = vpop.f32.mrb[122].mxu0 }
 0x349   : > { %v5140_v12 = vadd.f32 %v14019_v41, %v18268_v29  ;;  %v14022_v1 = vadd.f32 %v14021_v57, %v14020_v60  ;;  %v18378_v11 = vpack.c.bf16 %v5723_v10, %v5722_v49  ;;  %v5635_v56 = vpop.f32.mrb[123].mxu0  ;;  %v15442_v60 = vld [vmem:[#allocation10 + $0x90] sm:$0xff]  }
 0x34b   : > { %v5685_v34 = vadd.f32 %v14709_v31, %v5140_v12  ;;  %v5141_v5 = vadd.f32 %v14022_v1, %v18270_v2  ;;  %14755 = vmatprep.mubr.bf16.mxu1 %v18378_v11 }
 0x34d   : > { %v5686_v61 = vadd.f32 %v14710_v4, %v5141_v5  ;;  %v14023_v25 = vpop.f32.mrb[144].mxu1  ;;  %v5724_v43 = vadd.f32 %v18300_v44, %v5685_v34  ;;  %v15437_v4 = vld [vmem:[#allocation10 + $0xc0] sm:$0xff]  }
 0x34e   : > { %v14024_v6 = vpop.f32.mrb[145].mxu1  ;;  %14135 = vmatprep.subr.bf16.mxu0 %v15437_v4 }
 0x34f   : > { %v14025_v55 = vadd.f32 %v14024_v6, %v14023_v25  ;;  %v14026_v17 = vpop.f32.mrb[146].mxu1  ;;  %v5725_v29 = vadd.f32 %v18300_v44, %v5686_v61  ;;  %14136 = vmatpush3.bf16.msra.mxu0 %v15438_v20 }
 0x350   : > { %v14027_v0 = vpop.f32.mrb[147].mxu1  ;;  %14137 = vmatprep.subr.bf16.mxu0 %v15439_v7 }
 0x351   : > { %v14028_v45 = vadd.f32 %v14027_v0, %v14026_v17  ;;  %v5142_v32 = vadd.f32 %v14025_v55, %v18272_v63  ;;  %v18385_v27 = vpack.c.bf16 %v5725_v29, %v5724_v43 }
 0x353   : > { %v5687_v31 = vadd.f32 %v5632_v26, %v5142_v32  ;;  %14756 = vmatmul.mubr.bf16.gmra.mrb[180].mxu1 %v18385_v27  ;;  %v5143_v2 = vadd.f32 %v14028_v45, %v18275_v39  ;;  %14138 = vmatpush3.bf16.msra.mxu0 %v15440_v14 }
 0x354   : > { %14139 = vmatprep.subr.bf16.mxu0 %v15441_v37  ;;  %v15457_v37 = vld [vmem:[#allocation10 + $0x58] sm:$0xff]  }
 0x355   : > { %v5688_v9 = vadd.f32 %v5635_v56, %v5143_v2  ;;  %v14029_v42 = vpop.f32.mrb[148].mxu1  ;;  %v5726_v13 = vadd.f32 %v18300_v44, %v5687_v31  ;;  %v14717_v18 = vpop.f32.mrb[124].mxu0 }
 0x356   : > { %v14030_v15 = vpop.f32.mrb[149].mxu1  ;;  %v5648_v39 = vpop.f32.mrb[125].mxu0 }
 0x357   : > { %v5727_v63 = vadd.f32 %v18300_v44, %v5688_v9  ;;  %v14031_v35 = vadd.f32 %v14030_v15, %v14029_v42  ;;  %v14032_v58 = vpop.f32.mrb[150].mxu1  ;;  %v14718_v10 = vpop.f32.mrb[126].mxu0  ;;  %14140 = vmatpush3.bf16.msra.mxu0 %v15442_v60  ;;  %v15466_v60 = vld [vmem:[#allocation10 + $0x70] sm:$0xff]  }
 0x358   : > { %v14033_v54 = vpop.f32.mrb[151].mxu1  ;;  %v5651_v41 = vpop.f32.mrb[127].mxu0 }
 0x359   : > { %v5144_v52 = vadd.f32 %v14031_v35, %v18278_v16  ;;  %v14034_v36 = vadd.f32 %v14033_v54, %v14032_v58  ;;  %v18392_v49 = vpack.c.bf16 %v5727_v63, %v5726_v13  ;;  %v15430_v13 = vld [vmem:[#allocation9 + $0x88] sm:$0xff]   ;;  %v15453_v63 = vld [vmem:[#allocation10 + $0x50] sm:$0xff]   ;;  %v15458_v54 = vld [vmem:[#allocation10 + $0x18] sm:$0xff]  }
 0x35a   : > { %v15455_v35 = vld [vmem:[#allocation10 + $0x10] sm:$0xff]  }
 0x35b   : > { %v5689_v57 = vadd.f32 %v14713_v47, %v5144_v52  ;;  %v5145_v12 = vadd.f32 %v14034_v36, %v18280_v50  ;;  %14759 = vmatprep.mubr.bf16.mxu1 %v18392_v49  ;;  %v15454_v58 = vld [vmem:[#allocation10 + $0xf0] sm:$0xff]   ;;  %v15461_v52 = vld [vmem:[#allocation10 + $0x20] sm:$0xff]   ;;  %v15463_v36 = vld [vmem:[#allocation10 + $0x68] sm:$0xff]  }
 0x35d   : > { %v5690_v1 = vadd.f32 %v14714_v8, %v5145_v12  ;;  %v14035_v26 = vpop.f32.mrb[152].mxu1  ;;  %v5728_v16 = vadd.f32 %v18300_v44, %v5689_v57  ;;  %v15467_v57 = vld [vmem:[#allocation10 + $0x30] sm:$0xff]   ;;  %v15471_v12 = vld [vmem:[#allocation10 + $0x78] sm:$0xff]  }
 0x35e   : > { %v14036_v34 = vpop.f32.mrb[153].mxu1 }
 0x35f   : > { %v14037_v5 = vadd.f32 %v14036_v34, %v14035_v26  ;;  %v14038_v56 = vpop.f32.mrb[154].mxu1  ;;  %v5729_v61 = vadd.f32 %v18300_v44, %v5690_v1  ;;  %v15472_v1 = vld [vmem:[#allocation10 + $0x38] sm:$0xff]   ;;  %v15468_v26 = vld [vmem:[#allocation10 + $0x140] sm:$0xff]  }
 0x360   : > { %v14039_v25 = vpop.f32.mrb[155].mxu1  ;;  %v18432_v34 = vld [vmem:[#allocation2] sm:$0xf] }
 0x361   : > { %v14040_v6 = vadd.f32 %v14039_v25, %v14038_v56  ;;  %v5146_v55 = vadd.f32 %v14037_v5, %v18284_v48  ;;  %v18399_v47 = vpack.c.bf16 %v5729_v61, %v5728_v16  ;;  %v7256_v5 = vld [vmem:[#allocation2 + $0x50] sm:$0xf]  ;;  %v7313_v56 = vshrl.u32 %v18432_v34, 16 }
 0x362   : > { %v7316_v16 = vshll.u32 %v18432_v34, 16  ;;  %v7425_v61 = vshrl.u32 %v7256_v5, 16  ;;  %v7428_v25 = vshll.u32 %v7256_v5, 16 }
 0x363   : > { %v5691_v50 = vadd.f32 %v5648_v39, %v5146_v55  ;;  %14760 = vmatmul.mubr.bf16.gmra.mrb[184].mxu1 %v18399_v47  ;;  %v5147_v8 = vadd.f32 %v14040_v6, %v18286_v19  ;;  %v15459_v39 = vld [vmem:[#allocation10 + $0x60] sm:$0xff]   ;;  %v7315_v6 = vrot.slane %v7313_v56, 4 }
 0x364   : > { %v7318_v55 = vrot.slane %v7316_v16, 5 }
 0x365   : > { %v5692_v17 = vadd.f32 %v5651_v41, %v5147_v8  ;;  %v14041_v43 = vpop.f32.mrb[156].mxu1  ;;  %v5730_v0 = vadd.f32 %v18300_v44, %v5691_v50  ;;  %v15462_v41 = vld [vmem:[#allocation10 + $0xb8] sm:$0xff]   ;;  %v7430_v50 = vrot.slane %v7428_v25, 5  ;;  %v7280_v8 = vld [vmem:[#allocation2 + $0x4] sm:$0x1] }
 0x366   : > { %v14042_v29 = vpop.f32.mrb[157].mxu1  ;;  %v7203_v25 = vld [vmem:[#allocation2 + $0xfc] sm:$0x1] }
 0x367   : > { %v5731_v45 = vadd.f32 %v18300_v44, %v5692_v17  ;;  %v14043_v32 = vadd.f32 %v14042_v29, %v14041_v43  ;;  %v14044_v31 = vpop.f32.mrb[158].mxu1  ;;  %v7952_v17 = vld [vmem:[#allocation2] sm:$0xe]  ;;  %v7319_v43 = vor.u32 %v7318_v55, %v7315_v6  ;;  %v7322_v29 = vshll.u32 %v7280_v8, 16 }
 0x368   : > { %v14045_v2 = vpop.f32.mrb[159].mxu1 }
 0x369   : > { %v5148_v4 = vadd.f32 %v14043_v32, %v18292_v23  ;;  %v14046_v48 = vadd.f32 %v14045_v2, %v14044_v31  ;;  %v5748_v20 = vpack.c.bf16 %v5731_v45, %v5730_v0  ;;  %v15431_v23 = vld [vmem:[#allocation9 + $0x90] sm:$0xff]   ;;  %v18439_v0 = vld [vmem:[%s20550_s4] ss:$0 sm:$0xff] }
 0x36a   : > { %v7288_v45 = vld [vmem:[#allocation2 + $0x54] sm:$0x1]  ;;  %v7976_v32 = vld [vmem:[#allocation2 + $0xf0] sm:$0xe] }
 0x36b   : > { %v5693_v7 = vadd.f32 %v14717_v18, %v5148_v4  ;;  %v5149_v9 = vadd.f32 %v14046_v48, %v18294_v33  ;;  %14763 = vmatprep.mubr.bf16.mxu1 %v5748_v20  ;;  %v15432_v33 = vld [vmem:[#allocation9 + $0x98] sm:$0xff]   ;;  %v15456_v18 = vld [vmem:[#allocation10 + $0xb0] sm:$0xff]   ;;  %v7434_v4 = vshll.u32 %v7288_v45, 16 }
 0x36c   : > { %v7960_v31 = vld [vmem:[#allocation2 + $0x50] sm:$0xe]  ;;  %v7304_v48 = vld [vmem:[#allocation2 + $0xf4] sm:$0x1] }
 0x36d   : > { %v5694_v42 = vadd.f32 %v14718_v10, %v5149_v9  ;;  %v5732_v19 = vadd.f32 %v18300_v44, %v5693_v7  ;;  %v15464_v10 = vld [vmem:[#allocation10 + $0x28] sm:$0xff]   ;;  %v13222_v7 = vrot.slane %v7952_v17, 9  ;;  %v8050_v9 = vrot.slane %v7280_v8, 5 }
 0x36f   : > { %v5733_v15 = vadd.f32 %v18300_v44, %v5694_v42  ;;  %v15433_v44 = vld [vmem:[#allocation9 + $0xa0] sm:$0xff]  }
 0x371   : > { %v5749_v14 = vpack.c.bf16 %v5733_v15, %v5732_v19  ;;  %v18442_v15 = vrot.slane %v7319_v43, 4 }
 0x373   : > { %14764 = vmatmul.mubr.bf16.gmra.mrb[188].mxu1 %v5749_v14 }
 0x374   : > { %14783 = vmatprep.mubr.bf16.mxu1 %v18307_v62  ;;  %v15434_v62 = vld [vmem:[#allocation9 + $0xa8] sm:$0xff]  }
 0x37b   : > { %14784 = vmatmul.mubr.bf16.vlgmr.msra.gmra.mrb[168].mxu1 %v18309_v3  ;;  %v15435_v3 = vld [vmem:[#allocation9 + $0xb0] sm:$0xff]  }
 0x37c   : > { %14787 = vmatprep.mubr.bf16.mxu1 %v18319_v59  ;;  %14808 = vmatpush3.bf16.msra.mxu1 %v18337_v51  ;;  %v15436_v59 = vld [vmem:[#allocation9 + $0xb8] sm:$0xff]   ;;  %v15445_v51 = vld [vmem:[#allocation10 + $0xe0] sm:$0xff]  }
 0x37d   : > { %14809 = vmatprep.subr.bf16.mxu1 %v15430_v13 }
 0x380   : > { %14810 = vmatpush3.bf16.msra.mxu1 %v15430_v13  ;;  %v13246_v13 = vrot.slane %v7976_v32, 9 }
 0x381   : > { %14811 = vmatprep.subr.bf16.mxu1 %v15431_v23 }
 0x383   : > { %14788 = vmatmul.mubr.bf16.gmra.mrb[172].mxu1 %v18326_v53  ;;  %v15443_v53 = vld [vmem:[#allocation10 + $0xd8] sm:$0xff]  }
 0x384   : > { %14791 = vmatprep.mubr.bf16.mxu1 %v18333_v24  ;;  %14812 = vmatpush3.bf16.msra.mxu1 %v15431_v23 }
 0x385   : > { %14813 = vmatprep.subr.bf16.mxu1 %v15432_v33  ;;  %14141 = vmatprep.subr.bf16.mxu0 %v15443_v53 }
 0x388   : > { %14814 = vmatpush3.bf16.msra.mxu1 %v15432_v33 }
 0x389   : > { %14815 = vmatprep.subr.bf16.mxu1 %v15433_v44 }
 0x38b   : > { %14792 = vmatmul.mubr.bf16.gmra.mrb[176].mxu1 %v18342_v30 }
 0x38c   : > { %14795 = vmatprep.mubr.bf16.mxu1 %v18350_v46  ;;  %14816 = vmatpush3.bf16.msra.mxu1 %v15433_v44  ;;  %v13230_v44 = vrot.slane %v7960_v31, 9 }
 0x38d   : > { %14817 = vmatprep.subr.bf16.mxu1 %v15434_v62 }
 0x390   : > { %14818 = vmatpush3.bf16.msra.mxu1 %v15434_v62  ;;  %v8082_v62 = vrot.slane %v7288_v45, 5 }
 0x391   : > { %14819 = vmatprep.subr.bf16.mxu1 %v15435_v3 }
 0x393   : > { %14796 = vmatmul.mubr.bf16.gmra.mrb[180].mxu1 %v18357_v22 }
 0x394   : > { %14799 = vmatprep.mubr.bf16.mxu1 %v18364_v28  ;;  %14820 = vmatpush3.bf16.msra.mxu1 %v15435_v3  ;;  %v8146_v3 = vrot.slane %v7304_v48, 5 }
 0x395   : > { %14821 = vmatprep.subr.bf16.mxu1 %v15436_v59 }
 0x398   : > { %14822 = vmatpush3.bf16.msra.mxu1 %v15436_v59 }
 0x39b   : > { %14800 = vmatmul.mubr.bf16.gmra.mrb[184].mxu1 %v18371_v21 }
 0x39c   : > { %14803 = vmatprep.mubr.bf16.mxu1 %v18378_v11 }
 0x3a3   : > { %14804 = vmatmul.mubr.bf16.gmra.mrb[188].mxu1 %v18385_v27 }
 0x3a4   : > { %14823 = vmatprep.mubr.bf16.mxu1 %v18333_v24  ;;  %v15444_v24 = vld [vmem:[#allocation10 + $0x98] sm:$0xff]  }
 0x3a5   : > { %14142 = vmatpush3.bf16.msra.mxu0 %v15444_v24 }
 0x3a6   : > { %14143 = vmatprep.subr.bf16.mxu0 %v15445_v51 }
 0x3ab   : > { %14824 = vmatmul.mubr.bf16.vlgmr.msra.gmra.mrb[160].mxu1 %v18342_v30  ;;  %v15446_v30 = vld [vmem:[#allocation10 + $0xa0] sm:$0xff]  }
 0x3ac   : > { %14827 = vmatprep.mubr.bf16.mxu1 %v18350_v46  ;;  %14144 = vmatpush3.bf16.msra.mxu0 %v15446_v30  ;;  %v15447_v46 = vld [vmem:[#allocation10 + $0x40] sm:$0xff]   ;;  %v18450_v30 = vrot.slane %v7434_v4, 5  ;;  %v7221_v4 = vld [vmem:[#allocation2 + $0x114] sm:$0x1] }
 0x3ad   : > { %14247 = vmatprep.subr.bf16.mxu1 %v15447_v46 }
 0x3b3   : > { %14828 = vmatmul.mubr.bf16.gmra.mrb[164].mxu1 %v18357_v22  ;;  %v15449_v22 = vld [vmem:[#allocation10] sm:$0xff]  }
 0x3b4   : > { %14831 = vmatprep.mubr.bf16.mxu1 %v18364_v28  ;;  %v15448_v28 = vld [vmem:[#allocation10 + $0xe8] sm:$0xff]   ;;  %14248 = vmatpush3.bf16.msra.mxu1 %v15449_v22 }
 0x3b5   : > { %14145 = vmatprep.subr.bf16.mxu0 %v15448_v28 }
 0x3bb   : > { %14832 = vmatmul.mubr.bf16.gmra.mrb[168].mxu1 %v18371_v21  ;;  %v15450_v21 = vld [vmem:[#allocation10 + $0xa8] sm:$0xff]  }
 0x3bc   : > { %14835 = vmatprep.mubr.bf16.mxu1 %v18378_v11  ;;  %v15451_v11 = vld [vmem:[#allocation10 + $0x48] sm:$0xff]   ;;  %14146 = vmatpush3.bf16.msra.mxu0 %v15450_v21 }
 0x3bd   : > { %14249 = vmatprep.subr.bf16.mxu1 %v15451_v11  ;;  %14147 = vmatprep.subr.bf16.mxu0 %v15454_v58  ;;  %v18455_v11 = vsel %vm16241_vm9, %v13222_v7, %v8050_v9  ;;  %v18463_v58 = vsel %vm16241_vm9, %v13246_v13, %v8146_v3 }
 0x3c0   : > { %14148 = vmatpush3.bf16.msra.mxu0 %v15456_v18 }
 0x3c3   : > { %14836 = vmatmul.mubr.bf16.gmra.mrb[172].mxu1 %v18385_v27  ;;  %v15452_v27 = vld [vmem:[#allocation10 + $0x8] sm:$0xff]  }
 0x3c4   : > { %14839 = vmatprep.mubr.bf16.mxu1 %v18392_v49  ;;  %14250 = vmatpush3.bf16.msra.mxu1 %v15452_v27  ;;  %v15460_v49 = vld [vmem:[#allocation10 + $0xf8] sm:$0xff]  }
 0x3c5   : > { %14251 = vmatprep.subr.bf16.mxu1 %v15453_v63  ;;  %14149 = vmatprep.subr.bf16.mxu0 %v15460_v49  ;;  %v7215_v49 = vld [vmem:[#allocation2 + $0x10c] sm:$0x1] }
 0x3c6   : > { %14150 = vmatpush3.bf16.msra.mxu0 %v15462_v41 }
 0x3c7   : > { %14359 = vmatprep.subr.bf16.mxu0 %v15468_v26 }
 0x3c8   : > { %14252 = vmatpush3.bf16.msra.mxu1 %v15455_v35 }
 0x3c9   : > { %14253 = vmatprep.subr.bf16.mxu1 %v15457_v37 }
 0x3cb   : > { %14840 = vmatmul.mubr.bf16.gmra.mrb[176].mxu1 %v18399_v47  ;;  %v7427_v47 = vrot.slane %v7425_v61, 4 }
 0x3cc   : > { %14843 = vmatprep.mubr.bf16.mxu1 %v5748_v20  ;;  %14254 = vmatpush3.bf16.msra.mxu1 %v15458_v54  ;;  %v18467_v54 = vsel %vm16241_vm9, %v13230_v44, %v8082_v62  ;;  %v7209_v44 = vld [vmem:[#allocation2 + $0x104] sm:$0x1] }
 0x3cd   : > { %14255 = vmatprep.subr.bf16.mxu1 %v15459_v39  ;;  %v7431_v2 = vor.u32 %v7430_v50, %v7427_v47 }
 0x3cf   : > { %v18448_v51 = vrot.slane %v7431_v2, 4 }
 0x3d0   : > { %14256 = vmatpush3.bf16.msra.mxu1 %v15461_v52 }
 0x3d1   : > { %14257 = vmatprep.subr.bf16.mxu1 %v15463_v36  ;;  %v7437_v39 = vsel %vm16786_vm12, %v18448_v51, %v18450_v30  ;;  %v7212_v36 = vld [vmem:[#allocation2 + $0x108] sm:$0xf] }
 0x3d3   : > { %14844 = vmatmul.mubr.bf16.gmra.mrb[180].mxu1 %v5749_v14  ;;  %v18444_v14 = vrot.slane %v7322_v29, 5  ;;  %v7218_v29 = vld [vmem:[#allocation2 + $0x110] sm:$0xf] }
 0x3d4   : > { %14258 = vmatpush3.bf16.msra.mxu1 %v15464_v10 }
 0x3d5   : > { %14259 = vmatprep.subr.bf16.mxu1 %v15466_v60  ;;  %v7325_v35 = vsel %vm16786_vm12, %v18442_v15, %v18444_v14 }
 0x3d8   : > { %14260 = vmatpush3.bf16.msra.mxu1 %v15467_v57 }
 0x3d9   : > { %14261 = vmatprep.subr.bf16.mxu1 %v15471_v12 }
 0x3dc   : > { %14262 = vmatpush3.bf16.msra.mxu1 %v15472_v1  ;;  %v7200_v1 = vld [vmem:[#allocation2 + $0xf8] sm:$0xf] }
 0x46e   : > { %v14801_v20 = vpop.f32.mrb[184].mxu1 }
 0x46f   : > { %v15063_v42 = vadd.f32 %v14801_v20, %v18439_v0  ;;  %v6200_v19 = vpop.f32.mrb[185].mxu1 }
 0x470   : > { %v15064_v23 = vadd.f32 %v18439_v0, %v6200_v19  ;;  %v14802_v33 = vpop.f32.mrb[186].mxu1 }
 0x471   : > { %v6602_v59 = vmax.f32 %v15063_v42, 0.0  ;;  %v15065_v53 = vadd.f32 %v14802_v33, %v18439_v0  ;;  %v6203_v24 = vpop.f32.mrb[187].mxu1  ;;  %v7206_v33 = vld [vmem:[#allocation2 + $0x100] sm:$0xf] }
 0x472   : > { %v6600_v46 = vmax.f32 %v15064_v23, 0.0  ;;  %v15066_v22 = vadd.f32 %v18439_v0, %v6203_v24 }
 0x473   : > { %v13592_v28 = vpack.c.bf16 %v6602_v59, %v6602_v59  ;;  %v6603_v21 = vmax.f32 %v15065_v53, 0.0 }
 0x474   : > { %v13590_v27 = vpack.c.bf16 %v6600_v46, %v6600_v46  ;;  %v6601_v63 = vmax.f32 %v15066_v22, 0.0 }
 0x475   : > { %v6945_v18 = vshrl.u32 %v13592_v28, 16  ;;  %v13593_v37 = vpack.c.bf16 %v6603_v21, %v6603_v21  ;;  %v6948_v52 = vshll.u32 %v13592_v28, 16  ;;  %v15493_v21 = vld [vmem:[#allocation10 + $0x1c0] sm:$0xff]  }
 0x476   : > { %v6929_v10 = vshrl.u32 %v13590_v27, 16  ;;  %v6932_v41 = vshll.u32 %v13590_v27, 16  ;;  %v13591_v60 = vpack.c.bf16 %v6601_v63, %v6601_v63  ;;  %v14805_v57 = vpop.f32.mrb[188].mxu1  ;;  %14471 = vmatprep.subr.bf16.mxu1 %v15493_v21 }
 0x477   : > { %v6947_v12 = vrot.slane %v6945_v18, 7  ;;  %v6953_v26 = vshrl.u32 %v13593_v37, 16  ;;  %v6956_v5 = vshll.u32 %v13593_v37, 16  ;;  %v15067_v56 = vadd.f32 %v14805_v57, %v18439_v0  ;;  %v6216_v16 = vpop.f32.mrb[189].mxu1 }
 0x478   : > { %v6931_v61 = vrot.slane %v6929_v10, 7  ;;  %v6937_v6 = vshrl.u32 %v13591_v60, 16  ;;  %v6940_v55 = vshll.u32 %v13591_v60, 16  ;;  %v15068_v47 = vadd.f32 %v18439_v0, %v6216_v16  ;;  %v14806_v50 = vpop.f32.mrb[190].mxu1 }
 0x479   : > { %v6950_v8 = vor.u32 %v6948_v52, %v6947_v12  ;;  %v6951_v17 = vrot.slane %v6947_v12, 4  ;;  %v6955_v43 = vrot.slane %v6953_v26, 7  ;;  %v6606_v45 = vmax.f32 %v15067_v56, 0.0  ;;  %v6219_v32 = vpop.f32.mrb[191].mxu1  ;;  %v7236_v12 = vld [vmem:[#allocation2 + $0x128] sm:$0xf] }
 0x47a   : > { %v6934_v31 = vor.u32 %v6932_v41, %v6931_v61  ;;  %v6935_v2 = vrot.slane %v6931_v61, 4  ;;  %v6939_v48 = vrot.slane %v6937_v6, 7  ;;  %v6604_v20 = vmax.f32 %v15068_v47, 0.0 }
 0x47b   : > { %v7213_v9 = vsel %vm16186_vm8, %v6950_v8, %v7212_v36  ;;  %v7216_v19 = vsel %vm16152_vm2, %v6951_v17, %v7215_v49  ;;  %v6958_v13 = vor.u32 %v6956_v5, %v6955_v43  ;;  %v6959_v23 = vrot.slane %v6955_v43, 4  ;;  %v18493_v36 = vld [vmem:[#allocation2 + $0xa0] sm:$0xe]  ;;  %v7224_v8 = vld [vmem:[#allocation2 + $0x118] sm:$0xf] }
 0x47c   : > { %7217 = vst [vmem:[#allocation2 + $0x10c] sm:$0x1] %v7216_v19  ;;  %7214 = vst [vmem:[#allocation2 + $0x108] sm:$0xf] %v7213_v9  ;;  %v7201_v62 = vsel %vm16186_vm8, %v6934_v31, %v7200_v1  ;;  %v7204_v3 = vsel %vm16152_vm2, %v6935_v2, %v7203_v25  ;;  %v6942_v59 = vor.u32 %v6940_v55, %v6939_v48  ;;  %v6943_v53 = vrot.slane %v6939_v48, 4 }
 0x47d   : > { %7205 = vst [vmem:[#allocation2 + $0xfc] sm:$0x1] %v7204_v3  ;;  %7202 = vst [vmem:[#allocation2 + $0xf8] sm:$0xf] %v7201_v62  ;;  %v7219_v24 = vsel %vm16186_vm8, %v6958_v13, %v7218_v29  ;;  %v7222_v46 = vsel %vm16152_vm2, %v6959_v23, %v7221_v4  ;;  %v13596_v22 = vpack.c.bf16 %v6606_v45, %v6606_v45  ;;  %v7239_v25 = vld [vmem:[#allocation2 + $0x12c] sm:$0x1] }
 0x47e   : > { %v13594_v28 = vpack.c.bf16 %v6604_v20, %v6604_v20  ;;  %7223 = vst [vmem:[#allocation2 + $0x114] sm:$0x1] %v7222_v46  ;;  %7220 = vst [vmem:[#allocation2 + $0x110] sm:$0xf] %v7219_v24  ;;  %v7207_v27 = vsel %vm16186_vm8, %v6942_v59, %v7206_v33  ;;  %v7210_v63 = vsel %vm16152_vm2, %v6943_v53, %v7209_v44  ;;  %v14825_v52 = vpop.f32.mrb[160].mxu1 }
 0x47f   : > { %v15069_v18 = vadd.f32 %v14806_v50, %v18439_v0  ;;  %v15070_v37 = vadd.f32 %v18439_v0, %v6219_v32  ;;  %7211 = vst [vmem:[#allocation2 + $0x104] sm:$0x1] %v7210_v63  ;;  %7208 = vst [vmem:[#allocation2 + $0x100] sm:$0xf] %v7207_v27  ;;  %v6977_v49 = vshrl.u32 %v13596_v22, 16  ;;  %v6980_v10 = vshll.u32 %v13596_v22, 16 }
 0x480   : > { %v6961_v41 = vshrl.u32 %v13594_v28, 16  ;;  %v6964_v60 = vshll.u32 %v13594_v28, 16  ;;  %v6401_v57 = vpop.f32.mrb[161].mxu1  ;;  %v15039_v5 = vadd.f32 %v14825_v52, %v18439_v0  ;;  %v13238_v50 = vrot.slane %v18493_v36, 9  ;;  %v7227_v17 = vld [vmem:[#allocation2 + $0x11c] sm:$0x1] }
 0x481   : > { %v6607_v1 = vmax.f32 %v15069_v18, 0.0  ;;  %v6605_v26 = vmax.f32 %v15070_v37, 0.0  ;;  %v15040_v56 = vadd.f32 %v18439_v0, %v6401_v57  ;;  %v14826_v16 = vpop.f32.mrb[162].mxu1  ;;  %v6979_v61 = vrot.slane %v6977_v49, 7  ;;  %v18501_v20 = vld [vmem:[#allocation2 + $0xa4] sm:$0x1] }
 0x482   : > { %v6963_v6 = vrot.slane %v6961_v41, 7  ;;  %v18498_v55 = vadd.f32 %v14826_v16, %v18439_v0  ;;  %v6404_v47 = vpop.f32.mrb[163].mxu1  ;;  %v6578_v45 = vmax.f32 %v15039_v5, 0.0  ;;  %v7242_v59 = vld [vmem:[#allocation2 + $0x130] sm:$0xf] }
 0x483   : > { %v13597_v43 = vpack.c.bf16 %v6607_v1, %v6607_v1  ;;  %v13595_v29 = vpack.c.bf16 %v6605_v26, %v6605_v26  ;;  %v6576_v32 = vmax.f32 %v15040_v56, 0.0  ;;  %v6982_v31 = vor.u32 %v6980_v10, %v6979_v61  ;;  %v7245_v53 = vld [vmem:[#allocation2 + $0x134] sm:$0x1]  ;;  %v7230_v24 = vld [vmem:[#allocation2 + $0x120] sm:$0xf] }
 0x484   : > { %v6983_v2 = vrot.slane %v6979_v61, 4  ;;  %v6966_v4 = vor.u32 %v6964_v60, %v6963_v6  ;;  %v6967_v48 = vrot.slane %v6963_v6, 4  ;;  %v13568_v28 = vpack.c.bf16 %v6578_v45, %v6578_v45  ;;  %v7233_v63 = vld [vmem:[#allocation2 + $0x124] sm:$0x1] }
 0x485   : > { %v6985_v9 = vshrl.u32 %v13597_v43, 16  ;;  %v6988_v19 = vshll.u32 %v13597_v43, 16  ;;  %v6969_v13 = vshrl.u32 %v13595_v29, 16  ;;  %v6972_v23 = vshll.u32 %v13595_v29, 16  ;;  %v7071_v43 = vld [vmem:[#allocation2 + $0x1c] sm:$0x1] }
 0x486   : > { %v7237_v33 = vsel %vm16186_vm8, %v6982_v31, %v7236_v12  ;;  %v7240_v44 = vsel %vm16152_vm2, %v6983_v2, %v7239_v25  ;;  %v7225_v62 = vsel %vm16186_vm8, %v6966_v4, %v7224_v8  ;;  %v7228_v3 = vsel %vm16152_vm2, %v6967_v48, %v7227_v17  ;;  %v14829_v27 = vpop.f32.mrb[164].mxu1  ;;  %v7068_v8 = vld [vmem:[#allocation2 + $0x18] sm:$0xf]  ;;  %v7056_v31 = vld [vmem:[#allocation2 + $0x8] sm:$0xf] }
 0x487   : > { %7241 = vst [vmem:[#allocation2 + $0x12c] sm:$0x1] %v7240_v44  ;;  %7238 = vst [vmem:[#allocation2 + $0x128] sm:$0xf] %v7237_v33  ;;  %v6987_v46 = vrot.slane %v6985_v9, 7  ;;  %v6971_v22 = vrot.slane %v6969_v13, 7  ;;  %v13566_v21 = vpack.c.bf16 %v6576_v32, %v6576_v32  ;;  %v15042_v37 = vadd.f32 %v18439_v0, %v6404_v47 }
 0x488   : > { %7229 = vst [vmem:[#allocation2 + $0x11c] sm:$0x1] %v7228_v3  ;;  %7226 = vst [vmem:[#allocation2 + $0x118] sm:$0xf] %v7225_v62  ;;  %v6579_v18 = vmax.f32 %v18498_v55, 0.0  ;;  %v15043_v52 = vadd.f32 %v14829_v27, %v18439_v0  ;;  %v6417_v49 = vpop.f32.mrb[165].mxu1 }
 0x489   : > { %v8114_v10 = vrot.slane %v18501_v20, 5  ;;  %v6990_v41 = vor.u32 %v6988_v19, %v6987_v46  ;;  %v6991_v60 = vrot.slane %v6987_v46, 4  ;;  %v6974_v57 = vor.u32 %v6972_v23, %v6971_v22  ;;  %v14830_v1 = vpop.f32.mrb[166].mxu1  ;;  %v7059_v2 = vld [vmem:[#allocation2 + $0xc] sm:$0x1] }
 0x48a   : > { %v6975_v12 = vrot.slane %v6971_v22, 4  ;;  %v6753_v26 = vshrl.u32 %v13568_v28, 16  ;;  %v6756_v5 = vshll.u32 %v13568_v28, 16  ;;  %v6737_v56 = vshrl.u32 %v13566_v21, 16  ;;  %v6420_v61 = vpop.f32.mrb[167].mxu1 }
 0x48b   : > { %v6740_v16 = vshll.u32 %v13566_v21, 16  ;;  %v7243_v25 = vsel %vm16186_vm8, %v6990_v41, %v7242_v59  ;;  %v7246_v6 = vsel %vm16152_vm2, %v6991_v60, %v7245_v53  ;;  %v7231_v55 = vsel %vm16186_vm8, %v6974_v57, %v7230_v24  ;;  %v7074_v27 = vld [vmem:[#allocation2 + $0x20] sm:$0xf]  ;;  %v15613_v20 = vld [vmem:[#allocation2 + $0xa4] sm:$0x1] }
 0x48c   : > { %v7234_v47 = vsel %vm16152_vm2, %v6975_v12, %v7233_v63  ;;  %7247 = vst [vmem:[#allocation2 + $0x134] sm:$0x1] %v7246_v6  ;;  %7244 = vst [vmem:[#allocation2 + $0x130] sm:$0xf] %v7243_v25  ;;  %v6755_v17 = vrot.slane %v6753_v26, 7  ;;  %v6739_v29 = vrot.slane %v6737_v56, 7  ;;  %v13569_v45 = vpack.c.bf16 %v6579_v18, %v6579_v18 }
 0x48d   : > { %7235 = vst [vmem:[#allocation2 + $0x124] sm:$0x1] %v7234_v47  ;;  %7232 = vst [vmem:[#allocation2 + $0x120] sm:$0xf] %v7231_v55  ;;  %v6577_v32 = vmax.f32 %v15042_v37, 0.0  ;;  %v6582_v4 = vmax.f32 %v15043_v52, 0.0  ;;  %v15044_v48 = vadd.f32 %v18439_v0, %v6417_v49  ;;  %v15045_v9 = vadd.f32 %v14830_v1, %v18439_v0 }
 0x48e   : > { %v15046_v19 = vadd.f32 %v18439_v0, %v6420_v61  ;;  %v6758_v13 = vor.u32 %v6756_v5, %v6755_v17  ;;  %v6759_v23 = vrot.slane %v6755_v17, 4  ;;  %v6742_v33 = vor.u32 %v6740_v16, %v6739_v29  ;;  %v14833_v24 = vpop.f32.mrb[168].mxu1  ;;  %v7077_v63 = vld [vmem:[#allocation2 + $0x24] sm:$0x1]  ;;  %v7062_v25 = vld [vmem:[#allocation2 + $0x10] sm:$0xf] }
 0x48f   : > { %v6743_v44 = vrot.slane %v6739_v29, 4  ;;  %v6761_v62 = vshrl.u32 %v13569_v45, 16  ;;  %v6764_v3 = vshll.u32 %v13569_v45, 16  ;;  %v13567_v59 = vpack.c.bf16 %v6577_v32, %v6577_v32  ;;  %v6433_v18 = vpop.f32.mrb[169].mxu1  ;;  %v7065_v55 = vld [vmem:[#allocation2 + $0x14] sm:$0x1] }
 0x490   : > { %v13572_v53 = vpack.c.bf16 %v6582_v4, %v6582_v4  ;;  %v7069_v46 = vsel %vm16186_vm8, %v6758_v13, %v7068_v8  ;;  %v7072_v22 = vsel %vm16152_vm2, %v6759_v23, %v7071_v43  ;;  %v7057_v28 = vsel %vm16186_vm8, %v6742_v33, %v7056_v31  ;;  %v14834_v60 = vpop.f32.mrb[170].mxu1  ;;  %v7092_v47 = vld [vmem:[#allocation2 + $0x38] sm:$0xf]  ;;  %v7095_v8 = vld [vmem:[#allocation2 + $0x3c] sm:$0x1] }
 0x491   : > { %v7060_v21 = vsel %vm16152_vm2, %v6743_v44, %v7059_v2  ;;  %7073 = vst [vmem:[#allocation2 + $0x1c] sm:$0x1] %v7072_v22  ;;  %7070 = vst [vmem:[#allocation2 + $0x18] sm:$0xf] %v7069_v46  ;;  %v6763_v37 = vrot.slane %v6761_v62, 7  ;;  %v6745_v52 = vshrl.u32 %v13567_v59, 16  ;;  %v15047_v45 = vadd.f32 %v14833_v24, %v18439_v0 }
 0x492   : > { %7061 = vst [vmem:[#allocation2 + $0xc] sm:$0x1] %v7060_v21  ;;  %7058 = vst [vmem:[#allocation2 + $0x8] sm:$0xf] %v7057_v28  ;;  %v6748_v49 = vshll.u32 %v13567_v59, 16  ;;  %v6785_v41 = vshrl.u32 %v13572_v53, 16 }
 0x493   : > { %v6788_v57 = vshll.u32 %v13572_v53, 16  ;;  %v6580_v12 = vmax.f32 %v15044_v48, 0.0  ;;  %v6583_v1 = vmax.f32 %v15045_v9, 0.0  ;;  %v6581_v26 = vmax.f32 %v15046_v19, 0.0  ;;  %v18534_v5 = vpop.f32.mrb[171].mxu1 }
 0x494   : > { %v6766_v56 = vor.u32 %v6764_v3, %v6763_v37  ;;  %v6767_v16 = vrot.slane %v6763_v37, 4  ;;  %v6747_v61 = vrot.slane %v6745_v52, 7  ;;  %v6787_v6 = vrot.slane %v6785_v41, 7  ;;  %v7080_v44 = vld [vmem:[#allocation2 + $0x28] sm:$0xf] }
 0x495   : > { %v13570_v17 = vpack.c.bf16 %v6580_v12, %v6580_v12  ;;  %v13573_v43 = vpack.c.bf16 %v6583_v1, %v6583_v1  ;;  %v13571_v29 = vpack.c.bf16 %v6581_v26, %v6581_v26  ;;  %v7083_v62 = vld [vmem:[#allocation2 + $0x2c] sm:$0x1]  ;;  %v7098_v28 = vld [vmem:[#allocation2 + $0x40] sm:$0xf]  ;;  %v7101_v37 = vld [vmem:[#allocation2 + $0x44] sm:$0x1]  ;;  %v15048_v41 = vadd.f32 %v18439_v0, %v6433_v18 }
 0x496   : > { %v7075_v32 = vsel %vm16186_vm8, %v6766_v56, %v7074_v27  ;;  %v7078_v31 = vsel %vm16152_vm2, %v6767_v16, %v7077_v63  ;;  %v6750_v2 = vor.u32 %v6748_v49, %v6747_v61  ;;  %v6751_v4 = vrot.slane %v6747_v61, 4  ;;  %v14837_v53 = vpop.f32.mrb[172].mxu1  ;;  %v7086_v56 = vld [vmem:[#allocation2 + $0x30] sm:$0xf] }
 0x497   : > { %7079 = vst [vmem:[#allocation2 + $0x24] sm:$0x1] %v7078_v31  ;;  %7076 = vst [vmem:[#allocation2 + $0x20] sm:$0xf] %v7075_v32  ;;  %v6790_v48 = vor.u32 %v6788_v57, %v6787_v6  ;;  %v6791_v9 = vrot.slane %v6787_v6, 4  ;;  %v6769_v19 = vshrl.u32 %v13570_v17, 16  ;;  %v15049_v16 = vadd.f32 %v14834_v60, %v18439_v0 }
 0x498   : > { %v6772_v13 = vshll.u32 %v13570_v17, 16  ;;  %v7063_v23 = vsel %vm16186_vm8, %v6750_v2, %v7062_v25  ;;  %v7066_v33 = vsel %vm16152_vm2, %v6751_v4, %v7065_v55  ;;  %v6793_v3 = vshrl.u32 %v13573_v43, 16  ;;  %v6449_v27 = vpop.f32.mrb[173].mxu1  ;;  %v7089_v55 = vld [vmem:[#allocation2 + $0x34] sm:$0x1] }
 0x499   : > { %v6796_v59 = vshll.u32 %v13573_v43, 16  ;;  %7067 = vst [vmem:[#allocation2 + $0x14] sm:$0x1] %v7066_v33  ;;  %7064 = vst [vmem:[#allocation2 + $0x10] sm:$0xf] %v7063_v23  ;;  %v7093_v24 = vsel %vm16186_vm8, %v6790_v48, %v7092_v47  ;;  %v7096_v46 = vsel %vm16152_vm2, %v6791_v9, %v7095_v8  ;;  %v6771_v22 = vrot.slane %v6769_v19, 7 }
 0x49a   : > { %v6777_v21 = vshrl.u32 %v13571_v29, 16  ;;  %7097 = vst [vmem:[#allocation2 + $0x3c] sm:$0x1] %v7096_v46  ;;  %7094 = vst [vmem:[#allocation2 + $0x38] sm:$0xf] %v7093_v24  ;;  %v6795_v63 = vrot.slane %v6793_v3, 7  ;;  %v15050_v23 = vadd.f32 %v18439_v0, %v18534_v5  ;;  %v15051_v33 = vadd.f32 %v14837_v53, %v18439_v0 }
 0x49b   : > { %v6780_v52 = vshll.u32 %v13571_v29, 16  ;;  %v6586_v49 = vmax.f32 %v15047_v45, 0.0  ;;  %v14838_v57 = vpop.f32.mrb[174].mxu1  ;;  %v6774_v12 = vor.u32 %v6772_v13, %v6771_v22  ;;  %v6775_v1 = vrot.slane %v6771_v22, 4  ;;  %v7116_v48 = vld [vmem:[#allocation2 + $0x68] sm:$0xf] }
 0x49c   : > { %v6779_v26 = vrot.slane %v6777_v21, 7  ;;  %v18551_v61 = vpop.f32.mrb[175].mxu1  ;;  %v6798_v25 = vor.u32 %v6796_v59, %v6795_v63  ;;  %v6799_v6 = vrot.slane %v6795_v63, 4  ;;  %v6584_v8 = vmax.f32 %v15048_v41, 0.0  ;;  %v7119_v59 = vld [vmem:[#allocation2 + $0x6c] sm:$0x1] }
 0x49d   : > { %v13576_v47 = vpack.c.bf16 %v6586_v49, %v6586_v49  ;;  %v7081_v17 = vsel %vm16186_vm8, %v6774_v12, %v7080_v44  ;;  %v7084_v18 = vsel %vm16152_vm2, %v6775_v1, %v7083_v62  ;;  %v6587_v19 = vmax.f32 %v15049_v16, 0.0  ;;  %v7107_v16 = vld [vmem:[#allocation2 + $0x5c] sm:$0x1] }
 0x49e   : > { %v6782_v43 = vor.u32 %v6780_v52, %v6779_v26  ;;  %v6783_v29 = vrot.slane %v6779_v26, 4  ;;  %7085 = vst [vmem:[#allocation2 + $0x2c] sm:$0x1] %v7084_v18  ;;  %7082 = vst [vmem:[#allocation2 + $0x28] sm:$0xf] %v7081_v17  ;;  %v7099_v60 = vsel %vm16186_vm8, %v6798_v25, %v7098_v28  ;;  %v7102_v45 = vsel %vm16152_vm2, %v6799_v6, %v7101_v37  ;;  %v18569_v3 = vpop.f32.mrb[176].mxu1 }
 0x49f   : > { %v6817_v32 = vshrl.u32 %v13576_v47, 16  ;;  %v6820_v31 = vshll.u32 %v13576_v47, 16  ;;  %7103 = vst [vmem:[#allocation2 + $0x44] sm:$0x1] %v7102_v45  ;;  %7100 = vst [vmem:[#allocation2 + $0x40] sm:$0xf] %v7099_v60  ;;  %v13574_v9 = vpack.c.bf16 %v6584_v8, %v6584_v8  ;;  %v15052_v44 = vadd.f32 %v18439_v0, %v6449_v27 }
 0x4a0   : > { %v7087_v2 = vsel %vm16186_vm8, %v6782_v43, %v7086_v56  ;;  %v7090_v4 = vsel %vm16152_vm2, %v6783_v29, %v7089_v55  ;;  %v15465_v62 = vld [vmem:[#allocation2 + $0x8] ss:$8 sps:$4 sm:$0xff]   ;;  %v13577_v22 = vpack.c.bf16 %v6587_v19, %v6587_v19  ;;  %v15053_v28 = vadd.f32 %v14838_v57, %v18439_v0  ;;  %v18572_v21 = vpop.f32.mrb[177].mxu1  ;;  %v7104_v56 = vld [vmem:[#allocation2 + $0x58] sm:$0xf] }
 0x4a1   : > { %7091 = vst [vmem:[#allocation2 + $0x34] sm:$0x1] %v7090_v4  ;;  %7088 = vst [vmem:[#allocation2 + $0x30] sm:$0xf] %v7087_v2  ;;  %v6819_v13 = vrot.slane %v6817_v32, 7  ;;  %v6801_v24 = vshrl.u32 %v13574_v9, 16  ;;  %8528 = vmatprep.mubr.bf16.mxu0 %v15465_v62 }
 0x4a2   : > { %v6804_v46 = vshll.u32 %v13574_v9, 16  ;;  %v6585_v52 = vmax.f32 %v15050_v23, 0.0  ;;  %v6590_v49 = vmax.f32 %v15051_v33, 0.0  ;;  %v18574_v5 = vpop.f32.mrb[178].mxu1  ;;  %v6825_v27 = vshrl.u32 %v13577_v22, 16 }
 0x4a3   : > { %v6822_v63 = vor.u32 %v6820_v31, %v6819_v13  ;;  %v6823_v37 = vrot.slane %v6819_v13, 4  ;;  %v6803_v53 = vrot.slane %v6801_v24, 7  ;;  %v6828_v41 = vshll.u32 %v13577_v22, 16  ;;  %v18576_v1 = vpop.f32.mrb[179].mxu1  ;;  %v7122_v17 = vld [vmem:[#allocation2 + $0x70] sm:$0xf] }
 0x4a4   : > { %v6588_v12 = vmax.f32 %v15052_v44, 0.0  ;;  %v13575_v25 = vpack.c.bf16 %v6585_v52, %v6585_v52  ;;  %v13580_v6 = vpack.c.bf16 %v6590_v49, %v6590_v49  ;;  %v6827_v8 = vrot.slane %v6825_v27, 7  ;;  %v7125_v43 = vld [vmem:[#allocation2 + $0x74] sm:$0x1]  ;;  %v7110_v9 = vld [vmem:[#allocation2 + $0x60] sm:$0xf] }
 0x4a5   : > { %v7117_v26 = vsel %vm16186_vm8, %v6822_v63, %v7116_v48  ;;  %v7120_v57 = vsel %vm16152_vm2, %v6823_v37, %v7119_v59  ;;  %v6806_v55 = vor.u32 %v6804_v46, %v6803_v53  ;;  %v6807_v47 = vrot.slane %v6803_v53, 4  ;;  %v7113_v19 = vld [vmem:[#allocation2 + $0x64] sm:$0x1]  ;;  %v7140_v13 = vld [vmem:[#allocation2 + $0x88] sm:$0xf] }
 0x4a6   : > { %7121 = vst [vmem:[#allocation2 + $0x6c] sm:$0x1] %v7120_v57  ;;  %7118 = vst [vmem:[#allocation2 + $0x68] sm:$0xf] %v7117_v26  ;;  %v13578_v18 = vpack.c.bf16 %v6588_v12, %v6588_v12  ;;  %v6809_v29 = vshrl.u32 %v13575_v25, 16  ;;  %v6812_v60 = vshll.u32 %v13575_v25, 16  ;;  %v6830_v4 = vor.u32 %v6828_v41, %v6827_v8 }
 0x4a7   : > { %v6849_v45 = vshrl.u32 %v13580_v6, 16  ;;  %v6852_v32 = vshll.u32 %v13580_v6, 16  ;;  %v7105_v31 = vsel %vm16186_vm8, %v6806_v55, %v7104_v56  ;;  %v7108_v2 = vsel %vm16152_vm2, %v6807_v47, %v7107_v16  ;;  %v7953_v23 = vld [vmem:[#allocation2 + $0x8] sm:$0xe]  ;;  %v18586_v24 = vpop.f32.mrb[180].mxu1 }
 0x4a8   : > { %v6831_v48 = vrot.slane %v6827_v8, 4  ;;  %7109 = vst [vmem:[#allocation2 + $0x5c] sm:$0x1] %v7108_v2  ;;  %7106 = vst [vmem:[#allocation2 + $0x58] sm:$0xf] %v7105_v31  ;;  %v6811_v33 = vrot.slane %v6809_v29, 7  ;;  %v7123_v46 = vsel %vm16186_vm8, %v6830_v4, %v7122_v17  ;;  %v15054_v52 = vadd.f32 %v18439_v0, %v18551_v61 }
 0x4a9   : > { %v6851_v44 = vrot.slane %v6849_v45, 7  ;;  %v6833_v62 = vshrl.u32 %v13578_v18, 16  ;;  %v6836_v59 = vshll.u32 %v13578_v18, 16  ;;  %v7143_v63 = vld [vmem:[#allocation2 + $0x8c] sm:$0x1]  ;;  %v6591_v37 = vmax.f32 %v15053_v28, 0.0 }
 0x4aa   : > { %v7126_v22 = vsel %vm16152_vm2, %v6831_v48, %v7125_v43  ;;  %v18594_v49 = vpop.f32.mrb[181].mxu1  ;;  %7124 = vst [vmem:[#allocation2 + $0x70] sm:$0xf] %v7123_v46  ;;  %v6814_v53 = vor.u32 %v6812_v60, %v6811_v33  ;;  %v6815_v27 = vrot.slane %v6811_v33, 4  ;;  %v6589_v16 = vmax.f32 %v15054_v52, 0.0 }
 0x4ab   : > { %7127 = vst [vmem:[#allocation2 + $0x74] sm:$0x1] %v7126_v22  ;;  %v6854_v41 = vor.u32 %v6852_v32, %v6851_v44  ;;  %v6855_v12 = vrot.slane %v6851_v44, 4  ;;  %v18596_v26 = vpop.f32.mrb[182].mxu1  ;;  %v6835_v57 = vrot.slane %v6833_v62, 7  ;;  %v13581_v56 = vpack.c.bf16 %v6591_v37, %v6591_v37  ;;  %v15476_v22 = vld [vmem:[#allocation10 + $0x148] sm:$0xff]  }
 0x4ac   : > { %v18598_v25 = vld [vmem:[#allocation2 + $0xc] sm:$0x1]  ;;  %v13223_v6 = vrot.slane %v7953_v23, 9  ;;  %v18600_v28 = vpop.f32.mrb[183].mxu1  ;;  %v7111_v61 = vsel %vm16186_vm8, %v6814_v53, %v7110_v9  ;;  %v7114_v55 = vsel %vm16152_vm2, %v6815_v27, %v7113_v19  ;;  %v7128_v17 = vld [vmem:[#allocation2 + $0x78] sm:$0xf]  ;;  %v13579_v2 = vpack.c.bf16 %v6589_v16, %v6589_v16 }
 0x4ad   : > { %v7141_v47 = vsel %vm16186_vm8, %v6854_v41, %v7140_v13  ;;  %v7144_v8 = vsel %vm16152_vm2, %v6855_v12, %v7143_v63  ;;  %v7131_v18 = vld [vmem:[#allocation2 + $0x7c] sm:$0x1]  ;;  %7115 = vst [vmem:[#allocation2 + $0x64] sm:$0x1] %v7114_v55  ;;  %7112 = vst [vmem:[#allocation2 + $0x60] sm:$0xf] %v7111_v61  ;;  %v6838_v43 = vor.u32 %v6836_v59, %v6835_v57 }
 0x4ae   : > { %7145 = vst [vmem:[#allocation2 + $0x8c] sm:$0x1] %v7144_v8  ;;  %7142 = vst [vmem:[#allocation2 + $0x88] sm:$0xf] %v7141_v47  ;;  %v6839_v29 = vrot.slane %v6835_v57, 4  ;;  %v6857_v60 = vshrl.u32 %v13581_v56, 16  ;;  %v15055_v48 = vadd.f32 %v18569_v3, %v18439_v0  ;;  %v15056_v9 = vadd.f32 %v18439_v0, %v18572_v21 }
 0x4af   : > { %v6860_v45 = vshll.u32 %v13581_v56, 16  ;;  %v7146_v32 = vld [vmem:[#allocation2 + $0x90] sm:$0xf]  ;;  %v7149_v31 = vld [vmem:[#allocation2 + $0x94] sm:$0x1]  ;;  %v8054_v4 = vrot.slane %v18598_v25, 5  ;;  %v7129_v19 = vsel %vm16186_vm8, %v6838_v43, %v7128_v17  ;;  %v15057_v33 = vadd.f32 %v18574_v5, %v18439_v0 }
 0x4b0   : > { %v7132_v13 = vsel %vm16152_vm2, %v6839_v29, %v7131_v18  ;;  %v6859_v23 = vrot.slane %v6857_v60, 7  ;;  %v18621_v44 = vld [vmem:[#allocation2 + $0x8] sm:$0xf]  ;;  %7130 = vst [vmem:[#allocation2 + $0x78] sm:$0xf] %v7129_v19  ;;  %v6841_v62 = vshrl.u32 %v13579_v2, 16 }
 0x4b1   : > { %7133 = vst [vmem:[#allocation2 + $0x7c] sm:$0x1] %v7132_v13  ;;  %v6844_v59 = vshll.u32 %v13579_v2, 16  ;;  %v8055_v3 = vsel %vm16241_vm9, %v13223_v6, %v8054_v4  ;;  %v15470_v21 = vld [vmem:[#allocation10 + $0x100] sm:$0xff]   ;;  %v6594_v46 = vmax.f32 %v15055_v48, 0.0  ;;  %v6592_v27 = vmax.f32 %v15056_v9, 0.0 }
 0x4b2   : > { %v6862_v63 = vor.u32 %v6860_v45, %v6859_v23  ;;  %v6863_v37 = vrot.slane %v6859_v23, 4  ;;  %v13254_v52 = vcombine.low %v18455_v11, %v8055_v3  ;;  %v15469_v53 = vld [vmem:[#allocation2 + $0x18] ss:$8 sps:$4 sm:$0xff]   ;;  %v6843_v41 = vrot.slane %v6841_v62, 7  ;;  %v7137_v61 = vld [vmem:[#allocation2 + $0x84] sm:$0x1] }
 0x4b3   : > { %v13584_v5 = vpack.c.bf16 %v6594_v46, %v6594_v46  ;;  %v6595_v12 = vmax.f32 %v15057_v33, 0.0  ;;  %v7327_v57 = vshrl.u32 %v18621_v44, 16  ;;  %v7134_v6 = vld [vmem:[#allocation2 + $0x80] sm:$0xf]  ;;  %v13582_v55 = vpack.c.bf16 %v6592_v27, %v6592_v27  ;;  %v15478_v43 = vld [vmem:[#allocation10 + $0x108] sm:$0xff]   ;;  %v15482_v2 = vld [vmem:[#allocation10 + $0x150] sm:$0xff]  }
 0x4b4   : > { %v7147_v56 = vsel %vm16186_vm8, %v6862_v63, %v7146_v32  ;;  %v7150_v16 = vsel %vm16152_vm2, %v6863_v37, %v7149_v31  ;;  %8529 = vmatmul.mubr.bf16.vlgmr.msra.gmra.mrb[128].mxu0 %v13254_v52  ;;  %v7330_v47 = vshll.u32 %v18621_v44, 16  ;;  %v6846_v11 = vor.u32 %v6844_v59, %v6843_v41  ;;  %v7164_v29 = vld [vmem:[#allocation2 + $0xb8] sm:$0xf]  ;;  %v7167_v19 = vld [vmem:[#allocation2 + $0xbc] sm:$0x1] }
 0x4b5   : > { %7151 = vst [vmem:[#allocation2 + $0x94] sm:$0x1] %v7150_v16  ;;  %7148 = vst [vmem:[#allocation2 + $0x90] sm:$0xf] %v7147_v56  ;;  %v6847_v8 = vrot.slane %v6843_v41, 4  ;;  %8536 = vmatprep.mubr.bf16.mxu0 %v15469_v53  ;;  %14360 = vmatpush3.bf16.msra.mxu0 %v15470_v21  ;;  %v6881_v17 = vshrl.u32 %v13584_v5, 16  ;;  %v13585_v32 = vpack.c.bf16 %v6595_v12, %v6595_v12 }
 0x4b6   : > { %v6884_v18 = vshll.u32 %v13584_v5, 16  ;;  %v6865_v60 = vshrl.u32 %v13582_v55, 16  ;;  %v6868_v45 = vshll.u32 %v13582_v55, 16  ;;  %v7329_v31 = vrot.slane %v7327_v57, 4  ;;  %14361 = vmatprep.subr.bf16.mxu0 %v15476_v22  ;;  %v7152_v13 = vld [vmem:[#allocation2 + $0xa8] sm:$0xf] }
 0x4b7   : > { %v7135_v4 = vsel %vm16186_vm8, %v6846_v11, %v7134_v6  ;;  %v7138_v48 = vsel %vm16152_vm2, %v6847_v8, %v7137_v61  ;;  %v6883_v9 = vrot.slane %v6881_v17, 7  ;;  %v7332_v23 = vrot.slane %v7330_v47, 5  ;;  %v7155_v62 = vld [vmem:[#allocation2 + $0xac] sm:$0x1]  ;;  %v7170_v63 = vld [vmem:[#allocation2 + $0xc0] sm:$0xf] }
 0x4b8   : > { %7139 = vst [vmem:[#allocation2 + $0x84] sm:$0x1] %v7138_v48  ;;  %7136 = vst [vmem:[#allocation2 + $0x80] sm:$0xf] %v7135_v4  ;;  %v6867_v33 = vrot.slane %v6865_v60, 7  ;;  %v6889_v59 = vshrl.u32 %v13585_v32, 16  ;;  %v15058_v53 = vadd.f32 %v18439_v0, %v18576_v1 }
 0x4b9   : > { %v6892_v3 = vshll.u32 %v13585_v32, 16  ;;  %v7336_v21 = vshll.u32 %v18598_v25, 16  ;;  %v6886_v46 = vor.u32 %v6884_v18, %v6883_v9  ;;  %v6887_v22 = vrot.slane %v6883_v9, 4  ;;  %v7173_v37 = vld [vmem:[#allocation2 + $0xc4] sm:$0x1]  ;;  %14362 = vmatpush3.bf16.msra.mxu0 %v15478_v43  ;;  %v15484_v41 = vld [vmem:[#allocation10 + $0x110] sm:$0xff]  }
 0x4ba   : > { %v7333_v52 = vor.u32 %v7332_v23, %v7329_v31  ;;  %v7954_v27 = vld [vmem:[#allocation2 + $0x10] sm:$0xe]  ;;  %v6870_v5 = vor.u32 %v6868_v45, %v6867_v33  ;;  %v6871_v12 = vrot.slane %v6867_v33, 4  ;;  %v6891_v57 = vrot.slane %v6889_v59, 7  ;;  %14363 = vmatprep.subr.bf16.mxu0 %v15482_v2  ;;  %v15488_v16 = vld [vmem:[#allocation10 + $0x158] sm:$0xff]   ;;  %v15496_v48 = vld [vmem:[#allocation10 + $0x160] sm:$0xff]  }
 0x4bb   : > { %v7338_v56 = vrot.slane %v7336_v21, 5  ;;  %v7165_v25 = vsel %vm16186_vm8, %v6886_v46, %v7164_v29  ;;  %v7168_v6 = vsel %vm16152_vm2, %v6887_v22, %v7167_v19  ;;  %v6593_v55 = vmax.f32 %v15058_v53, 0.0  ;;  %v7282_v47 = vld [vmem:[#allocation2 + $0x14] sm:$0x1]  ;;  %v15490_v11 = vld [vmem:[#allocation10 + $0x118] sm:$0xff]   ;;  %v15494_v29 = vld [vmem:[#allocation10 + $0x180] sm:$0xff]  }
 0x4bc   : > { %v7334_v61 = vrot.slane %v7333_v52, 4  ;;  %7169 = vst [vmem:[#allocation2 + $0xbc] sm:$0x1] %v7168_v6  ;;  %7166 = vst [vmem:[#allocation2 + $0xb8] sm:$0xf] %v7165_v25  ;;  %v7153_v0 = vsel %vm16186_vm8, %v6870_v5, %v7152_v13  ;;  %v7156_v1 = vsel %vm16152_vm2, %v6871_v12, %v7155_v62  ;;  %v6894_v8 = vor.u32 %v6892_v3, %v6891_v57  ;;  %v15498_v12 = vld [vmem:[#allocation10 + $0x120] sm:$0xff]  }
 0x4bd   : > { %v6895_v17 = vrot.slane %v6891_v57, 4  ;;  %v18647_v18 = vld [vmem:[#allocation2 + $0x1c] sm:$0x1]  ;;  %v7955_v43 = vld [vmem:[#allocation2 + $0x18] sm:$0xe]  ;;  %v13583_v45 = vpack.c.bf16 %v6593_v55, %v6593_v55  ;;  %v13190_v32 = vcombine.low %v18432_v34, %v18621_v44  ;;  %v13224_v31 = vrot.slane %v7954_v27, 9  ;;  %14364 = vmatpush3.bf16.msra.mxu0 %v15484_v41 }
 0x4be   : > { %7157 = vst [vmem:[#allocation2 + $0xac] sm:$0x1] %v7156_v1  ;;  %7154 = vst [vmem:[#allocation2 + $0xa8] sm:$0xf] %v7153_v0  ;;  %v7339_v60 = vsel %vm16786_vm12, %v7334_v61, %v7338_v56  ;;  %v18653_v2 = vld [vmem:[#allocation2 + $0x10] sm:$0xf]  ;;  %v7171_v9 = vsel %vm16186_vm8, %v6894_v8, %v7170_v63  ;;  %14365 = vmatprep.subr.bf16.mxu0 %v15488_v16 }
 0x4bf   : > { %v18655_v4 = vld [vmem:[#allocation2 + $0x18] sm:$0xf]  ;;  %v7174_v19 = vsel %vm16152_vm2, %v6895_v17, %v7173_v37  ;;  %v13206_v13 = vcombine.low %v7325_v35, %v7339_v60  ;;  %v8058_v34 = vrot.slane %v7282_v47, 5  ;;  %v15501_v44 = vld [vmem:[#allocation10 + $0x1c8] sm:$0xff]   ;;  %7172 = vst [vmem:[#allocation2 + $0xc0] sm:$0xf] %v7171_v9 }
 0x4c0   : > { %7175 = vst [vmem:[#allocation2 + $0xc4] sm:$0x1] %v7174_v19  ;;  %v6873_v23 = vshrl.u32 %v13583_v45, 16  ;;  %v6876_v33 = vshll.u32 %v13583_v45, 16  ;;  %v13225_v62 = vrot.slane %v7955_v43, 9  ;;  %v8062_v59 = vrot.slane %v18647_v18, 5 }
 0x4c1   : > { %8785 = vmatprep.mubr.bf16.mxu1 %v13206_v13  ;;  %v7158_v3 = vld [vmem:[#allocation2 + $0xb0] sm:$0xf]  ;;  %v8059_v21 = vsel %vm16241_vm9, %v13224_v31, %v8058_v34  ;;  %v7341_v46 = vshrl.u32 %v18653_v2, 16  ;;  %v7344_v15 = vshll.u32 %v18653_v2, 16  ;;  %v7350_v14 = vshll.u32 %v7282_v47, 16  ;;  %14366 = vmatpush3.bf16.msra.mxu0 %v15490_v11  ;;  %v15502_v57 = vld [vmem:[#allocation10 + $0x188] sm:$0xff]  }
 0x4c2   : > { %v6875_v35 = vrot.slane %v6873_v23, 7  ;;  %v7161_v22 = vld [vmem:[#allocation2 + $0xb4] sm:$0x1]  ;;  %8786 = vmatmul.mubr.bf16.vlgmr.msra.gmra.mrb[192].mxu1 %v13190_v32  ;;  %v8063_v63 = vsel %vm16241_vm9, %v13225_v62, %v8062_v59  ;;  %v7355_v37 = vshrl.u32 %v18655_v4, 16  ;;  %v7358_v52 = vshll.u32 %v18655_v4, 16  ;;  %14367 = vmatprep.subr.bf16.mxu0 %v15496_v48  ;;  %v15504_v56 = vld [vmem:[#allocation10 + $0x168] sm:$0xff]  }
 0x4c3   : > { %v13255_v53 = vcombine.low %v8059_v21, %v8063_v63  ;;  %v7343_v27 = vrot.slane %v7341_v46, 4  ;;  %v7346_v41 = vrot.slane %v7344_v15, 5  ;;  %v7352_v5 = vrot.slane %v7350_v14, 5  ;;  %14472 = vmatpush3.bf16.msra.mxu1 %v15494_v29  ;;  %v15474_v55 = vld [vmem:[#allocation2 + $0x28] ss:$8 sps:$4 sm:$0xff]  }
 0x4c4   : > { %v6878_v16 = vor.u32 %v6876_v33, %v6875_v35  ;;  %v6879_v25 = vrot.slane %v6875_v35, 4  ;;  %v7357_v6 = vrot.slane %v7355_v37, 4  ;;  %v7360_v61 = vrot.slane %v7358_v52, 5  ;;  %14473 = vmatprep.subr.bf16.mxu1 %v15501_v44  ;;  %v15509_v47 = vld [vmem:[#allocation10 + $0x1d0] sm:$0xff]   ;;  %v15611_v1 = vld [vmem:[%s20550_s4] ss:$0 sm:$0xff] }
 0x4c5   : > { %8537 = vmatmul.mubr.bf16.gmra.mrb[132].mxu0 %v13255_v53  ;;  %v7347_v0 = vor.u32 %v7346_v41, %v7343_v27  ;;  %v7364_v11 = vshll.u32 %v18647_v18, 16  ;;  %v15059_v8 = vadd.f32 %v15611_v1, %v18586_v24  ;;  %v15060_v17 = vadd.f32 %v15611_v1, %v18594_v49  ;;  %v18686_v32 = vld [vmem:[#allocation2 + $0x24] sm:$0x1]  ;;  %v7956_v18 = vld [vmem:[#allocation2 + $0x20] sm:$0xe]  ;;  %v15506_v49 = vld [vmem:[#allocation10 + $0x128] sm:$0xff]  }
 0x4c6   : > { %v7159_v43 = vsel %vm16186_vm8, %v6878_v16, %v7158_v3  ;;  %v7162_v29 = vsel %vm16152_vm2, %v6879_v25, %v7161_v22  ;;  %v7361_v60 = vor.u32 %v7360_v61, %v7357_v6  ;;  %8544 = vmatprep.mubr.bf16.mxu0 %v15474_v55  ;;  %v15061_v45 = vadd.f32 %v15611_v1, %v18596_v26  ;;  %v15510_v19 = vld [vmem:[#allocation10 + $0x190] sm:$0xff]   ;;  %v15517_v33 = vld [vmem:[#allocation10 + $0x1d8] sm:$0xff]   ;;  %v18695_v35 = vld [vmem:[#allocation2 + $0x2c] sm:$0x1] }
 0x4c7   : > { %7163 = vst [vmem:[#allocation2 + $0xb4] sm:$0x1] %v7162_v29  ;;  %7160 = vst [vmem:[#allocation2 + $0xb0] sm:$0xf] %v7159_v43  ;;  %v7348_v31 = vrot.slane %v7347_v0, 4  ;;  %v7366_v48 = vrot.slane %v7364_v11, 5  ;;  %14368 = vmatpush3.bf16.msra.mxu0 %v15498_v12  ;;  %14474 = vmatpush3.bf16.msra.mxu1 %v15502_v57  ;;  %v15062_v44 = vadd.f32 %v15611_v1, %v18600_v28 }
 0x4c8   : > { %v6598_v24 = vmax.f32 %v15059_v8, 0.0  ;;  %v6596_v9 = vmax.f32 %v15060_v17, 0.0  ;;  %v7362_v13 = vrot.slane %v7361_v60, 4  ;;  %v6599_v34 = vmax.f32 %v15061_v45, 0.0  ;;  %14369 = vmatprep.subr.bf16.mxu0 %v15504_v56  ;;  %14475 = vmatprep.subr.bf16.mxu1 %v15509_v47  ;;  %v15512_v23 = vld [vmem:[#allocation10 + $0x170] sm:$0xff]   ;;  %v15518_v53 = vld [vmem:[#allocation10 + $0x198] sm:$0xff]  }
 0x4c9   : > { %v13191_v26 = vcombine.low %v18653_v2, %v18655_v4  ;;  %v7353_v62 = vsel %vm16786_vm12, %v7348_v31, %v7352_v5  ;;  %v13226_v21 = vrot.slane %v7956_v18, 9  ;;  %v6597_v14 = vmax.f32 %v15062_v44, 0.0  ;;  %v7957_v28 = vld [vmem:[#allocation2 + $0x28] sm:$0xe]  ;;  %v15514_v52 = vld [vmem:[#allocation10 + $0x130] sm:$0xff]   ;;  %v15520_v6 = vld [vmem:[#allocation10 + $0x178] sm:$0xff]  }
 0x4ca   : > { %v13588_v59 = vpack.c.bf16 %v6598_v24, %v6598_v24  ;;  %v13586_v3 = vpack.c.bf16 %v6596_v9, %v6596_v9  ;;  %v7367_v46 = vsel %vm16786_vm12, %v7362_v13, %v7366_v48  ;;  %v13589_v15 = vpack.c.bf16 %v6599_v34, %v6599_v34  ;;  %v7188_v27 = vld [vmem:[#allocation2 + $0xd8] sm:$0xf]  ;;  %v7191_v41 = vld [vmem:[#allocation2 + $0xdc] sm:$0x1]  ;;  %v7176_v12 = vld [vmem:[#allocation2 + $0xc8] sm:$0xf] }
 0x4cb   : > { %v8066_v2 = vrot.slane %v18686_v32, 5  ;;  %v13207_v4 = vcombine.low %v7353_v62, %v7367_v46  ;;  %14370 = vmatpush3.bf16.msra.mxu0 %v15506_v49  ;;  %14476 = vmatpush3.bf16.msra.mxu1 %v15510_v19  ;;  %v7179_v57 = vld [vmem:[#allocation2 + $0xcc] sm:$0x1]  ;;  %v13587_v25 = vpack.c.bf16 %v6597_v14, %v6597_v14  ;;  %v15524_v61 = vld [vmem:[#allocation10 + $0x1e0] sm:$0xff]   ;;  %v13227_v1 = vrot.slane %v7957_v28, 9  ;;  %v15522_v24 = vld [vmem:[#allocation10 + $0x138] sm:$0xff]  }
 0x4cc   : > { %v6913_v22 = vshrl.u32 %v13588_v59, 16  ;;  %v6916_v63 = vshll.u32 %v13588_v59, 16  ;;  %v6897_v37 = vshrl.u32 %v13586_v3, 16  ;;  %v6900_v5 = vshll.u32 %v13586_v3, 16  ;;  %14371 = vmatprep.subr.bf16.mxu0 %v15512_v23  ;;  %14477 = vmatprep.subr.bf16.mxu1 %v15517_v33  ;;  %v7194_v0 = vld [vmem:[#allocation2 + $0xe0] sm:$0xf] }
 0x4cd   : > { %v6921_v56 = vshrl.u32 %v13589_v15, 16  ;;  %v6924_v16 = vshll.u32 %v13589_v15, 16  ;;  %8793 = vmatprep.mubr.bf16.mxu1 %v13207_v4  ;;  %v18700_v11 = vsel %vm16241_vm9, %v13226_v21, %v8066_v2  ;;  %v6905_v17 = vshrl.u32 %v13587_v25, 16  ;;  %v7197_v48 = vld [vmem:[#allocation2 + $0xe4] sm:$0x1] }
 0x4ce   : > { %v6915_v55 = vrot.slane %v6913_v22, 7  ;;  %v6899_v47 = vrot.slane %v6897_v37, 7  ;;  %v6908_v43 = vshll.u32 %v13587_v25, 16  ;;  %8794 = vmatmul.mubr.bf16.gmra.mrb[196].mxu1 %v13191_v26  ;;  %v8070_v29 = vrot.slane %v18695_v35, 5  ;;  %v15525_v9 = vld [vmem:[#allocation10 + $0x1a0] sm:$0xff]   ;;  %v15526_v26 = vld [vmem:[#allocation10 + $0x1e8] sm:$0xff]  }
 0x4cf   : > { %v6923_v8 = vrot.slane %v6921_v56, 7  ;;  %14372 = vmatpush3.bf16.msra.mxu0 %v15514_v52  ;;  %14478 = vmatpush3.bf16.msra.mxu1 %v15518_v53  ;;  %v6907_v13 = vrot.slane %v6905_v17, 7  ;;  %v18705_v44 = vld [vmem:[#allocation2 + $0x20] sm:$0xf]  ;;  %v7182_v21 = vld [vmem:[#allocation2 + $0xd0] sm:$0xf] }
 0x4d0   : > { %v6918_v60 = vor.u32 %v6916_v63, %v6915_v55  ;;  %v6919_v45 = vrot.slane %v6915_v55, 4  ;;  %v6902_v18 = vor.u32 %v6900_v5, %v6899_v47  ;;  %v6903_v31 = vrot.slane %v6899_v47, 4  ;;  %14373 = vmatprep.subr.bf16.mxu0 %v15520_v6  ;;  %14479 = vmatprep.subr.bf16.mxu1 %v15524_v61  ;;  %v15532_v23 = vld [vmem:[#allocation10 + $0x200] sm:$0xff]   ;;  %v7185_v46 = vld [vmem:[#allocation2 + $0xd4] sm:$0x1] }
 0x4d1   : > { %v6926_v49 = vor.u32 %v6924_v16, %v6923_v8  ;;  %v6927_v19 = vrot.slane %v6923_v8, 4  ;;  %v8071_v34 = vsel %vm16241_vm9, %v13227_v1, %v8070_v29  ;;  %v18715_v15 = vld [vmem:[#allocation2 + $0x28] sm:$0xf]  ;;  %v6910_v2 = vor.u32 %v6908_v43, %v6907_v13  ;;  %v15477_v22 = vld [vmem:[#allocation2 + $0x38] ss:$8 sps:$4 sm:$0xff]   ;;  %v15529_v61 = vld [vmem:[#allocation10 + $0x1f0] sm:$0xff]  }
 0x4d2   : > { %v7189_v33 = vsel %vm16186_vm8, %v6918_v60, %v7188_v27  ;;  %v7192_v62 = vsel %vm16152_vm2, %v6919_v45, %v7191_v41  ;;  %v7177_v59 = vsel %vm16186_vm8, %v6902_v18, %v7176_v12  ;;  %v7180_v3 = vsel %vm16152_vm2, %v6903_v31, %v7179_v57  ;;  %v7286_v63 = vld [vmem:[#allocation2 + $0x34] sm:$0x1]  ;;  %v18725_v41 = vld [vmem:[#allocation2 + $0x3c] sm:$0x1]  ;;  %v7958_v5 = vld [vmem:[#allocation2 + $0x30] sm:$0xe] }
 0x4d3   : > { %7193 = vst [vmem:[#allocation2 + $0xdc] sm:$0x1] %v7192_v62  ;;  %7190 = vst [vmem:[#allocation2 + $0xd8] sm:$0xf] %v7189_v33  ;;  %v7195_v14 = vsel %vm16186_vm8, %v6926_v49, %v7194_v0  ;;  %v7198_v28 = vsel %vm16152_vm2, %v6927_v19, %v7197_v48  ;;  %v6911_v4 = vrot.slane %v6907_v13, 4  ;;  %v13256_v37 = vcombine.low %v18700_v11, %v8071_v34  ;;  %v15527_v12 = vld [vmem:[#allocation10 + $0x1a8] sm:$0xff]  }
 0x4d4   : > { %7181 = vst [vmem:[#allocation2 + $0xcc] sm:$0x1] %v7180_v3  ;;  %7178 = vst [vmem:[#allocation2 + $0xc8] sm:$0xf] %v7177_v59  ;;  %v7369_v52 = vshrl.u32 %v18705_v44, 16  ;;  %v7372_v53 = vshll.u32 %v18705_v44, 16  ;;  %14374 = vmatpush3.bf16.msra.mxu0 %v15522_v24  ;;  %14480 = vmatpush3.bf16.msra.mxu1 %v15525_v9  ;;  %v7183_v57 = vsel %vm16186_vm8, %v6910_v2, %v7182_v21 }
 0x4d5   : > { %7199 = vst [vmem:[#allocation2 + $0xe4] sm:$0x1] %v7198_v28  ;;  %7196 = vst [vmem:[#allocation2 + $0xe0] sm:$0xf] %v7195_v14  ;;  %v7378_v27 = vshll.u32 %v18686_v32, 16  ;;  %v7186_v56 = vsel %vm16152_vm2, %v6911_v4, %v7185_v46  ;;  %v7383_v16 = vshrl.u32 %v18715_v15, 16  ;;  %14481 = vmatprep.subr.bf16.mxu1 %v15526_v26  ;;  %14847 = vmatprep.subr.bf16.mxu0 %v15532_v23 }
 0x4d6   : > { %v7386_v25 = vshll.u32 %v18715_v15, 16  ;;  %v7959_v6 = vld [vmem:[#allocation2 + $0x38] sm:$0xe]  ;;  %7187 = vst [vmem:[#allocation2 + $0xd4] sm:$0x1] %v7186_v56  ;;  %8545 = vmatmul.mubr.bf16.gmra.mrb[136].mxu0 %v13256_v37  ;;  %v7371_v32 = vrot.slane %v7369_v52, 4  ;;  %v13192_v1 = vcombine.low %v18705_v44, %v18715_v15 }
 0x4d7   : > { %7184 = vst [vmem:[#allocation2 + $0xd0] sm:$0xf] %v7183_v57  ;;  %v7374_v55 = vrot.slane %v7372_v53, 5  ;;  %v7380_v47 = vrot.slane %v7378_v27, 5  ;;  %v7392_v7 = vshll.u32 %v18695_v35, 16  ;;  %v7385_v42 = vrot.slane %v7383_v16, 4  ;;  %8552 = vmatprep.mubr.bf16.mxu0 %v15477_v22 }
 0x4d8   : > { %v18734_v0 = vld [vmem:[#allocation2 + $0x30] sm:$0xf]  ;;  %v7388_v11 = vrot.slane %v7386_v25, 5  ;;  %v13228_v8 = vrot.slane %v7958_v5, 9  ;;  %v18738_v17 = vld [vmem:[#allocation2 + $0x38] sm:$0xf]  ;;  %14482 = vmatpush3.bf16.msra.mxu1 %v15527_v12 }
 0x4d9   : > { %v7375_v43 = vor.u32 %v7374_v55, %v7371_v32  ;;  %v7394_v29 = vrot.slane %v7392_v7, 5  ;;  %v8074_v60 = vrot.slane %v7286_v63, 5  ;;  %v13229_v45 = vrot.slane %v7959_v6, 9  ;;  %v15530_v18 = vld [vmem:[#allocation10 + $0x1b0] sm:$0xff]   ;;  %v7289_v9 = vld [vmem:[#allocation2 + $0x5c] sm:$0x1]  ;;  %14483 = vmatprep.subr.bf16.mxu1 %v15529_v61 }
 0x4da   : > { %v7389_v31 = vor.u32 %v7388_v11, %v7385_v42  ;;  %v8078_v35 = vrot.slane %v18725_v41, 5  ;;  %v7397_v48 = vshrl.u32 %v18734_v0, 16  ;;  %v7400_v24 = vshll.u32 %v18734_v0, 16  ;;  %v7961_v49 = vld [vmem:[#allocation2 + $0x58] sm:$0xe] }
 0x4db   : > { %v15533_v19 = vld [vmem:[#allocation10 + $0x1f8] sm:$0xff]   ;;  %v7376_v13 = vrot.slane %v7375_v43, 4  ;;  %v8075_v34 = vsel %vm16241_vm9, %v13228_v8, %v8074_v60  ;;  %v7406_v44 = vshll.u32 %v7286_v63, 16  ;;  %v7411_v26 = vshrl.u32 %v18738_v17, 16  ;;  %v7290_v52 = vld [vmem:[#allocation2 + $0x64] sm:$0x1] }
 0x4dc   : > { %v7390_v23 = vrot.slane %v7389_v31, 4  ;;  %v8079_v33 = vsel %vm16241_vm9, %v13229_v45, %v8078_v35  ;;  %v7399_v62 = vrot.slane %v7397_v48, 4  ;;  %v7402_v59 = vrot.slane %v7400_v24, 5  ;;  %v18748_v3 = vld [vmem:[#allocation2 + $0x58] sm:$0xf]  ;;  %14484 = vmatpush3.bf16.msra.mxu1 %v15530_v18 }
 0x4dd   : > { %v7381_v21 = vsel %vm16786_vm12, %v7376_v13, %v7380_v47  ;;  %v13257_v46 = vcombine.low %v8075_v34, %v8079_v33  ;;  %v7408_v15 = vrot.slane %v7406_v44, 5  ;;  %v7413_v14 = vrot.slane %v7411_v26, 4  ;;  %v15480_v28 = vld [vmem:[#allocation2 + $0x58] ss:$8 sps:$4 sm:$0xff]   ;;  %14485 = vmatprep.subr.bf16.mxu1 %v15533_v19  ;;  %v7291_v57 = vld [vmem:[#allocation2 + $0x6c] sm:$0x1] }
 0x4de   : > { %v15534_v2 = vld [vmem:[#allocation10 + $0x1b8] sm:$0xff]   ;;  %v7395_v4 = vsel %vm16786_vm12, %v7390_v23, %v7394_v29  ;;  %v7403_v22 = vor.u32 %v7402_v59, %v7399_v62  ;;  %v7414_v63 = vshll.u32 %v18738_v17, 16  ;;  %v7420_v37 = vshll.u32 %v18725_v41, 16  ;;  %v7962_v61 = vld [vmem:[#allocation2 + $0x60] sm:$0xe] }
 0x4df   : > { %v13208_v53 = vcombine.low %v7381_v21, %v7395_v4  ;;  %8553 = vmatmul.mubr.bf16.gmra.mrb[140].mxu0 %v13257_v46  ;;  %v13193_v27 = vcombine.low %v18734_v0, %v18738_v17  ;;  %v13231_v5 = vrot.slane %v7961_v49, 9  ;;  %v8086_v12 = vrot.slane %v7289_v9, 5  ;;  %v18762_v47 = vld [vmem:[#allocation2 + $0x50] sm:$0xf]  ;;  %v7963_v0 = vld [vmem:[#allocation2 + $0x68] sm:$0xe] }
 0x4e0   : > { %v7404_v56 = vrot.slane %v7403_v22, 4  ;;  %v7416_v16 = vrot.slane %v7414_v63, 5  ;;  %v7422_v25 = vrot.slane %v7420_v37, 5  ;;  %8560 = vmatprep.mubr.bf16.mxu0 %v15480_v28  ;;  %v7439_v6 = vshrl.u32 %v18748_v3, 16  ;;  %v18766_v42 = vld [vmem:[#allocation2 + $0x60] sm:$0xf]  ;;  %14486 = vmatpush3.bf16.msra.mxu1 %v15534_v2 }
 0x4e1   : > { %8801 = vmatprep.mubr.bf16.mxu1 %v13208_v53  ;;  %v8087_v41 = vsel %vm16241_vm9, %v13231_v5, %v8086_v12  ;;  %v7442_v32 = vshll.u32 %v18748_v3, 16  ;;  %v7448_v55 = vshll.u32 %v7289_v9, 16  ;;  %v13194_v7 = vcombine.low %v18762_v47, %v18748_v3  ;;  %v18771_v31 = vld [vmem:[#allocation2 + $0x68] sm:$0xf]  ;;  %v7292_v33 = vld [vmem:[#allocation2 + $0x74] sm:$0x1] }
 0x4e2   : > { %8802 = vmatmul.mubr.bf16.gmra.mrb[200].mxu1 %v13192_v1  ;;  %v7409_v11 = vsel %vm16786_vm12, %v7404_v56, %v7408_v15  ;;  %v7417_v8 = vor.u32 %v7416_v16, %v7413_v14  ;;  %v13258_v17 = vcombine.low %v18467_v54, %v8087_v41  ;;  %v7441_v43 = vrot.slane %v7439_v6, 4  ;;  %v15483_v1 = vld [vmem:[#allocation2 + $0x68] ss:$8 sps:$4 sm:$0xff]   ;;  %v7293_v14 = vld [vmem:[#allocation2 + $0x7c] sm:$0x1] }
 0x4e3   : > { %v7444_v29 = vrot.slane %v7442_v32, 5  ;;  %v7450_v60 = vrot.slane %v7448_v55, 5  ;;  %v13232_v45 = vrot.slane %v7962_v61, 9  ;;  %v8090_v18 = vrot.slane %v7290_v52, 5  ;;  %v7964_v62 = vld [vmem:[#allocation2 + $0x70] sm:$0xe] }
 0x4e4   : > { %v7418_v35 = vrot.slane %v7417_v8, 4  ;;  %v13233_v48 = vrot.slane %v7963_v0, 9  ;;  %v8094_v24 = vrot.slane %v7291_v57, 5  ;;  %v7453_v9 = vshrl.u32 %v18766_v42, 16  ;;  %v7965_v28 = vld [vmem:[#allocation2 + $0x78] sm:$0xe] }
 0x4e5   : > { %v7445_v49 = vor.u32 %v7444_v29, %v7441_v43  ;;  %v8091_v19 = vsel %vm16241_vm9, %v13232_v45, %v8090_v18  ;;  %v7456_v13 = vshll.u32 %v18766_v42, 16  ;;  %v7462_v54 = vshll.u32 %v7290_v52, 16  ;;  %v18783_v37 = vld [vmem:[#allocation2 + $0x70] sm:$0xf]  ;;  %v18794_v6 = vld [vmem:[#allocation2 + $0x78] sm:$0xf] }
 0x4e6   : > { %v7423_v34 = vsel %vm16786_vm12, %v7418_v35, %v7422_v25  ;;  %v8095_v44 = vsel %vm16241_vm9, %v13233_v48, %v8094_v24  ;;  %v7455_v26 = vrot.slane %v7453_v9, 4  ;;  %v7467_v23 = vshrl.u32 %v18771_v31, 16  ;;  %v7294_v30 = vld [vmem:[#allocation2 + $0x84] sm:$0x1]  ;;  %v7966_v45 = vld [vmem:[#allocation2 + $0x80] sm:$0xe] }
 0x4e7   : > { %v13209_v59 = vcombine.low %v7409_v11, %v7423_v34  ;;  %8561 = vmatmul.mubr.bf16.gmra.mrb[144].mxu0 %v13258_v17  ;;  %v7446_v21 = vrot.slane %v7445_v49, 4  ;;  %v13259_v46 = vcombine.low %v8091_v19, %v8095_v44  ;;  %v7458_v15 = vrot.slane %v7456_v13, 5  ;;  %v15486_v11 = vld [vmem:[#allocation2 + $0x78] ss:$8 sps:$4 sm:$0xff]   ;;  %v7967_v9 = vld [vmem:[#allocation2 + $0x88] sm:$0xe] }
 0x4e8   : > { %8568 = vmatprep.mubr.bf16.mxu0 %v15483_v1  ;;  %v7464_v2 = vrot.slane %v7462_v54, 5  ;;  %v7469_v4 = vrot.slane %v7467_v23, 4  ;;  %v7470_v22 = vshll.u32 %v18771_v31, 16  ;;  %v7476_v63 = vshll.u32 %v7291_v57, 16  ;;  %v18808_v54 = vld [vmem:[#allocation2 + $0x80] sm:$0xf] }
 0x4e9   : > { %8809 = vmatprep.mubr.bf16.mxu1 %v13209_v59  ;;  %v7451_v52 = vsel %vm16786_vm12, %v7446_v21, %v7450_v60  ;;  %v7459_v53 = vor.u32 %v7458_v15, %v7455_v26  ;;  %v13195_v5 = vcombine.low %v18766_v42, %v18771_v31  ;;  %v13234_v12 = vrot.slane %v7964_v62, 9  ;;  %v7295_v60 = vld [vmem:[#allocation2 + $0x8c] sm:$0x1] }
 0x4ea   : > { %8810 = vmatmul.mubr.bf16.gmra.mrb[204].mxu1 %v13193_v27  ;;  %v13210_v56 = vcombine.low %v7437_v39, %v7451_v52  ;;  %v7472_v16 = vrot.slane %v7470_v22, 5  ;;  %v7478_v57 = vrot.slane %v7476_v63, 5  ;;  %v8098_v25 = vrot.slane %v7292_v33, 5 }
 0x4eb   : > { %v7460_v61 = vrot.slane %v7459_v53, 4  ;;  %v13235_v41 = vrot.slane %v7965_v28, 9  ;;  %v8102_v32 = vrot.slane %v7293_v14, 5  ;;  %v7481_v55 = vshrl.u32 %v18783_v37, 16 }
 0x4ec   : > { %8817 = vmatprep.mubr.bf16.mxu1 %v13210_v56  ;;  %v7473_v0 = vor.u32 %v7472_v16, %v7469_v4  ;;  %v8099_v27 = vsel %vm16241_vm9, %v13234_v12, %v8098_v25  ;;  %v7484_v8 = vshll.u32 %v18783_v37, 16  ;;  %v7490_v51 = vshll.u32 %v7292_v33, 16  ;;  %v18812_v33 = vld [vmem:[#allocation2 + $0x88] sm:$0xf]  ;;  %v18829_v56 = vld [vmem:[#allocation2 + $0xa0] sm:$0xf] }
 0x4ed   : > { %v7465_v39 = vsel %vm16786_vm12, %v7460_v61, %v7464_v2  ;;  %v8103_v17 = vsel %vm16241_vm9, %v13235_v41, %v8102_v32  ;;  %v7483_v43 = vrot.slane %v7481_v55, 4  ;;  %v7495_v29 = vshrl.u32 %v18794_v6, 16  ;;  %v7969_v12 = vld [vmem:[#allocation2 + $0xa8] sm:$0xe]  ;;  %v7297_v41 = vld [vmem:[#allocation2 + $0xac] sm:$0x1] }
 0x4ee   : > { %v7474_v18 = vrot.slane %v7473_v0, 4  ;;  %v13260_v35 = vcombine.low %v8099_v27, %v8103_v17  ;;  %v7486_v48 = vrot.slane %v7484_v8, 5  ;;  %v7492_v24 = vrot.slane %v7490_v51, 5  ;;  %v15489_v32 = vld [vmem:[#allocation2 + $0x88] ss:$8 sps:$4 sm:$0xff]  }
 0x4ef   : > { %8569 = vmatmul.mubr.bf16.gmra.mrb[148].mxu0 %v13259_v46  ;;  %v7497_v49 = vrot.slane %v7495_v29, 4  ;;  %v7498_v1 = vshll.u32 %v18794_v6, 16  ;;  %v7504_v19 = vshll.u32 %v7293_v14, 16  ;;  %v13196_v13 = vcombine.low %v18783_v37, %v18794_v6  ;;  %v18844_v17 = vld [vmem:[#allocation2 + $0xa8] sm:$0xf] }
 0x4f0   : > { %v7479_v34 = vsel %vm16786_vm12, %v7474_v18, %v7478_v57  ;;  %8576 = vmatprep.mubr.bf16.mxu0 %v15486_v11  ;;  %v7487_v44 = vor.u32 %v7486_v48, %v7483_v43  ;;  %v13236_v26 = vrot.slane %v7966_v45, 9  ;;  %v8106_v23 = vrot.slane %v7294_v30, 5 }
 0x4f1   : > { %v13211_v62 = vcombine.low %v7465_v39, %v7479_v34  ;;  %v7500_v59 = vrot.slane %v7498_v1, 5  ;;  %v7506_v21 = vrot.slane %v7504_v19, 5  ;;  %v13237_v46 = vrot.slane %v7967_v9, 9  ;;  %v7971_v1 = vld [vmem:[#allocation2 + $0xb8] sm:$0xe] }
 0x4f2   : > { %8818 = vmatmul.mubr.bf16.gmra.mrb[208].mxu1 %v13194_v7  ;;  %v7488_v15 = vrot.slane %v7487_v44, 4  ;;  %v18819_v14 = vsel %vm16241_vm9, %v13236_v26, %v8106_v23  ;;  %v8110_v28 = vrot.slane %v7295_v60, 5  ;;  %v7509_v2 = vshrl.u32 %v18808_v54, 16  ;;  %v7970_v44 = vld [vmem:[#allocation2 + $0xb0] sm:$0xe] }
 0x4f3   : > { %8825 = vmatprep.mubr.bf16.mxu1 %v13211_v62  ;;  %v7501_v4 = vor.u32 %v7500_v59, %v7497_v49  ;;  %v7512_v22 = vshll.u32 %v18808_v54, 16  ;;  %v7518_v63 = vshll.u32 %v7294_v30, 16  ;;  %v7523_v52 = vshrl.u32 %v18812_v33, 16  ;;  %v7299_v49 = vld [vmem:[#allocation2 + $0xbc] sm:$0x1] }
 0x4f4   : > { %v7493_v53 = vsel %vm16786_vm12, %v7488_v15, %v7492_v24  ;;  %v8111_v3 = vsel %vm16241_vm9, %v13237_v46, %v8110_v28  ;;  %v7511_v47 = vrot.slane %v7509_v2, 4  ;;  %v7526_v7 = vshll.u32 %v18812_v33, 16  ;;  %v18867_v2 = vld [vmem:[#allocation2 + $0xb8] sm:$0xf] }
 0x4f5   : > { %v7502_v16 = vrot.slane %v7501_v4, 4  ;;  %v13261_v57 = vcombine.low %v18819_v14, %v8111_v3  ;;  %v7514_v25 = vrot.slane %v7512_v22, 5  ;;  %v7520_v61 = vrot.slane %v7518_v63, 5  ;;  %v15492_v4 = vld [vmem:[#allocation2 + $0xa8] ss:$8 sps:$4 sm:$0xff]  }
 0x4f6   : > { %v7525_v55 = vrot.slane %v7523_v52, 4  ;;  %v7528_v0 = vrot.slane %v7526_v7, 5  ;;  %v7532_v11 = vshll.u32 %v7295_v60, 16  ;;  %v13197_v27 = vcombine.low %v18808_v54, %v18812_v33 }
 0x4f7   : > { %8577 = vmatmul.mubr.bf16.gmra.mrb[152].mxu0 %v13260_v35  ;;  %v7507_v8 = vsel %vm16786_vm12, %v7502_v16, %v7506_v21  ;;  %v7515_v51 = vor.u32 %v7514_v25, %v7511_v47  ;;  %v18842_v30 = vsel %vm16241_vm9, %v13238_v50, %v8114_v10  ;;  %v13239_v39 = vrot.slane %v7969_v12, 9  ;;  %v18863_v21 = vld [vmem:[#allocation2 + $0xb0] sm:$0xf] }
 0x4f8   : > { %v13212_v43 = vcombine.low %v7493_v53, %v7507_v8  ;;  %8584 = vmatprep.mubr.bf16.mxu0 %v15489_v32  ;;  %v7529_v29 = vor.u32 %v7528_v0, %v7525_v55  ;;  %v7534_v60 = vrot.slane %v7532_v11, 5  ;;  %v8118_v45 = vrot.slane %v7297_v41, 5  ;;  %v7300_v11 = vld [vmem:[#allocation2 + $0xc4] sm:$0x1]  ;;  %v7972_v8 = vld [vmem:[#allocation2 + $0xc0] sm:$0xe] }
 0x4f9   : > { %v7516_v18 = vrot.slane %v7515_v51, 4  ;;  %v7537_v35 = vshrl.u32 %v18829_v56, 16  ;;  %v7540_v48 = vshll.u32 %v18829_v56, 16  ;;  %v7546_v24 = vshll.u32 %v15613_v20, 16  ;;  %v18890_v20 = vld [vmem:[#allocation2 + $0xc0] sm:$0xf] }
 0x4fa   : > { %8826 = vmatmul.mubr.bf16.gmra.mrb[212].mxu1 %v13195_v5  ;;  %v7530_v36 = vrot.slane %v7529_v29, 4  ;;  %v18853_v50 = vsel %vm16241_vm9, %v13239_v39, %v8118_v45  ;;  %v7551_v10 = vshrl.u32 %v18844_v17, 16  ;;  %v7554_v9 = vshll.u32 %v18844_v17, 16  ;;  %v7298_v5 = vld [vmem:[#allocation2 + $0xb4] sm:$0x1] }
 0x4fb   : > { %8833 = vmatprep.mubr.bf16.mxu1 %v13212_v43  ;;  %v7521_v19 = vsel %vm16786_vm12, %v7516_v18, %v7520_v61  ;;  %v13262_v34 = vcombine.low %v18842_v30, %v18853_v50  ;;  %v7539_v42 = vrot.slane %v7537_v35, 4  ;;  %v7542_v31 = vrot.slane %v7540_v48, 5  ;;  %v7301_v29 = vld [vmem:[#allocation2 + $0xcc] sm:$0x1] }
 0x4fc   : > { %v7535_v26 = vsel %vm16786_vm12, %v7530_v36, %v7534_v60  ;;  %v7548_v23 = vrot.slane %v7546_v24, 5  ;;  %v7553_v62 = vrot.slane %v7551_v10, 4  ;;  %v7556_v59 = vrot.slane %v7554_v9, 5  ;;  %v7973_v60 = vld [vmem:[#allocation2 + $0xc8] sm:$0xe] }
 0x4fd   : > { %v13213_v46 = vcombine.low %v7521_v19, %v7535_v26  ;;  %v7543_v15 = vor.u32 %v7542_v31, %v7539_v42  ;;  %v7560_v14 = vshll.u32 %v7297_v41, 16  ;;  %v13198_v28 = vcombine.low %v18829_v56, %v18844_v17  ;;  %v18894_v36 = vld [vmem:[#allocation2 + $0xc8] sm:$0xf]  ;;  %v15497_v19 = vld [vmem:[#allocation2 + $0xb8] ss:$8 sps:$4 sm:$0xff]  }
 0x4fe   : > { %v7557_v22 = vor.u32 %v7556_v59, %v7553_v62  ;;  %v13240_v63 = vrot.slane %v7970_v44, 9  ;;  %v8122_v52 = vrot.slane %v7298_v5, 5  ;;  %v13241_v53 = vrot.slane %v7971_v1, 9  ;;  %v7974_v59 = vld [vmem:[#allocation2 + $0xd0] sm:$0xe] }
 0x4ff   : > { %8585 = vmatmul.mubr.bf16.gmra.mrb[156].mxu0 %v13261_v57  ;;  %v7544_v3 = vrot.slane %v7543_v15, 4  ;;  %v7562_v47 = vrot.slane %v7560_v14, 5  ;;  %v8126_v7 = vrot.slane %v7299_v49, 5  ;;  %v7565_v12 = vshrl.u32 %v18863_v21, 16 }
 0x500   : > { %8592 = vmatprep.mubr.bf16.mxu0 %v15492_v4  ;;  %v7558_v16 = vrot.slane %v7557_v22, 4  ;;  %v18872_v25 = vsel %vm16241_vm9, %v13240_v63, %v8122_v52  ;;  %v7568_v61 = vshll.u32 %v18863_v21, 16  ;;  %v7574_v41 = vshll.u32 %v7298_v5, 16  ;;  %v7302_v22 = vld [vmem:[#allocation2 + $0xd4] sm:$0x1] }
 0x501   : > { %v7549_v32 = vsel %vm16786_vm12, %v7544_v3, %v7548_v23  ;;  %v18879_v57 = vsel %vm16241_vm9, %v13241_v53, %v8126_v7  ;;  %v7567_v55 = vrot.slane %v7565_v12, 4  ;;  %v7579_v0 = vshrl.u32 %v18867_v2, 16 }
 0x502   : > { %8834 = vmatmul.mubr.bf16.gmra.mrb[216].mxu1 %v13196_v13  ;;  %v7563_v51 = vsel %vm16786_vm12, %v7558_v16, %v7562_v47  ;;  %v13263_v30 = vcombine.low %v18872_v25, %v18879_v57  ;;  %v7570_v39 = vrot.slane %v7568_v61, 5  ;;  %v7576_v43 = vrot.slane %v7574_v41, 5  ;;  %v7303_v47 = vld [vmem:[#allocation2 + $0xdc] sm:$0x1]  ;;  %v18917_v41 = vld [vmem:[#allocation2 + $0xd0] sm:$0xf] }
 0x503   : > { %8841 = vmatprep.mubr.bf16.mxu1 %v13213_v46  ;;  %v13214_v45 = vcombine.low %v7549_v32, %v7563_v51  ;;  %v7581_v18 = vrot.slane %v7579_v0, 4  ;;  %v7582_v35 = vshll.u32 %v18867_v2, 16  ;;  %v7588_v48 = vshll.u32 %v7299_v49, 16 }
 0x504   : > { %v7571_v37 = vor.u32 %v7570_v39, %v7567_v55  ;;  %v13199_v6 = vcombine.low %v18863_v21, %v18867_v2  ;;  %v13242_v13 = vrot.slane %v7972_v8, 9  ;;  %v8130_v24 = vrot.slane %v7300_v11, 5  ;;  %v18921_v8 = vld [vmem:[#allocation2 + $0xd8] sm:$0xf]  ;;  %v7308_v2 = vld [vmem:[#allocation2 + $0x114] sm:$0x1] }
 0x505   : > { %v7584_v50 = vrot.slane %v7582_v35, 5  ;;  %v7590_v10 = vrot.slane %v7588_v48, 5  ;;  %v13243_v9 = vrot.slane %v7973_v60, 9  ;;  %v8134_v1 = vrot.slane %v7301_v29, 5 }
 0x506   : > { %v7572_v42 = vrot.slane %v7571_v37, 4  ;;  %v18898_v31 = vsel %vm16241_vm9, %v13242_v13, %v8130_v24  ;;  %v7593_v49 = vshrl.u32 %v18890_v20, 16  ;;  %v7596_v5 = vshll.u32 %v18890_v20, 16  ;;  %v7977_v13 = vld [vmem:[#allocation2 + $0xf8] sm:$0xe] }
 0x507   : > { %8593 = vmatmul.mubr.bf16.gmra.mrb[160].mxu0 %v13262_v34  ;;  %v7585_v44 = vor.u32 %v7584_v50, %v7581_v18  ;;  %v18904_v26 = vsel %vm16241_vm9, %v13243_v9, %v8134_v1  ;;  %v7602_v23 = vshll.u32 %v7300_v11, 16  ;;  %v7607_v62 = vshrl.u32 %v18894_v36, 16  ;;  %v7975_v34 = vld [vmem:[#allocation2 + $0xd8] sm:$0xe]  ;;  %v7305_v1 = vld [vmem:[#allocation2 + $0xfc] sm:$0x1] }
 0x508   : > { %8600 = vmatprep.mubr.bf16.mxu0 %v15497_v19  ;;  %v7577_v46 = vsel %vm16786_vm12, %v7572_v42, %v7576_v43  ;;  %v13264_v15 = vcombine.low %v18898_v31, %v18904_v26  ;;  %v7595_v14 = vrot.slane %v7593_v49, 4  ;;  %v7598_v4 = vrot.slane %v7596_v5, 5 }
 0x509   : > { %v7586_v63 = vrot.slane %v7585_v44, 4  ;;  %v7604_v52 = vrot.slane %v7602_v23, 5  ;;  %v7609_v53 = vrot.slane %v7607_v62, 4  ;;  %v7610_v3 = vshll.u32 %v18894_v36, 16  ;;  %v18942_v44 = vld [vmem:[#allocation2 + $0xf0] sm:$0xf] }
 0x50a   : > { %8842 = vmatmul.mubr.bf16.gmra.mrb[220].mxu1 %v13197_v27  ;;  %v7599_v7 = vor.u32 %v7598_v4, %v7595_v14  ;;  %v7616_v12 = vshll.u32 %v7301_v29, 16  ;;  %v13200_v16 = vcombine.low %v18890_v20, %v18894_v36  ;;  %v13244_v61 = vrot.slane %v7974_v59, 9  ;;  %v18948_v62 = vld [vmem:[#allocation2 + $0xf8] sm:$0xf] }
 0x50b   : > { %8849 = vmatprep.mubr.bf16.mxu1 %v13214_v45  ;;  %v7591_v32 = vsel %vm16786_vm12, %v7586_v63, %v7590_v10  ;;  %v7612_v55 = vrot.slane %v7610_v3, 5  ;;  %v8138_v0 = vrot.slane %v7302_v22, 5  ;;  %v13245_v11 = vrot.slane %v7975_v34, 9  ;;  %v15500_v45 = vld [vmem:[#allocation2 + $0xc8] ss:$8 sps:$4 sm:$0xff]  }
 0x50c   : > { %v13215_v51 = vcombine.low %v7577_v46, %v7591_v32  ;;  %v7600_v54 = vrot.slane %v7599_v7, 4  ;;  %v7618_v33 = vrot.slane %v7616_v12, 5  ;;  %v8142_v27 = vrot.slane %v7303_v47, 5  ;;  %v7978_v7 = vld [vmem:[#allocation2 + $0x100] sm:$0xe] }
 0x50d   : > { %v7613_v39 = vor.u32 %v7612_v55, %v7609_v53  ;;  %v18925_v43 = vsel %vm16241_vm9, %v13244_v61, %v8138_v0  ;;  %v7621_v29 = vshrl.u32 %v18917_v41, 16  ;;  %v7624_v60 = vshll.u32 %v18917_v41, 16  ;;  %v7306_v0 = vld [vmem:[#allocation2 + $0x104] sm:$0x1] }
 0x50e   : > { %v7605_v18 = vsel %vm16786_vm12, %v7600_v54, %v7604_v52  ;;  %v18933_v35 = vsel %vm16241_vm9, %v13245_v11, %v8142_v27  ;;  %v7630_v48 = vshll.u32 %v7302_v22, 16  ;;  %v7635_v37 = vshrl.u32 %v18921_v8, 16  ;;  %v15614_v52 = vld [vmem:[#allocation2 + $0xf4] sm:$0x1]  ;;  %v7979_v11 = vld [vmem:[#allocation2 + $0x108] sm:$0xe] }
 0x50f   : > { %8601 = vmatmul.mubr.bf16.gmra.mrb[164].mxu0 %v13263_v30  ;;  %v7614_v24 = vrot.slane %v7613_v39, 4  ;;  %v13265_v50 = vcombine.low %v18925_v43, %v18933_v35  ;;  %v7623_v10 = vrot.slane %v7621_v29, 4  ;;  %v7626_v9 = vrot.slane %v7624_v60, 5 }
 0x510   : > { %8608 = vmatprep.mubr.bf16.mxu0 %v15500_v45  ;;  %v7632_v19 = vrot.slane %v7630_v48, 5  ;;  %v7637_v42 = vrot.slane %v7635_v37, 4  ;;  %v7638_v49 = vshll.u32 %v18921_v8, 16  ;;  %v7644_v5 = vshll.u32 %v7303_v47, 16  ;;  %v18972_v48 = vld [vmem:[#allocation2 + $0x100] sm:$0xf] }
 0x511   : > { %v7619_v23 = vsel %vm16786_vm12, %v7614_v24, %v7618_v33  ;;  %v7627_v25 = vor.u32 %v7626_v9, %v7623_v10  ;;  %v13201_v57 = vcombine.low %v18917_v41, %v18921_v8  ;;  %v13247_v30 = vrot.slane %v7977_v13, 9  ;;  %v18976_v9 = vld [vmem:[#allocation2 + $0x108] sm:$0xf] }
 0x512   : > { %8850 = vmatmul.mubr.bf16.gmra.mrb[224].mxu1 %v13198_v28  ;;  %v13216_v59 = vcombine.low %v7605_v18, %v7619_v23  ;;  %v7640_v46 = vrot.slane %v7638_v49, 5  ;;  %v7646_v14 = vrot.slane %v7644_v5, 5  ;;  %v8150_v4 = vrot.slane %v7305_v1, 5  ;;  %v18961_v28 = vld [vmem:[#allocation2 + $0x10c] sm:$0x1] }
 0x513   : > { %8857 = vmatprep.mubr.bf16.mxu1 %v13215_v51  ;;  %v7628_v22 = vrot.slane %v7627_v25, 4  ;;  %v7649_v34 = vshrl.u32 %v18942_v44, 16  ;;  %v7652_v63 = vshll.u32 %v18942_v44, 16  ;;  %v7658_v53 = vshll.u32 %v15614_v52, 16  ;;  %v15505_v51 = vld [vmem:[#allocation2 + $0xd8] ss:$8 sps:$4 sm:$0xff]  }
 0x514   : > { %v7641_v3 = vor.u32 %v7640_v46, %v7637_v42  ;;  %v18957_v47 = vsel %vm16241_vm9, %v13247_v30, %v8150_v4  ;;  %v7663_v56 = vshrl.u32 %v18948_v62, 16  ;;  %v7666_v17 = vshll.u32 %v18948_v62, 16 }
 0x515   : > { %v7633_v12 = vsel %vm16786_vm12, %v7628_v22, %v7632_v19  ;;  %v13266_v61 = vcombine.low %v18463_v58, %v18957_v47  ;;  %v7651_v32 = vrot.slane %v7649_v34, 4  ;;  %v7654_v55 = vrot.slane %v7652_v63, 5  ;;  %v7309_v22 = vld [vmem:[#allocation2 + $0x11c] sm:$0x1]  ;;  %v7981_v34 = vld [vmem:[#allocation2 + $0x118] sm:$0xe] }
 0x516   : > { %v7642_v54 = vrot.slane %v7641_v3, 4  ;;  %v7660_v33 = vrot.slane %v7658_v53, 5  ;;  %v7665_v27 = vrot.slane %v7663_v56, 4  ;;  %v7668_v39 = vrot.slane %v7666_v17, 5  ;;  %v19002_v56 = vld [vmem:[#allocation2 + $0x110] sm:$0xf] }
 0x517   : > { %8609 = vmatmul.mubr.bf16.gmra.mrb[168].mxu0 %v13264_v15  ;;  %v7655_v29 = vor.u32 %v7654_v55, %v7651_v32  ;;  %v7672_v60 = vshll.u32 %v7305_v1, 16  ;;  %v13202_v45 = vcombine.low %v18942_v44, %v18948_v62  ;;  %v13248_v18 = vrot.slane %v7978_v7, 9  ;;  %v15508_v17 = vld [vmem:[#allocation2 + $0xf8] ss:$8 sps:$4 sm:$0xff]   ;;  %v8917_v58 = vld [vmem:[#allocation2 + $0x14] sm:$0x1] }
 0x518   : > { %8616 = vmatprep.mubr.bf16.mxu0 %v15505_v51  ;;  %v7647_v37 = vsel %vm16786_vm12, %v7642_v54, %v7646_v14  ;;  %v7669_v13 = vor.u32 %v7668_v39, %v7665_v27  ;;  %v8154_v24 = vrot.slane %v7306_v0, 5  ;;  %v13249_v10 = vrot.slane %v7979_v11, 9  ;;  %v19010_v39 = vld [vmem:[#allocation2 + $0x118] sm:$0xf] }
 0x519   : > { %v13217_v19 = vcombine.low %v7633_v12, %v7647_v37  ;;  %v7656_v31 = vrot.slane %v7655_v29, 4  ;;  %v7674_v26 = vrot.slane %v7672_v60, 5  ;;  %v8158_v15 = vrot.slane %v18961_v28, 5 }
 0x51a   : > { %8858 = vmatmul.mubr.bf16.gmra.mrb[228].mxu1 %v13199_v6  ;;  %v7670_v1 = vrot.slane %v7669_v13, 4  ;;  %v18984_v42 = vsel %vm16241_vm9, %v13248_v18, %v8154_v24  ;;  %v7677_v49 = vshrl.u32 %v18972_v48, 16  ;;  %v7680_v5 = vshll.u32 %v18972_v48, 16  ;;  %v7980_v6 = vld [vmem:[#allocation2 + $0x110] sm:$0xe] }
 0x51b   : > { %8865 = vmatprep.mubr.bf16.mxu1 %v13216_v59  ;;  %v7661_v23 = vsel %vm16786_vm12, %v7656_v31, %v7660_v33  ;;  %v18992_v25 = vsel %vm16241_vm9, %v13249_v10, %v8158_v15  ;;  %v7686_v30 = vshll.u32 %v7306_v0, 16  ;;  %v7691_v21 = vshrl.u32 %v18976_v9, 16  ;;  %v7310_v31 = vld [vmem:[#allocation2 + $0x124] sm:$0x1] }
 0x51c   : > { %v7675_v46 = vsel %vm16786_vm12, %v7670_v1, %v7674_v26  ;;  %v13267_v14 = vcombine.low %v18984_v42, %v18992_v25  ;;  %v7679_v4 = vrot.slane %v7677_v49, 4  ;;  %v7682_v59 = vrot.slane %v7680_v5, 5  ;;  %v7983_v5 = vld [vmem:[#allocation2 + $0x128] sm:$0xe] }
 0x51d   : > { %v18999_v63 = vcombine.low %v7661_v23, %v7675_v46  ;;  %v7688_v52 = vrot.slane %v7686_v30, 5  ;;  %v7693_v53 = vrot.slane %v7691_v21, 4  ;;  %v7694_v3 = vshll.u32 %v18976_v9, 16  ;;  %v19033_v21 = vld [vmem:[#allocation2 + $0x120] sm:$0xf] }
 0x51e   : > { %v7683_v7 = vor.u32 %v7682_v59, %v7679_v4  ;;  %v7700_v12 = vshll.u32 %v18961_v28, 16  ;;  %v13203_v32 = vcombine.low %v18972_v48, %v18976_v9  ;;  %v13250_v55 = vrot.slane %v7980_v6, 9  ;;  %v19037_v4 = vld [vmem:[#allocation2 + $0x128] sm:$0xf] }
 0x51f   : > { %8617 = vmatmul.mubr.bf16.gmra.mrb[172].mxu0 %v13265_v50  ;;  %v7696_v0 = vrot.slane %v7694_v3, 5  ;;  %v8162_v11 = vrot.slane %v7308_v2, 5  ;;  %v13251_v51 = vrot.slane %v7981_v34, 9  ;;  %v8166_v54 = vrot.slane %v7309_v22, 5  ;;  %v7982_v50 = vld [vmem:[#allocation2 + $0x120] sm:$0xe] }
 0x520   : > { %8624 = vmatprep.mubr.bf16.mxu0 %v15508_v17  ;;  %v7684_v33 = vrot.slane %v7683_v7, 4  ;;  %v7702_v27 = vrot.slane %v7700_v12, 5  ;;  %v7705_v29 = vshrl.u32 %v19002_v56, 16  ;;  %v7708_v28 = vshll.u32 %v19002_v56, 16  ;;  %v15513_v59 = vld [vmem:[#allocation2 + $0x108] ss:$8 sps:$4 sm:$0xff]  }
 0x521   : > { %v7697_v60 = vor.u32 %v7696_v0, %v7693_v53  ;;  %v19016_v18 = vsel %vm16241_vm9, %v13250_v55, %v8162_v11  ;;  %v19020_v43 = vsel %vm16241_vm9, %v13251_v51, %v8166_v54  ;;  %v7714_v35 = vshll.u32 %v7308_v2, 16  ;;  %v8915_v55 = vld [vmem:[#allocation2 + $0xc] sm:$0x1] }
 0x522   : > { %8866 = vmatmul.mubr.bf16.gmra.mrb[232].mxu1 %v13200_v16  ;;  %v7689_v37 = vsel %vm16786_vm12, %v7684_v33, %v7688_v52  ;;  %v13268_v13 = vcombine.low %v19016_v18, %v19020_v43  ;;  %v7707_v24 = vrot.slane %v7705_v29, 4  ;;  %v7710_v10 = vrot.slane %v7708_v28, 5  ;;  %v7311_v16 = vld [vmem:[#allocation2 + $0x12c] sm:$0x1]  ;;  %v9426_v29 = vld [vmem:[#allocation2 + $0x8] sm:$0xe] }
 0x523   : > { %8873 = vmatprep.mubr.bf16.mxu1 %v13217_v19  ;;  %v7698_v26 = vrot.slane %v7697_v60, 4  ;;  %v7716_v15 = vrot.slane %v7714_v35, 5  ;;  %v7719_v1 = vshrl.u32 %v19010_v39, 16  ;;  %v7722_v49 = vshll.u32 %v19010_v39, 16  ;;  %v8920_v43 = vld [vmem:[#allocation2 + $0x20] sm:$0xf] }
 0x524   : > { %v7711_v23 = vor.u32 %v7710_v10, %v7707_v24  ;;  %v7728_v20 = vshll.u32 %v7309_v22, 16  ;;  %v13204_v36 = vcombine.low %v19002_v56, %v19010_v39  ;;  %v13252_v30 = vrot.slane %v7982_v50, 9 }
 0x525   : > { %v7703_v2 = vsel %vm16786_vm12, %v7698_v26, %v7702_v27  ;;  %v7721_v19 = vrot.slane %v7719_v1, 4  ;;  %v7724_v6 = vrot.slane %v7722_v49, 5  ;;  %v8170_v46 = vrot.slane %v7310_v31, 5  ;;  %v9427_v26 = vld [vmem:[#allocation2 + $0x10] sm:$0xe] }
 0x526   : > { %v19039_v34 = vcombine.low %v7689_v37, %v7703_v2  ;;  %v7712_v52 = vrot.slane %v7711_v23, 4  ;;  %v7730_v22 = vrot.slane %v7728_v20, 5  ;;  %v13253_v53 = vrot.slane %v7983_v5, 9 }
 0x527   : > { %8625 = vmatmul.mubr.bf16.gmra.mrb[176].mxu0 %v13266_v61  ;;  %v7725_v3 = vor.u32 %v7724_v6, %v7721_v19  ;;  %v19046_v17 = vsel %vm16241_vm9, %v13252_v30, %v8170_v46  ;;  %v8174_v7 = vrot.slane %v7311_v16, 5  ;;  %v7733_v12 = vshrl.u32 %v19033_v21, 16  ;;  %v8916_v30 = vld [vmem:[#allocation2 + $0x10] sm:$0xf] }
 0x528   : > { %8632 = vmatprep.mubr.bf16.mxu0 %v15513_v59  ;;  %v7717_v0 = vsel %vm16786_vm12, %v7712_v52, %v7716_v15  ;;  %v7736_v11 = vshll.u32 %v19033_v21, 16  ;;  %v7742_v51 = vshll.u32 %v7310_v31, 16  ;;  %v7747_v54 = vshrl.u32 %v19037_v4, 16 }
 0x529   : > { %v7726_v47 = vrot.slane %v7725_v3, 4  ;;  %v19055_v61 = vsel %vm16241_vm9, %v13253_v53, %v8174_v7  ;;  %v7735_v33 = vrot.slane %v7733_v12, 4  ;;  %v7750_v27 = vshll.u32 %v19037_v4, 16  ;;  %v19081_v53 = vld [vmem:[#allocation2 + $0x10] sm:$0xf] }
 0x52a   : > { %8874 = vmatmul.mubr.bf16.gmra.mrb[236].mxu1 %v13201_v57  ;;  %v13269_v28 = vcombine.low %v19046_v17, %v19055_v61  ;;  %v7738_v60 = vrot.slane %v7736_v11, 5  ;;  %v7744_v35 = vrot.slane %v7742_v51, 5  ;;  %v7749_v50 = vrot.slane %v7747_v54, 4  ;;  %v8914_v57 = vld [vmem:[#allocation2 + $0x8] sm:$0xf] }
 0x52b   : > { %8881 = vmatprep.mubr.bf16.mxu1 %v18999_v63  ;;  %v7731_v37 = vsel %vm16786_vm12, %v7726_v47, %v7730_v22  ;;  %v7752_v24 = vrot.slane %v7750_v27, 5  ;;  %v7756_v10 = vshll.u32 %v7311_v16, 16  ;;  %v8988_v31 = vshll.u32 %v8915_v55, 16  ;;  %v15516_v63 = vld [vmem:[#allocation2 + $0x118] ss:$8 sps:$4 sm:$0xff]  }
 0x52c   : > { %v19066_v15 = vcombine.low %v7717_v0, %v7731_v37  ;;  %v7739_v1 = vor.u32 %v7738_v60, %v7735_v33  ;;  %v9002_v41 = vshll.u32 %v8917_v58, 16  ;;  %v13318_v8 = vrot.slane %v9426_v29, 9  ;;  %v10131_v12 = vld [vmem:[#allocation2 + $0x14] sm:$0x1]  ;;  %v10132_v54 = vld [vmem:[#allocation2 + $0x1c] sm:$0x1] }
 0x52d   : > { %v7753_v49 = vor.u32 %v7752_v24, %v7749_v50  ;;  %v7758_v5 = vrot.slane %v7756_v10, 5  ;;  %v19068_v23 = vrot.slane %v8988_v31, 5  ;;  %v9524_v20 = vrot.slane %v8915_v55, 5  ;;  %v8919_v29 = vld [vmem:[#allocation2 + $0x1c] sm:$0x1] }
 0x52e   : > { %v7740_v2 = vrot.slane %v7739_v1, 4  ;;  %v19070_v19 = vrot.slane %v9002_v41, 5  ;;  %v13319_v6 = vrot.slane %v9427_v26, 9  ;;  %v9528_v16 = vrot.slane %v8917_v58, 5  ;;  %v8921_v24 = vld [vmem:[#allocation2 + $0x24] sm:$0x1] }
 0x52f   : > { %8633 = vmatmul.mubr.bf16.gmra.mrb[180].mxu0 %v13267_v14  ;;  %v7754_v46 = vrot.slane %v7753_v49, 4  ;;  %v19077_v59 = vsel %vm16241_vm9, %v13318_v8, %v9524_v20  ;;  %v13205_v52 = vcombine.low %v19033_v21, %v19037_v4  ;;  %v8979_v22 = vshrl.u32 %v8914_v57, 16  ;;  %v19089_v14 = vld [vmem:[#allocation2 + $0x18] sm:$0xf]  ;;  %v15521_v10 = vld [vmem:[#allocation2 + $0x128] ss:$8 sps:$4 sm:$0xff]  }
 0x530   : > { %8640 = vmatprep.mubr.bf16.mxu0 %v15516_v63  ;;  %v7745_v3 = vsel %vm16786_vm12, %v7740_v2, %v7744_v35  ;;  %v19087_v7 = vsel %vm16241_vm9, %v13319_v6, %v9528_v16  ;;  %v8982_v42 = vshll.u32 %v8914_v57, 16  ;;  %v8993_v25 = vshrl.u32 %v8916_v30, 16  ;;  %v9428_v26 = vld [vmem:[#allocation2 + $0x18] sm:$0xe]  ;;  %v9429_v49 = vld [vmem:[#allocation2 + $0x20] sm:$0xe] }
 0x531   : > { %v7759_v55 = vsel %vm16786_vm12, %v7754_v46, %v7758_v5  ;;  %v13366_v0 = vcombine.low %v19077_v59, %v19087_v7  ;;  %v8981_v11 = vrot.slane %v8979_v22, 4  ;;  %v8996_v51 = vshll.u32 %v8916_v30, 16  ;;  %v8918_v63 = vld [vmem:[#allocation2 + $0x18] sm:$0xf]  ;;  %v8927_v4 = vld [vmem:[#allocation2 + $0x3c] sm:$0x1] }
 0x532   : > { %8882 = vmatmul.mubr.bf16.gmra.mrb[240].mxu1 %v13202_v45  ;;  %v19098_v58 = vcombine.low %v7745_v3, %v7759_v55  ;;  %v8984_v47 = vrot.slane %v8982_v42, 5  ;;  %v8995_v33 = vrot.slane %v8993_v25, 4  ;;  %v10164_v27 = vshrl.u32 %v19081_v53, 16 }
 0x533   : > { %8889 = vmatprep.mubr.bf16.mxu1 %v19039_v34  ;;  %v8998_v60 = vrot.slane %v8996_v51, 5  ;;  %v10167_v35 = vshll.u32 %v19081_v53, 16  ;;  %v10173_v50 = vshll.u32 %v10131_v12, 16  ;;  %v10178_v37 = vshrl.u32 %v19089_v14, 16 }
 0x534   : > { %v8985_v31 = vor.u32 %v8984_v47, %v8981_v11  ;;  %v10166_v44 = vrot.slane %v10164_v27, 4  ;;  %v10181_v62 = vshll.u32 %v19089_v14, 16  ;;  %v10187_v45 = vshll.u32 %v10132_v54, 16 }
 0x535   : > { %v8999_v1 = vor.u32 %v8998_v60, %v8995_v33  ;;  %v10169_v41 = vrot.slane %v10167_v35, 5  ;;  %v10175_v8 = vrot.slane %v10173_v50, 5  ;;  %v10180_v57 = vrot.slane %v10178_v37, 4  ;;  %v10133_v37 = vld [vmem:[#allocation2 + $0x24] sm:$0x1] }
 0x536   : > { %v8986_v34 = vrot.slane %v8985_v31, 4  ;;  %v10183_v5 = vrot.slane %v10181_v62, 5  ;;  %v10189_v20 = vrot.slane %v10187_v45, 5  ;;  %v13398_v30 = vcombine.low %v19081_v53, %v19089_v14 }
 0x537   : > { %8641 = vmatmul.mubr.bf16.gmra.mrb[184].mxu0 %v13268_v13  ;;  %v9000_v2 = vrot.slane %v8999_v1, 4  ;;  %v10170_v6 = vor.u32 %v10169_v41, %v10166_v44  ;;  %v13320_v16 = vrot.slane %v9428_v26, 9  ;;  %v9532_v46 = vrot.slane %v8919_v29, 5  ;;  %v10134_v1 = vld [vmem:[#allocation2 + $0x2c] sm:$0x1] }
 0x538   : > { %8648 = vmatprep.mubr.bf16.mxu0 %v15521_v10  ;;  %v8991_v22 = vsel %vm16786_vm12, %v8986_v34, %v19068_v23  ;;  %v10184_v3 = vor.u32 %v10183_v5, %v10180_v57  ;;  %v13321_v42 = vrot.slane %v9429_v49, 9  ;;  %v9536_v25 = vrot.slane %v8921_v24, 5  ;;  %v11094_v34 = vld [vmem:[#allocation2 + $0x20] sm:$0xe] }
 0x539   : > { %v9005_v12 = vsel %vm16786_vm12, %v9000_v2, %v19070_v19  ;;  %v10171_v55 = vrot.slane %v10170_v6, 4  ;;  %v19118_v18 = vsel %vm16241_vm9, %v13320_v16, %v9532_v46  ;;  %v9007_v13 = vshrl.u32 %v8918_v63, 16  ;;  %v19129_v19 = vld [vmem:[#allocation2 + $0x20] sm:$0xf]  ;;  %v11095_v2 = vld [vmem:[#allocation2 + $0x28] sm:$0xe] }
 0x53a   : > { %8890 = vmatmul.mubr.bf16.gmra.mrb[244].mxu1 %v13203_v32  ;;  %v19123_v11 = vcombine.low %v8991_v22, %v9005_v12  ;;  %v10185_v23 = vrot.slane %v10184_v3, 4  ;;  %v19127_v51 = vsel %vm16241_vm9, %v13321_v42, %v9536_v25  ;;  %v9010_v54 = vshll.u32 %v8918_v63, 16  ;;  %v19136_v32 = vld [vmem:[#allocation2 + $0x28] sm:$0xf]  ;;  %v8923_v46 = vld [vmem:[#allocation2 + $0x2c] sm:$0x1] }
 0x53b   : > { %8897 = vmatprep.mubr.bf16.mxu1 %v19066_v15  ;;  %v10176_v47 = vsel %vm16786_vm12, %v10171_v55, %v10175_v8  ;;  %v13367_v33 = vcombine.low %v19118_v18, %v19127_v51  ;;  %v9009_v48 = vrot.slane %v9007_v13, 4  ;;  %v9016_v9 = vshll.u32 %v8919_v29, 16  ;;  %v9430_v22 = vld [vmem:[#allocation2 + $0x28] sm:$0xe]  ;;  %v9431_v55 = vld [vmem:[#allocation2 + $0x30] sm:$0xe] }
 0x53c   : > { %v10190_v27 = vsel %vm16786_vm12, %v10185_v23, %v10189_v20  ;;  %v9012_v60 = vrot.slane %v9010_v54, 5  ;;  %v9021_v35 = vshrl.u32 %v8920_v43, 16  ;;  %v9024_v50 = vshll.u32 %v8920_v43, 16  ;;  %v8925_v13 = vld [vmem:[#allocation2 + $0x34] sm:$0x1] }
 0x53d   : > { %v19140_v10 = vcombine.low %v10176_v47, %v10190_v27  ;;  %v9018_v15 = vrot.slane %v9016_v9, 5  ;;  %v9030_v31 = vshll.u32 %v8921_v24, 16  ;;  %v10192_v44 = vshrl.u32 %v19129_v19, 16  ;;  %v8922_v23 = vld [vmem:[#allocation2 + $0x28] sm:$0xf] }
 0x53e   : > { %v9013_v62 = vor.u32 %v9012_v60, %v9009_v48  ;;  %v9023_v45 = vrot.slane %v9021_v35, 4  ;;  %v9026_v26 = vrot.slane %v9024_v50, 5  ;;  %v10195_v29 = vshll.u32 %v19129_v19, 16  ;;  %v8924_v9 = vld [vmem:[#allocation2 + $0x30] sm:$0xf]  ;;  %v15537_v27 = vld [vmem:[#allocation10 + $0x208] sm:$0xff]  }
 0x53f   : > { %8649 = vmatmul.mubr.bf16.gmra.mrb[188].mxu0 %v13269_v28  ;;  %v9032_v41 = vrot.slane %v9030_v31, 5  ;;  %v10194_v8 = vrot.slane %v10192_v44, 4  ;;  %v10201_v57 = vshll.u32 %v10133_v37, 16  ;;  %v10206_v49 = vshrl.u32 %v19136_v32, 16  ;;  %v10135_v18 = vld [vmem:[#allocation2 + $0x34] sm:$0x1] }
 0x540   : > { %9938 = vmatprep.mubr.bf16.mxu0 %v13366_v0  ;;  %v9014_v24 = vrot.slane %v9013_v62, 4  ;;  %v9027_v5 = vor.u32 %v9026_v26, %v9023_v45  ;;  %v10197_v20 = vrot.slane %v10195_v29, 5  ;;  %v10209_v63 = vshll.u32 %v19136_v32, 16  ;;  %v15615_v45 = vld [vmem:[#allocation10 + $0x200] sm:$0xff]  }
 0x541   : > { %v10203_v6 = vrot.slane %v10201_v57, 5  ;;  %v10208_v16 = vrot.slane %v10206_v49, 4  ;;  %v10215_v17 = vshll.u32 %v10134_v1, 16  ;;  %v13399_v61 = vcombine.low %v19129_v19, %v19136_v32 }
 0x542   : > { %8898 = vmatmul.mubr.bf16.gmra.mrb[248].mxu1 %v13204_v36  ;;  %v9019_v28 = vsel %vm16786_vm12, %v9014_v24, %v9018_v15  ;;  %v9028_v59 = vrot.slane %v9027_v5, 4  ;;  %v10198_v7 = vor.u32 %v10197_v20, %v10194_v8  ;;  %v10211_v0 = vrot.slane %v10209_v63, 5  ;;  %v15540_v8 = vld [vmem:[#allocation10 + $0x210] sm:$0xff]   ;;  %v19186_v5 = vld [vmem:[#allocation2 + $0x38] sm:$0xf] }
 0x543   : > { %8905 = vmatprep.mubr.bf16.mxu1 %v19098_v58  ;;  %v10217_v3 = vrot.slane %v10215_v17, 5  ;;  %v13448_v42 = vrot.slane %v11094_v34, 9  ;;  %v11198_v25 = vrot.slane %v10133_v37, 5  ;;  %v13449_v12 = vrot.slane %v11095_v2, 9 }
 0x544   : > { %v9033_v43 = vsel %vm16786_vm12, %v9028_v59, %v9032_v41  ;;  %v10199_v56 = vrot.slane %v10198_v7, 4  ;;  %v10212_v39 = vor.u32 %v10211_v0, %v10208_v16  ;;  %v11202_v36 = vrot.slane %v10134_v1, 5  ;;  %v19182_v41 = vld [vmem:[#allocation2 + $0x30] sm:$0xf]  ;;  %v10136_v16 = vld [vmem:[#allocation2 + $0x3c] sm:$0x1] }
 0x545   : > { %v13351_v54 = vcombine.low %v9019_v28, %v9033_v43  ;;  %v19164_v47 = vsel %vm16241_vm9, %v13448_v42, %v11198_v25  ;;  %v13322_v48 = vrot.slane %v9430_v22, 9  ;;  %v9540_v58 = vrot.slane %v8923_v46, 5  ;;  %v15543_v42 = vld [vmem:[#allocation10 + $0x218] sm:$0xff]  }
 0x546   : > { %20774 = vst [vmem:[#allocation38_spill] sm:$0xff] %v19164_v47  ;;  %v10204_v60 = vsel %vm16786_vm12, %v10199_v56, %v10203_v6  ;;  %v10213_v35 = vrot.slane %v10212_v39, 4  ;;  %v19170_v50 = vsel %vm16241_vm9, %v13449_v12, %v11202_v36  ;;  %v13323_v37 = vrot.slane %v9431_v55, 9  ;;  %v9433_v56 = vld [vmem:[#allocation2 + $0x40] sm:$0xe] }
 0x547   : > { %20775 = vst [vmem:[#allocation27_spill] sm:$0xff] %v19170_v50  ;;  %9939 = vmatmul.mubr.bf16.vlgmr.msra.gmra.mrb[192].mxu0 %v19123_v11  ;;  %v9541_v31 = vsel %vm16241_vm9, %v13322_v48, %v9540_v58  ;;  %v9544_v44 = vrot.slane %v8925_v13, 5  ;;  %v9035_v62 = vshrl.u32 %v8922_v23, 16  ;;  %v9038_v1 = vshll.u32 %v8922_v23, 16  ;;  %v8929_v48 = vld [vmem:[#allocation2 + $0x44] sm:$0x1] }
 0x548   : > { %9946 = vmatprep.mubr.bf16.mxu0 %v13367_v33  ;;  %14848 = vmatpush3.bf16.msra.mxu0 %v15615_v45  ;;  %v10218_v26 = vsel %vm16786_vm12, %v10213_v35, %v10217_v3  ;;  %v9044_v29 = vshll.u32 %v8923_v46, 16  ;;  %v9049_v11 = vshrl.u32 %v8924_v9, 16  ;;  %v9052_v24 = vshll.u32 %v8924_v9, 16  ;;  %v8926_v35 = vld [vmem:[#allocation2 + $0x38] sm:$0xf]  ;;  %v15546_v45 = vld [vmem:[#allocation10 + $0x220] sm:$0xff]  }
 0x549   : > { %v13415_v57 = vcombine.low %v10204_v60, %v10218_v26  ;;  %v9545_v49 = vsel %vm16241_vm9, %v13323_v37, %v9544_v44  ;;  %v9037_v34 = vrot.slane %v9035_v62, 4  ;;  %14849 = vmatprep.subr.bf16.mxu0 %v15537_v27  ;;  %v9040_v33 = vrot.slane %v9038_v1, 5  ;;  %v8928_v62 = vld [vmem:[#allocation2 + $0x40] sm:$0xf]  ;;  %v8965_v50 = vld [vmem:[#allocation2 + $0x104] sm:$0x1] }
 0x54a   : > { %8906 = vmatmul.mubr.bf16.gmra.mrb[252].mxu1 %v13205_v52  ;;  %v13368_v51 = vcombine.low %v9541_v31, %v9545_v49  ;;  %v9046_v20 = vrot.slane %v9044_v29, 5  ;;  %v9051_v63 = vrot.slane %v9049_v11, 4  ;;  %v9054_v2 = vrot.slane %v9052_v24, 5 }
 0x54b   : > { %10931 = vmatprep.mubr.bf16.mxu1 %v19140_v10  ;;  %v9058_v6 = vshll.u32 %v8925_v13, 16  ;;  %v10220_v17 = vshrl.u32 %v19182_v41, 16  ;;  %v10223_v28 = vshll.u32 %v19182_v41, 16  ;;  %v9041_v59 = vor.u32 %v9040_v33, %v9037_v34  ;;  %v9432_v10 = vld [vmem:[#allocation2 + $0x38] sm:$0xe] }
 0x54c   : > { %v10229_v7 = vshll.u32 %v10135_v18, 16  ;;  %v10234_v0 = vshrl.u32 %v19186_v5, 16  ;;  %v10237_v21 = vshll.u32 %v19186_v5, 16  ;;  %14850 = vmatpush3.bf16.msra.mxu0 %v15537_v27  ;;  %v9055_v52 = vor.u32 %v9054_v2, %v9051_v63  ;;  %v10137_v33 = vld [vmem:[#allocation2 + $0x44] sm:$0x1] }
 0x54d   : > { %v9060_v46 = vrot.slane %v9058_v6, 5  ;;  %v10222_v22 = vrot.slane %v10220_v17, 4  ;;  %v10225_v3 = vrot.slane %v10223_v28, 5  ;;  %14851 = vmatprep.subr.bf16.mxu0 %v15540_v8  ;;  %v9042_v25 = vrot.slane %v9041_v59, 4  ;;  %v19215_v6 = vld [vmem:[#allocation2 + $0x48] sm:$0xf] }
 0x54e   : > { %v10231_v12 = vrot.slane %v10229_v7, 5  ;;  %v10236_v55 = vrot.slane %v10234_v0, 4  ;;  %v10239_v43 = vrot.slane %v10237_v21, 5  ;;  %v9056_v39 = vrot.slane %v9055_v52, 4  ;;  %v10138_v21 = vld [vmem:[#allocation2 + $0x4c] sm:$0x1] }
 0x54f   : > { %9947 = vmatmul.mubr.bf16.gmra.mrb[196].mxu0 %v13351_v54  ;;  %v10226_v36 = vor.u32 %v10225_v3, %v10222_v22  ;;  %v10243_v13 = vshll.u32 %v10136_v16, 16  ;;  %v13400_v23 = vcombine.low %v19182_v41, %v19186_v5  ;;  %v9047_v58 = vsel %vm16786_vm12, %v9042_v25, %v9046_v20  ;;  %v15549_v16 = vld [vmem:[#allocation10 + $0x228] sm:$0xff]   ;;  %v11098_v25 = vld [vmem:[#allocation2 + $0x40] sm:$0xe] }
 0x550   : > { %9954 = vmatprep.mubr.bf16.mxu0 %v13368_v51  ;;  %v10240_v9 = vor.u32 %v10239_v43, %v10236_v55  ;;  %v13324_v27 = vrot.slane %v9432_v10, 9  ;;  %v9548_v60 = vrot.slane %v8927_v4, 5  ;;  %14852 = vmatpush3.bf16.msra.mxu0 %v15540_v8  ;;  %v9061_v37 = vsel %vm16786_vm12, %v9056_v39, %v9060_v46  ;;  %v19213_v51 = vld [vmem:[#allocation2 + $0x40] sm:$0xf]  ;;  %v15552_v39 = vld [vmem:[#allocation10 + $0x230] sm:$0xff]  }
 0x551   : > { %v10227_v54 = vrot.slane %v10226_v36, 4  ;;  %v10245_v31 = vrot.slane %v10243_v13, 5  ;;  %v13325_v44 = vrot.slane %v9433_v56, 9  ;;  %14853 = vmatprep.subr.bf16.mxu0 %v15543_v42  ;;  %v13352_v26 = vcombine.low %v9047_v58, %v9061_v37  ;;  %v8935_v5 = vld [vmem:[#allocation2 + $0x6c] sm:$0x1] }
 0x552   : > { %10932 = vmatmul.mubr.bf16.vlgmr.msra.gmra.mrb[0].mxu1 %v13398_v30  ;;  %v10241_v1 = vrot.slane %v10240_v9, 4  ;;  %v9549_v29 = vsel %vm16241_vm9, %v13324_v27, %v9548_v60  ;;  %v9552_v11 = vrot.slane %v8929_v48, 5  ;;  %v9063_v49 = vshrl.u32 %v8926_v35, 16  ;;  %v11099_v9 = vld [vmem:[#allocation2 + $0x48] sm:$0xe] }
 0x553   : > { %10939 = vmatprep.mubr.bf16.mxu1 %v13415_v57  ;;  %v10232_v8 = vsel %vm16786_vm12, %v10227_v54, %v10231_v12  ;;  %v9066_v34 = vshll.u32 %v8926_v35, 16  ;;  %v9072_v24 = vshll.u32 %v8927_v4, 16  ;;  %v9077_v14 = vshrl.u32 %v8928_v62, 16  ;;  %v8931_v54 = vld [vmem:[#allocation2 + $0x5c] sm:$0x1] }
 0x554   : > { %v10246_v18 = vsel %vm16786_vm12, %v10241_v1, %v10245_v31  ;;  %v9553_v53 = vsel %vm16241_vm9, %v13325_v44, %v9552_v11  ;;  %v9080_v30 = vshll.u32 %v8928_v62, 16  ;;  %14854 = vmatpush3.bf16.msra.mxu0 %v15543_v42  ;;  %v9065_v63 = vrot.slane %v9063_v49, 4  ;;  %v9434_v31 = vld [vmem:[#allocation2 + $0x58] sm:$0xe]  ;;  %v8933_v62 = vld [vmem:[#allocation2 + $0x64] sm:$0x1] }
 0x555   : > { %v13416_v20 = vcombine.low %v10232_v8, %v10246_v18  ;;  %v13369_v57 = vcombine.low %v9549_v29, %v9553_v53  ;;  %v9068_v2 = vrot.slane %v9066_v34, 5  ;;  %14855 = vmatprep.subr.bf16.mxu0 %v15546_v45  ;;  %v9074_v17 = vrot.slane %v9072_v24, 5  ;;  %v8930_v8 = vld [vmem:[#allocation2 + $0x58] sm:$0xf] }
 0x556   : > { %v9079_v28 = vrot.slane %v9077_v14, 4  ;;  %v9082_v59 = vrot.slane %v9080_v30, 5  ;;  %v9086_v7 = vshll.u32 %v8929_v48, 16  ;;  %v10248_v4 = vshrl.u32 %v19213_v51, 16 }
 0x557   : > { %9955 = vmatmul.mubr.bf16.gmra.mrb[200].mxu0 %v13352_v26  ;;  %v9069_v0 = vor.u32 %v9068_v2, %v9065_v63  ;;  %v10251_v52 = vshll.u32 %v19213_v51, 16  ;;  %v10257_v46 = vshll.u32 %v10137_v33, 16  ;;  %v10262_v10 = vshrl.u32 %v19215_v6, 16 }
 0x558   : > { %9962 = vmatprep.mubr.bf16.mxu0 %v13369_v57  ;;  %v9083_v22 = vor.u32 %v9082_v59, %v9079_v28  ;;  %v9088_v3 = vrot.slane %v9086_v7, 5  ;;  %v10265_v42 = vshll.u32 %v19215_v6, 16  ;;  %14856 = vmatpush3.bf16.msra.mxu0 %v15546_v45  ;;  %v10250_v55 = vrot.slane %v10248_v4, 4  ;;  %v9435_v45 = vld [vmem:[#allocation2 + $0x60] sm:$0xe] }
 0x559   : > { %v9070_v12 = vrot.slane %v9069_v0, 4  ;;  %v10253_v43 = vrot.slane %v10251_v52, 5  ;;  %v10259_v56 = vrot.slane %v10257_v46, 5  ;;  %14857 = vmatprep.subr.bf16.mxu0 %v15549_v16  ;;  %v10264_v13 = vrot.slane %v10262_v10, 4 }
 0x55a   : > { %10940 = vmatmul.mubr.bf16.gmra.mrb[4].mxu1 %v13399_v61  ;;  %v9084_v36 = vrot.slane %v9083_v22, 4  ;;  %v10267_v48 = vrot.slane %v10265_v42, 5  ;;  %v10271_v58 = vshll.u32 %v10138_v21, 16  ;;  %v13401_v35 = vcombine.low %v19213_v51, %v19215_v6 }
 0x55b   : > { %10947 = vmatprep.mubr.bf16.mxu1 %v13416_v20  ;;  %v9075_v27 = vsel %vm16786_vm12, %v9070_v12, %v9074_v17  ;;  %v10254_v60 = vor.u32 %v10253_v43, %v10250_v55  ;;  %v13452_v37 = vrot.slane %v11098_v25, 9  ;;  %v11214_v44 = vrot.slane %v10137_v33, 5  ;;  %v8932_v20 = vld [vmem:[#allocation2 + $0x60] sm:$0xf]  ;;  %v10140_v12 = vld [vmem:[#allocation2 + $0x6c] sm:$0x1] }
 0x55c   : > { %v9089_v19 = vsel %vm16786_vm12, %v9084_v36, %v9088_v3  ;;  %v10268_v32 = vor.u32 %v10267_v48, %v10264_v13  ;;  %v10273_v61 = vrot.slane %v10271_v58, 5  ;;  %14858 = vmatpush3.bf16.msra.mxu0 %v15549_v16  ;;  %v13453_v29 = vrot.slane %v11099_v9, 9  ;;  %v19246_v17 = vld [vmem:[#allocation2 + $0x60] sm:$0xf]  ;;  %v19253_v3 = vld [vmem:[#allocation2 + $0x68] sm:$0xf] }
 0x55d   : > { %v13353_v26 = vcombine.low %v9075_v27, %v9089_v19  ;;  %v10255_v1 = vrot.slane %v10254_v60, 4  ;;  %v11218_v11 = vrot.slane %v10138_v21, 5  ;;  %14859 = vmatprep.subr.bf16.mxu0 %v15552_v39  ;;  %v19232_v34 = vsel %vm16241_vm9, %v13452_v37, %v11214_v44  ;;  %v10139_v21 = vld [vmem:[#allocation2 + $0x64] sm:$0x1]  ;;  %v9436_v58 = vld [vmem:[#allocation2 + $0x68] sm:$0xe] }
 0x55e   : > { %v10269_v49 = vrot.slane %v10268_v32, 4  ;;  %20776 = vst [vmem:[#allocation44_spill] sm:$0xff] %v19232_v34  ;;  %v13326_v24 = vrot.slane %v9434_v31, 9  ;;  %v9556_v18 = vrot.slane %v8931_v54, 5  ;;  %v13327_v30 = vrot.slane %v9435_v45, 9 }
 0x55f   : > { %9963 = vmatmul.mubr.bf16.gmra.mrb[204].mxu0 %v13353_v26  ;;  %v10260_v53 = vsel %vm16786_vm12, %v10255_v1, %v10259_v56  ;;  %v19238_v14 = vsel %vm16241_vm9, %v13453_v29, %v11218_v11  ;;  %v9560_v33 = vrot.slane %v8933_v62, 5  ;;  %v9091_v16 = vshrl.u32 %v8930_v8, 16  ;;  %v8937_v44 = vld [vmem:[#allocation2 + $0x74] sm:$0x1]  ;;  %v8934_v29 = vld [vmem:[#allocation2 + $0x68] sm:$0xf] }
 0x560   : > { %20777 = vst [vmem:[#allocation32_spill] sm:$0xff] %v19238_v14  ;;  %v10274_v57 = vsel %vm16786_vm12, %v10269_v49, %v10273_v61  ;;  %v9557_v2 = vsel %vm16241_vm9, %v13326_v24, %v9556_v18  ;;  %14860 = vmatpush3.bf16.msra.mxu0 %v15552_v39  ;;  %v9094_v7 = vshll.u32 %v8930_v8, 16  ;;  %v9100_v0 = vshll.u32 %v8931_v54, 16  ;;  %v9437_v54 = vld [vmem:[#allocation2 + $0x70] sm:$0xe] }
 0x561   : > { %v13417_v28 = vcombine.low %v10260_v53, %v10274_v57  ;;  %v9561_v59 = vsel %vm16241_vm9, %v13327_v30, %v9560_v33  ;;  %v9093_v52 = vrot.slane %v9091_v16, 4  ;;  %v9105_v46 = vshrl.u32 %v8932_v20, 16  ;;  %v9451_v14 = vld [vmem:[#allocation2 + $0x100] sm:$0xe] }
 0x562   : > { %10948 = vmatmul.mubr.bf16.gmra.mrb[8].mxu1 %v13400_v23  ;;  %v13370_v4 = vcombine.low %v9557_v2, %v9561_v59  ;;  %v9108_v22 = vshll.u32 %v8932_v20, 16  ;;  %v9096_v10 = vrot.slane %v9094_v7, 5  ;;  %v9102_v42 = vrot.slane %v9100_v0, 5  ;;  %v8936_v20 = vld [vmem:[#allocation2 + $0x70] sm:$0xf] }
 0x563   : > { %10955 = vmatprep.mubr.bf16.mxu1 %v13417_v28  ;;  %v9114_v25 = vshll.u32 %v8933_v62, 16  ;;  %v10276_v55 = vshrl.u32 %v19246_v17, 16  ;;  %v9107_v43 = vrot.slane %v9105_v46, 4  ;;  %v10279_v39 = vshll.u32 %v19246_v17, 16 }
 0x564   : > { %9970 = vmatprep.mubr.bf16.mxu0 %v13370_v4  ;;  %v9110_v56 = vrot.slane %v9108_v22, 5  ;;  %v10285_v41 = vshll.u32 %v10139_v21, 16  ;;  %v9097_v23 = vor.u32 %v9096_v10, %v9093_v52  ;;  %v10290_v48 = vshrl.u32 %v19253_v3, 16  ;;  %v10141_v52 = vld [vmem:[#allocation2 + $0x74] sm:$0x1] }
 0x565   : > { %v9116_v36 = vrot.slane %v9114_v25, 5  ;;  %v10278_v13 = vrot.slane %v10276_v55, 4  ;;  %v10281_v27 = vrot.slane %v10279_v39, 5  ;;  %v10293_v37 = vshll.u32 %v19253_v3, 16 }
 0x566   : > { %v9111_v9 = vor.u32 %v9110_v56, %v9107_v43  ;;  %v10287_v60 = vrot.slane %v10285_v41, 5  ;;  %v9098_v31 = vrot.slane %v9097_v23, 4  ;;  %v10292_v19 = vrot.slane %v10290_v48, 4  ;;  %v10142_v43 = vld [vmem:[#allocation2 + $0x7c] sm:$0x1] }
 0x567   : > { %v10299_v32 = vshll.u32 %v10140_v12, 16  ;;  %v13402_v61 = vcombine.low %v19246_v17, %v19253_v3  ;;  %v10282_v45 = vor.u32 %v10281_v27, %v10278_v13  ;;  %v10295_v26 = vrot.slane %v10293_v37, 5 }
 0x568   : > { %v9112_v62 = vrot.slane %v9111_v9, 4  ;;  %v13328_v1 = vrot.slane %v9436_v58, 9  ;;  %v9103_v11 = vsel %vm16786_vm12, %v9098_v31, %v9102_v42  ;;  %v9564_v49 = vrot.slane %v8935_v5, 5  ;;  %v19278_v42 = vld [vmem:[#allocation2 + $0x78] sm:$0xf] }
 0x569   : > { %v10301_v8 = vrot.slane %v10299_v32, 5  ;;  %v13329_v24 = vrot.slane %v9437_v54, 9  ;;  %v10283_v53 = vrot.slane %v10282_v45, 4  ;;  %v10296_v30 = vor.u32 %v10295_v26, %v10292_v19  ;;  %v11102_v9 = vld [vmem:[#allocation2 + $0x70] sm:$0xe]  ;;  %v15555_v19 = vld [vmem:[#allocation10 + $0x238] sm:$0xff]  }
 0x56a   : > { %10956 = vmatmul.mubr.bf16.gmra.mrb[12].mxu1 %v13401_v35  ;;  %v9117_v18 = vsel %vm16786_vm12, %v9112_v62, %v9116_v36  ;;  %v9568_v33 = vrot.slane %v8937_v44, 5  ;;  %v9565_v2 = vsel %vm16241_vm9, %v13328_v1, %v9564_v49  ;;  %v9119_v16 = vshrl.u32 %v8934_v29, 16  ;;  %v19274_v35 = vld [vmem:[#allocation2 + $0x70] sm:$0xf]  ;;  %v11103_v31 = vld [vmem:[#allocation2 + $0x78] sm:$0xe]  ;;  %14861 = vmatprep.subr.bf16.mxu0 %v15555_v19 }
 0x56b   : > { %v13354_v57 = vcombine.low %v9103_v11, %v9117_v18  ;;  %v9122_v17 = vshll.u32 %v8934_v29, 16  ;;  %v10288_v28 = vsel %vm16786_vm12, %v10283_v53, %v10287_v60  ;;  %v10297_v59 = vrot.slane %v10296_v30, 4  ;;  %v8939_v26 = vld [vmem:[#allocation2 + $0x7c] sm:$0x1]  ;;  %v9438_v1 = vld [vmem:[#allocation2 + $0x78] sm:$0xe]  ;;  %14862 = vmatpush3.bf16.msra.mxu0 %v15555_v19 }
 0x56c   : > { %v9569_v51 = vsel %vm16241_vm9, %v13329_v24, %v9568_v33  ;;  %v9128_v6 = vshll.u32 %v8935_v5, 16  ;;  %v9121_v0 = vrot.slane %v9119_v16, 4  ;;  %v9133_v4 = vshrl.u32 %v8936_v20, 16  ;;  %v8941_v49 = vld [vmem:[#allocation2 + $0x84] sm:$0x1] }
 0x56d   : > { %9971 = vmatmul.mubr.bf16.gmra.mrb[208].mxu0 %v13354_v57  ;;  %v13371_v7 = vcombine.low %v9565_v2, %v9569_v51  ;;  %v9124_v21 = vrot.slane %v9122_v17, 5  ;;  %v10302_v46 = vsel %vm16786_vm12, %v10297_v59, %v10301_v8  ;;  %v9136_v3 = vshll.u32 %v8936_v20, 16  ;;  %v9439_v33 = vld [vmem:[#allocation2 + $0x80] sm:$0xe]  ;;  %v8938_v17 = vld [vmem:[#allocation2 + $0x78] sm:$0xf] }
 0x56e   : > { %v9130_v22 = vrot.slane %v9128_v6, 5  ;;  %v9142_v10 = vshll.u32 %v8937_v44, 16  ;;  %v13418_v25 = vcombine.low %v10288_v28, %v10302_v46  ;;  %v9135_v55 = vrot.slane %v9133_v4, 4 }
 0x56f   : > { %9978 = vmatprep.mubr.bf16.mxu0 %v13371_v7  ;;  %v9125_v12 = vor.u32 %v9124_v21, %v9121_v0  ;;  %v10304_v56 = vshrl.u32 %v19274_v35, 16  ;;  %v9138_v39 = vrot.slane %v9136_v3, 5  ;;  %v10307_v5 = vshll.u32 %v19274_v35, 16  ;;  %v8958_v0 = vld [vmem:[#allocation2 + $0xd8] sm:$0xf] }
 0x570   : > { %v9144_v41 = vrot.slane %v9142_v10, 5  ;;  %v10313_v23 = vshll.u32 %v10141_v52, 16  ;;  %10963 = vmatprep.mubr.bf16.mxu1 %v13418_v25  ;;  %v10318_v48 = vshrl.u32 %v19278_v42, 16  ;;  %v10321_v58 = vshll.u32 %v19278_v42, 16  ;;  %v19306_v10 = vld [vmem:[#allocation2 + $0x80] sm:$0xf] }
 0x571   : > { %v9126_v36 = vrot.slane %v9125_v12, 4  ;;  %v10306_v13 = vrot.slane %v10304_v56, 4  ;;  %v9139_v27 = vor.u32 %v9138_v39, %v9135_v55  ;;  %v10309_v60 = vrot.slane %v10307_v5, 5 }
 0x572   : > { %10964 = vmatmul.mubr.bf16.gmra.mrb[16].mxu1 %v13402_v61  ;;  %v10315_v37 = vrot.slane %v10313_v23, 5  ;;  %v10327_v54 = vshll.u32 %v10142_v43, 16  ;;  %v10320_v44 = vrot.slane %v10318_v48, 4  ;;  %v10323_v62 = vrot.slane %v10321_v58, 5  ;;  %v10143_v23 = vld [vmem:[#allocation2 + $0x84] sm:$0x1] }
 0x573   : > { %v9131_v32 = vsel %vm16786_vm12, %v9126_v36, %v9130_v22  ;;  %v13403_v45 = vcombine.low %v19274_v35, %v19278_v42  ;;  %v9140_v29 = vrot.slane %v9139_v27, 4  ;;  %v10310_v11 = vor.u32 %v10309_v60, %v10306_v13  ;;  %v8940_v35 = vld [vmem:[#allocation2 + $0x80] sm:$0xf] }
 0x574   : > { %v10329_v8 = vrot.slane %v10327_v54, 5  ;;  %v13456_v61 = vrot.slane %v11102_v9, 9  ;;  %v10324_v24 = vor.u32 %v10323_v62, %v10320_v44  ;;  %v11230_v18 = vrot.slane %v10141_v52, 5  ;;  %v10144_v9 = vld [vmem:[#allocation2 + $0x8c] sm:$0x1] }
 0x575   : > { %v13457_v53 = vrot.slane %v11103_v31, 9  ;;  %v11234_v30 = vrot.slane %v10142_v43, 5  ;;  %v9145_v20 = vsel %vm16786_vm12, %v9140_v29, %v9144_v41  ;;  %v10311_v57 = vrot.slane %v10310_v11, 4  ;;  %v19308_v43 = vld [vmem:[#allocation2 + $0x88] sm:$0xf] }
 0x576   : > { %v13330_v2 = vrot.slane %v9438_v1, 9  ;;  %v9572_v16 = vrot.slane %v8939_v26, 5  ;;  %v13355_v28 = vcombine.low %v9131_v32, %v9145_v20  ;;  %v10325_v59 = vrot.slane %v10324_v24, 4  ;;  %v8943_v31 = vld [vmem:[#allocation2 + $0x8c] sm:$0x1] }
 0x577   : > { %v19292_v51 = vsel %vm16241_vm9, %v13456_v61, %v11230_v18  ;;  %v19296_v6 = vsel %vm16241_vm9, %v13457_v53, %v11234_v30  ;;  %v10316_v7 = vsel %vm16786_vm12, %v10311_v57, %v10315_v37  ;;  %v13331_v4 = vrot.slane %v9439_v33, 9  ;;  %v9441_v53 = vld [vmem:[#allocation2 + $0x90] sm:$0xe] }
 0x578   : > { %20778 = vst [vmem:[#allocation45_spill] sm:$0xff] %v19292_v51  ;;  %20779 = vst [vmem:[#allocation33_spill] sm:$0xff] %v19296_v6  ;;  %v9573_v21 = vsel %vm16241_vm9, %v13330_v2, %v9572_v16  ;;  %9979 = vmatmul.mubr.bf16.gmra.mrb[212].mxu0 %v13355_v28  ;;  %v10330_v52 = vsel %vm16786_vm12, %v10325_v59, %v10329_v8  ;;  %v9576_v46 = vrot.slane %v8941_v49, 5  ;;  %v9147_v22 = vshrl.u32 %v8938_v17, 16  ;;  %v8942_v2 = vld [vmem:[#allocation2 + $0x88] sm:$0xf] }
 0x579   : > { %v9150_v3 = vshll.u32 %v8938_v17, 16  ;;  %v13419_v42 = vcombine.low %v10316_v7, %v10330_v52  ;;  %v9156_v25 = vshll.u32 %v8939_v26, 16  ;;  %v9161_v12 = vshrl.u32 %v8940_v35, 16  ;;  %v8945_v26 = vld [vmem:[#allocation2 + $0x94] sm:$0x1] }
 0x57a   : > { %v9164_v55 = vshll.u32 %v8940_v35, 16  ;;  %v9577_v56 = vsel %vm16241_vm9, %v13331_v4, %v9576_v46  ;;  %v9149_v39 = vrot.slane %v9147_v22, 4  ;;  %v9170_v5 = vshll.u32 %v8941_v49, 16  ;;  %v8944_v35 = vld [vmem:[#allocation2 + $0x90] sm:$0xf] }
 0x57b   : > { %v9152_v41 = vrot.slane %v9150_v3, 5  ;;  %10971 = vmatprep.mubr.bf16.mxu1 %v13419_v42  ;;  %v13372_v36 = vcombine.low %v9573_v21, %v9577_v56  ;;  %v9158_v13 = vrot.slane %v9156_v25, 5  ;;  %v9163_v48 = vrot.slane %v9161_v12, 4 }
 0x57c   : > { %v9166_v58 = vrot.slane %v9164_v55, 5  ;;  %10972 = vmatmul.mubr.bf16.gmra.mrb[20].mxu1 %v13403_v45  ;;  %v9172_v60 = vrot.slane %v9170_v5, 5  ;;  %v10332_v37 = vshrl.u32 %v19306_v10, 16  ;;  %v10335_v54 = vshll.u32 %v19306_v10, 16  ;;  %v9440_v45 = vld [vmem:[#allocation2 + $0x88] sm:$0xe] }
 0x57d   : > { %v9153_v27 = vor.u32 %v9152_v41, %v9149_v39  ;;  %9986 = vmatprep.mubr.bf16.mxu0 %v13372_v36  ;;  %v10341_v32 = vshll.u32 %v10143_v23, 16  ;;  %v10346_v44 = vshrl.u32 %v19308_v43, 16  ;;  %v10349_v62 = vshll.u32 %v19308_v43, 16  ;;  %v19332_v23 = vld [vmem:[#allocation2 + $0x98] sm:$0xf] }
 0x57e   : > { %v9167_v19 = vor.u32 %v9166_v58, %v9163_v48  ;;  %v10334_v29 = vrot.slane %v10332_v37, 4  ;;  %v10337_v11 = vrot.slane %v10335_v54, 5  ;;  %v10355_v8 = vshll.u32 %v10144_v9, 16  ;;  %v10145_v36 = vld [vmem:[#allocation2 + $0x94] sm:$0x1] }
 0x57f   : > { %v9154_v1 = vrot.slane %v9153_v27, 4  ;;  %v10343_v49 = vrot.slane %v10341_v32, 5  ;;  %v10348_v24 = vrot.slane %v10346_v44, 4  ;;  %v10351_v18 = vrot.slane %v10349_v62, 5 }
 0x580   : > { %v9168_v61 = vrot.slane %v9167_v19, 4  ;;  %v10338_v33 = vor.u32 %v10337_v11, %v10334_v29  ;;  %v10357_v20 = vrot.slane %v10355_v8, 5  ;;  %v13404_v57 = vcombine.low %v19306_v10, %v19308_v43  ;;  %v19328_v43 = vld [vmem:[#allocation2 + $0x90] sm:$0xf]  ;;  %v10146_v19 = vld [vmem:[#allocation2 + $0x9c] sm:$0x1] }
 0x581   : > { %v9159_v30 = vsel %vm16786_vm12, %v9154_v1, %v9158_v13  ;;  %v10352_v17 = vor.u32 %v10351_v18, %v10348_v24  ;;  %v13332_v28 = vrot.slane %v9440_v45, 9  ;;  %v9580_v59 = vrot.slane %v8943_v31, 5  ;;  %v11106_v1 = vld [vmem:[#allocation2 + $0x90] sm:$0xe] }
 0x582   : > { %v9173_v16 = vsel %vm16786_vm12, %v9168_v61, %v9172_v60  ;;  %v10339_v21 = vrot.slane %v10338_v33, 4  ;;  %v13333_v4 = vrot.slane %v9441_v53, 9  ;;  %v9584_v52 = vrot.slane %v8945_v26, 5  ;;  %v11107_v53 = vld [vmem:[#allocation2 + $0x98] sm:$0xe] }
 0x583   : > { %v13356_v7 = vcombine.low %v9159_v30, %v9173_v16  ;;  %v10353_v46 = vrot.slane %v10352_v17, 4  ;;  %v9581_v22 = vsel %vm16241_vm9, %v13332_v28, %v9580_v59  ;;  %v9175_v3 = vshrl.u32 %v8942_v2, 16  ;;  %v8947_v16 = vld [vmem:[#allocation2 + $0xac] sm:$0x1]  ;;  %v9442_v17 = vld [vmem:[#allocation2 + $0xa8] sm:$0xe] }
 0x584   : > { %v9178_v42 = vshll.u32 %v8942_v2, 16  ;;  %v10344_v10 = vsel %vm16786_vm12, %v10339_v21, %v10343_v49  ;;  %v9585_v25 = vsel %vm16241_vm9, %v13333_v4, %v9584_v52  ;;  %v9184_v12 = vshll.u32 %v8943_v31, 16  ;;  %v8949_v4 = vld [vmem:[#allocation2 + $0xb4] sm:$0x1] }
 0x585   : > { %9987 = vmatmul.mubr.bf16.gmra.mrb[216].mxu0 %v13356_v7  ;;  %v9189_v55 = vshrl.u32 %v8944_v35, 16  ;;  %v10358_v56 = vsel %vm16786_vm12, %v10353_v46, %v10357_v20  ;;  %v13373_v39 = vcombine.low %v9581_v22, %v9585_v25  ;;  %v9177_v41 = vrot.slane %v9175_v3, 4 }
 0x586   : > { %v9180_v5 = vrot.slane %v9178_v42, 5  ;;  %v13420_v13 = vcombine.low %v10344_v10, %v10358_v56  ;;  %v9186_v48 = vrot.slane %v9184_v12, 5  ;;  %v9192_v9 = vshll.u32 %v8944_v35, 16  ;;  %v9443_v10 = vld [vmem:[#allocation2 + $0xb0] sm:$0xe] }
 0x587   : > { %v9191_v58 = vrot.slane %v9189_v55, 4  ;;  %9994 = vmatprep.mubr.bf16.mxu0 %v13373_v39  ;;  %v9198_v60 = vshll.u32 %v8945_v26, 16  ;;  %v10360_v37 = vshrl.u32 %v19328_v43, 16  ;;  %v10363_v54 = vshll.u32 %v19328_v43, 16  ;;  %v19338_v61 = vpop.f32.mrb[128].mxu0 }
 0x588   : > { %v9181_v27 = vor.u32 %v9180_v5, %v9177_v41  ;;  %10979 = vmatprep.mubr.bf16.mxu1 %v13420_v13  ;;  %v9194_v31 = vrot.slane %v9192_v9, 5  ;;  %v10369_v32 = vshll.u32 %v10145_v36, 16  ;;  %v10374_v44 = vshrl.u32 %v19332_v23, 16  ;;  %v19340_v30 = vpop.f32.mrb[129].mxu0  ;;  %v8946_v56 = vld [vmem:[#allocation2 + $0xa8] sm:$0xf] }
 0x589   : > { %v10377_v62 = vshll.u32 %v19332_v23, 16  ;;  %10980 = vmatmul.mubr.bf16.gmra.mrb[24].mxu1 %v13404_v57  ;;  %v9200_v11 = vrot.slane %v9198_v60, 5  ;;  %v10362_v8 = vrot.slane %v10360_v37, 4  ;;  %v10365_v45 = vrot.slane %v10363_v54, 5  ;;  %v19346_v28 = vpop.f32.mrb[130].mxu0 }
 0x58a   : > { %v9182_v29 = vrot.slane %v9181_v27, 4  ;;  %v9195_v26 = vor.u32 %v9194_v31, %v9191_v58  ;;  %v10371_v49 = vrot.slane %v10369_v32, 5  ;;  %v10376_v24 = vrot.slane %v10374_v44, 4  ;;  %v19348_v52 = vpop.f32.mrb[131].mxu0  ;;  %v19368_v31 = vld [vmem:[#allocation2 + $0xb0] sm:$0xf] }
 0x58b   : > { %v10379_v18 = vrot.slane %v10377_v62, 5  ;;  %v10366_v20 = vor.u32 %v10365_v45, %v10362_v8  ;;  %v10383_v2 = vshll.u32 %v10146_v19, 16  ;;  %v13405_v57 = vcombine.low %v19328_v43, %v19332_v23 }
 0x58c   : > { %v9187_v33 = vsel %vm16786_vm12, %v9182_v29, %v9186_v48  ;;  %v9196_v59 = vrot.slane %v9195_v26, 4  ;;  %v13460_v7 = vrot.slane %v11106_v1, 9  ;;  %v11246_v21 = vrot.slane %v10145_v36, 5  ;;  %v8948_v36 = vld [vmem:[#allocation2 + $0xb0] sm:$0xf] }
 0x58d   : > { %v10380_v35 = vor.u32 %v10379_v18, %v10376_v24  ;;  %v10367_v46 = vrot.slane %v10366_v20, 4  ;;  %v10385_v22 = vrot.slane %v10383_v2, 5  ;;  %v13461_v3 = vrot.slane %v11107_v53, 9  ;;  %v10147_v1 = vld [vmem:[#allocation2 + $0xb4] sm:$0x1] }
 0x58e   : > { %v11250_v42 = vrot.slane %v10146_v19, 5  ;;  %v9201_v25 = vsel %vm16786_vm12, %v9196_v59, %v9200_v11  ;;  %v19354_v55 = vsel %vm16241_vm9, %v13460_v7, %v11246_v21  ;;  %v13334_v43 = vrot.slane %v9442_v17, 9  ;;  %v19372_v26 = vld [vmem:[#allocation2 + $0xb8] sm:$0xf]  ;;  %v10148_v53 = vld [vmem:[#allocation2 + $0xbc] sm:$0x1] }
 0x58f   : > { %v10381_v12 = vrot.slane %v10380_v35, 4  ;;  %20780 = vst [vmem:[#allocation28_spill] sm:$0xff] %v19354_v55  ;;  %v13357_v39 = vcombine.low %v9187_v33, %v9201_v25  ;;  %v10372_v41 = vsel %vm16786_vm12, %v10367_v46, %v10371_v49  ;;  %v9588_v23 = vrot.slane %v8947_v16, 5  ;;  %v8951_v59 = vld [vmem:[#allocation2 + $0xbc] sm:$0x1] }
 0x590   : > { %v19360_v5 = vsel %vm16241_vm9, %v13461_v3, %v11250_v42  ;;  %v13335_v58 = vrot.slane %v9443_v10, 9  ;;  %v9592_v9 = vrot.slane %v8949_v4, 5  ;;  %v9203_v37 = vshrl.u32 %v8946_v56, 16  ;;  %v9444_v35 = vld [vmem:[#allocation2 + $0xb8] sm:$0xe] }
 0x591   : > { %20781 = vst [vmem:[#allocation30_spill] sm:$0xff] %v19360_v5  ;;  %v10386_v13 = vsel %vm16786_vm12, %v10381_v12, %v10385_v22  ;;  %9995 = vmatmul.mubr.bf16.gmra.mrb[220].mxu0 %v13357_v39  ;;  %v9589_v60 = vsel %vm16241_vm9, %v13334_v43, %v9588_v23  ;;  %v9206_v54 = vshll.u32 %v8946_v56, 16  ;;  %v9212_v32 = vshll.u32 %v8947_v16, 16  ;;  %v8953_v46 = vld [vmem:[#allocation2 + $0xc4] sm:$0x1] }
 0x592   : > { %v13421_v27 = vcombine.low %v10372_v41, %v10386_v13  ;;  %v9593_v19 = vsel %vm16241_vm9, %v13335_v58, %v9592_v9  ;;  %v9217_v44 = vshrl.u32 %v8948_v36, 16  ;;  %v9220_v62 = vshll.u32 %v8948_v36, 16  ;;  %v9445_v22 = vld [vmem:[#allocation2 + $0xc0] sm:$0xe]  ;;  %v8950_v36 = vld [vmem:[#allocation2 + $0xb8] sm:$0xf] }
 0x593   : > { %v13374_v29 = vcombine.low %v9589_v60, %v9593_v19  ;;  %v9205_v11 = vrot.slane %v9203_v37, 4  ;;  %v9208_v8 = vrot.slane %v9206_v54, 5  ;;  %v9226_v45 = vshll.u32 %v8949_v4, 16 }
 0x594   : > { %10987 = vmatprep.mubr.bf16.mxu1 %v13421_v27  ;;  %v9214_v49 = vrot.slane %v9212_v32, 5  ;;  %v9219_v24 = vrot.slane %v9217_v44, 4  ;;  %v9222_v18 = vrot.slane %v9220_v62, 5  ;;  %v10388_v33 = vshrl.u32 %v19368_v31, 16 }
 0x595   : > { %10988 = vmatmul.mubr.bf16.gmra.mrb[28].mxu1 %v13405_v57  ;;  %10002 = vmatprep.mubr.bf16.mxu0 %v13374_v29  ;;  %v9209_v20 = vor.u32 %v9208_v8, %v9205_v11  ;;  %v9228_v2 = vrot.slane %v9226_v45, 5  ;;  %v10391_v16 = vshll.u32 %v19368_v31, 16  ;;  %v10397_v17 = vshll.u32 %v10147_v1, 16  ;;  %v19378_v3 = vpop.f32.mrb[192].mxu1 }
 0x596   : > { %v9223_v7 = vor.u32 %v9222_v18, %v9219_v24  ;;  %v10390_v21 = vrot.slane %v10388_v33, 4  ;;  %v10402_v4 = vshrl.u32 %v19372_v26, 16  ;;  %v10405_v57 = vshll.u32 %v19372_v26, 16  ;;  %v19380_v43 = vpop.f32.mrb[193].mxu1 }
 0x597   : > { %v9210_v42 = vrot.slane %v9209_v20, 4  ;;  %v10393_v10 = vrot.slane %v10391_v16, 5  ;;  %v10399_v25 = vrot.slane %v10397_v17, 5  ;;  %v10411_v12 = vshll.u32 %v10148_v53, 16  ;;  %v19384_v13 = vpop.f32.mrb[194].mxu1 }
 0x598   : > { %v9224_v56 = vrot.slane %v9223_v7, 4  ;;  %v10404_v39 = vrot.slane %v10402_v4, 4  ;;  %v10407_v41 = vrot.slane %v10405_v57, 5  ;;  %v13406_v23 = vcombine.low %v19368_v31, %v19372_v26  ;;  %v19388_v37 = vpop.f32.mrb[132].mxu0  ;;  %v19390_v54 = vpop.f32.mrb[195].mxu1 }
 0x599   : > { %v9215_v58 = vsel %vm16786_vm12, %v9210_v42, %v9214_v49  ;;  %v10394_v9 = vor.u32 %v10393_v10, %v10390_v21  ;;  %v10413_v27 = vrot.slane %v10411_v12, 5  ;;  %v13336_v60 = vrot.slane %v9444_v35, 9  ;;  %v8952_v31 = vld [vmem:[#allocation2 + $0xc0] sm:$0xf]  ;;  %v19394_v1 = vpop.f32.mrb[133].mxu0 }
 0x59a   : > { %v9229_v19 = vsel %vm16786_vm12, %v9224_v56, %v9228_v2  ;;  %v10408_v32 = vor.u32 %v10407_v41, %v10404_v39  ;;  %v9596_v44 = vrot.slane %v8951_v59, 5  ;;  %v13337_v62 = vrot.slane %v9445_v22, 9  ;;  %v19396_v26 = vpop.f32.mrb[134].mxu0  ;;  %v19406_v35 = vld [vmem:[#allocation2 + $0xc0] sm:$0xf] }
 0x59b   : > { %v13358_v29 = vcombine.low %v9215_v58, %v9229_v19  ;;  %v10395_v11 = vrot.slane %v10394_v9, 4  ;;  %v9600_v8 = vrot.slane %v8953_v46, 5  ;;  %v9231_v45 = vshrl.u32 %v8950_v36, 16  ;;  %v19400_v33 = vpop.f32.mrb[135].mxu0  ;;  %v10149_v7 = vld [vmem:[#allocation2 + $0xc4] sm:$0x1] }
 0x59c   : > { %v10409_v49 = vrot.slane %v10408_v32, 4  ;;  %v9597_v24 = vsel %vm16241_vm9, %v13336_v60, %v9596_v44  ;;  %v9234_v18 = vshll.u32 %v8950_v36, 16  ;;  %v9240_v53 = vshll.u32 %v8951_v59, 16  ;;  %v19410_v22 = vld [vmem:[#allocation2 + $0xc8] sm:$0xf] }
 0x59d   : > { %10003 = vmatmul.mubr.bf16.gmra.mrb[224].mxu0 %v13358_v29  ;;  %v10400_v20 = vsel %vm16786_vm12, %v10395_v11, %v10399_v25  ;;  %v9601_v2 = vsel %vm16241_vm9, %v13337_v62, %v9600_v8  ;;  %v9233_v16 = vrot.slane %v9231_v45, 4  ;;  %v9245_v17 = vshrl.u32 %v8952_v31, 16  ;;  %v10150_v56 = vld [vmem:[#allocation2 + $0xcc] sm:$0x1]  ;;  %v11110_v9 = vld [vmem:[#allocation2 + $0xc0] sm:$0xe] }
 0x59e   : > { %v10414_v21 = vsel %vm16786_vm12, %v10409_v49, %v10413_v27  ;;  %v13375_v4 = vcombine.low %v9597_v24, %v9601_v2  ;;  %v9236_v57 = vrot.slane %v9234_v18, 5  ;;  %v9242_v59 = vrot.slane %v9240_v53, 5  ;;  %v11111_v44 = vld [vmem:[#allocation2 + $0xc8] sm:$0xe] }
 0x59f   : > { %v13422_v42 = vcombine.low %v10400_v20, %v10414_v21  ;;  %v9247_v10 = vrot.slane %v9245_v17, 4  ;;  %v9248_v12 = vshll.u32 %v8952_v31, 16  ;;  %v9254_v25 = vshll.u32 %v8953_v46, 16  ;;  %v9446_v18 = vld [vmem:[#allocation2 + $0xc8] sm:$0xe] }
 0x5a0   : > { %10010 = vmatprep.mubr.bf16.mxu0 %v13375_v4  ;;  %v9237_v39 = vor.u32 %v9236_v57, %v9233_v16  ;;  %v10416_v41 = vshrl.u32 %v19406_v35, 16  ;;  %v10419_v36 = vshll.u32 %v19406_v35, 16  ;;  %v10425_v58 = vshll.u32 %v10149_v7, 16  ;;  %v8955_v17 = vld [vmem:[#allocation2 + $0xcc] sm:$0x1] }
 0x5a1   : > { %10995 = vmatprep.mubr.bf16.mxu1 %v13422_v42  ;;  %v9250_v27 = vrot.slane %v9248_v12, 5  ;;  %v9256_v60 = vrot.slane %v9254_v25, 5  ;;  %v10430_v19 = vshrl.u32 %v19410_v22, 16  ;;  %v10433_v32 = vshll.u32 %v19410_v22, 16  ;;  %v19416_v11 = vpop.f32.mrb[196].mxu1 }
 0x5a2   : > { %10996 = vmatmul.mubr.bf16.gmra.mrb[32].mxu1 %v13406_v23  ;;  %v9238_v62 = vrot.slane %v9237_v39, 4  ;;  %v10418_v46 = vrot.slane %v10416_v41, 4  ;;  %v10421_v31 = vrot.slane %v10419_v36, 5  ;;  %v10427_v29 = vrot.slane %v10425_v58, 5  ;;  %v19418_v53 = vpop.f32.mrb[197].mxu1 }
 0x5a3   : > { %v9251_v8 = vor.u32 %v9250_v27, %v9247_v10  ;;  %v10432_v45 = vrot.slane %v10430_v19, 4  ;;  %v10435_v49 = vrot.slane %v10433_v32, 5  ;;  %v10439_v24 = vshll.u32 %v10150_v56, 16  ;;  %v19424_v21 = vpop.f32.mrb[198].mxu1  ;;  %v9447_v12 = vld [vmem:[#allocation2 + $0xd0] sm:$0xe] }
 0x5a4   : > { %v9243_v20 = vsel %vm16786_vm12, %v9238_v62, %v9242_v59  ;;  %v10422_v2 = vor.u32 %v10421_v31, %v10418_v46  ;;  %v13407_v23 = vcombine.low %v19406_v35, %v19410_v22  ;;  %v13464_v16 = vrot.slane %v11110_v9, 9  ;;  %v19426_v25 = vpop.f32.mrb[199].mxu1  ;;  %v8957_v58 = vld [vmem:[#allocation2 + $0xd4] sm:$0x1]  ;;  %v8954_v19 = vld [vmem:[#allocation2 + $0xc8] sm:$0xf] }
 0x5a5   : > { %v9252_v4 = vrot.slane %v9251_v8, 4  ;;  %v10436_v57 = vor.u32 %v10435_v49, %v10432_v45  ;;  %v10441_v42 = vrot.slane %v10439_v24, 5  ;;  %v11262_v10 = vrot.slane %v10149_v7, 5  ;;  %v8956_v62 = vld [vmem:[#allocation2 + $0xd0] sm:$0xf] }
 0x5a6   : > { %v10423_v39 = vrot.slane %v10422_v2, 4  ;;  %v13465_v41 = vrot.slane %v11111_v44, 9  ;;  %v11266_v36 = vrot.slane %v10150_v56, 5  ;;  %v13338_v59 = vrot.slane %v9446_v18, 9  ;;  %v19446_v45 = vld [vmem:[#allocation2 + $0xd0] sm:$0xf] }
 0x5a7   : > { %v9257_v27 = vsel %vm16786_vm12, %v9252_v4, %v9256_v60  ;;  %v10437_v35 = vrot.slane %v10436_v57, 4  ;;  %v19432_v22 = vsel %vm16241_vm9, %v13464_v16, %v11262_v10  ;;  %v9604_v9 = vrot.slane %v8955_v17, 5  ;;  %v19450_v2 = vld [vmem:[#allocation2 + $0xd8] sm:$0xf]  ;;  %v9449_v46 = vld [vmem:[#allocation2 + $0xe0] sm:$0xe] }
 0x5a8   : > { %20782 = vst [vmem:[#allocation43_spill] sm:$0xff] %v19432_v22  ;;  %v13359_v32 = vcombine.low %v9243_v20, %v9257_v27  ;;  %v10428_v7 = vsel %vm16786_vm12, %v10423_v39, %v10427_v29  ;;  %v19438_v44 = vsel %vm16241_vm9, %v13465_v41, %v11266_v36  ;;  %v13339_v56 = vrot.slane %v9447_v12, 9  ;;  %v10151_v12 = vld [vmem:[#allocation2 + $0xd4] sm:$0x1] }
 0x5a9   : > { %20783 = vst [vmem:[#allocation31_spill] sm:$0xff] %v19438_v44  ;;  %v10442_v60 = vsel %vm16786_vm12, %v10437_v35, %v10441_v42  ;;  %v9605_v31 = vsel %vm16241_vm9, %v13338_v59, %v9604_v9  ;;  %v9608_v8 = vrot.slane %v8957_v58, 5  ;;  %v19448_v49 = vpop.f32.mrb[136].mxu0  ;;  %v9259_v24 = vshrl.u32 %v8954_v19, 16  ;;  %v10152_v35 = vld [vmem:[#allocation2 + $0xdc] sm:$0x1] }
 0x5aa   : > { %10011 = vmatmul.mubr.bf16.gmra.mrb[228].mxu0 %v13359_v32  ;;  %v13423_v29 = vcombine.low %v10428_v7, %v10442_v60  ;;  %v9262_v18 = vshll.u32 %v8954_v19, 16  ;;  %v9268_v20 = vshll.u32 %v8955_v17, 16  ;;  %v19452_v16 = vpop.f32.mrb[137].mxu0  ;;  %v9273_v57 = vshrl.u32 %v8956_v62, 16 }
 0x5ab   : > { %v9609_v4 = vsel %vm16241_vm9, %v13339_v56, %v9608_v8  ;;  %v9276_v42 = vshll.u32 %v8956_v62, 16  ;;  %v9282_v10 = vshll.u32 %v8957_v58, 16  ;;  %v19456_v39 = vpop.f32.mrb[138].mxu0  ;;  %v9261_v36 = vrot.slane %v9259_v24, 4  ;;  %v8959_v56 = vld [vmem:[#allocation2 + $0xdc] sm:$0x1] }
 0x5ac   : > { %11003 = vmatprep.mubr.bf16.mxu1 %v13423_v29  ;;  %v13376_v41 = vcombine.low %v9605_v31, %v9609_v4  ;;  %v9264_v59 = vrot.slane %v9262_v18, 5  ;;  %v9270_v27 = vrot.slane %v9268_v20, 5  ;;  %v19458_v17 = vpop.f32.mrb[139].mxu0  ;;  %v9275_v9 = vrot.slane %v9273_v57, 4  ;;  %v19463_v8 = vld [vmem:[#allocation2 + $0xe4] sm:$0x1] }
 0x5ad   : > { %11004 = vmatmul.mubr.bf16.gmra.mrb[36].mxu1 %v13407_v23  ;;  %v9278_v19 = vrot.slane %v9276_v42, 5  ;;  %v9284_v32 = vrot.slane %v9282_v10, 5  ;;  %v10444_v7 = vshrl.u32 %v19446_v45, 16  ;;  %v10447_v62 = vshll.u32 %v19446_v45, 16  ;;  %v9448_v20 = vld [vmem:[#allocation2 + $0xd8] sm:$0xe] }
 0x5ae   : > { %10018 = vmatprep.mubr.bf16.mxu0 %v13376_v41  ;;  %v9265_v58 = vor.u32 %v9264_v59, %v9261_v36  ;;  %v10453_v60 = vshll.u32 %v10151_v12, 16  ;;  %v10458_v31 = vshrl.u32 %v19450_v2, 16  ;;  %v10461_v18 = vshll.u32 %v19450_v2, 16 }
 0x5af   : > { %v9279_v29 = vor.u32 %v9278_v19, %v9275_v9  ;;  %v10446_v24 = vrot.slane %v10444_v7, 4  ;;  %v10467_v23 = vshll.u32 %v10152_v35, 16  ;;  %v10449_v57 = vrot.slane %v10447_v62, 5 }
 0x5b0   : > { %v9266_v4 = vrot.slane %v9265_v58, 4  ;;  %v10455_v42 = vrot.slane %v10453_v60, 5  ;;  %v10460_v10 = vrot.slane %v10458_v31, 4  ;;  %v10463_v36 = vrot.slane %v10461_v18, 5 }
 0x5b1   : > { %v9280_v41 = vrot.slane %v9279_v29, 4  ;;  %v10469_v59 = vrot.slane %v10467_v23, 5  ;;  %v13408_v12 = vcombine.low %v19446_v45, %v19450_v2  ;;  %v10450_v19 = vor.u32 %v10449_v57, %v10446_v24  ;;  %v8960_v23 = vld [vmem:[#allocation2 + $0xe0] sm:$0xf] }
 0x5b2   : > { %v19468_v48 = vpop.f32.mrb[140].mxu0  ;;  %v9271_v9 = vsel %vm16786_vm12, %v9266_v4, %v9270_v27  ;;  %v13340_v7 = vrot.slane %v9448_v20, 9  ;;  %v9612_v35 = vrot.slane %v8959_v56, 5  ;;  %v10464_v60 = vor.u32 %v10463_v36, %v10460_v10 }
 0x5b3   : > { %v19472_v58 = vpop.f32.mrb[141].mxu0  ;;  %v9285_v62 = vsel %vm16786_vm12, %v9280_v41, %v9284_v32  ;;  %v13341_v31 = vrot.slane %v9449_v46, 9  ;;  %v9616_v29 = vrot.slane %v19463_v8, 5  ;;  %v10451_v2 = vrot.slane %v10450_v19, 4  ;;  %v19495_v41 = vld [vmem:[#allocation2 + $0xe0] sm:$0xf] }
 0x5b4   : > { %v19477_v18 = vpop.f32.mrb[142].mxu0  ;;  %v13360_v45 = vcombine.low %v9271_v9, %v9285_v62  ;;  %v9613_v27 = vsel %vm16241_vm9, %v13340_v7, %v9612_v35  ;;  %v19483_v24 = vadd.f32 %v19340_v30, %v19338_v61  ;;  %v10465_v32 = vrot.slane %v10464_v60, 4  ;;  %v19501_v7 = vld [vmem:[#allocation2 + $0xe8] sm:$0xf] }
 0x5b5   : > { %v19485_v20 = vpop.f32.mrb[200].mxu1  ;;  %v19487_v4 = vpop.f32.mrb[143].mxu0  ;;  %v9617_v46 = vsel %vm16241_vm9, %v13341_v31, %v9616_v29  ;;  %v19493_v57 = vadd.f32 %v19348_v52, %v19346_v28  ;;  %v9287_v10 = vshrl.u32 %v8958_v0, 16  ;;  %v10456_v61 = vsel %vm16786_vm12, %v10451_v2, %v10455_v42  ;;  %v10153_v31 = vld [vmem:[#allocation2 + $0xe4] sm:$0x1] }
 0x5b6   : > { %v19497_v36 = vpop.f32.mrb[201].mxu1  ;;  %10019 = vmatmul.mubr.bf16.gmra.mrb[232].mxu0 %v13360_v45  ;;  %v13377_v30 = vcombine.low %v9613_v27, %v9617_v46  ;;  %v9290_v9 = vshll.u32 %v8958_v0, 16  ;;  %v9296_v19 = vshll.u32 %v8959_v56, 16  ;;  %v10470_v28 = vsel %vm16786_vm12, %v10465_v32, %v10469_v59  ;;  %v10154_v27 = vld [vmem:[#allocation2 + $0xec] sm:$0x1] }
 0x5b7   : > { %v19503_v35 = vpop.f32.mrb[202].mxu1  ;;  %v9289_v52 = vrot.slane %v9287_v10, 4  ;;  %v9301_v62 = vshrl.u32 %v8960_v23, 16  ;;  %v9304_v60 = vshll.u32 %v8960_v23, 16  ;;  %v13424_v45 = vcombine.low %v10456_v61, %v10470_v28 }
 0x5b8   : > { %v19507_v29 = vpop.f32.mrb[203].mxu1  ;;  %10026 = vmatprep.mubr.bf16.mxu0 %v13377_v30  ;;  %v9292_v63 = vrot.slane %v9290_v9, 5  ;;  %v9298_v42 = vrot.slane %v9296_v19, 5  ;;  %v9310_v0 = vshll.u32 %v19463_v8, 16  ;;  %v10472_v46 = vshrl.u32 %v19495_v41, 16 }
 0x5b9   : > { %v9303_v56 = vrot.slane %v9301_v62, 4  ;;  %v9306_v2 = vrot.slane %v9304_v60, 5  ;;  %v10475_v15 = vshll.u32 %v19495_v41, 16  ;;  %11011 = vmatprep.mubr.bf16.mxu1 %v13424_v45  ;;  %v10481_v10 = vshll.u32 %v10153_v31, 16  ;;  %v11114_v30 = vld [vmem:[#allocation2 + $0xe0] sm:$0xe] }
 0x5ba   : > { %v19512_v59 = vpop.f32.mrb[144].mxu0  ;;  %v9293_v23 = vor.u32 %v9292_v63, %v9289_v52  ;;  %v9312_v32 = vrot.slane %v9310_v0, 5  ;;  %v10486_v61 = vshrl.u32 %v19501_v7, 16  ;;  %11012 = vmatmul.mubr.bf16.gmra.mrb[40].mxu1 %v13408_v12  ;;  %v10474_v19 = vrot.slane %v10472_v46, 4  ;;  %v11115_v60 = vld [vmem:[#allocation2 + $0xe8] sm:$0xe] }
 0x5bb   : > { %v19515_v9 = vpop.f32.mrb[145].mxu0  ;;  %v9307_v8 = vor.u32 %v9306_v2, %v9303_v56  ;;  %v10477_v28 = vrot.slane %v10475_v15, 5  ;;  %v10489_v62 = vshll.u32 %v19501_v7, 16  ;;  %v10483_v5 = vrot.slane %v10481_v10, 5  ;;  %v19520_v52 = vld [vmem:[#allocation2 + $0xfc] sm:$0x1] }
 0x5bc   : > { %v19518_v44 = vpop.f32.mrb[146].mxu0  ;;  %v9294_v22 = vrot.slane %v9293_v23, 4  ;;  %v10488_v45 = vrot.slane %v10486_v61, 4  ;;  %v10495_v63 = vshll.u32 %v10154_v27, 16  ;;  %v13409_v15 = vcombine.low %v19495_v41, %v19501_v7  ;;  %v9450_v2 = vld [vmem:[#allocation2 + $0xf8] sm:$0xe] }
 0x5bd   : > { %v19522_v0 = vpop.f32.mrb[204].mxu1  ;;  %v19524_v55 = vpop.f32.mrb[147].mxu0  ;;  %v9308_v6 = vrot.slane %v9307_v8, 4  ;;  %v10478_v12 = vor.u32 %v10477_v28, %v10474_v19  ;;  %v10491_v56 = vrot.slane %v10489_v62, 5  ;;  %v13468_v61 = vrot.slane %v11114_v30, 9 }
 0x5be   : > { %v19528_v46 = vpop.f32.mrb[205].mxu1  ;;  %v9299_v23 = vsel %vm16786_vm12, %v9294_v22, %v9298_v42  ;;  %v10497_v10 = vrot.slane %v10495_v63, 5  ;;  %v11278_v51 = vrot.slane %v10153_v31, 5  ;;  %v13469_v62 = vrot.slane %v11115_v60, 9 }
 0x5bf   : > { %v19532_v34 = vpop.f32.mrb[206].mxu1  ;;  %v9313_v8 = vsel %vm16786_vm12, %v9308_v6, %v9312_v32  ;;  %v10479_v19 = vrot.slane %v10478_v12, 4  ;;  %v10492_v28 = vor.u32 %v10491_v56, %v10488_v45  ;;  %v11282_v22 = vrot.slane %v10154_v27, 5 }
 0x5c0   : > { %v19536_v41 = vpop.f32.mrb[207].mxu1  ;;  %v13361_v7 = vcombine.low %v9299_v23, %v9313_v8  ;;  %v19540_v47 = vsel %vm16241_vm9, %v13468_v61, %v11278_v51  ;;  %v13342_v42 = vrot.slane %v9450_v2, 9  ;;  %v9620_v63 = vrot.slane %v19520_v52, 5  ;;  %v19578_v8 = vld [vmem:[#allocation2 + $0x100] sm:$0xf] }
 0x5c1   : > { %20784 = vst [vmem:[#allocation39_spill] sm:$0xff] %v19540_v47  ;;  %v10484_v31 = vsel %vm16786_vm12, %v10479_v19, %v10483_v5  ;;  %v10493_v30 = vrot.slane %v10492_v28, 4  ;;  %v13343_v6 = vrot.slane %v9451_v14, 9  ;;  %v19549_v60 = vsel %vm16241_vm9, %v13469_v62, %v11282_v22  ;;  %v8962_v5 = vld [vmem:[#allocation2 + $0xf8] sm:$0xf] }
 0x5c2   : > { %v19545_v32 = vpop.f32.mrb[148].mxu0  ;;  %10027 = vmatmul.mubr.bf16.gmra.mrb[236].mxu0 %v13361_v7  ;;  %20785 = vst [vmem:[#allocation40_spill] sm:$0xff] %v19549_v60  ;;  %v9624_v45 = vrot.slane %v8965_v50, 5  ;;  %v14265_v51 = vadd.f32 %v19380_v43, %v19378_v3  ;;  %v19555_v27 = vadd.f32 %v19394_v1, %v19388_v37  ;;  %v9621_v2 = vsel %vm16241_vm9, %v13342_v42, %v9620_v63  ;;  %v8964_v3 = vld [vmem:[#allocation2 + $0x100] sm:$0xf] }
 0x5c3   : > { %v19557_v12 = vpop.f32.mrb[149].mxu0  ;;  %v10498_v14 = vsel %vm16786_vm12, %v10493_v30, %v10497_v10  ;;  %v14268_v23 = vadd.f32 %v19390_v54, %v19384_v13  ;;  %v19576_v10 = vadd.f32 %v19400_v33, %v19396_v26  ;;  %v19580_v19 = vld [vmem:[#allocation2 + $0x104] sm:$0x1]  ;;  %v9315_v7 = vshrl.u32 %v8962_v5, 16  ;;  %v19591_v42 = vld [vmem:[#allocation2 + $0x10c] sm:$0x1] }
 0x5c4   : > { %v19567_v43 = vpop.f32.mrb[150].mxu0  ;;  %v13425_v37 = vcombine.low %v10484_v31, %v10498_v14  ;;  %v9625_v1 = vsel %vm16241_vm9, %v13343_v6, %v9624_v45  ;;  %v19572_v61 = vadd.f32 %v14265_v51, %v19483_v24  ;;  %20787 = vst [vmem:[#allocation42_spill] sm:$0xff] %v19580_v19  ;;  %v9318_v22 = vshll.u32 %v8962_v5, 16  ;;  %v19589_v24 = vld [vmem:[#allocation2 + $0x108] sm:$0xf]  ;;  %20789 = vst [vmem:[#allocation37_spill] sm:$0xff] %v19591_v42 }
 0x5c5   : > { %v19582_v28 = vpop.f32.mrb[208].mxu1  ;;  %v19584_v13 = vpop.f32.mrb[151].mxu0  ;;  %v13378_v54 = vcombine.low %v9621_v2, %v9625_v1  ;;  %v19587_v62 = vadd.f32 %v14268_v23, %v19493_v57  ;;  %v9324_v33 = vshll.u32 %v19520_v52, 16  ;;  %v9329_v31 = vshrl.u32 %v8964_v3, 16  ;;  %v19602_v52 = vld [vmem:[#allocation2 + $0x10c] sm:$0x1] }
 0x5c6   : > { %20786 = vst [vmem:[#allocation41_spill] sm:$0xff] %v19572_v61  ;;  %v19593_v26 = vpop.f32.mrb[209].mxu1  ;;  %11019 = vmatprep.mubr.bf16.mxu1 %v13425_v37  ;;  %v9332_v30 = vshll.u32 %v8964_v3, 16  ;;  %v9338_v63 = vshll.u32 %v8965_v50, 16  ;;  %v9317_v57 = vrot.slane %v9315_v7, 4  ;;  %v9320_v45 = vrot.slane %v9318_v22, 5 }
 0x5c7   : > { %20788 = vst [vmem:[#allocation55_spill] sm:$0xff] %v19587_v62  ;;  %v19596_v6 = vpop.f32.mrb[210].mxu1  ;;  %10034 = vmatprep.mubr.bf16.mxu0 %v13378_v54  ;;  %11020 = vmatmul.mubr.bf16.gmra.mrb[44].mxu1 %v13409_v15  ;;  %v10500_v51 = vshrl.u32 %v19578_v8, 16  ;;  %v10503_v5 = vshll.u32 %v19578_v8, 16  ;;  %v9326_v2 = vrot.slane %v9324_v33, 5  ;;  %v9331_v23 = vrot.slane %v9329_v31, 4 }
 0x5c8   : > { %v19600_v14 = vpop.f32.mrb[211].mxu1  ;;  %v9334_v37 = vrot.slane %v9332_v30, 5  ;;  %v9340_v1 = vrot.slane %v9338_v63, 5  ;;  %v9321_v3 = vor.u32 %v9320_v45, %v9317_v57  ;;  %v10509_v54 = vshll.u32 %v19580_v19, 16  ;;  %v9452_v15 = vld [vmem:[#allocation2 + $0x108] sm:$0xe] }
 0x5c9   : > { %v10502_v50 = vrot.slane %v10500_v51, 4  ;;  %v10505_v56 = vrot.slane %v10503_v5, 5  ;;  %v10514_v60 = vshrl.u32 %v19589_v24, 16  ;;  %v10517_v47 = vshll.u32 %v19589_v24, 16  ;;  %v19610_v31 = vld [vmem:[#allocation2 + $0x114] sm:$0x1] }
 0x5ca   : > { %v19605_v7 = vpop.f32.mrb[152].mxu0  ;;  %v9335_v22 = vor.u32 %v9334_v37, %v9331_v23  ;;  %v10523_v33 = vshll.u32 %v19591_v42, 16  ;;  %v9322_v63 = vrot.slane %v9321_v3, 4  ;;  %v10511_v45 = vrot.slane %v10509_v54, 5  ;;  %v9453_v5 = vld [vmem:[#allocation2 + $0x110] sm:$0xe] }
 0x5cb   : > { %20790 = vst [vmem:[#allocation25_spill] sm:$0xff] %v19605_v7  ;;  %v19612_v30 = vpop.f32.mrb[153].mxu0  ;;  %v10506_v57 = vor.u32 %v10505_v56, %v10502_v50  ;;  %v13410_v51 = vcombine.low %v19578_v8, %v19589_v24  ;;  %v10516_v37 = vrot.slane %v10514_v60, 4  ;;  %v10519_v62 = vrot.slane %v10517_v47, 5 }
 0x5cc   : > { %20791 = vst [vmem:[#allocation58_spill] sm:$0xff] %v19612_v30  ;;  %v19616_v19 = vpop.f32.mrb[154].mxu0  ;;  %v9336_v23 = vrot.slane %v9335_v22, 4  ;;  %v10525_v61 = vrot.slane %v10523_v33, 5  ;;  %v9327_v30 = vsel %vm16786_vm12, %v9322_v63, %v9326_v2  ;;  %v13344_v56 = vrot.slane %v9452_v15, 9 }
 0x5cd   : > { %v19618_v7 = vpop.f32.mrb[212].mxu1  ;;  %v19620_v42 = vpop.f32.mrb[155].mxu0  ;;  %v10507_v3 = vrot.slane %v10506_v57, 4  ;;  %v9628_v50 = vrot.slane %v19602_v52, 5  ;;  %v10520_v24 = vor.u32 %v10519_v62, %v10516_v37  ;;  %v13345_v60 = vrot.slane %v9453_v5, 9 }
 0x5ce   : > { %20792 = vst [vmem:[#allocation22_spill] sm:$0xff] %v19620_v42  ;;  %v19625_v54 = vpop.f32.mrb[213].mxu1  ;;  %v9341_v8 = vsel %vm16786_vm12, %v9336_v23, %v9340_v1  ;;  %v9632_v47 = vrot.slane %v19610_v31, 5  ;;  %v8966_v22 = vld [vmem:[#allocation2 + $0x108] sm:$0xf]  ;;  %v14271_v63 = vadd.f32 %v19418_v53, %v19416_v11  ;;  %v19644_v5 = vadd.f32 %v19452_v16, %v19448_v49 }
 0x5cf   : > { %v19630_v33 = vpop.f32.mrb[214].mxu1  ;;  %v13362_v42 = vcombine.low %v9327_v30, %v9341_v8  ;;  %v10512_v2 = vsel %vm16786_vm12, %v10507_v3, %v10511_v45  ;;  %v9629_v15 = vsel %vm16241_vm9, %v13344_v56, %v9628_v50  ;;  %v10521_v1 = vrot.slane %v10520_v24, 4  ;;  %v8968_v45 = vld [vmem:[#allocation2 + $0x110] sm:$0xf]  ;;  %v19657_v56 = vld [vmem:[#allocation2 + $0x114] sm:$0x1] }
 0x5d0   : > { %v19638_v57 = vpop.f32.mrb[215].mxu1  ;;  %v9633_v62 = vsel %vm16241_vm9, %v13345_v60, %v9632_v47  ;;  %v14274_v30 = vadd.f32 %v19426_v25, %v19424_v21  ;;  %v19649_v37 = vadd.f32 %v14271_v63, %v19555_v27  ;;  %v19653_v11 = vadd.f32 %v19458_v17, %v19456_v39  ;;  %v19655_v3 = vld [vmem:[#allocation2 + $0x110] sm:$0xf]  ;;  %v10158_v60 = vld [vmem:[#allocation2 + $0x11c] sm:$0x1] }
 0x5d1   : > { %10035 = vmatmul.mubr.bf16.gmra.mrb[240].mxu0 %v13362_v42  ;;  %v13379_v23 = vcombine.low %v9629_v15, %v9633_v62  ;;  %v9343_v53 = vshrl.u32 %v8966_v22, 16  ;;  %v10526_v21 = vsel %vm16786_vm12, %v10521_v1, %v10525_v61  ;;  %v9346_v16 = vshll.u32 %v8966_v22, 16  ;;  %v19667_v42 = vld [vmem:[#allocation2 + $0x118] sm:$0xf] }
 0x5d2   : > { %20793 = vst [vmem:[#allocation24_spill] sm:$0xff] %v19649_v37  ;;  %v19659_v49 = vpop.f32.mrb[156].mxu0  ;;  %v19664_v25 = vadd.f32 %v14274_v30, %v19576_v10  ;;  %v9352_v27 = vshll.u32 %v19602_v52, 16  ;;  %v13426_v17 = vcombine.low %v10512_v2, %v10526_v21  ;;  %v9357_v8 = vshrl.u32 %v8968_v45, 16 }
 0x5d3   : > { %20794 = vst [vmem:[#allocation36_spill] sm:$0xff] %v19659_v49  ;;  %v19669_v39 = vpop.f32.mrb[157].mxu0  ;;  %10042 = vmatprep.mubr.bf16.mxu0 %v13379_v23  ;;  %v9345_v50 = vrot.slane %v9343_v53, 4  ;;  %v9360_v24 = vshll.u32 %v8968_v45, 16  ;;  %v9348_v15 = vrot.slane %v9346_v16, 5  ;;  %v9366_v10 = vshll.u32 %v19610_v31, 16 }
 0x5d4   : > { %20795 = vst [vmem:[#allocation47_spill] sm:$0xff] %v19664_v25  ;;  %20796 = vst [vmem:[#allocation48_spill] sm:$0xff] %v19669_v39  ;;  %v19671_v47 = vpop.f32.mrb[158].mxu0  ;;  %v9354_v61 = vrot.slane %v9352_v27, 5  ;;  %v10528_v22 = vshrl.u32 %v19655_v3, 16  ;;  %11027 = vmatprep.mubr.bf16.mxu1 %v13426_v17  ;;  %v9359_v1 = vrot.slane %v9357_v8, 4  ;;  %v14183_v38 = vadd.f32 %v19557_v12, %v19545_v32 }
 0x5d5   : > { %20797 = vst [vmem:[#allocation49_spill] sm:$0xff] %v19671_v47  ;;  %v19675_v63 = vpop.f32.mrb[216].mxu1  ;;  %v19677_v52 = vpop.f32.mrb[159].mxu0  ;;  %v9362_v2 = vrot.slane %v9360_v24, 5  ;;  %v10531_v62 = vshll.u32 %v19655_v3, 16  ;;  %v10537_v30 = vshll.u32 %v19657_v56, 16  ;;  %11028 = vmatmul.mubr.bf16.gmra.mrb[48].mxu1 %v13410_v51  ;;  %v9349_v23 = vor.u32 %v9348_v15, %v9345_v50 }
 0x5d6   : > { %20798 = vst [vmem:[#allocation50_spill] sm:$0xff] %v19677_v52  ;;  %v19681_v45 = vpop.f32.mrb[217].mxu1  ;;  %v9368_v53 = vrot.slane %v9366_v10, 5  ;;  %v10530_v21 = vrot.slane %v10528_v22, 4  ;;  %v10542_v31 = vshrl.u32 %v19667_v42, 16  ;;  %v10545_v8 = vshll.u32 %v19667_v42, 16 }
 0x5d7   : > { %20799 = vst [vmem:[#allocation51_spill] sm:$0xff] %v19681_v45  ;;  %v11118_v16 = vld [vmem:[#allocation2 + $0x110] sm:$0xe]  ;;  %v19684_v27 = vpop.f32.mrb[218].mxu1  ;;  %v9363_v25 = vor.u32 %v9362_v2, %v9359_v1  ;;  %v10533_v37 = vrot.slane %v10531_v62, 5  ;;  %v10539_v17 = vrot.slane %v10537_v30, 5  ;;  %v13411_v51 = vcombine.low %v19655_v3, %v19667_v42 }
 0x5d8   : > { %20800 = vst [vmem:[#allocation52_spill] sm:$0xff] %v19684_v27  ;;  %v11119_v24 = vld [vmem:[#allocation2 + $0x118] sm:$0xe]  ;;  %v19687_v52 = vpop.f32.mrb[219].mxu1  ;;  %v9350_v47 = vrot.slane %v9349_v23, 4  ;;  %v10544_v39 = vrot.slane %v10542_v31, 4 }
 0x5d9   : > { %20801 = vst [vmem:[#allocation53_spill] sm:$0xff] %v19687_v52  ;;  %v10551_v49 = vshll.u32 %v10158_v60, 16  ;;  %v19691_v50 = vld [vmem:[#allocation2 + $0x11c] sm:$0x1]  ;;  %v9364_v15 = vrot.slane %v9363_v25, 4  ;;  %v10534_v10 = vor.u32 %v10533_v37, %v10530_v21  ;;  %v10547_v22 = vrot.slane %v10545_v8, 5 }
 0x5da   : > { %v13472_v27 = vrot.slane %v11118_v16, 9  ;;  %v9454_v1 = vld [vmem:[#allocation2 + $0x118] sm:$0xe]  ;;  %v19693_v2 = vpop.f32.mrb[160].mxu0  ;;  %v9355_v62 = vsel %vm16786_vm12, %v9350_v47, %v9354_v61  ;;  %v11294_v23 = vrot.slane %v19657_v56, 5  ;;  %v13473_v31 = vrot.slane %v11119_v24, 9 }
 0x5db   : > { %v10553_v30 = vrot.slane %v10551_v49, 5  ;;  %v9455_v52 = vld [vmem:[#allocation2 + $0x120] sm:$0xe]  ;;  %v19698_v45 = vpop.f32.mrb[161].mxu0  ;;  %v9369_v3 = vsel %vm16786_vm12, %v9364_v15, %v9368_v53  ;;  %v10535_v25 = vrot.slane %v10534_v10, 4  ;;  %v10548_v37 = vor.u32 %v10547_v22, %v10544_v39 }
 0x5dc   : > { %v11298_v42 = vrot.slane %v10158_v60, 5  ;;  %v19702_v21 = vld [vmem:[#allocation2 + $0x124] sm:$0x1]  ;;  %v19704_v16 = vpop.f32.mrb[162].mxu0  ;;  %v13363_v8 = vcombine.low %v9355_v62, %v9369_v3  ;;  %v19708_v49 = vsel %vm16241_vm9, %v13472_v27, %v11294_v23  ;;  %v13346_v56 = vrot.slane %v9454_v1, 9 }
 0x5dd   : > { %20802 = vst [vmem:[#allocation54_spill] sm:$0xff] %v19708_v49  ;;  %v9636_v47 = vrot.slane %v19691_v50, 5  ;;  %v19711_v61 = vpop.f32.mrb[220].mxu1  ;;  %v19713_v24 = vpop.f32.mrb[163].mxu0  ;;  %v10540_v39 = vsel %vm16786_vm12, %v10535_v25, %v10539_v17  ;;  %v10549_v60 = vrot.slane %v10548_v37, 4  ;;  %v13347_v15 = vrot.slane %v9455_v52, 9 }
 0x5de   : > { %v19719_v53 = vsel %vm16241_vm9, %v13473_v31, %v11298_v42  ;;  %v8970_v10 = vld [vmem:[#allocation2 + $0x118] sm:$0xf]  ;;  %v19721_v22 = vpop.f32.mrb[221].mxu1  ;;  %10043 = vmatmul.mubr.bf16.gmra.mrb[244].mxu0 %v13363_v8  ;;  %v9640_v62 = vrot.slane %v19702_v21, 5  ;;  %v14277_v17 = vadd.f32 %v19497_v36, %v19485_v20  ;;  %v19736_v31 = vadd.f32 %v19472_v58, %v19468_v48  ;;  %v8972_v37 = vld [vmem:[#allocation2 + $0x120] sm:$0xf] }
 0x5df   : > { %20803 = vst [vmem:[#allocation56_spill] sm:$0xff] %v19719_v53  ;;  %v9637_v1 = vsel %vm16241_vm9, %v13346_v56, %v9636_v47  ;;  %v19730_v23 = vpop.f32.mrb[222].mxu1  ;;  %v10554_v52 = vsel %vm16786_vm12, %v10549_v60, %v10553_v30  ;;  %v14280_v3 = vadd.f32 %v19507_v29, %v19503_v35  ;;  %v19742_v25 = vadd.f32 %v19487_v4, %v19477_v18  ;;  %v19751_v48 = vld [vmem:[#allocation2 + $0x120] sm:$0xf]  ;;  %v19753_v58 = vld [vmem:[#allocation2 + $0x128] sm:$0xf] }
 0x5e0   : > { %v19744_v42 = vpop.f32.mrb[223].mxu1  ;;  %v13427_v20 = vcombine.low %v10540_v39, %v10554_v52  ;;  %v9641_v36 = vsel %vm16241_vm9, %v13347_v15, %v9640_v62  ;;  %v19749_v30 = vadd.f32 %v14277_v17, %v19644_v5  ;;  %v9371_v8 = vshrl.u32 %v8970_v10, 16  ;;  %v19759_v56 = vld [vmem:[#allocation2 + $0x124] sm:$0x1]  ;;  %v9456_v53 = vld [vmem:[#allocation2 + $0x128] sm:$0xe] }
 0x5e1   : > { %v13380_v35 = vcombine.low %v9637_v1, %v9641_v36  ;;  %v19756_v29 = vadd.f32 %v14280_v3, %v19653_v11  ;;  %v9374_v18 = vshll.u32 %v8970_v10, 16  ;;  %v9380_v4 = vshll.u32 %v19691_v50, 16  ;;  %20806 = vst [vmem:[#allocation23_spill] sm:$0xff] %v19759_v56  ;;  %v19766_v11 = vld [vmem:[#allocation2 + $0x12c] sm:$0x1] }
 0x5e2   : > { %20804 = vst [vmem:[#allocation57_spill] sm:$0xff] %v19749_v30  ;;  %v19761_v47 = vpop.f32.mrb[164].mxu0  ;;  %11035 = vmatprep.mubr.bf16.mxu1 %v13427_v20  ;;  %v9373_v39 = vrot.slane %v9371_v8, 4  ;;  %v9385_v5 = vshrl.u32 %v8972_v37, 16  ;;  %v9388_v60 = vshll.u32 %v8972_v37, 16  ;;  %v9394_v15 = vshll.u32 %v19702_v21, 16 }
 0x5e3   : > { %20805 = vst [vmem:[#allocation35_spill] sm:$0xff] %v19756_v29  ;;  %20807 = vst [vmem:[#allocation26_spill] sm:$0xff] %v19761_v47  ;;  %v19764_v62 = vpop.f32.mrb[165].mxu0  ;;  %10050 = vmatprep.mubr.bf16.mxu0 %v13380_v35  ;;  %11036 = vmatmul.mubr.bf16.gmra.mrb[52].mxu1 %v13411_v51  ;;  %v9376_v1 = vrot.slane %v9374_v18, 5  ;;  %v10556_v10 = vshrl.u32 %v19751_v48, 16  ;;  %v10559_v50 = vshll.u32 %v19751_v48, 16 }
 0x5e4   : > { %20808 = vst [vmem:[#allocation29_spill] sm:$0xff] %v19764_v62  ;;  %20809 = vst [vmem:[#allocation46_spill] sm:$0xff] %v19766_v11  ;;  %v19770_v17 = vpop.f32.mrb[166].mxu0  ;;  %v9382_v52 = vrot.slane %v9380_v4, 5  ;;  %v9387_v3 = vrot.slane %v9385_v5, 4  ;;  %v9390_v20 = vrot.slane %v9388_v60, 5 }
 0x5e5   : > { %20810 = vst [vmem:[#allocation34_spill] sm:$0xff] %v19770_v17  ;;  %v10565_v37 = vshll.u32 %v19759_v56, 16  ;;  %v19773_v36 = vld [vmem:[#allocation2 + $0x12c] sm:$0x1]  ;;  %v19775_v21 = vpop.f32.mrb[224].mxu1  ;;  %v19777_v8 = vpop.f32.mrb[167].mxu0  ;;  %v9377_v51 = vor.u32 %v9376_v1, %v9373_v39 }
 0x5e6   : > { %20811 = vst [vmem:[#allocation21_spill] sm:$0xff] %v19775_v21  ;;  %20812 = vst [vmem:[#allocation20_spill] sm:$0xff] %v19777_v8  ;;  %v10558_v35 = vrot.slane %v10556_v10, 4  ;;  %v10561_v18 = vrot.slane %v10559_v50, 5  ;;  %v10570_v27 = vshrl.u32 %v19753_v58, 16  ;;  %v19780_v49 = vpop.f32.mrb[225].mxu1  ;;  %v9391_v29 = vor.u32 %v9390_v20, %v9387_v3 }
 0x5e7   : > { %20813 = vst [vmem:[#allocation59_spill] sm:$0xff] %v19780_v49  ;;  %v9396_v4 = vrot.slane %v9394_v15, 5  ;;  %v10573_v5 = vshll.u32 %v19753_v58, 16  ;;  %v10579_v60 = vshll.u32 %v19766_v11, 16  ;;  %v9457_v30 = vld [vmem:[#allocation2 + $0x130] sm:$0xe] }
 0x5e8   : > { %v19784_v56 = vpop.f32.mrb[226].mxu1  ;;  %v9378_v17 = vrot.slane %v9377_v51, 4  ;;  %v10562_v62 = vor.u32 %v10561_v18, %v10558_v35  ;;  %v10567_v8 = vrot.slane %v10565_v37, 5  ;;  %v10572_v39 = vrot.slane %v10570_v27, 4  ;;  %v19786_v1 = vld [vmem:[#allocation2 + $0x134] sm:$0x1] }
 0x5e9   : > { %20814 = vst [vmem:[#allocation60_spill] sm:$0xff] %v19784_v56  ;;  %v19788_v10 = vpop.f32.mrb[227].mxu1  ;;  %v9392_v50 = vrot.slane %v9391_v29, 4  ;;  %v10575_v47 = vrot.slane %v10573_v5, 5  ;;  %v10581_v49 = vrot.slane %v10579_v60, 5  ;;  %v13348_v3 = vrot.slane %v9456_v53, 9 }
 0x5ea   : > { %v9383_v15 = vsel %vm16786_vm12, %v9378_v17, %v9382_v52  ;;  %v10563_v20 = vrot.slane %v10562_v62, 4  ;;  %v9644_v11 = vrot.slane %v19773_v36, 5  ;;  %v13349_v21 = vrot.slane %v9457_v30, 9  ;;  %v19793_v56 = vpop.f32.mrb[168].mxu0  ;;  %v8974_v35 = vld [vmem:[#allocation2 + $0x128] sm:$0xf] }
 0x5eb   : > { %v9397_v27 = vsel %vm16786_vm12, %v9392_v50, %v9396_v4  ;;  %v10576_v37 = vor.u32 %v10575_v47, %v10572_v39  ;;  %v9648_v51 = vrot.slane %v19786_v1, 5  ;;  %v14283_v29 = vadd.f32 %v19528_v46, %v19522_v0  ;;  %v19800_v53 = vpop.f32.mrb[169].mxu0  ;;  %v8976_v47 = vld [vmem:[#allocation2 + $0x130] sm:$0xf]  ;;  %v15618_v12 = vld [vmem:[#allocation2 + $0x34] sm:$0x1] }
 0x5ec   : > { %v13364_v18 = vcombine.low %v9383_v15, %v9397_v27  ;;  %v10568_v62 = vsel %vm16786_vm12, %v10563_v20, %v10567_v8  ;;  %v9645_v30 = vsel %vm16241_vm9, %v13348_v3, %v9644_v11  ;;  %v19808_v17 = vadd.f32 %v19515_v9, %v19512_v59  ;;  %v19810_v52 = vpop.f32.mrb[170].mxu0  ;;  %v19827_v50 = vld [vmem:[#allocation2 + $0x130] sm:$0xf]  ;;  %v19836_v3 = vld [vmem:[#allocation2 + $0x138] sm:$0xf] }
 0x5ed   : > { %v10577_v4 = vrot.slane %v10576_v37, 4  ;;  %v9649_v0 = vsel %vm16241_vm9, %v13349_v21, %v9648_v51  ;;  %v19815_v46 = vadd.f32 %v14283_v29, %v19736_v31  ;;  %v14286_v8 = vadd.f32 %v19536_v41, %v19532_v34  ;;  %v19819_v5 = vpop.f32.mrb[228].mxu1  ;;  %v19821_v11 = vpop.f32.mrb[171].mxu0  ;;  %v19840_v37 = vld [vmem:[#allocation2 + $0x134] sm:$0x1] }
 0x5ee   : > { %10051 = vmatmul.mubr.bf16.gmra.mrb[248].mxu0 %v13364_v18  ;;  %v13381_v59 = vcombine.low %v9645_v30, %v9649_v0  ;;  %v19825_v9 = vadd.f32 %v19524_v55, %v19518_v44  ;;  %v9399_v60 = vshrl.u32 %v8974_v35, 16  ;;  %v9402_v39 = vshll.u32 %v8974_v35, 16  ;;  %v19829_v21 = vpop.f32.mrb[229].mxu1  ;;  %20817 = vst [vmem:[#allocation63_spill] sm:$0xff] %v19840_v37 }
 0x5ef   : > { %20815 = vst [vmem:[#allocation61_spill] sm:$0xff] %v19815_v46  ;;  %v10582_v31 = vsel %vm16786_vm12, %v10577_v4, %v10581_v49  ;;  %v19834_v34 = vadd.f32 %v14286_v8, %v19742_v25  ;;  %v9413_v41 = vshrl.u32 %v8976_v47, 16  ;;  %v19838_v15 = vpop.f32.mrb[230].mxu1  ;;  %v9416_v27 = vshll.u32 %v8976_v47, 16  ;;  %v19849_v4 = vld [vmem:[#allocation2 + $0x13c] sm:$0x1] }
 0x5f0   : > { %v13428_v20 = vcombine.low %v10568_v62, %v10582_v31  ;;  %10058 = vmatprep.mubr.bf16.mxu0 %v13381_v59  ;;  %v9401_v55 = vrot.slane %v9399_v60, 4  ;;  %v9404_v44 = vrot.slane %v9402_v39, 5  ;;  %v19842_v51 = vpop.f32.mrb[231].mxu1  ;;  %v13412_v49 = vcombine.low %v19751_v48, %v19753_v58  ;;  %20818 = vst [vmem:[#allocation64_spill] sm:$0xff] %v19849_v4 }
 0x5f1   : > { %20816 = vst [vmem:[#allocation62_spill] sm:$0xff] %v19834_v34  ;;  %v9408_v25 = vshll.u32 %v19773_v36, 16  ;;  %v9415_v29 = vrot.slane %v9413_v41, 4  ;;  %v10584_v35 = vshrl.u32 %v19827_v50, 16  ;;  %v9418_v30 = vrot.slane %v9416_v27, 5 }
 0x5f2   : > { %11043 = vmatprep.mubr.bf16.mxu1 %v13428_v20  ;;  %v9405_v18 = vor.u32 %v9404_v44, %v9401_v55  ;;  %v9422_v62 = vshll.u32 %v19786_v1, 16  ;;  %v10587_v47 = vshll.u32 %v19827_v50, 16  ;;  %v19852_v0 = vpop.f32.mrb[172].mxu0  ;;  %v10593_v48 = vshll.u32 %v19840_v37, 16  ;;  %v11092_v1 = vld [vmem:[#allocation2 + $0x10] sm:$0xe] }
 0x5f3   : > { %20819 = vst [vmem:[#allocation65_spill] sm:$0xff] %v19852_v0  ;;  %11044 = vmatmul.mubr.bf16.gmra.mrb[56].mxu1 %v13412_v49  ;;  %v10586_v8 = vrot.slane %v10584_v35, 4  ;;  %v10598_v58 = vshrl.u32 %v19836_v3, 16  ;;  %v10601_v36 = vshll.u32 %v19836_v3, 16  ;;  %v19857_v59 = vpop.f32.mrb[173].mxu0  ;;  %v9419_v39 = vor.u32 %v9418_v30, %v9415_v29 }
 0x5f4   : > { %20820 = vst [vmem:[#allocation66_spill] sm:$0xff] %v19857_v59  ;;  %v9406_v60 = vrot.slane %v9405_v18, 4  ;;  %v10589_v31 = vrot.slane %v10587_v47, 5  ;;  %v19859_v41 = vpop.f32.mrb[174].mxu0  ;;  %v10607_v44 = vshll.u32 %v19849_v4, 16  ;;  %v9410_v35 = vrot.slane %v9408_v25, 5 }
 0x5f5   : > { %20821 = vst [vmem:[#allocation67_spill] sm:$0xff] %v19859_v41  ;;  %v10600_v20 = vrot.slane %v10598_v58, 4  ;;  %v10603_v55 = vrot.slane %v10601_v36, 5  ;;  %v19862_v27 = vpop.f32.mrb[232].mxu1  ;;  %v19864_v49 = vpop.f32.mrb[175].mxu0  ;;  %v9420_v34 = vrot.slane %v9419_v39, 4 }
 0x5f6   : > { %20822 = vst [vmem:[#allocation68_spill] sm:$0xff] %v19864_v49  ;;  %v9424_v46 = vrot.slane %v9422_v62, 5  ;;  %v10590_v37 = vor.u32 %v10589_v31, %v10586_v8  ;;  %v19866_v0 = vpop.f32.mrb[233].mxu1  ;;  %v10595_v18 = vrot.slane %v10593_v48, 5  ;;  %v10609_v30 = vrot.slane %v10607_v44, 5 }
 0x5f7   : > { %v10604_v29 = vor.u32 %v10603_v55, %v10600_v20  ;;  %v11093_v47 = vld [vmem:[#allocation2 + $0x18] sm:$0xe]  ;;  %v19868_v59 = vpop.f32.mrb[234].mxu1  ;;  %v9411_v58 = vsel %vm16786_vm12, %v9406_v60, %v9410_v35  ;;  %v13446_v49 = vrot.slane %v11092_v1, 9  ;;  %v15616_v39 = vld [vmem:[#allocation2 + $0x14] sm:$0x1]  ;;  %v14289_v60 = vadd.f32 %v19593_v26, %v19582_v28 }
 0x5f8   : > { %20823 = vst [vmem:[#allocation69_spill] sm:$0xff] %v19868_v59  ;;  %v9425_v36 = vsel %vm16786_vm12, %v9420_v34, %v9424_v46  ;;  %v10591_v4 = vrot.slane %v10590_v37, 4  ;;  %v19874_v25 = vpop.f32.mrb[235].mxu1  ;;  %v11190_v31 = vrot.slane %v15616_v39, 5  ;;  %v13447_v20 = vrot.slane %v11093_v47, 9 }
 0x5f9   : > { %v13365_v62 = vcombine.low %v9411_v58, %v9425_v36  ;;  %v10605_v8 = vrot.slane %v10604_v29, 4  ;;  %v15617_v55 = vld [vmem:[#allocation2 + $0x1c] sm:$0x1]  ;;  %v11096_v41 = vld [vmem:[#allocation2 + $0x30] sm:$0xe]  ;;  %v13413_v34 = vcombine.low %v19827_v50, %v19836_v3  ;;  %v14292_v29 = vadd.f32 %v19600_v14, %v19596_v6 }
 0x5fa   : > { %v10596_v48 = vsel %vm16786_vm12, %v10591_v4, %v10595_v18  ;;  %v11194_v44 = vrot.slane %v15617_v55, 5  ;;  %v19878_v59 = vpop.f32.mrb[176].mxu0  ;;  %v11191_v37 = vsel %vm16241_vm9, %v13446_v49, %v11190_v31  ;;  %v11097_v4 = vld [vmem:[#allocation2 + $0x38] sm:$0xe]  ;;  %v19899_v49 = vadd.f32 %v14289_v60, %v19808_v17  ;;  %v15619_v58 = vld [vmem:[#allocation2 + $0x3c] sm:$0x1] }
 0x5fb   : > { %10059 = vmatmul.mubr.bf16.gmra.mrb[252].mxu0 %v13365_v62  ;;  %v10610_v46 = vsel %vm16786_vm12, %v10605_v8, %v10609_v30  ;;  %v19888_v1 = vpop.f32.mrb[177].mxu0  ;;  %v14186_v28 = vadd.f32 %v19584_v13, %v19567_v43  ;;  %v13450_v26 = vrot.slane %v11096_v41, 9  ;;  %v19908_v32 = vadd.f32 %v14292_v29, %v19825_v9  ;;  %v20824_v13 = vld [vmem:[#allocation25_spill] sm:$0xff]  ;;  %v20825_v17 = vld [vmem:[#allocation58_spill] sm:$0xff]  ;;  %v20829_v60 = vld [vmem:[#allocation48_spill] sm:$0xff] }
 0x5fc   : > { %v13429_v35 = vcombine.low %v10596_v48, %v10610_v46  ;;  %v11195_v18 = vsel %vm16241_vm9, %v13447_v20, %v11194_v44  ;;  %v19896_v50 = vpop.f32.mrb[178].mxu0  ;;  %v11206_v6 = vrot.slane %v15618_v12, 5  ;;  %v13451_v14 = vrot.slane %v11097_v4, 9  ;;  %v20826_v31 = vld [vmem:[#allocation22_spill] sm:$0xff]  ;;  %v11100_v20 = vld [vmem:[#allocation2 + $0x60] sm:$0xe] }
 0x5fd   : > { %v13478_v3 = vcombine.low %v11191_v37, %v11195_v18  ;;  %v19903_v30 = vpop.f32.mrb[236].mxu1  ;;  %v19905_v47 = vpop.f32.mrb[179].mxu0  ;;  %v11210_v36 = vrot.slane %v15619_v58, 5  ;;  %v14295_v43 = vadd.f32 %v19625_v54, %v19618_v7  ;;  %v14189_v41 = vadd.f32 %v20825_v17, %v20824_v13  ;;  %v11101_v46 = vld [vmem:[#allocation2 + $0x68] sm:$0xe]  ;;  %v20828_v37 = vld [vmem:[#allocation36_spill] sm:$0xff] }
 0x5fe   : > { %11051 = vmatprep.mubr.bf16.mxu1 %v13429_v35  ;;  %v19910_v62 = vpop.f32.mrb[237].mxu1  ;;  %v14298_v8 = vadd.f32 %v19638_v57, %v19630_v33  ;;  %v11207_v39 = vsel %vm16241_vm9, %v13450_v26, %v11206_v6  ;;  %v14192_v48 = vadd.f32 %v20826_v31, %v19616_v19  ;;  %v20827_v57 = vld [vmem:[#allocation51_spill] sm:$0xff]  ;;  %v14195_v4 = vadd.f32 %v20829_v60, %v20828_v37  ;;  %v20830_v19 = vld [vmem:[#allocation38_spill] sm:$0xff]  ;;  %v15620_v26 = vld [vmem:[#allocation2 + $0x64] sm:$0x1] }
 0x5ff   : > { %14863 = vmatprep.mubr.bf16.mxu0 %v13478_v3  ;;  %11052 = vmatmul.mubr.bf16.gmra.mrb[60].mxu1 %v13413_v34  ;;  %v19918_v9 = vpop.f32.mrb[238].mxu1  ;;  %v11211_v7 = vsel %vm16241_vm9, %v13451_v14, %v11210_v36  ;;  %v19928_v54 = vadd.f32 %v14295_v43, %v14183_v38  ;;  %v14301_v34 = vadd.f32 %v20827_v57, %v19675_v63  ;;  %v20831_v18 = vld [vmem:[#allocation27_spill] sm:$0xff]  ;;  %v13454_v3 = vrot.slane %v11100_v20, 9  ;;  %v20833_v12 = vld [vmem:[#allocation52_spill] sm:$0xff]  ;;  %v20835_v14 = vld [vmem:[#allocation49_spill] sm:$0xff] }
 0x600   : > { %v19924_v55 = vpop.f32.mrb[239].mxu1  ;;  %v19930_v44 = vadd.f32 %v14298_v8, %v14186_v28  ;;  %v13480_v33 = vcombine.low %v11207_v39, %v11211_v7  ;;  %v20832_v29 = vcombine.low %v20830_v19, %v20831_v18  ;;  %v11222_v38 = vrot.slane %v15620_v26, 5  ;;  %v20834_v28 = vld [vmem:[#allocation53_spill] sm:$0xff]  ;;  %v20836_v58 = vld [vmem:[#allocation50_spill] sm:$0xff]  ;;  %v11104_v39 = vld [vmem:[#allocation2 + $0x80] sm:$0xe] }
 0x601   : > { %v14304_v6 = vadd.f32 %v20834_v28, %v20833_v12  ;;  %v14198_v36 = vadd.f32 %v20836_v58, %v20835_v14  ;;  %v13455_v63 = vrot.slane %v11101_v46, 9  ;;  %v15621_v13 = vld [vmem:[#allocation2 + $0x6c] sm:$0x1]  ;;  %v19947_v8 = vadd.f32 %v14301_v34, %v14189_v41  ;;  %v15557_v20 = vld [vmem:[#allocation12 + $0x40] sm:$0xff]   ;;  %v11105_v57 = vld [vmem:[#allocation2 + $0x88] sm:$0xe] }
 0x602   : > { %v19936_v35 = vpop.f32.mrb[180].mxu0  ;;  %v11226_v17 = vrot.slane %v15621_v13, 5  ;;  %v14307_v37 = vadd.f32 %v19721_v22, %v19711_v61  ;;  %v14201_v46 = vadd.f32 %v19698_v45, %v19693_v2  ;;  %v14310_v41 = vadd.f32 %v19744_v42, %v19730_v23  ;;  %14895 = vmatprep.subr.bf16.mxu0 %v15557_v20  ;;  %v15622_v22 = vld [vmem:[#allocation2 + $0x84] sm:$0x1]  ;;  %v20839_v28 = vld [vmem:[#allocation26_spill] sm:$0xff] }
 0x603   : > { %14864 = vmatmul.mubr.bf16.vlgmr.msra.gmra.mrb[0].mxu0 %v20832_v29  ;;  %v19945_v43 = vpop.f32.mrb[181].mxu0  ;;  %v19951_v7 = vadd.f32 %v14304_v6, %v14192_v48  ;;  %v11223_v48 = vsel %vm16241_vm9, %v13454_v3, %v11222_v38  ;;  %v13458_v61 = vrot.slane %v11104_v39, 9  ;;  %v11238_v18 = vrot.slane %v15622_v22, 5  ;;  %v15623_v3 = vld [vmem:[#allocation2 + $0x8c] sm:$0x1]  ;;  %v20841_v14 = vld [vmem:[#allocation60_spill] sm:$0xff] }
 0x604   : > { %14867 = vmatprep.mubr.bf16.mxu0 %v13480_v33  ;;  %v19949_v31 = vpop.f32.mrb[182].mxu0  ;;  %v14204_v33 = vadd.f32 %v19713_v24, %v19704_v16  ;;  %v19969_v29 = vadd.f32 %v14307_v37, %v14195_v4  ;;  %14896 = vmatpush3.bf16.msra.mxu0 %v15557_v20  ;;  %v11227_v45 = vsel %vm16241_vm9, %v13455_v63, %v11226_v17  ;;  %v13459_v2 = vrot.slane %v11105_v57, 9  ;;  %v20837_v16 = vld [vmem:[#allocation21_spill] sm:$0xff]  ;;  %v20838_v24 = vld [vmem:[#allocation59_spill] sm:$0xff]  ;;  %v20842_v13 = vld [vmem:[#allocation34_spill] sm:$0xff] }
 0x605   : > { %v19955_v60 = vpop.f32.mrb[240].mxu1  ;;  %v19957_v19 = vpop.f32.mrb[183].mxu0  ;;  %v19975_v23 = vadd.f32 %v14310_v41, %v14198_v36  ;;  %v14313_v42 = vadd.f32 %v20838_v24, %v20837_v16  ;;  %v11242_v38 = vrot.slane %v15623_v3, 5  ;;  %v20840_v6 = vld [vmem:[#allocation29_spill] sm:$0xff]  ;;  %v14316_v58 = vadd.f32 %v19788_v10, %v20841_v14  ;;  %v20843_v39 = vld [vmem:[#allocation20_spill] sm:$0xff] }
 0x606   : > { %v19965_v34 = vpop.f32.mrb[241].mxu1  ;;  %v14207_v4 = vadd.f32 %v20840_v6, %v20839_v28  ;;  %v14210_v20 = vadd.f32 %v20843_v39, %v20842_v13  ;;  %v13482_v63 = vcombine.low %v11223_v48, %v11227_v45  ;;  %v20844_v57 = vld [vmem:[#allocation44_spill] sm:$0xff]  ;;  %v11108_v22 = vld [vmem:[#allocation2 + $0xb0] sm:$0xe]  ;;  %v11239_v10 = vsel %vm16241_vm9, %v13458_v61, %v11238_v18  ;;  %v19998_v3 = vld [vmem:[#allocation2 + $0xb8] sm:$0xe] }
 0x607   : > { %v19971_v26 = vpop.f32.mrb[242].mxu1  ;;  %v19987_v17 = vadd.f32 %v14313_v42, %v14201_v46  ;;  %v20845_v37 = vld [vmem:[#allocation32_spill] sm:$0xff]  ;;  %v19994_v16 = vadd.f32 %v14316_v58, %v14204_v33  ;;  %v14319_v46 = vadd.f32 %v19829_v21, %v19819_v5  ;;  %v14213_v48 = vadd.f32 %v19800_v53, %v19793_v56  ;;  %v15624_v58 = vld [vmem:[#allocation2 + $0xb4] sm:$0x1]  ;;  %v11121_v56 = vld [vmem:[#allocation2 + $0x128] sm:$0xe] }
 0x608   : > { %v19979_v12 = vpop.f32.mrb[243].mxu1  ;;  %v20846_v41 = vcombine.low %v20844_v57, %v20845_v37  ;;  %v14322_v45 = vadd.f32 %v19842_v51, %v19838_v15  ;;  %v11243_v33 = vsel %vm16241_vm9, %v13459_v2, %v11242_v38  ;;  %v14216_v28 = vadd.f32 %v19821_v11, %v19810_v52  ;;  %v11120_v6 = vld [vmem:[#allocation2 + $0x120] sm:$0xe]  ;;  %v20848_v38 = vld [vmem:[#allocation65_spill] sm:$0xff]  ;;  %v20849_v52 = vld [vmem:[#allocation66_spill] sm:$0xff] }
 0x609   : > { %v13462_v14 = vrot.slane %v11108_v22, 9  ;;  %v11254_v13 = vrot.slane %v15624_v58, 5  ;;  %v20010_v5 = vadd.f32 %v14319_v46, %v14207_v4  ;;  %v13484_v15 = vcombine.low %v11239_v10, %v11243_v33  ;;  %v20851_v37 = vld [vmem:[#allocation67_spill] sm:$0xff]  ;;  %v20852_v4 = vld [vmem:[#allocation68_spill] sm:$0xff]  ;;  %v15558_v10 = vld [vmem:[#allocation12 + $0x48] sm:$0xff]  }
 0x60a   : > { %v19989_v36 = vpop.f32.mrb[184].mxu0  ;;  %v20012_v21 = vadd.f32 %v14322_v45, %v14210_v20  ;;  %v13463_v51 = vrot.slane %v19998_v3, 9  ;;  %v14325_v2 = vadd.f32 %v19866_v0, %v19862_v27  ;;  %v14219_v11 = vadd.f32 %v20849_v52, %v20848_v38  ;;  %v20853_v22 = vld [vmem:[#allocation23_spill] sm:$0xff]  ;;  %v20854_v27 = vld [vmem:[#allocation46_spill] sm:$0xff]  ;;  %14897 = vmatprep.subr.bf16.mxu0 %v15558_v10 }
 0x60b   : > { %14868 = vmatmul.mubr.bf16.gmra.mrb[4].mxu0 %v20846_v41  ;;  %v14236_v24 = vpop.f32.mrb[185].mxu0  ;;  %v14222_v41 = vadd.f32 %v20852_v4, %v20851_v37  ;;  %v13474_v20 = vrot.slane %v11120_v6, 9  ;;  %v11302_v46 = vrot.slane %v20853_v22, 5  ;;  %v15625_v33 = vld [vmem:[#allocation2 + $0xbc] sm:$0x1]  ;;  %v13475_v0 = vrot.slane %v11121_v56, 9 }
 0x60c   : > { %14871 = vmatprep.mubr.bf16.mxu0 %v13482_v63  ;;  %v14238_v42 = vpop.f32.mrb[186].mxu0  ;;  %20847 = vst [vmem:[#allocation25_spill] sm:$0xff] %v20012_v21  ;;  %v20850_v63 = vld [vmem:[#allocation69_spill] sm:$0xff]  ;;  %v11258_v3 = vrot.slane %v15625_v33, 5  ;;  %v20024_v58 = vadd.f32 %v14325_v2, %v14213_v48  ;;  %v11306_v21 = vrot.slane %v20854_v27, 5  ;;  %v11255_v38 = vsel %vm16241_vm9, %v13462_v14, %v11254_v13  ;;  %14898 = vmatpush3.bf16.msra.mxu0 %v15558_v10 }
 0x60d   : > { %v14341_v61 = vpop.f32.mrb[244].mxu1  ;;  %v14239_v18 = vpop.f32.mrb[187].mxu0  ;;  %v14328_v57 = vadd.f32 %v19874_v25, %v20850_v63  ;;  %v20033_v25 = vsel %vm16241_vm9, %v13474_v20, %v11302_v46  ;;  %v14331_v6 = vadd.f32 %v19910_v62, %v19903_v30  ;;  %v20855_v37 = vld [vmem:[#allocation45_spill] sm:$0xff]  ;;  %v14334_v14 = vadd.f32 %v19924_v55, %v19918_v9  ;;  %v11112_v46 = vld [vmem:[#allocation2 + $0xd0] sm:$0xe] }
 0x60e   : > { %v14342_v53 = vpop.f32.mrb[245].mxu1  ;;  %v20856_v48 = vld [vmem:[#allocation33_spill] sm:$0xff]  ;;  %v20042_v56 = vsel %vm16241_vm9, %v13475_v0, %v11306_v21  ;;  %v14228_v13 = vadd.f32 %v19905_v47, %v19896_v50  ;;  %v14337_v21 = vadd.f32 %v19965_v34, %v19955_v60  ;;  %v14231_v4 = vadd.f32 %v19945_v43, %v19936_v35  ;;  %v15626_v27 = vld [vmem:[#allocation2 + $0xd4] sm:$0x1] }
 0x60f   : > { %v14344_v39 = vpop.f32.mrb[246].mxu1  ;;  %v20029_v52 = vadd.f32 %v14328_v57, %v14216_v28  ;;  %v20857_v2 = vcombine.low %v20855_v37, %v20856_v48  ;;  %v14225_v28 = vadd.f32 %v19888_v1, %v19878_v59  ;;  %v13492_v62 = vcombine.low %v20033_v25, %v20042_v56  ;;  %v20881_v56 = vld [vmem:[#allocation62_spill] sm:$0xff] }
 0x610   : > { %v14345_v45 = vpop.f32.mrb[247].mxu1  ;;  %v20052_v57 = vadd.f32 %v14331_v6, %v14219_v11  ;;  %v20058_v1 = vadd.f32 %v14334_v14, %v14222_v41  ;;  %v14340_v9 = vadd.f32 %v19979_v12, %v19971_v26  ;;  %v14234_v50 = vadd.f32 %v19957_v19, %v19949_v31 }
 0x611   : > { %v14343_v47 = vadd.f32 %v14342_v53, %v14341_v61  ;;  %v20064_v11 = vadd.f32 %v14337_v21, %v14225_v28  ;;  %v14237_v60 = vadd.f32 %v14236_v24, %v19989_v36  ;;  %v14346_v34 = vadd.f32 %v14345_v45, %v14344_v39  ;;  %v20858_v39 = vld [vmem:[#allocation28_spill] sm:$0xff]  ;;  %v20859_v45 = vld [vmem:[#allocation30_spill] sm:$0xff]  ;;  %v15627_v28 = vld [vmem:[#allocation2 + $0xdc] sm:$0x1] }
 0x612   : > { %v14241_v63 = vpop.f32.mrb[188].mxu0  ;;  %v14240_v20 = vadd.f32 %v14239_v18, %v14238_v42  ;;  %v20067_v43 = vadd.f32 %v14340_v9, %v14228_v13  ;;  %v11259_v53 = vsel %vm16241_vm9, %v13463_v51, %v11258_v3  ;;  %v11113_v42 = vld [vmem:[#allocation2 + $0xd8] sm:$0xe]  ;;  %v20860_v33 = vcombine.low %v20858_v39, %v20859_v45  ;;  %v15559_v51 = vld [vmem:[#allocation12 + $0x50] sm:$0xff]   ;;  %v20861_v21 = vld [vmem:[#allocation41_spill] sm:$0xff] }
 0x613   : > { %14872 = vmatmul.mubr.bf16.gmra.mrb[8].mxu0 %v20857_v2  ;;  %v14242_v30 = vpop.f32.mrb[189].mxu0  ;;  %v20069_v41 = vadd.f32 %v14343_v47, %v14231_v4  ;;  %v20071_v31 = vadd.f32 %v14346_v34, %v14234_v50  ;;  %v13486_v24 = vcombine.low %v11255_v38, %v11259_v53  ;;  %v13466_v0 = vrot.slane %v11112_v46, 9  ;;  %14899 = vmatprep.subr.bf16.mxu0 %v15559_v51  ;;  %v11117_v46 = vld [vmem:[#allocation2 + $0x108] sm:$0xe]  ;;  %v20863_v53 = vld [vmem:[#allocation43_spill] sm:$0xff] }
 0x614   : > { %14875 = vmatprep.mubr.bf16.mxu0 %v13484_v15  ;;  %v14244_v59 = vpop.f32.mrb[190].mxu0  ;;  %v14243_v26 = vadd.f32 %v14242_v30, %v14241_v63  ;;  %v11270_v6 = vrot.slane %v15626_v27, 5  ;;  %v13467_v3 = vrot.slane %v11113_v42, 9  ;;  %v11274_v14 = vrot.slane %v15627_v28, 5  ;;  %14900 = vmatpush3.bf16.msra.mxu0 %v15559_v51 }
 0x615   : > { %v14347_v55 = vpop.f32.mrb[248].mxu1  ;;  %v14245_v15 = vpop.f32.mrb[191].mxu0 }
 0x616   : > { %v14348_v35 = vpop.f32.mrb[249].mxu1  ;;  %v14246_v61 = vadd.f32 %v14245_v15, %v14244_v59  ;;  %v11271_v9 = vsel %vm16241_vm9, %v13466_v0, %v11270_v6  ;;  %v13471_v6 = vrot.slane %v11117_v46, 9 }
 0x617   : > { %v14349_v22 = vadd.f32 %v14348_v35, %v14347_v55  ;;  %v14350_v12 = vpop.f32.mrb[250].mxu1  ;;  %v11116_v55 = vld [vmem:[#allocation2 + $0x100] sm:$0xe] }
 0x618   : > { %v14351_v19 = vpop.f32.mrb[251].mxu1  ;;  %v13470_v42 = vrot.slane %v11116_v55, 9 }
 0x619   : > { %v20075_v10 = vadd.f32 %v14349_v22, %v14237_v60  ;;  %v14352_v36 = vadd.f32 %v14351_v19, %v14350_v12  ;;  %v20862_v60 = vld [vmem:[#allocation55_spill] sm:$0xff] }
 0x61a   : > { %v14375_v18 = vpop.f32.mrb[192].mxu0 }
 0x61b   : > { %14876 = vmatmul.mubr.bf16.gmra.mrb[12].mxu0 %v20860_v33  ;;  %v20080_v63 = vadd.f32 %v14352_v36, %v14240_v20  ;;  %v14376_v37 = vpop.f32.mrb[193].mxu0  ;;  %v11275_v20 = vsel %vm16241_vm9, %v13467_v3, %v11274_v14  ;;  %v20864_v36 = vld [vmem:[#allocation31_spill] sm:$0xff]  ;;  %v20868_v3 = vld [vmem:[#allocation24_spill] sm:$0xff] }
 0x61c   : > { %14879 = vmatprep.mubr.bf16.mxu0 %v13486_v24  ;;  %v14377_v48 = vadd.f32 %v14376_v37, %v14375_v18  ;;  %v14378_v2 = vpop.f32.mrb[194].mxu0  ;;  %v13488_v12 = vcombine.low %v11271_v9, %v11275_v20  ;;  %v20865_v24 = vcombine.low %v20863_v53, %v20864_v36  ;;  %v20866_v18 = vld [vmem:[#allocation42_spill] sm:$0xff] }
 0x61d   : > { %v14353_v38 = vpop.f32.mrb[252].mxu1  ;;  %v14379_v13 = vpop.f32.mrb[195].mxu0  ;;  %v11286_v39 = vrot.slane %v20866_v18, 5 }
 0x61e   : > { %v14354_v30 = vpop.f32.mrb[253].mxu1  ;;  %v20083_v4 = vadd.f32 %v14377_v48, %v20861_v21  ;;  %v14380_v59 = vadd.f32 %v14379_v13, %v14378_v2  ;;  %v20869_v21 = vld [vmem:[#allocation47_spill] sm:$0xff] }
 0x61f   : > { %v14355_v50 = vadd.f32 %v14354_v30, %v14353_v38  ;;  %v14356_v47 = vpop.f32.mrb[254].mxu1  ;;  %v11287_v38 = vsel %vm16241_vm9, %v13470_v42, %v11286_v39  ;;  %v20873_v42 = vld [vmem:[#allocation57_spill] sm:$0xff] }
 0x620   : > { %v14357_v15 = vpop.f32.mrb[255].mxu1  ;;  %v20088_v34 = vadd.f32 %v14380_v59, %v20862_v60  ;;  %v20871_v60 = vld [vmem:[#allocation40_spill] sm:$0xff] }
 0x621   : > { %v20092_v35 = vadd.f32 %v14355_v50, %v14243_v26  ;;  %v14358_v22 = vadd.f32 %v14357_v15, %v14356_v47  ;;  %v20867_v26 = vld [vmem:[#allocation37_spill] sm:$0xff]  ;;  %v20870_v15 = vld [vmem:[#allocation39_spill] sm:$0xff] }
 0x622   : > { %v14381_v19 = vpop.f32.mrb[196].mxu0  ;;  %v11290_v37 = vrot.slane %v20867_v26, 5  ;;  %v20872_v20 = vcombine.low %v20870_v15, %v20871_v60 }
 0x623   : > { %14880 = vmatmul.mubr.bf16.gmra.mrb[16].mxu0 %v20865_v24  ;;  %v20098_v45 = vadd.f32 %v14358_v22, %v14246_v61  ;;  %v14382_v33 = vpop.f32.mrb[197].mxu0 }
 0x624   : > { %14883 = vmatprep.mubr.bf16.mxu0 %v13488_v12  ;;  %v14383_v0 = vadd.f32 %v14382_v33, %v14381_v19  ;;  %v14384_v27 = vpop.f32.mrb[198].mxu0  ;;  %v11291_v9 = vsel %vm16241_vm9, %v13471_v6, %v11290_v37  ;;  %v15560_v12 = vld [vmem:[#allocation12 + $0x58] sm:$0xff]   ;;  %v11122_v33 = vld [vmem:[#allocation2 + $0x130] sm:$0xe] }
 0x625   : > { %v14487_v48 = vpop.f32.mrb[0].mxu1  ;;  %v14385_v2 = vpop.f32.mrb[199].mxu0  ;;  %v13490_v47 = vcombine.low %v11287_v38, %v11291_v9  ;;  %14901 = vmatprep.subr.bf16.mxu0 %v15560_v12  ;;  %v20874_v37 = vld [vmem:[#allocation35_spill] sm:$0xff]  ;;  %v20877_v9 = vld [vmem:[#allocation54_spill] sm:$0xff] }
 0x626   : > { %v14488_v51 = vpop.f32.mrb[1].mxu1  ;;  %v20102_v28 = vadd.f32 %v14383_v0, %v20868_v3  ;;  %v14386_v14 = vadd.f32 %v14385_v2, %v14384_v27  ;;  %14902 = vmatpush3.bf16.msra.mxu0 %v15560_v12  ;;  %v11123_v0 = vld [vmem:[#allocation2 + $0x138] sm:$0xe] }
 0x627   : > { %v20106_v13 = vadd.f32 %v14488_v51, %v14487_v48  ;;  %v14490_v61 = vpop.f32.mrb[2].mxu1  ;;  %v13476_v51 = vrot.slane %v11122_v33, 9  ;;  %v20875_v3 = vld [vmem:[#allocation63_spill] sm:$0xff]  ;;  %v13477_v38 = vrot.slane %v11123_v0, 9  ;;  %v15561_v0 = vld [vmem:[#allocation12 + $0x60] sm:$0xff]  }
 0x628   : > { %v14491_v30 = vpop.f32.mrb[3].mxu1  ;;  %v20109_v59 = vadd.f32 %v14386_v14, %v20869_v21  ;;  %v11310_v14 = vrot.slane %v20875_v3, 5  ;;  %14903 = vmatprep.subr.bf16.mxu0 %v15561_v0 }
 0x629   : > { %v20113_v50 = vadd.f32 %v14491_v30, %v14490_v61  ;;  %v20876_v61 = vld [vmem:[#allocation64_spill] sm:$0xff] }
 0x62a   : > { %v14387_v55 = vpop.f32.mrb[200].mxu0  ;;  %v11314_v30 = vrot.slane %v20876_v61, 5  ;;  %14904 = vmatpush3.bf16.msra.mxu0 %v15561_v0 }
 0x62b   : > { %14884 = vmatmul.mubr.bf16.gmra.mrb[20].mxu0 %v20872_v20  ;;  %v14388_v22 = vpop.f32.mrb[201].mxu0 }
 0x62c   : > { %14887 = vmatprep.mubr.bf16.mxu0 %v13490_v47  ;;  %v14389_v46 = vadd.f32 %v14388_v22, %v14387_v55  ;;  %v14390_v19 = vpop.f32.mrb[202].mxu0  ;;  %v20878_v47 = vld [vmem:[#allocation56_spill] sm:$0xff] }
 0x62d   : > { %v14493_v53 = vpop.f32.mrb[4].mxu1  ;;  %v14391_v36 = vpop.f32.mrb[203].mxu0  ;;  %v20879_v55 = vcombine.low %v20877_v9, %v20878_v47 }
 0x62e   : > { %v14494_v24 = vpop.f32.mrb[5].mxu1  ;;  %v20119_v18 = vadd.f32 %v14389_v46, %v20873_v42  ;;  %v14392_v39 = vadd.f32 %v14391_v36, %v14390_v19  ;;  %v11311_v46 = vsel %vm16241_vm9, %v13476_v51, %v11310_v14  ;;  %v11315_v19 = vsel %vm16241_vm9, %v13477_v38, %v11314_v30  ;;  %v20880_v36 = vld [vmem:[#allocation61_spill] sm:$0xff] }
 0x62f   : > { %v20121_v27 = vadd.f32 %v14494_v24, %v14493_v53  ;;  %v14496_v6 = vpop.f32.mrb[6].mxu1 }
 0x630   : > { %v14497_v26 = vpop.f32.mrb[7].mxu1  ;;  %v20124_v48 = vadd.f32 %v14392_v39, %v20874_v37 }
 0x631   : > { %v20126_v2 = vadd.f32 %v14497_v26, %v14496_v6  ;;  %v13493_v6 = vcombine.low %v11311_v46, %v11315_v19  ;;  %v15562_v19 = vld [vmem:[#allocation12 + $0x68] sm:$0xff]  }
 0x632   : > { %v14393_v21 = vpop.f32.mrb[204].mxu0  ;;  %14905 = vmatprep.subr.bf16.mxu0 %v15562_v19 }
 0x633   : > { %14888 = vmatmul.mubr.bf16.gmra.mrb[24].mxu0 %v20879_v55  ;;  %v14394_v15 = vpop.f32.mrb[205].mxu0 }
 0x634   : > { %14891 = vmatprep.mubr.bf16.mxu0 %v13492_v62  ;;  %v14395_v60 = vadd.f32 %v14394_v15, %v14393_v21  ;;  %v14396_v20 = vpop.f32.mrb[206].mxu0  ;;  %14906 = vmatpush3.bf16.msra.mxu0 %v15562_v19 }
 0x635   : > { %v14499_v22 = vpop.f32.mrb[8].mxu1  ;;  %v14397_v12 = vpop.f32.mrb[207].mxu0 }
 0x636   : > { %v14500_v53 = vpop.f32.mrb[9].mxu1  ;;  %v20141_v24 = vadd.f32 %v14395_v60, %v20880_v36  ;;  %v14398_v42 = vadd.f32 %v14397_v12, %v14396_v20 }
 0x637   : > { %v20143_v39 = vadd.f32 %v14500_v53, %v14499_v22  ;;  %v14502_v33 = vpop.f32.mrb[10].mxu1 }
 0x638   : > { %v14503_v25 = vpop.f32.mrb[11].mxu1  ;;  %v20146_v62 = vadd.f32 %v14398_v42, %v20881_v56 }
 0x639   : > { %v20148_v26 = vadd.f32 %v14503_v25, %v14502_v33 }
 0x63b   : > { %14892 = vmatmul.mubr.bf16.gmra.mrb[28].mxu0 %v13493_v6 }
 0x63d   : > { %v14505_v40 = vpop.f32.mrb[12].mxu1 }
 0x63e   : > { %v14506_v37 = vpop.f32.mrb[13].mxu1 }
 0x63f   : > { %v14507_v51 = vadd.f32 %v14506_v37, %v14505_v40  ;;  %v14508_v3 = vpop.f32.mrb[14].mxu1 }
 0x640   : > { %v14399_v14 = vpop.f32.mrb[208].mxu0  ;;  %v14509_v38 = vpop.f32.mrb[15].mxu1 }
 0x641   : > { %v14400_v61 = vpop.f32.mrb[209].mxu0  ;;  %v14510_v30 = vadd.f32 %v14509_v38, %v14508_v3 }
 0x642   : > { %v14401_v21 = vadd.f32 %v14400_v61, %v14399_v14  ;;  %v14402_v9 = vpop.f32.mrb[210].mxu0 }
 0x643   : > { %v14403_v47 = vpop.f32.mrb[211].mxu0 }
 0x644   : > { %v20151_v55 = vadd.f32 %v14401_v21, %v19899_v49  ;;  %v14404_v15 = vadd.f32 %v14403_v47, %v14402_v9  ;;  %v15563_v21 = vld [vmem:[#allocation12 + $0x70] sm:$0xff]   ;;  %v20162_v9 = vadd.f32 %v20121_v27, %v20102_v28  ;;  %v20175_v27 = vadd.f32 %v20113_v50, %v20088_v34 }
 0x645   : > { %v14511_v60 = vpop.f32.mrb[16].mxu1  ;;  %14907 = vmatprep.subr.bf16.mxu0 %v15563_v21  ;;  %v20186_v34 = vadd.f32 %v14510_v30, %v20146_v62 }
 0x646   : > { %v20154_v20 = vadd.f32 %v14404_v15, %v19908_v32  ;;  %v14512_v22 = vpop.f32.mrb[17].mxu1  ;;  %14908 = vmatpush3.bf16.msra.mxu0 %v15563_v21 }
 0x647   : > { %v14513_v12 = vadd.f32 %v14512_v22, %v14511_v60  ;;  %v14514_v46 = vpop.f32.mrb[18].mxu1 }
 0x648   : > { %v14515_v53 = vpop.f32.mrb[19].mxu1 }
 0x649   : > { %v20156_v36 = vadd.f32 %v14515_v53, %v14514_v46 }
 0x64b   : > { %v14405_v42 = vpop.f32.mrb[212].mxu0 }
 0x64c   : > { %v14406_v33 = vpop.f32.mrb[213].mxu0 }
 0x64d   : > { %v14407_v25 = vadd.f32 %v14406_v33, %v14405_v42  ;;  %v14408_v56 = vpop.f32.mrb[214].mxu0  ;;  %v15564_v42 = vld [vmem:[#allocation12 + $0x78] sm:$0xff]   ;;  %v20178_v33 = vadd.f32 %v14507_v51, %v20141_v24  ;;  %v20190_v24 = vadd.f32 %v20148_v26, %v20124_v48 }
 0x64e   : > { %v14409_v49 = vpop.f32.mrb[215].mxu0  ;;  %14909 = vmatprep.subr.bf16.mxu0 %v15564_v42 }
 0x64f   : > { %v10077_v0 = vadd.f32 %v14407_v25, %v19928_v54  ;;  %v14410_v6 = vadd.f32 %v14409_v49, %v14408_v56  ;;  %v14517_v40 = vpop.f32.mrb[20].mxu1  ;;  %v20166_v54 = vadd.f32 %v20106_v13, %v20083_v4  ;;  %14910 = vmatpush3.bf16.msra.mxu0 %v15564_v42 }
 0x650   : > { %v14518_v32 = vpop.f32.mrb[21].mxu1 }
 0x651   : > { %v10078_v37 = vadd.f32 %v14410_v6, %v19930_v44  ;;  %v14519_v3 = vadd.f32 %v14518_v32, %v14517_v40  ;;  %v14520_v14 = vpop.f32.mrb[22].mxu1  ;;  %v20170_v44 = vadd.f32 %v20126_v2, %v20109_v59 }
 0x652   : > { %v14521_v38 = vpop.f32.mrb[23].mxu1 }
 0x653   : > { %v14522_v61 = vadd.f32 %v14521_v38, %v14520_v14  ;;  %v20194_v51 = vadd.f32 %v14519_v3, %v10077_v0  ;;  %v20199_v14 = vadd.f32 %v14513_v12, %v20151_v55 }
 0x655   : > { %v20201_v38 = vadd.f32 %v14522_v61, %v10078_v37 }
 0x658   : > { %v14411_v47 = vpop.f32.mrb[216].mxu0 }
 0x659   : > { %v14412_v15 = vpop.f32.mrb[217].mxu0 }
 0x65a   : > { %v14413_v60 = vadd.f32 %v14412_v15, %v14411_v47  ;;  %v14414_v22 = vpop.f32.mrb[218].mxu0  ;;  %v20206_v47 = vadd.f32 %v20156_v36, %v20154_v20 }
 0x65b   : > { %v14415_v46 = vpop.f32.mrb[219].mxu0 }
 0x65c   : > { %v10079_v19 = vadd.f32 %v14413_v60, %v19947_v8  ;;  %v14416_v53 = vadd.f32 %v14415_v46, %v14414_v22  ;;  %v14523_v28 = vpop.f32.mrb[24].mxu1  ;;  %v20183_v8 = vadd.f32 %v20143_v39, %v20119_v18 }
 0x65d   : > { %v14524_v13 = vpop.f32.mrb[25].mxu1 }
 0x65e   : > { %v10080_v4 = vadd.f32 %v14416_v53, %v19951_v7  ;;  %v14525_v25 = vadd.f32 %v14524_v13, %v14523_v28  ;;  %v14526_v56 = vpop.f32.mrb[26].mxu1  ;;  %v20192_v7 = vld [vmem:[#allocation12] sm:$0xff]  }
 0x65f   : > { %v14527_v59 = vpop.f32.mrb[27].mxu1  ;;  %14943 = vmatprep.subr.bf16.mxu0 %v20192_v7 }
 0x660   : > { %v14528_v2 = vadd.f32 %v14527_v59, %v14526_v56  ;;  %v20210_v60 = vadd.f32 %v14525_v25, %v10079_v19 }
 0x662   : > { %v20215_v53 = vadd.f32 %v14528_v2, %v10080_v4 }
 0x664   : > { %v14417_v50 = vpop.f32.mrb[220].mxu0 }
 0x665   : > { %v14418_v49 = vpop.f32.mrb[221].mxu0 }
 0x666   : > { %v14419_v6 = vadd.f32 %v14418_v49, %v14417_v50  ;;  %v14420_v40 = vpop.f32.mrb[222].mxu0 }
 0x667   : > { %v14421_v32 = vpop.f32.mrb[223].mxu0 }
 0x668   : > { %v14529_v18 = vpop.f32.mrb[28].mxu1  ;;  %v10081_v39 = vadd.f32 %v14419_v6, %v19969_v29  ;;  %v14422_v62 = vadd.f32 %v14421_v32, %v14420_v40 }
 0x669   : > { %v14530_v30 = vpop.f32.mrb[29].mxu1 }
 0x66a   : > { %v14531_v48 = vadd.f32 %v14530_v30, %v14529_v18  ;;  %v14532_v26 = vpop.f32.mrb[30].mxu1  ;;  %v10082_v0 = vadd.f32 %v14422_v62, %v19975_v23  ;;  %v20882_v62 = vld [vmem:[#allocation25_spill] sm:$0xff] }
 0x66b   : > { %v14533_v3 = vpop.f32.mrb[31].mxu1 }
 0x66c   : > { %v14534_v21 = vadd.f32 %v14533_v3, %v14532_v26  ;;  %v20208_v15 = vadd.f32 %v14531_v48, %v10081_v39 }
 0x66e   : > { %v20212_v55 = vadd.f32 %v14534_v21, %v10082_v0 }
 0x670   : > { %v14423_v29 = vpop.f32.mrb[224].mxu0 }
 0x671   : > { %v14424_v22 = vpop.f32.mrb[225].mxu0 }
 0x672   : > { %v14425_v12 = vadd.f32 %v14424_v22, %v14423_v29  ;;  %v14426_v46 = vpop.f32.mrb[226].mxu0 }
 0x673   : > { %v14427_v37 = vpop.f32.mrb[227].mxu0 }
 0x674   : > { %v10083_v61 = vadd.f32 %v14425_v12, %v19987_v17  ;;  %v14428_v23 = vadd.f32 %v14427_v37, %v14426_v46 }
 0x675   : > { %v14535_v28 = vpop.f32.mrb[32].mxu1 }
 0x676   : > { %v10084_v20 = vadd.f32 %v14428_v23, %v19994_v16  ;;  %v14536_v36 = vpop.f32.mrb[33].mxu1 }
 0x677   : > { %v14537_v42 = vadd.f32 %v14536_v36, %v14535_v28  ;;  %v14538_v13 = vpop.f32.mrb[34].mxu1 }
 0x678   : > { %v14539_v56 = vpop.f32.mrb[35].mxu1 }
 0x679   : > { %v14540_v19 = vadd.f32 %v14539_v56, %v14538_v13  ;;  %v20218_v25 = vadd.f32 %v14537_v42, %v10083_v61 }
 0x67b   : > { %v20220_v59 = vadd.f32 %v14540_v19, %v10084_v20 }
 0x67d   : > { %v14429_v50 = vpop.f32.mrb[228].mxu0 }
 0x67e   : > { %v14430_v49 = vpop.f32.mrb[229].mxu0 }
 0x67f   : > { %v14431_v6 = vadd.f32 %v14430_v49, %v14429_v50  ;;  %v14432_v40 = vpop.f32.mrb[230].mxu0 }
 0x680   : > { %v14433_v17 = vpop.f32.mrb[231].mxu0  ;;  %v14541_v32 = vpop.f32.mrb[36].mxu1 }
 0x681   : > { %v10085_v4 = vadd.f32 %v14431_v6, %v20010_v5  ;;  %v14434_v2 = vadd.f32 %v14433_v17, %v14432_v40  ;;  %v14542_v18 = vpop.f32.mrb[37].mxu1 }
 0x682   : > { %v14543_v16 = vadd.f32 %v14542_v18, %v14541_v32  ;;  %v14544_v39 = vpop.f32.mrb[38].mxu1 }
 0x683   : > { %v10086_v30 = vadd.f32 %v14434_v2, %v20882_v62  ;;  %v14545_v48 = vpop.f32.mrb[39].mxu1 }
 0x684   : > { %v14546_v26 = vadd.f32 %v14545_v48, %v14544_v39  ;;  %v20224_v0 = vadd.f32 %v14543_v16, %v10085_v4 }
 0x686   : > { %v20226_v3 = vadd.f32 %v14546_v26, %v10086_v30 }
 0x689   : > { %v14435_v21 = vpop.f32.mrb[232].mxu0 }
 0x68a   : > { %v14436_v29 = vpop.f32.mrb[233].mxu0 }
 0x68b   : > { %v14437_v22 = vadd.f32 %v14436_v29, %v14435_v21  ;;  %v14438_v12 = vpop.f32.mrb[234].mxu0 }
 0x68c   : > { %v14439_v46 = vpop.f32.mrb[235].mxu0 }
 0x68d   : > { %v10087_v37 = vadd.f32 %v14437_v22, %v20024_v58  ;;  %v14440_v5 = vadd.f32 %v14439_v46, %v14438_v12  ;;  %v14547_v61 = vpop.f32.mrb[40].mxu1 }
 0x68e   : > { %v14548_v28 = vpop.f32.mrb[41].mxu1 }
 0x68f   : > { %v10088_v23 = vadd.f32 %v14440_v5, %v20029_v52  ;;  %v14549_v20 = vadd.f32 %v14548_v28, %v14547_v61  ;;  %v14550_v36 = vpop.f32.mrb[42].mxu1 }
 0x690   : > { %v14551_v42 = vpop.f32.mrb[43].mxu1 }
 0x691   : > { %v14552_v13 = vadd.f32 %v14551_v42, %v14550_v36  ;;  %v20230_v56 = vadd.f32 %v14549_v20, %v10087_v37 }
 0x693   : > { %v20232_v19 = vadd.f32 %v14552_v13, %v10088_v23 }
 0x695   : > { %v14441_v50 = vpop.f32.mrb[236].mxu0 }
 0x696   : > { %v14442_v49 = vpop.f32.mrb[237].mxu0 }
 0x697   : > { %v14443_v6 = vadd.f32 %v14442_v49, %v14441_v50  ;;  %v14444_v40 = vpop.f32.mrb[238].mxu0 }
 0x698   : > { %v14445_v17 = vpop.f32.mrb[239].mxu0 }
 0x699   : > { %v10089_v58 = vadd.f32 %v14443_v6, %v20052_v57  ;;  %v14446_v32 = vadd.f32 %v14445_v17, %v14444_v40 }
 0x69a   : > { %v14553_v4 = vpop.f32.mrb[44].mxu1 }
 0x69b   : > { %v10090_v52 = vadd.f32 %v14446_v32, %v20058_v1  ;;  %v14554_v2 = vpop.f32.mrb[45].mxu1 }
 0x69c   : > { %v14555_v18 = vadd.f32 %v14554_v2, %v14553_v4  ;;  %v14556_v16 = vpop.f32.mrb[46].mxu1 }
 0x69d   : > { %v14557_v39 = vpop.f32.mrb[47].mxu1 }
 0x69e   : > { %v14558_v62 = vadd.f32 %v14557_v39, %v14556_v16  ;;  %v20236_v30 = vadd.f32 %v14555_v18, %v10089_v58 }
 0x6a0   : > { %v20238_v48 = vadd.f32 %v14558_v62, %v10090_v52 }
 0x6a4   : > { %v14447_v26 = vpop.f32.mrb[240].mxu0 }
 0x6a5   : > { %v14448_v21 = vpop.f32.mrb[241].mxu0 }
 0x6a6   : > { %v14449_v29 = vadd.f32 %v14448_v21, %v14447_v26  ;;  %v14450_v22 = vpop.f32.mrb[242].mxu0 }
 0x6a7   : > { %v14451_v12 = vpop.f32.mrb[243].mxu0 }
 0x6a8   : > { %v10091_v57 = vadd.f32 %v14449_v29, %v20064_v11  ;;  %v14452_v46 = vadd.f32 %v14451_v12, %v14450_v22  ;;  %v14559_v37 = vpop.f32.mrb[48].mxu1 }
 0x6a9   : > { %v14560_v5 = vpop.f32.mrb[49].mxu1 }
 0x6aa   : > { %v10092_v1 = vadd.f32 %v14452_v46, %v20067_v43  ;;  %v14561_v61 = vadd.f32 %v14560_v5, %v14559_v37  ;;  %v14562_v23 = vpop.f32.mrb[50].mxu1 }
 0x6ab   : > { %v14563_v28 = vpop.f32.mrb[51].mxu1 }
 0x6ac   : > { %v14564_v20 = vadd.f32 %v14563_v28, %v14562_v23  ;;  %v20242_v36 = vadd.f32 %v14561_v61, %v10091_v57 }
 0x6ae   : > { %v20244_v42 = vadd.f32 %v14564_v20, %v10092_v1 }
 0x6b1   : > { %v14453_v13 = vpop.f32.mrb[244].mxu0 }
 0x6b2   : > { %v14454_v50 = vpop.f32.mrb[245].mxu0 }
 0x6b3   : > { %v14455_v49 = vadd.f32 %v14454_v50, %v14453_v13  ;;  %v14456_v6 = vpop.f32.mrb[246].mxu0 }
 0x6b4   : > { %v14457_v40 = vpop.f32.mrb[247].mxu0 }
 0x6b5   : > { %v10093_v11 = vadd.f32 %v14455_v49, %v20069_v41  ;;  %v14458_v17 = vadd.f32 %v14457_v40, %v14456_v6 }
 0x6b6   : > { %v14565_v58 = vpop.f32.mrb[52].mxu1 }
 0x6b7   : > { %v10094_v43 = vadd.f32 %v14458_v17, %v20071_v31  ;;  %v14566_v32 = vpop.f32.mrb[53].mxu1 }
 0x6b8   : > { %v14567_v4 = vadd.f32 %v14566_v32, %v14565_v58  ;;  %v14568_v52 = vpop.f32.mrb[54].mxu1 }
 0x6b9   : > { %v14569_v2 = vpop.f32.mrb[55].mxu1 }
 0x6ba   : > { %v14570_v18 = vadd.f32 %v14569_v2, %v14568_v52  ;;  %v20248_v16 = vadd.f32 %v14567_v4, %v10093_v11 }
 0x6bc   : > { %v20250_v39 = vadd.f32 %v14570_v18, %v10094_v43 }
 0x6c1   : > { %v14459_v62 = vpop.f32.mrb[248].mxu0 }
 0x6c2   : > { %v14460_v26 = vpop.f32.mrb[249].mxu0 }
 0x6c3   : > { %v14461_v21 = vadd.f32 %v14460_v26, %v14459_v62  ;;  %v14462_v29 = vpop.f32.mrb[250].mxu0  ;;  %v20266_v26 = vld [vmem:[%s20552_s6] ss:$0 sm:$0xff] }
 0x6c4   : > { %v14463_v22 = vpop.f32.mrb[251].mxu0 }
 0x6c5   : > { %v10095_v41 = vadd.f32 %v14461_v21, %v20075_v10  ;;  %v14464_v12 = vadd.f32 %v14463_v22, %v14462_v29 }
 0x6c6   : > { %v14571_v57 = vpop.f32.mrb[56].mxu1 }
 0x6c7   : > { %v10096_v31 = vadd.f32 %v14464_v12, %v20080_v63  ;;  %v14572_v46 = vpop.f32.mrb[57].mxu1 }
 0x6c8   : > { %v14573_v37 = vadd.f32 %v14572_v46, %v14571_v57  ;;  %v14574_v1 = vpop.f32.mrb[58].mxu1 }
 0x6c9   : > { %v14575_v5 = vpop.f32.mrb[59].mxu1 }
 0x6ca   : > { %v14576_v61 = vadd.f32 %v14575_v5, %v14574_v1  ;;  %v20254_v23 = vadd.f32 %v14573_v37, %v10095_v41 }
 0x6cc   : > { %v20256_v28 = vadd.f32 %v14576_v61, %v10096_v31 }
 0x6ce   : > { %v14465_v20 = vpop.f32.mrb[252].mxu0 }
 0x6cf   : > { %v14466_v13 = vpop.f32.mrb[253].mxu0 }
 0x6d0   : > { %v14467_v50 = vadd.f32 %v14466_v13, %v14465_v20  ;;  %v14468_v49 = vpop.f32.mrb[254].mxu0 }
 0x6d1   : > { %v14469_v6 = vpop.f32.mrb[255].mxu0 }
 0x6d2   : > { %v10097_v10 = vadd.f32 %v14467_v50, %v20092_v35  ;;  %v14470_v40 = vadd.f32 %v14469_v6, %v14468_v49  ;;  %v14577_v11 = vpop.f32.mrb[60].mxu1  ;;  %v15567_v6 = vld [vmem:[#allocation12 + $0x10] sm:$0xff]  }
 0x6d3   : > { %v14578_v17 = vpop.f32.mrb[61].mxu1 }
 0x6d4   : > { %v10098_v63 = vadd.f32 %v14470_v40, %v20098_v45  ;;  %v14579_v58 = vadd.f32 %v14578_v17, %v14577_v11  ;;  %v14580_v43 = vpop.f32.mrb[62].mxu1 }
 0x6d5   : > { %v14581_v32 = vpop.f32.mrb[63].mxu1 }
 0x6d6   : > { %v14865_v4 = vpop.f32.mrb[0].mxu0  ;;  %v14582_v52 = vadd.f32 %v14581_v32, %v14580_v43  ;;  %v20260_v2 = vadd.f32 %v14579_v58, %v10097_v10 }
 0x6d7   : > { %v11607_v18 = vadd.f32 %v14865_v4, %v20162_v9  ;;  %v11478_v62 = vpop.f32.mrb[1].mxu0 }
 0x6d8   : > { %v11605_v35 = vadd.f32 %v11478_v62, %v20166_v54  ;;  %v14866_v21 = vpop.f32.mrb[2].mxu0  ;;  %v20269_v29 = vadd.f32 %v14582_v52, %v10098_v63 }
 0x6d9   : > { %v11608_v45 = vadd.f32 %v14866_v21, %v20170_v44  ;;  %v11481_v22 = vpop.f32.mrb[3].mxu0  ;;  %v11646_v12 = vadd.f32 %v20266_v26, %v11607_v18  ;;  %v15566_v44 = vld [vmem:[#allocation12 + $0x8] sm:$0xff]   ;;  %v15569_v18 = vld [vmem:[#allocation12 + $0x20] sm:$0xff]  }
 0x6da   : > { %v11606_v41 = vadd.f32 %v11481_v22, %v20175_v27  ;;  %v11644_v57 = vadd.f32 %v20266_v26, %v11605_v35  ;;  %v15570_v22 = vld [vmem:[#allocation12 + $0x28] sm:$0xff]  }
 0x6db   : > { %v11647_v9 = vadd.f32 %v20266_v26, %v11608_v45 }
 0x6dc   : > { %v11645_v31 = vadd.f32 %v20266_v26, %v11606_v41 }
 0x6dd   : > { %v20277_v46 = vpack.c.bf16 %v11647_v9, %v11646_v12 }
 0x6de   : > { %v14869_v37 = vpop.f32.mrb[4].mxu0  ;;  %v20279_v54 = vpack.c.bf16 %v11645_v31, %v11644_v57 }
 0x6df   : > { %v11611_v1 = vadd.f32 %v14869_v37, %v20178_v33  ;;  %v11494_v5 = vpop.f32.mrb[5].mxu0 }
 0x6e0   : > { %v11609_v61 = vadd.f32 %v11494_v5, %v20183_v8  ;;  %v14870_v27 = vpop.f32.mrb[6].mxu0  ;;  %14911 = vmatprep.mubr.bf16.mxu0 %v20279_v54 }
 0x6e1   : > { %v11612_v20 = vadd.f32 %v14870_v27, %v20186_v34  ;;  %v11497_v13 = vpop.f32.mrb[7].mxu0  ;;  %14912 = vmatmul.mubr.bf16.vlgmr.msra.gmra.mrb[32].mxu0 %v20277_v46  ;;  %v11650_v49 = vadd.f32 %v20266_v26, %v11611_v1  ;;  %v15571_v1 = vld [vmem:[#allocation12 + $0x30] sm:$0xff]  }
 0x6e2   : > { %v11610_v50 = vadd.f32 %v11497_v13, %v20190_v24  ;;  %14944 = vmatpush3.bf16.msra.mxu0 %v20192_v7  ;;  %v11648_v8 = vadd.f32 %v20266_v26, %v11609_v61  ;;  %v15568_v7 = vld [vmem:[#allocation12 + $0x18] sm:$0xff]  }
 0x6e3   : > { %v11651_v33 = vadd.f32 %v20266_v26, %v11612_v20  ;;  %14945 = vmatprep.subr.bf16.mxu0 %v15566_v44  ;;  %v15572_v20 = vld [vmem:[#allocation12 + $0x38] sm:$0xff]  }
 0x6e4   : > { %v11649_v10 = vadd.f32 %v20266_v26, %v11610_v50 }
 0x6e5   : > { %v20292_v40 = vpack.c.bf16 %v11651_v33, %v11650_v49 }
 0x6e6   : > { %v14873_v34 = vpop.f32.mrb[8].mxu0  ;;  %v20294_v11 = vpack.c.bf16 %v11649_v10, %v11648_v8  ;;  %14946 = vmatpush3.bf16.msra.mxu0 %v15566_v44  ;;  %v15573_v10 = vld [vmem:[#allocation12 + $0x80] sm:$0xff]  }
 0x6e7   : > { %v11615_v24 = vadd.f32 %v14873_v34, %v20194_v51  ;;  %v11510_v17 = vpop.f32.mrb[9].mxu0  ;;  %14947 = vmatprep.subr.bf16.mxu0 %v15567_v6 }
 0x6e8   : > { %v11613_v63 = vadd.f32 %v11510_v17, %v20199_v14  ;;  %v14874_v58 = vpop.f32.mrb[10].mxu0  ;;  %14915 = vmatprep.mubr.bf16.mxu0 %v20294_v11 }
 0x6e9   : > { %v11616_v43 = vadd.f32 %v14874_v58, %v20201_v38  ;;  %v11513_v32 = vpop.f32.mrb[11].mxu0  ;;  %14916 = vmatmul.mubr.bf16.gmra.mrb[36].mxu0 %v20292_v40  ;;  %v11654_v52 = vadd.f32 %v20266_v26, %v11615_v24 }
 0x6ea   : > { %v11614_v4 = vadd.f32 %v11513_v32, %v20206_v47  ;;  %14948 = vmatpush3.bf16.msra.mxu0 %v15567_v6  ;;  %v11652_v62 = vadd.f32 %v20266_v26, %v11613_v63 }
 0x6eb   : > { %v11655_v51 = vadd.f32 %v20266_v26, %v11616_v43  ;;  %14949 = vmatprep.subr.bf16.mxu0 %v15568_v7 }
 0x6ec   : > { %v11653_v14 = vadd.f32 %v20266_v26, %v11614_v4 }
 0x6ed   : > { %v20306_v35 = vpack.c.bf16 %v11655_v51, %v11654_v52 }
 0x6ee   : > { %v14877_v21 = vpop.f32.mrb[12].mxu0  ;;  %v20308_v38 = vpack.c.bf16 %v11653_v14, %v11652_v62  ;;  %14950 = vmatpush3.bf16.msra.mxu0 %v15568_v7 }
 0x6ef   : > { %v11619_v45 = vadd.f32 %v14877_v21, %v20208_v15  ;;  %v11526_v47 = vpop.f32.mrb[13].mxu0  ;;  %14951 = vmatprep.subr.bf16.mxu0 %v15569_v18 }
 0x6f0   : > { %v11617_v41 = vadd.f32 %v11526_v47, %v20210_v60  ;;  %v14878_v12 = vpop.f32.mrb[14].mxu0  ;;  %14919 = vmatprep.mubr.bf16.mxu0 %v20308_v38 }
 0x6f1   : > { %v11620_v9 = vadd.f32 %v14878_v12, %v20212_v55  ;;  %v11529_v57 = vpop.f32.mrb[15].mxu0  ;;  %14920 = vmatmul.mubr.bf16.gmra.mrb[40].mxu0 %v20306_v35  ;;  %v11658_v37 = vadd.f32 %v20266_v26, %v11619_v45 }
 0x6f2   : > { %v11618_v31 = vadd.f32 %v11529_v57, %v20215_v53  ;;  %14952 = vmatpush3.bf16.msra.mxu0 %v15569_v18  ;;  %v11656_v5 = vadd.f32 %v20266_v26, %v11617_v41 }
 0x6f3   : > { %v11659_v15 = vadd.f32 %v20266_v26, %v11620_v9  ;;  %14953 = vmatprep.subr.bf16.mxu0 %v15570_v22 }
 0x6f4   : > { %v11657_v60 = vadd.f32 %v20266_v26, %v11618_v31 }
 0x6f5   : > { %v20320_v44 = vpack.c.bf16 %v11659_v15, %v11658_v37 }
 0x6f6   : > { %v14881_v61 = vpop.f32.mrb[16].mxu0  ;;  %v20322_v55 = vpack.c.bf16 %v11657_v60, %v11656_v5  ;;  %14954 = vmatpush3.bf16.msra.mxu0 %v15570_v22 }
 0x6f7   : > { %v11623_v27 = vadd.f32 %v14881_v61, %v20224_v0  ;;  %v11542_v53 = vpop.f32.mrb[17].mxu0  ;;  %14955 = vmatprep.subr.bf16.mxu0 %v15571_v1 }
 0x6f8   : > { %v11621_v13 = vadd.f32 %v11542_v53, %v20218_v25  ;;  %v14882_v50 = vpop.f32.mrb[18].mxu0  ;;  %14923 = vmatprep.mubr.bf16.mxu0 %v20322_v55 }
 0x6f9   : > { %v11624_v49 = vadd.f32 %v14882_v50, %v20226_v3  ;;  %v11545_v33 = vpop.f32.mrb[19].mxu0  ;;  %14924 = vmatmul.mubr.bf16.gmra.mrb[44].mxu0 %v20320_v44  ;;  %v11662_v8 = vadd.f32 %v20266_v26, %v11623_v27 }
 0x6fa   : > { %v11622_v6 = vadd.f32 %v11545_v33, %v20220_v59  ;;  %14956 = vmatpush3.bf16.msra.mxu0 %v15571_v1  ;;  %v11660_v34 = vadd.f32 %v20266_v26, %v11621_v13 }
 0x6fb   : > { %v11663_v0 = vadd.f32 %v20266_v26, %v11624_v49  ;;  %14957 = vmatprep.subr.bf16.mxu0 %v15572_v20  ;;  %v12542_v49 = vld [vmem:[%s16138_s29 + $0xc0] sm:$0xff] }
 0x6fc   : > { %v11661_v25 = vadd.f32 %v20266_v26, %v11622_v6 }
 0x6fd   : > { %v20334_v24 = vpack.c.bf16 %v11663_v0, %v11662_v8  ;;  %v12545_v8 = vld [vmem:[%s16138_s29 + $0xd8] sm:$0xff] }
 0x6fe   : > { %v14885_v17 = vpop.f32.mrb[20].mxu0  ;;  %v20336_v3 = vpack.c.bf16 %v11661_v25, %v11660_v34  ;;  %14958 = vmatpush3.bf16.msra.mxu0 %v15572_v20  ;;  %v12543_v25 = vld [vmem:[%s16138_s29 + $0xc8] sm:$0xff] }
 0x6ff   : > { %v11627_v7 = vadd.f32 %v14885_v17, %v20236_v30  ;;  %v11558_v59 = vpop.f32.mrb[21].mxu0  ;;  %14983 = vmatprep.subr.bf16.mxu0 %v15573_v10 }
 0x700   : > { %v11625_v63 = vadd.f32 %v11558_v59, %v20230_v56  ;;  %v14886_v58 = vpop.f32.mrb[22].mxu0  ;;  %14927 = vmatprep.mubr.bf16.mxu0 %v20336_v3 }
 0x701   : > { %v11628_v43 = vadd.f32 %v14886_v58, %v20238_v48  ;;  %v11561_v32 = vpop.f32.mrb[23].mxu0  ;;  %14928 = vmatmul.mubr.bf16.gmra.mrb[48].mxu0 %v20334_v24  ;;  %v11666_v52 = vadd.f32 %v20266_v26, %v11627_v7 }
 0x702   : > { %v11626_v4 = vadd.f32 %v11561_v32, %v20232_v19  ;;  %v11664_v30 = vadd.f32 %v20266_v26, %v11625_v63 }
 0x703   : > { %v11667_v51 = vadd.f32 %v20266_v26, %v11628_v43 }
 0x704   : > { %v11665_v18 = vadd.f32 %v20266_v26, %v11626_v4  ;;  %v12548_v4 = vld [vmem:[%s16138_s29 + $0xf0] sm:$0xff] }
 0x705   : > { %v20348_v62 = vpack.c.bf16 %v11667_v51, %v11666_v52 }
 0x706   : > { %v14889_v56 = vpop.f32.mrb[24].mxu0  ;;  %v20350_v14 = vpack.c.bf16 %v11665_v18, %v11664_v30  ;;  %v12546_v30 = vld [vmem:[%s16138_s29 + $0xe0] sm:$0xff] }
 0x707   : > { %v11631_v48 = vadd.f32 %v14889_v56, %v20248_v16  ;;  %v11574_v21 = vpop.f32.mrb[25].mxu0  ;;  %v12549_v56 = vld [vmem:[%s16138_s29 + $0xf8] sm:$0xff] }
 0x708   : > { %v11629_v45 = vadd.f32 %v11574_v21, %v20242_v36  ;;  %v14890_v47 = vpop.f32.mrb[26].mxu0  ;;  %14931 = vmatprep.mubr.bf16.mxu0 %v20350_v14 }
 0x709   : > { %v11632_v19 = vadd.f32 %v14890_v47, %v20250_v39  ;;  %v11577_v22 = vpop.f32.mrb[27].mxu0  ;;  %14932 = vmatmul.mubr.bf16.gmra.mrb[52].mxu0 %v20348_v62  ;;  %v11670_v12 = vadd.f32 %v20266_v26, %v11631_v48 }
 0x70a   : > { %v11630_v41 = vadd.f32 %v11577_v22, %v20244_v42  ;;  %v11668_v57 = vadd.f32 %v20266_v26, %v11629_v45  ;;  %v12547_v45 = vld [vmem:[%s16138_s29 + $0xe8] sm:$0xff] }
 0x70b   : > { %v11671_v9 = vadd.f32 %v20266_v26, %v11632_v19 }
 0x70c   : > { %v11669_v16 = vadd.f32 %v20266_v26, %v11630_v41 }
 0x70d   : > { %v11689_v31 = vpack.c.bf16 %v11671_v9, %v11670_v12 }
 0x70e   : > { %v14893_v36 = vpop.f32.mrb[28].mxu0  ;;  %v11688_v37 = vpack.c.bf16 %v11669_v16, %v11668_v57 }
 0x70f   : > { %v11635_v15 = vadd.f32 %v14893_v36, %v20260_v2  ;;  %v11590_v1 = vpop.f32.mrb[29].mxu0  ;;  %v12520_v36 = vld [vmem:[%s16138_s29 + $0x10] sm:$0xff] }
 0x710   : > { %v11633_v39 = vadd.f32 %v11590_v1, %v20254_v23  ;;  %v14894_v5 = vpop.f32.mrb[30].mxu0  ;;  %14935 = vmatprep.mubr.bf16.mxu0 %v11688_v37  ;;  %v15574_v23 = vld [vmem:[#allocation12 + $0x88] sm:$0xff]   ;;  %v12518_v1 = vld [vmem:[%s16138_s29] sm:$0xff] }
 0x711   : > { %v11636_v42 = vadd.f32 %v14894_v5, %v20269_v29  ;;  %v11593_v60 = vpop.f32.mrb[31].mxu0  ;;  %14936 = vmatmul.mubr.bf16.gmra.mrb[56].mxu0 %v11689_v31  ;;  %v11674_v27 = vadd.f32 %v20266_v26, %v11635_v15  ;;  %v15576_v29 = vld [vmem:[#allocation12 + $0x98] sm:$0xff]  }
 0x712   : > { %v11634_v61 = vadd.f32 %v11593_v60, %v20256_v28  ;;  %v11672_v20 = vadd.f32 %v20266_v26, %v11633_v39  ;;  %v15575_v28 = vld [vmem:[#allocation12 + $0x90] sm:$0xff]  }
 0x713   : > { %v11675_v53 = vadd.f32 %v20266_v26, %v11636_v42  ;;  %v12521_v42 = vld [vmem:[%s16138_s29 + $0x18] sm:$0xff] }
 0x714   : > { %v11673_v13 = vadd.f32 %v20266_v26, %v11634_v61  ;;  %v15577_v26 = vld [vmem:[#allocation12 + $0xa0] sm:$0xff]  }
 0x715   : > { %v11691_v2 = vpack.c.bf16 %v11675_v53, %v11674_v27  ;;  %v12519_v53 = vld [vmem:[%s16138_s29 + $0x8] sm:$0xff] }
 0x716   : > { %v11690_v50 = vpack.c.bf16 %v11673_v13, %v11672_v20 }
 0x718   : > { %14939 = vmatprep.mubr.bf16.mxu0 %v11690_v50 }
 0x719   : > { %14940 = vmatmul.mubr.bf16.gmra.mrb[60].mxu0 %v11691_v2 }
 0x71a   : > { %14959 = vmatprep.mubr.bf16.mxu0 %v20279_v54  ;;  %v15578_v54 = vld [vmem:[#allocation12 + $0xa8] sm:$0xff]  }
 0x721   : > { %14960 = vmatmul.mubr.bf16.vlgmr.msra.gmra.mrb[40].mxu0 %v20277_v46  ;;  %v15579_v46 = vld [vmem:[#allocation12 + $0xb0] sm:$0xff]  }
 0x722   : > { %14963 = vmatprep.mubr.bf16.mxu0 %v20294_v11  ;;  %14984 = vmatpush3.bf16.msra.mxu0 %v15573_v10  ;;  %v15580_v11 = vld [vmem:[#allocation12 + $0xb8] sm:$0xff]  }
 0x723   : > { %14985 = vmatprep.subr.bf16.mxu0 %v15574_v23 }
 0x726   : > { %14986 = vmatpush3.bf16.msra.mxu0 %v15574_v23 }
 0x727   : > { %14987 = vmatprep.subr.bf16.mxu0 %v15575_v28 }
 0x729   : > { %14964 = vmatmul.mubr.bf16.gmra.mrb[44].mxu0 %v20292_v40  ;;  %v20393_v40 = vld [vmem:[%s20554_s8] ss:$0 sm:$0xff] }
 0x72a   : > { %14967 = vmatprep.mubr.bf16.mxu0 %v20308_v38  ;;  %14988 = vmatpush3.bf16.msra.mxu0 %v15575_v28 }
 0x72b   : > { %14989 = vmatprep.subr.bf16.mxu0 %v15576_v29 }
 0x72e   : > { %14990 = vmatpush3.bf16.msra.mxu0 %v15576_v29 }
 0x72f   : > { %14991 = vmatprep.subr.bf16.mxu0 %v15577_v26 }
 0x731   : > { %14968 = vmatmul.mubr.bf16.gmra.mrb[48].mxu0 %v20306_v35 }
 0x732   : > { %14971 = vmatprep.mubr.bf16.mxu0 %v20322_v55  ;;  %14992 = vmatpush3.bf16.msra.mxu0 %v15577_v26 }
 0x733   : > { %14993 = vmatprep.subr.bf16.mxu0 %v15578_v54 }
 0x736   : > { %14994 = vmatpush3.bf16.msra.mxu0 %v15578_v54 }
 0x737   : > { %14995 = vmatprep.subr.bf16.mxu0 %v15579_v46 }
 0x739   : > { %14972 = vmatmul.mubr.bf16.gmra.mrb[52].mxu0 %v20320_v44 }
 0x73a   : > { %14975 = vmatprep.mubr.bf16.mxu0 %v20336_v3  ;;  %14996 = vmatpush3.bf16.msra.mxu0 %v15579_v46  ;;  %v12524_v46 = vld [vmem:[%s16138_s29 + $0x30] sm:$0xff] }
 0x73b   : > { %14997 = vmatprep.subr.bf16.mxu0 %v15580_v11 }
 0x73e   : > { %14998 = vmatpush3.bf16.msra.mxu0 %v15580_v11 }
 0x741   : > { %14976 = vmatmul.mubr.bf16.gmra.mrb[56].mxu0 %v20334_v24 }
 0x742   : > { %14979 = vmatprep.mubr.bf16.mxu0 %v20350_v14 }
 0x749   : > { %14980 = vmatmul.mubr.bf16.gmra.mrb[60].mxu0 %v20348_v62 }
 0x74a   : > { %14999 = vmatprep.mubr.bf16.mxu0 %v20308_v38  ;;  %v12544_v38 = vld [vmem:[%s16138_s29 + $0xd0] sm:$0xff] }
 0x751   : > { %15000 = vmatmul.mubr.bf16.vlgmr.msra.gmra.mrb[32].mxu0 %v20306_v35 }
 0x752   : > { %15003 = vmatprep.mubr.bf16.mxu0 %v20322_v55 }
 0x759   : > { %15004 = vmatmul.mubr.bf16.gmra.mrb[36].mxu0 %v20320_v44 }
 0x75a   : > { %15007 = vmatprep.mubr.bf16.mxu0 %v20336_v3 }
 0x761   : > { %15008 = vmatmul.mubr.bf16.gmra.mrb[40].mxu0 %v20334_v24 }
 0x762   : > { %15011 = vmatprep.mubr.bf16.mxu0 %v20350_v14 }
 0x769   : > { %15012 = vmatmul.mubr.bf16.gmra.mrb[44].mxu0 %v20348_v62 }
 0x76a   : > { %15015 = vmatprep.mubr.bf16.mxu0 %v11688_v37 }
 0x771   : > { %15016 = vmatmul.mubr.bf16.gmra.mrb[48].mxu0 %v11689_v31 }
 0x772   : > { %15019 = vmatprep.mubr.bf16.mxu0 %v11690_v50 }
 0x779   : > { %15020 = vmatmul.mubr.bf16.gmra.mrb[52].mxu0 %v11691_v2 }
 0x814   : > { %v14977_v35 = vpop.f32.mrb[56].mxu0 }
 0x815   : > { %v15095_v44 = vadd.f32 %v14977_v35, %v20393_v40  ;;  %v12142_v55 = vpop.f32.mrb[57].mxu0 }
 0x816   : > { %v15096_v33 = vadd.f32 %v20393_v40, %v12142_v55  ;;  %v14978_v6 = vpop.f32.mrb[58].mxu0 }
 0x817   : > { %v12576_v0 = vadd.f32 %v15095_v44, %v12544_v38  ;;  %v15097_v10 = vadd.f32 %v14978_v6, %v20393_v40  ;;  %v12145_v34 = vpop.f32.mrb[59].mxu0  ;;  %v12522_v38 = vld [vmem:[%s16138_s29 + $0x20] sm:$0xff] }
 0x818   : > { %v12574_v24 = vadd.f32 %v15096_v33, %v12542_v49  ;;  %v15098_v17 = vadd.f32 %v20393_v40, %v12145_v34  ;;  %v12525_v49 = vld [vmem:[%s16138_s29 + $0x38] sm:$0xff] }
 0x819   : > { %v12608_v3 = vmax.f32 %v12576_v0, 0.0  ;;  %v12577_v7 = vadd.f32 %v15097_v10, %v12545_v8  ;;  %v12523_v0 = vld [vmem:[%s16138_s29 + $0x28] sm:$0xff] }
 0x81a   : > { %v12606_v59 = vmax.f32 %v12574_v24, 0.0  ;;  %v12575_v63 = vadd.f32 %v15098_v17, %v12543_v25 }
 0x81b   : > { %12640 = vst [vmem:[%s20405_s30 + $0xd0] sm:$0xff] %v12608_v3  ;;  %v12609_v58 = vmax.f32 %v12577_v7, 0.0 }
 0x81c   : > { %12638 = vst [vmem:[%s20405_s30 + $0xc0] sm:$0xff] %v12606_v59  ;;  %v12607_v43 = vmax.f32 %v12575_v63, 0.0  ;;  %v14981_v32 = vpop.f32.mrb[60].mxu0 }
 0x81d   : > { %12641 = vst [vmem:[%s20405_s30 + $0xd8] sm:$0xff] %v12609_v58  ;;  %v15099_v52 = vadd.f32 %v14981_v32, %v20393_v40  ;;  %v12158_v51 = vpop.f32.mrb[61].mxu0  ;;  %v12528_v58 = vld [vmem:[%s16138_s29 + $0x50] sm:$0xff] }
 0x81e   : > { %12639 = vst [vmem:[%s20405_s30 + $0xc8] sm:$0xff] %v12607_v43  ;;  %v15100_v18 = vadd.f32 %v20393_v40, %v12158_v51  ;;  %v14982_v62 = vpop.f32.mrb[62].mxu0 }
 0x81f   : > { %v12580_v14 = vadd.f32 %v15099_v52, %v12548_v4  ;;  %v15101_v48 = vadd.f32 %v14982_v62, %v20393_v40  ;;  %v12161_v21 = vpop.f32.mrb[63].mxu0  ;;  %v12526_v4 = vld [vmem:[%s16138_s29 + $0x40] sm:$0xff] }
 0x820   : > { %v12578_v47 = vadd.f32 %v15100_v18, %v12546_v30  ;;  %v15102_v19 = vadd.f32 %v20393_v40, %v12161_v21  ;;  %v12529_v30 = vld [vmem:[%s16138_s29 + $0x58] sm:$0xff] }
 0x821   : > { %v12612_v22 = vmax.f32 %v12580_v14, 0.0  ;;  %v12581_v41 = vadd.f32 %v15101_v48, %v12549_v56  ;;  %v12527_v14 = vld [vmem:[%s16138_s29 + $0x48] sm:$0xff] }
 0x822   : > { %v12610_v12 = vmax.f32 %v12578_v47, 0.0  ;;  %v12579_v9 = vadd.f32 %v15102_v19, %v12547_v45 }
 0x823   : > { %12644 = vst [vmem:[%s20405_s30 + $0xf0] sm:$0xff] %v12612_v22  ;;  %v12613_v57 = vmax.f32 %v12581_v41, 0.0 }
 0x824   : > { %12642 = vst [vmem:[%s20405_s30 + $0xe0] sm:$0xff] %v12610_v12  ;;  %v12611_v16 = vmax.f32 %v12579_v9, 0.0  ;;  %v15001_v31 = vpop.f32.mrb[32].mxu0 }
 0x825   : > { %12645 = vst [vmem:[%s20405_s30 + $0xf8] sm:$0xff] %v12613_v57  ;;  %v15071_v37 = vadd.f32 %v15001_v31, %v20393_v40  ;;  %v12343_v15 = vpop.f32.mrb[33].mxu0  ;;  %v12532_v57 = vld [vmem:[%s16138_s29 + $0x70] sm:$0xff] }
 0x826   : > { %12643 = vst [vmem:[%s20405_s30 + $0xe8] sm:$0xff] %v12611_v16  ;;  %v15072_v39 = vadd.f32 %v20393_v40, %v12343_v15  ;;  %v15002_v5 = vpop.f32.mrb[34].mxu0 }
 0x827   : > { %v12552_v60 = vadd.f32 %v15071_v37, %v12520_v36  ;;  %v15073_v61 = vadd.f32 %v15002_v5, %v20393_v40  ;;  %v12346_v27 = vpop.f32.mrb[35].mxu0  ;;  %v12530_v36 = vld [vmem:[%s16138_s29 + $0x60] sm:$0xff] }
 0x828   : > { %v12550_v20 = vadd.f32 %v15072_v39, %v12518_v1  ;;  %v15074_v13 = vadd.f32 %v20393_v40, %v12346_v27  ;;  %v12533_v1 = vld [vmem:[%s16138_s29 + $0x78] sm:$0xff] }
 0x829   : > { %v12584_v2 = vmax.f32 %v12552_v60, 0.0  ;;  %v12553_v50 = vadd.f32 %v15073_v61, %v12521_v42  ;;  %v12531_v60 = vld [vmem:[%s16138_s29 + $0x68] sm:$0xff] }
 0x82a   : > { %v12582_v23 = vmax.f32 %v12550_v20, 0.0  ;;  %v12551_v28 = vadd.f32 %v15074_v13, %v12519_v53 }
 0x82b   : > { %12616 = vst [vmem:[%s20405_s30 + $0x10] sm:$0xff] %v12584_v2  ;;  %v12585_v29 = vmax.f32 %v12553_v50, 0.0 }
 0x82c   : > { %12614 = vst [vmem:[%s20405_s30] sm:$0xff] %v12582_v23  ;;  %v12583_v26 = vmax.f32 %v12551_v28, 0.0  ;;  %v15005_v54 = vpop.f32.mrb[36].mxu0 }
 0x82d   : > { %12617 = vst [vmem:[%s20405_s30 + $0x18] sm:$0xff] %v12585_v29  ;;  %v15075_v11 = vadd.f32 %v15005_v54, %v20393_v40  ;;  %v12359_v35 = vpop.f32.mrb[37].mxu0  ;;  %v12536_v29 = vld [vmem:[%s16138_s29 + $0x90] sm:$0xff] }
 0x82e   : > { %12615 = vst [vmem:[%s20405_s30 + $0x8] sm:$0xff] %v12583_v26  ;;  %v15076_v44 = vadd.f32 %v20393_v40, %v12359_v35  ;;  %v15006_v55 = vpop.f32.mrb[38].mxu0 }
 0x82f   : > { %v12556_v33 = vadd.f32 %v15075_v11, %v12524_v46  ;;  %v15077_v6 = vadd.f32 %v15006_v55, %v20393_v40  ;;  %v12362_v8 = vpop.f32.mrb[39].mxu0  ;;  %v12534_v46 = vld [vmem:[%s16138_s29 + $0x80] sm:$0xff] }
 0x830   : > { %v12554_v10 = vadd.f32 %v15076_v44, %v12522_v38  ;;  %v15078_v34 = vadd.f32 %v20393_v40, %v12362_v8  ;;  %v12537_v38 = vld [vmem:[%s16138_s29 + $0x98] sm:$0xff] }
 0x831   : > { %v12588_v25 = vmax.f32 %v12556_v33, 0.0  ;;  %v12557_v24 = vadd.f32 %v15077_v6, %v12525_v49  ;;  %v12535_v33 = vld [vmem:[%s16138_s29 + $0x88] sm:$0xff] }
 0x832   : > { %v12586_v17 = vmax.f32 %v12554_v10, 0.0  ;;  %v12555_v3 = vadd.f32 %v15078_v34, %v12523_v0 }
 0x833   : > { %12620 = vst [vmem:[%s20405_s30 + $0x30] sm:$0xff] %v12588_v25  ;;  %v12589_v7 = vmax.f32 %v12557_v24, 0.0 }
 0x834   : > { %12618 = vst [vmem:[%s20405_s30 + $0x20] sm:$0xff] %v12586_v17  ;;  %v12587_v59 = vmax.f32 %v12555_v3, 0.0  ;;  %v15009_v63 = vpop.f32.mrb[40].mxu0 }
 0x835   : > { %12621 = vst [vmem:[%s20405_s30 + $0x38] sm:$0xff] %v12589_v7  ;;  %v15079_v43 = vadd.f32 %v15009_v63, %v20393_v40  ;;  %v12375_v32 = vpop.f32.mrb[41].mxu0  ;;  %v12540_v7 = vld [vmem:[%s16138_s29 + $0xb0] sm:$0xff] }
 0x836   : > { %12619 = vst [vmem:[%s20405_s30 + $0x28] sm:$0xff] %v12587_v59  ;;  %v15080_v52 = vadd.f32 %v20393_v40, %v12375_v32  ;;  %v15010_v51 = vpop.f32.mrb[42].mxu0 }
 0x837   : > { %v12560_v18 = vadd.f32 %v15079_v43, %v12528_v58  ;;  %v15081_v62 = vadd.f32 %v15010_v51, %v20393_v40  ;;  %v12378_v56 = vpop.f32.mrb[43].mxu0  ;;  %v12538_v58 = vld [vmem:[%s16138_s29 + $0xa0] sm:$0xff] }
 0x838   : > { %v12558_v48 = vadd.f32 %v15080_v52, %v12526_v4  ;;  %v15082_v21 = vadd.f32 %v20393_v40, %v12378_v56  ;;  %v12541_v4 = vld [vmem:[%s16138_s29 + $0xb8] sm:$0xff] }
 0x839   : > { %v12592_v45 = vmax.f32 %v12560_v18, 0.0  ;;  %v12561_v47 = vadd.f32 %v15081_v62, %v12529_v30  ;;  %v12539_v18 = vld [vmem:[%s16138_s29 + $0xa8] sm:$0xff]  ;;  %s15770_s29 = scalar_lea.vmem %s20499_s26, 4096 }
 0x83a   : > { %v12590_v19 = vmax.f32 %v12558_v48, 0.0  ;;  %v12559_v22 = vadd.f32 %v15082_v21, %v12527_v14  ;;  %p15771_p3 = scmp.ne.s32.totalorder %s20499_s26, %s15770_s29  ;;  %p15778_p1 = scmp.lt.s32.totalorder %s15776_s16, %s15770_s29 }
 0x83b   : > { %12624 = vst [vmem:[%s20405_s30 + $0x50] sm:$0xff] %v12592_v45  ;;  %v12593_v41 = vmax.f32 %v12561_v47, 0.0 }
 0x83c   : > { %12622 = vst [vmem:[%s20405_s30 + $0x40] sm:$0xff] %v12590_v19  ;;  %v12591_v12 = vmax.f32 %v12559_v22, 0.0  ;;  %v15013_v9 = vpop.f32.mrb[44].mxu0  ;;  %p15772_p5 = pnand %p15771_p3, %p16080_p10  ;;  %p15779_p2 = por %p15778_p1, %p15777_p12 }
 0x83d   : > { %12625 = vst [vmem:[%s20405_s30 + $0x58] sm:$0xff] %v12593_v41  ;;  %v15083_v16 = vadd.f32 %v15013_v9, %v20393_v40  ;;  %v12391_v31 = vpop.f32.mrb[45].mxu0 }
 0x83e   : > { %12623 = vst [vmem:[%s20405_s30 + $0x48] sm:$0xff] %v12591_v12  ;;  %v15084_v37 = vadd.f32 %v20393_v40, %v12391_v31  ;;  %v15014_v15 = vpop.f32.mrb[46].mxu0  ;;  %p15773_p7 = pneg %p15772_p5 }
 0x83f   : > { %v12564_v39 = vadd.f32 %v15083_v16, %v12532_v57  ;;  %v15085_v5 = vadd.f32 %v15014_v15, %v20393_v40  ;;  %v12394_v42 = vpop.f32.mrb[47].mxu0 }
 0x840   : > { %v12562_v61 = vadd.f32 %v15084_v37, %v12530_v36  ;;  %v15086_v27 = vadd.f32 %v20393_v40, %v12394_v42  ;;  %p15780_p13 = pnand %p15779_p2, %p15773_p7 }
 0x841   : > { %v12596_v53 = vmax.f32 %v12564_v39, 0.0  ;;  %v12565_v20 = vadd.f32 %v15085_v5, %v12533_v1 }
 0x842   : > { %v12594_v13 = vmax.f32 %v12562_v61, 0.0  ;;  %v12563_v2 = vadd.f32 %v15086_v27, %v12531_v60 }
 0x843   : > { %12628 = vst [vmem:[%s20405_s30 + $0x70] sm:$0xff] %v12596_v53  ;;  %v12597_v50 = vmax.f32 %v12565_v20, 0.0 }
 0x844   : > { %12626 = vst [vmem:[%s20405_s30 + $0x60] sm:$0xff] %v12594_v13  ;;  %v12595_v23 = vmax.f32 %v12563_v2, 0.0  ;;  %v15017_v28 = vpop.f32.mrb[48].mxu0 }
 0x845   : > { %12629 = vst [vmem:[%s20405_s30 + $0x78] sm:$0xff] %v12597_v50  ;;  %v15087_v26 = vadd.f32 %v15017_v28, %v20393_v40  ;;  %v12407_v54 = vpop.f32.mrb[49].mxu0 }
 0x846   : > { %12627 = vst [vmem:[%s20405_s30 + $0x68] sm:$0xff] %v12595_v23  ;;  %v15088_v11 = vadd.f32 %v20393_v40, %v12407_v54  ;;  %v15018_v35 = vpop.f32.mrb[50].mxu0 }
 0x847   : > { %v12568_v44 = vadd.f32 %v15087_v26, %v12536_v29  ;;  %v15089_v55 = vadd.f32 %v15018_v35, %v20393_v40  ;;  %v12410_v49 = vpop.f32.mrb[51].mxu0 }
 0x848   : > { %v12566_v6 = vadd.f32 %v15088_v11, %v12534_v46  ;;  %v15090_v8 = vadd.f32 %v20393_v40, %v12410_v49 }
 0x849   : > { %v12600_v0 = vmax.f32 %v12568_v44, 0.0  ;;  %v12569_v10 = vadd.f32 %v15089_v55, %v12537_v38 }
 0x84a   : > { %v12598_v34 = vmax.f32 %v12566_v6, 0.0  ;;  %v12567_v25 = vadd.f32 %v15090_v8, %v12535_v33 }
 0x84b   : > { %12632 = vst [vmem:[%s20405_s30 + $0x90] sm:$0xff] %v12600_v0  ;;  %v12601_v24 = vmax.f32 %v12569_v10, 0.0 }
 0x84c   : > { %12630 = vst [vmem:[%s20405_s30 + $0x80] sm:$0xff] %v12598_v34  ;;  %v12599_v17 = vmax.f32 %v12567_v25, 0.0  ;;  %v15021_v3 = vpop.f32.mrb[52].mxu0 }
 0x84d   : > { %12633 = vst [vmem:[%s20405_s30 + $0x98] sm:$0xff] %v12601_v24  ;;  %v15091_v59 = vadd.f32 %v15021_v3, %v20393_v40  ;;  %v12423_v63 = vpop.f32.mrb[53].mxu0 }
 0x84e   : > { %12631 = vst [vmem:[%s20405_s30 + $0x88] sm:$0xff] %v12599_v17  ;;  %v15092_v43 = vadd.f32 %v20393_v40, %v12423_v63  ;;  %v15022_v32 = vpop.f32.mrb[54].mxu0 }
 0x84f   : > { %v12572_v52 = vadd.f32 %v15091_v59, %v12540_v7  ;;  %v15093_v51 = vadd.f32 %v15022_v32, %v20393_v40  ;;  %v12426_v30 = vpop.f32.mrb[55].mxu0 }
 0x850   : > { %v12570_v62 = vadd.f32 %v15092_v43, %v12538_v58  ;;  %v15094_v56 = vadd.f32 %v20393_v40, %v12426_v30 }
 0x851   : > { %v12604_v14 = vmax.f32 %v12572_v52, 0.0  ;;  %v12573_v48 = vadd.f32 %v15093_v51, %v12541_v4 }
 0x852   : > { %v12602_v21 = vmax.f32 %v12570_v62, 0.0  ;;  %v12571_v45 = vadd.f32 %v15094_v56, %v12539_v18 }
 0x853   : > { %12636 = vst [vmem:[%s20405_s30 + $0xb0] sm:$0xff] %v12604_v14  ;;  %v12605_v47 = vmax.f32 %v12573_v48, 0.0 }
 0x854   : > { %12634 = vst [vmem:[%s20405_s30 + $0xa0] sm:$0xff] %v12602_v21  ;;  %v12603_v40 = vmax.f32 %v12571_v45, 0.0 }
 0x855   : > { %12637 = vst [vmem:[%s20405_s30 + $0xb8] sm:$0xff] %v12605_v47 }
 0x856   : > { %12635 = vst [vmem:[%s20405_s30 + $0xa8] sm:$0xff] %v12603_v40 }
 0x857   : > { %15783 = shalt.err (!%p15780_p13)
}
 0x858   : > { %s15784_s23 = scalar_lea.hbm %s20497_s19, 4096  ;;  %s15788_s30 = scalar_lea.hbm %s20883_s21, 8192 }
 0x859   : > { %p15785_p9 = scmp.ne.s32.totalorder %s20497_s19, %s15784_s23  ;;  %p15789_p4 = scmp.lt.u32.totalorder %s20497_s19, %s20883_s21 }
 0x85a   : > { %p15790_p8 = scmp.lt.u32.totalorder %s15788_s30, %s15784_s23  ;;  %p15792_p3 = scmp.lt.u32.totalorder %s15784_s23, %s20497_s19 }
 0x85b   : > { %p15786_p0 = pnand %p15785_p9, %p16080_p10 }
 0x85c   : > { %p15791_p6 = por %p15790_p8, %p15789_p4 }
 0x85d   : > { %p15787_p11 = pneg %p15786_p0 }
 0x85e   : > { %p15793_p5 = por %p15792_p3, %p15791_p6 }
 0x860   : > { %p15794_p7 = pnand %p15793_p5, %p15787_p11 }
 0x862   : > { %15797 = shalt.err (!%p15794_p7)
}
 0x863   : > { %s15857_s17 = smov 128   ;;  %s15858_s29 = smov 8  }
 0x864   : > { %15217 = dma.vmem_to_hbm [thread:$0]  (%p16080_p10), %s20499_s26, 4096, %s20497_s19, %s12647_s13, %s15857_s17, %s15857_s17, %s15858_s29  }
 0x865 PF: > { %s20884_s24 = sld [smem:[#allocation18_spill]]  ;;  %s20885_s22 = sld [smem:[#allocation19_spill]] }
 0x866   : > { %p20887_p1 = scmp.ge.s32.totalorder %s15844_s12, 2 }
 0x86b   : > { %s12675_s16 = sand.u32 1, %s20884_s24   ;;  %p20886_p12 = scmp.ne.s32.totalorder %s20885_s22, 0 }
 0x86c   : > { %s12676_s23 = scalar_lea.sflag [#allocation6], %s12675_s16 }
 0x86d   : > { %p15237_p2 = pnand %p20887_p1, %p20886_p12 }
 0x86f   : > { %15827 = dma.done.wait (!%p15237_p2), %s12676_s23, 4096  }
 0x870   : > { %15829 = vsyncadd (!%p15237_p2), %s12676_s23, 4294963200  ;;  %p24_p13 = scmp.ge.s32.totalorder %s16070_s14, 4   ;;  %s20888_s30 = smov %s15836_s10 }
 0x871   : > { %s20889_s10 = smov %s15840_s11  ;;  %s20890_s11 = smov %s16086_s28 }
 0x872   : > { %s20891_s12 = smov %s16070_s14  ;;  %26 = sbr.rel (!%p24_p13) target bundleno = 9 (0x9), region = 120 }
 0x879   :  { %12681 = vsyncpa [#allocation5], 1 }
 0x87a   :  { %12683 = vsyncpa [#allocation5 + $0x1], 1 }
 0x87b   :  { %12684 = vsyncpa [#allocation8], 1 }
 0x87c   :  { %12685 = vsyncpa [#allocation11], 1 }
 0x87d   :  { %12686 = vsyncpa [#allocation6], 1 }
 0x87e   :  { %12688 = vsyncpa [#allocation6 + $0x1], 1 }

</bundles_post_ra>
